<compile_context>
chip_gen: v7x
topology: tpu7x:2x2x1
jax: 0.10.0
libtpu: 0.0.40
codegen_flags: <defaults>
</compile_context>

<pallas_src>
import functools

import numpy as np
import jax
import jax.numpy as jnp
from jax import lax
from jax.experimental import pallas as pl
from jax.experimental.pallas import tpu as pltpu


def _round_up(x, m):
    return (x + m - 1) // m * m


def _next_pow2(x):
    return 1 << (int(x) - 1).bit_length()


_PARALLEL_1D = pltpu.CompilerParams(dimension_semantics=("parallel",))


# --------------------------------------------------------------------------
# Kernel 1: conv1 (+ bias + ReLU) as one im2col matmul per image.
# --------------------------------------------------------------------------
def _mm_bias_relu_kernel(p_ref, w_ref, b_ref, o_ref):
    acc = jnp.dot(p_ref[...], w_ref[...], preferred_element_type=jnp.float32)
    o_ref[...] = jnp.maximum(acc + b_ref[...], 0.0).astype(o_ref.dtype)


def _im2col_conv1(img, kd, kh, kw):
    """img: (1, D, H, W) single-channel f32 -> (Do*Ho*Wo, kd*kh*kw) patches."""
    x = img[0]
    pd, ph, pw = (kd - 1) // 2, (kh - 1) // 2, (kw - 1) // 2   # PyTorch (k-1)//2
    xp = jnp.pad(x, ((pd, pd), (ph, ph), (pw, pw)))
    dp, hp, wp = xp.shape
    do, ho, wo = dp - kd + 1, hp - kh + 1, wp - kw + 1
    cols = [xp[a:a + do, b:b + ho, c:c + wo]
            for a in range(kd) for b in range(kh) for c in range(kw)]
    patches = jnp.stack(cols, axis=-1).reshape(do * ho * wo, kd * kh * kw)
    return patches, (do, ho, wo)


def conv1_relu(img1, img2, w, b):
    """Conv3d(1, 32, k1) + ReLU on both images, one pallas_call, grid=(2,)."""
    cout, cin, kd, kh, kw = w.shape
    assert cin == 1
    p1, dims = _im2col_conv1(img1, kd, kh, kw)
    p2, _ = _im2col_conv1(img2, kd, kh, kw)
    do, ho, wo = dims
    m, k = p1.shape
    mp, kp = _round_up(m, 16), _round_up(k, 128)

    patches = jnp.stack([p1, p2], axis=0)
    patches = jnp.pad(patches, ((0, 0), (0, mp - m), (0, kp - k))).astype(jnp.bfloat16)
    wmat = jnp.pad(w.reshape(cout, k).T, ((0, kp - k), (0, 0))).astype(jnp.bfloat16)
    brow = b.reshape(1, cout).astype(jnp.float32)

    out = pl.pallas_call(
        _mm_bias_relu_kernel,
        out_shape=jax.ShapeDtypeStruct((2, mp, cout), jnp.bfloat16),
        grid=(2,),
        in_specs=[pl.BlockSpec((None, mp, kp), lambda i: (i, 0, 0)),
                  pl.BlockSpec((kp, cout), lambda i: (0, 0)),
                  pl.BlockSpec((1, cout), lambda i: (0, 0))],
        out_specs=pl.BlockSpec((None, mp, cout), lambda i: (i, 0, 0)),
        compiler_params=_PARALLEL_1D,
    )(patches, wmat, brow)
    return out[:, :m, :].reshape(2, do, ho, wo, cout)


# --------------------------------------------------------------------------
# XLA glue: MaxPool3d + ring/alignment pad + w-tap folding (stays bf16).
# --------------------------------------------------------------------------
def maxpool3d(x, pool):
    """x: (B, D, H, W, C); MaxPool3d(pool), stride=pool, floor mode."""
    pd, ph, pw = pool
    if (pd, ph, pw) == (1, 1, 1):
        return x
    b, d, h, w, c = x.shape
    d2, h2, w2 = d // pd, h // ph, w // pw
    xc = x[:, :d2 * pd, :h2 * ph, :w2 * pw, :]
    return xc.reshape(b, d2, pd, h2, ph, w2, pw, c).max(axis=(2, 4, 6))


def _pad_flatten_fold(x):
    """x: (B, D, H, W, C) bf16 -> w-folded, ring-padded flat slab for a 3x3x3 conv.

    The innermost W is padded to a power of two >= 16 so every (d, h) tap offset
    is a multiple of 16 rows (aligned even for packed bf16 sublanes).
    Returns xf: (B, Dp*Hp*Wp, 3*C) bf16 and the padded-grid dims.
    """
    b, d, h, w, c = x.shape
    dp, hp = d + 2, h + 2
    wp = max(16, _next_pow2(w + 2))
    xp = jnp.pad(x, ((0, 0), (1, 1), (1, 1), (1, wp - w - 1), (0, 0)))
    n = dp * hp * wp
    flat = jnp.pad(xp.reshape(b, n, c), ((0, 0), (0, 2), (0, 0)))
    xf = jnp.concatenate([flat[:, 0:n], flat[:, 1:n + 1], flat[:, 2:n + 2]], axis=-1)
    return xf, (d, h, w, dp, hp, wp)


# --------------------------------------------------------------------------
# Kernel 2: fused conv2 + ReLU -> VMEM scratch -> conv3 + ReLU -> masked GAP.
# --------------------------------------------------------------------------
def _fused_conv_gap_kernel(xf2_ref, w2_ref, b2_ref, w3_ref, b3_ref, gap_ref, y2_ref,
                           *, n_planes, plane, wp, tile_rows, w_valid,
                           f_off, sub_rows, gap_scale):
    c2 = b2_ref.shape[-1]
    c3 = b3_ref.shape[-1]
    # Zero the conv3-input scratch: all ring / alignment-padding rows stay zero.
    y2_ref[...] = jnp.zeros(y2_ref.shape, y2_ref.dtype)
    b2 = b2_ref[...]
    b3 = b3_ref[...]

    # Stripe-validity mask (w coordinate < W), built in-kernel from iota.
    rows = lax.broadcasted_iota(jnp.int32, (tile_rows, c3), 0)
    valid3 = (rows & (wp - 1)) < w_valid          # (tile_rows, c3) bool
    valid2 = valid3[:, :c2]                       # same values, c2 lanes

    # ---- conv2: one d-plane per iteration, 9 (dd,hh) taps with w folded into K.
    def conv2_plane(d, carry):
        base = pl.multiple_of(d * plane, 16)
        acc = jnp.zeros((tile_rows, c2), jnp.float32)
        for dd in range(3):
            for hh in range(3):
                start = pl.multiple_of(base + dd * plane + hh * wp, 16)
                xt = xf2_ref[pl.ds(start, tile_rows), :]
                acc = acc + jnp.dot(xt, w2_ref[dd * 3 + hh],
                                    preferred_element_type=jnp.float32)
        y = jnp.where(valid2, jnp.maximum(acc + b2, 0.0), 0.0)
        dst = pl.multiple_of(f_off + base, 16)
        y2_ref[pl.ds(dst, tile_rows), :] = y.astype(y2_ref.dtype)
        return carry

    lax.fori_loop(0, n_planes, conv2_plane, 0)

    # ---- conv3 + fused GAP: per d-tap one aligned bulk load, static value slices
    # absorb the (+/-1 row) ring shift, 27 matmuls of K=c2, masked row-sum.
    loc0 = f_off - plane - wp - 1                 # static, >= 0 by construction

    def conv3_plane(d, gap_acc):
        base = pl.multiple_of(d * plane, 16)
        acc = jnp.zeros((tile_rows, c3), jnp.float32)
        for dd in range(3):
            start = pl.multiple_of(base + dd * plane, 16)
            chunk = y2_ref[pl.ds(start, sub_rows), :]
            for hh in range(3):
                for ww in range(3):
                    loc = loc0 + hh * wp + ww
                    xt = chunk[loc:loc + tile_rows, :]
                    acc = acc + jnp.dot(xt, w3_ref[dd * 9 + hh * 3 + ww],
                                        preferred_element_type=jnp.float32)
        y = jnp.where(valid3, jnp.maximum(acc + b3, 0.0), 0.0)
        return gap_acc + jnp.sum(y, axis=0, keepdims=True)

    gap = lax.fori_loop(0, n_planes, conv3_plane, jnp.zeros((1, c3), jnp.float32))
    gap_ref[...] = gap * gap_scale


def fused_conv2_conv3_gap(xf2, w2, b2, w3, b3, dims):
    """conv2(3x3x3)+ReLU -> conv3(3x3x3)+ReLU -> GAP, one pallas_call, grid=(B,)."""
    bsz, n_fold, k2f = xf2.shape
    d2, h2, w2dim, dp, hp, wp = dims
    plane = hp * wp
    tile_rows = h2 * wp
    c2in, c2out = w2.shape[1], w2.shape[0]
    c3in, c3out = w3.shape[1], w3.shape[0]
    assert n_fold == dp * plane and k2f == 3 * c2in and c3in == c2out
    assert c2out <= c3out and wp & (wp - 1) == 0 and wp % 16 == 0

    f_off = _round_up(plane + wp + 1, 16)                       # aligned store offset
    sub_rows = _round_up(f_off - plane + wp + 1 + tile_rows, 16)
    scratch_rows = _round_up(max(f_off + (d2 - 1) * plane + tile_rows,
                                 (d2 + 1) * plane + sub_rows), 16)

    # folded conv2 weights: (kd*kh, kw*Cin, Cout); conv3 weights: (27, Cin, Cout)
    w2f = jnp.transpose(w2, (2, 3, 4, 1, 0)).reshape(9, 3 * c2in, c2out)
    w2f = w2f.astype(jnp.bfloat16)
    w3f = jnp.transpose(w3, (2, 3, 4, 1, 0)).reshape(27, c3in, c3out)
    w3f = w3f.astype(jnp.bfloat16)
    b2r = b2.reshape(1, c2out).astype(jnp.float32)
    b3r = b3.reshape(1, c3out).astype(jnp.float32)

    kernel = functools.partial(
        _fused_conv_gap_kernel,
        n_planes=d2, plane=plane, wp=wp, tile_rows=tile_rows, w_valid=w2dim,
        f_off=f_off, sub_rows=sub_rows, gap_scale=1.0 / float(d2 * h2 * w2dim))

    return pl.pallas_call(
        kernel,
        out_shape=jax.ShapeDtypeStruct((bsz, 1, c3out), jnp.float32),
        grid=(bsz,),
        in_specs=[
            pl.BlockSpec((None, n_fold, k2f), lambda i: (i, 0, 0)),
            pl.BlockSpec((9, 3 * c2in, c2out), lambda i: (0, 0, 0)),
            pl.BlockSpec((1, c2out), lambda i: (0, 0)),
            pl.BlockSpec((27, c3in, c3out), lambda i: (0, 0, 0)),
            pl.BlockSpec((1, c3out), lambda i: (0, 0)),
        ],
        out_specs=pl.BlockSpec((None, 1, c3out), lambda i: (i, 0, 0)),
        scratch_shapes=[pltpu.VMEM((scratch_rows, c2out), jnp.bfloat16)],
        compiler_params=_PARALLEL_1D,
    )(xf2, w2f, b2r, w3f, b3r)


# --------------------------------------------------------------------------
# Forward pass.
# --------------------------------------------------------------------------
def dual_forward(img1, img2, params, pool1, radius):
    # conv1 + ReLU (Pallas, one image per grid step), bf16 out
    y1 = conv1_relu(img1, img2, params['conv1_w'], params['conv1_b'])
    # MaxPool3d + ring/alignment pad + w-tap fold: cheap XLA glue, stays bf16
    x2, dims = _pad_flatten_fold(maxpool3d(y1, pool1))
    # conv2 -> conv3 -> GAP fused into one Pallas kernel, grid over the 2 images
    gaps = fused_conv2_conv3_gap(
        x2, params['conv2_w'], params['conv2_b'],
        params['conv3_w'], params['conv3_b'], dims)              # (2, 1, 128) f32
    # tiny head: fc1 -> tanh -> fc3 -> tanh -> * radius (plain XLA, f32)
    feats = jnp.concatenate([gaps[0, 0], gaps[1, 0]], axis=0)    # (256,)
    h = jnp.tanh(feats @ params['fc1_w'].T + params['fc1_b'])
    y = jnp.tanh(h @ params['fc3_w'].T + params['fc3_b'])
    return radius * y


# --------------------------------------------------------------------------
# Module configuration / parameters (mirrors Dual3DImageNet.__init__).
# --------------------------------------------------------------------------
def make_config(shape):
    shape = np.array(shape).astype(int)
    radius = np.round((shape - 1) / 2).astype(int)
    depth, height, width = (int(s) for s in shape)
    min_dim = int(min(shape))
    sd, sh, sw = depth / min_dim, height / min_dim, width / min_dim
    k1 = (max(3, int(np.round(3 * sd))),
          max(3, int(np.round(3 * sh))),
          max(3, int(np.round(3 * sw))))
    p1 = (max(1, int(np.round(sd))),
          max(1, int(np.round(sh))),
          max(1, int(np.round(sw))))
    return radius, k1, p1


def init_params(key, k1):
    ks = jax.random.split(key, 10)

    def w(k, shape, scale):
        return (scale * jax.random.normal(k, shape)).astype(jnp.float32)

    return {
        'conv1_w': w(ks[0], (32, 1) + tuple(k1), 0.05),
        'conv1_b': w(ks[1], (32,), 0.05),
        'conv2_w': w(ks[2], (64, 32, 3, 3, 3), 0.05),
        'conv2_b': w(ks[3], (64,), 0.05),
        'conv3_w': w(ks[4], (128, 64, 3, 3, 3), 0.02),
        'conv3_b': w(ks[5], (128,), 0.02),
        'fc1_w': w(ks[6], (64, 256), 0.05),
        'fc1_b': w(ks[7], (64,), 0.05),
        'fc3_w': w(ks[8], (3, 64), 0.05),
        'fc3_b': w(ks[9], (3,), 0.05),
    }

# TODO(synk): get_chunk_4d_with_padding / get_images / predict / train_* / save /
# load are host-side numpy preprocessing, optimizer, and I/O code -- not part of
# the forward hot path and intentionally not translated to Pallas.


if __name__ == "__main__":
    shape = (8, 16, 16)                        # (depth, height, width)
    radius_np, k1, pool1 = make_config(shape)  # k1=(3,6,6), pool1=(1,2,2), radius=(4,8,8)

    key = jax.random.PRNGKey(0)
    kp, ka, kb = jax.random.split(key, 3)
    params = init_params(kp, k1)
    radius = jnp.asarray(radius_np, dtype=jnp.float32)

    img1 = jax.random.normal(ka, (1,) + shape, dtype=jnp.float32)
    img2 = jax.random.normal(kb, (1,) + shape, dtype=jnp.float32)

    fwd = jax.jit(lambda a, b: dual_forward(a, b, params, pool1, radius))
    out = fwd(img1, img2)
    jax.block_until_ready(out)
    assert out.shape == (3,) and out.dtype == jnp.float32
    assert bool(jnp.all(jnp.isfinite(out)))
    print("KERNEL_OK")
</pallas_src>

<mosaic_0001>
module attributes {stable_mosaic.version = 11 : i64} {
  func.func @_mm_bias_relu_kernel(%arg0: i32, %arg1: memref<1x1808x128xbf16, #tpu.memory_space<vmem>>, %arg2: memref<128x32xbf16, #tpu.memory_space<vmem>>, %arg3: memref<1x32xf32, #tpu.memory_space<vmem>>, %arg4: memref<1x1808x32xbf16, #tpu.memory_space<vmem>>) attributes {dimension_semantics = [#tpu.dimension_semantics<parallel>], iteration_bounds = array<i64: 2>, scalar_prefetch = 0 : i64, scratch_operands = 0 : i64, tpu.core_type = #tpu.core_type<tc>, window_params = [{transform_indices = @transform_0, window_bounds = array<i64: 1, 1808, 128>}, {pipeline_mode = #tpu.pipeline_mode<synchronous>, transform_indices = @transform_1, window_bounds = array<i64: 128, 32>}, {pipeline_mode = #tpu.pipeline_mode<synchronous>, transform_indices = @transform_2, window_bounds = array<i64: 1, 32>}, {transform_indices = @transform_3, window_bounds = array<i64: 1, 1808, 32>}]} {
    %c0 = arith.constant 0 : index
    %c0_0 = arith.constant 0 : index
    %c0_1 = arith.constant 0 : index
    %0 = vector.load %arg1[%c0, %c0_0, %c0_1] : memref<1x1808x128xbf16, #tpu.memory_space<vmem>>, vector<1x1808x128xbf16>
    %1 = vector.shape_cast %0 : vector<1x1808x128xbf16> to vector<1808x128xbf16>
    %c0_2 = arith.constant 0 : index
    %c0_3 = arith.constant 0 : index
    %2 = vector.load %arg2[%c0_2, %c0_3] : memref<128x32xbf16, #tpu.memory_space<vmem>>, vector<128x32xbf16>
    %cst = arith.constant dense<0.000000e+00> : vector<1808x32xf32>
    %3 = tpu.matmul %1, %2, %cst {dimension_numbers = #tpu.dot_dimension_numbers<[1], [0], [0], [1], [0, 0, 1, 1], [], []>} : vector<1808x128xbf16>, vector<128x32xbf16>, vector<1808x32xf32> -> vector<1808x32xf32>
    %c0_4 = arith.constant 0 : index
    %c0_5 = arith.constant 0 : index
    %4 = vector.load %arg3[%c0_4, %c0_5] : memref<1x32xf32, #tpu.memory_space<vmem>>, vector<1x32xf32>
    %5 = vector.broadcast %4 : vector<1x32xf32> to vector<1808x32xf32>
    %6 = arith.addf %3, %5 : vector<1808x32xf32>
    %cst_6 = arith.constant 0.000000e+00 : f32
    %7 = vector.broadcast %cst_6 : f32 to vector<1808x32xf32>
    %8 = arith.maximumf %6, %7 : vector<1808x32xf32>
    %9 = arith.truncf %8 : vector<1808x32xf32> to vector<1808x32xbf16>
    %c0_7 = arith.constant 0 : index
    %c0_8 = arith.constant 0 : index
    %c0_9 = arith.constant 0 : index
    %10 = vector.load %arg4[%c0_7, %c0_8, %c0_9] : memref<1x1808x32xbf16, #tpu.memory_space<vmem>>, vector<1x1808x32xbf16>
    %11 = vector.shape_cast %10 : vector<1x1808x32xbf16> to vector<1808x32xbf16>
    %12 = vector.shape_cast %9 : vector<1808x32xbf16> to vector<1x1808x32xbf16>
    tpu.vector_store %arg4[%c0_7, %c0_8, %c0_9], %12 {strides = array<i32>} : memref<1x1808x32xbf16, #tpu.memory_space<vmem>>, vector<1x1808x32xbf16>,
    return
  }
  func.func @transform_0(%arg0: i32) -> (i32, i32, i32) {
    %c0_i32 = arith.constant 0 : i32
    %c0_i32_0 = arith.constant 0 : i32
    %c0_i32_1 = arith.constant 0 : i32
    return %arg0, %c0_i32, %c0_i32_0 : i32, i32, i32
  }
  func.func @transform_1(%arg0: i32) -> (i32, i32) {
    %c0_i32 = arith.constant 0 : i32
    %c0_i32_0 = arith.constant 0 : i32
    %c0_i32_1 = arith.constant 0 : i32
    return %c0_i32, %c0_i32_0 : i32, i32
  }
  func.func @transform_2(%arg0: i32) -> (i32, i32) {
    %c0_i32 = arith.constant 0 : i32
    %c0_i32_0 = arith.constant 0 : i32
    %c0_i32_1 = arith.constant 0 : i32
    return %c0_i32, %c0_i32_0 : i32, i32
  }
  func.func @transform_3(%arg0: i32) -> (i32, i32, i32) {
    %c0_i32 = arith.constant 0 : i32
    %c0_i32_0 = arith.constant 0 : i32
    %c0_i32_1 = arith.constant 0 : i32
    return %arg0, %c0_i32, %c0_i32_0 : i32, i32, i32
  }
}

module attributes {stable_mosaic.version = 11 : i64} {
  func.func @_fused_conv_gap_kernel(%arg0: i32, %arg1: memref<1x1440x96xbf16, #tpu.memory_space<vmem>>, %arg2: memref<9x96x64xbf16, #tpu.memory_space<vmem>>, %arg3: memref<1x64xf32, #tpu.memory_space<vmem>>, %arg4: memref<27x64x128xbf16, #tpu.memory_space<vmem>>, %arg5: memref<1x128xf32, #tpu.memory_space<vmem>>, %arg6: memref<1x1x128xf32, #tpu.memory_space<vmem>>, %arg7: memref<1472x64xbf16, #tpu.memory_space<vmem>>) attributes {dimension_semantics = [#tpu.dimension_semantics<parallel>], iteration_bounds = array<i64: 2>, scalar_prefetch = 0 : i64, scratch_operands = 1 : i64, tpu.core_type = #tpu.core_type<tc>, window_params = [{transform_indices = @transform_0, window_bounds = array<i64: 1, 1440, 96>}, {pipeline_mode = #tpu.pipeline_mode<synchronous>, transform_indices = @transform_1, window_bounds = array<i64: 9, 96, 64>}, {pipeline_mode = #tpu.pipeline_mode<synchronous>, transform_indices = @transform_2, window_bounds = array<i64: 1, 64>}, {pipeline_mode = #tpu.pipeline_mode<synchronous>, transform_indices = @transform_3, window_bounds = array<i64: 27, 64, 128>}, {pipeline_mode = #tpu.pipeline_mode<synchronous>, transform_indices = @transform_4, window_bounds = array<i64: 1, 128>}, {transform_indices = @transform_5, window_bounds = array<i64: 1, 1, 128>}]} {
    %cst = arith.constant 0.000000e+00 : bf16
    %0 = vector.broadcast %cst : bf16 to vector<1472x64xbf16>
    %c0 = arith.constant 0 : index
    %c0_0 = arith.constant 0 : index
    %1 = vector.load %arg7[%c0, %c0_0] : memref<1472x64xbf16, #tpu.memory_space<vmem>>, vector<1472x64xbf16>
    tpu.vector_store %arg7[%c0, %c0_0], %0 {strides = array<i32>} : memref<1472x64xbf16, #tpu.memory_space<vmem>>, vector<1472x64xbf16>,
    %c0_1 = arith.constant 0 : index
    %c0_2 = arith.constant 0 : index
    %2 = vector.load %arg3[%c0_1, %c0_2] : memref<1x64xf32, #tpu.memory_space<vmem>>, vector<1x64xf32>
    %c0_3 = arith.constant 0 : index
    %c0_4 = arith.constant 0 : index
    %3 = vector.load %arg5[%c0_3, %c0_4] : memref<1x128xf32, #tpu.memory_space<vmem>>, vector<1x128xf32>
    %4 = tpu.iota {dimensions = array<i32: 0>} : vector<112x128xi32>
    %c15_i32 = arith.constant 15 : i32
    %5 = vector.broadcast %c15_i32 : i32 to vector<112x128xi32>
    %6 = arith.andi %4, %5 : vector<112x128xi32>
    %c7_i32 = arith.constant 7 : i32
    %7 = vector.broadcast %c7_i32 : i32 to vector<112x128xi32>
    %8 = arith.cmpi slt, %6, %7 : vector<112x128xi32>
    %9 = vector.extract_strided_slice %8 {offsets = [0, 0], sizes = [112, 64], strides = [1, 1]} : vector<112x128xi1> to vector<112x64xi1>
    %c0_i32 = arith.constant 0 : i32
    %c8_i32 = arith.constant 8 : i32
    %10 = arith.addi %c0_i32, %c8_i32 : i32
    %c1_i32 = arith.constant 1 : i32
    scf.for %arg8 = %c0_i32 to %10 step %c1_i32  : i32 {
      %c144_i32 = arith.constant 144 : i32
      %19 = arith.muli %arg8, %c144_i32 : i32
      %20 = tpu.assume_multiple %19, 16 : i32
      %cst_15 = arith.constant 0.000000e+00 : f32
      %21 = vector.broadcast %cst_15 : f32 to vector<112x64xf32>
      %c0_i32_16 = arith.constant 0 : i32
      %22 = arith.addi %20, %c0_i32_16 : i32
      %c0_i32_17 = arith.constant 0 : i32
      %23 = arith.addi %22, %c0_i32_17 : i32
      %24 = tpu.assume_multiple %23, 16 : i32
      %c0_18 = arith.constant 0 : index
      %25 = arith.index_cast %24 : i32 to index
      %c0_19 = arith.constant 0 : index
      %26 = vector.load %arg1[%c0_18, %25, %c0_19] : memref<1x1440x96xbf16, #tpu.memory_space<vmem>>, vector<1x112x96xbf16>
      %27 = vector.shape_cast %26 : vector<1x112x96xbf16> to vector<112x96xbf16>
      %c0_20 = arith.constant 0 : index
      %c0_21 = arith.constant 0 : index
      %c0_22 = arith.constant 0 : index
      %28 = vector.load %arg2[%c0_20, %c0_21, %c0_22] : memref<9x96x64xbf16, #tpu.memory_space<vmem>>, vector<1x96x64xbf16>
      %29 = vector.shape_cast %28 : vector<1x96x64xbf16> to vector<96x64xbf16>
      %cst_23 = arith.constant dense<0.000000e+00> : vector<112x64xf32>
      %30 = tpu.matmul %27, %29, %cst_23 {dimension_numbers = #tpu.dot_dimension_numbers<[1], [0], [0], [1], [0, 0, 1, 1], [], []>} : vector<112x96xbf16>, vector<96x64xbf16>, vector<112x64xf32> -> vector<112x64xf32>
      %31 = arith.addf %21, %30 : vector<112x64xf32>
      %c0_i32_24 = arith.constant 0 : i32
      %32 = arith.addi %20, %c0_i32_24 : i32
      %c16_i32 = arith.constant 16 : i32
      %33 = arith.addi %32, %c16_i32 : i32
      %34 = tpu.assume_multiple %33, 16 : i32
      %c0_25 = arith.constant 0 : index
      %35 = arith.index_cast %34 : i32 to index
      %c0_26 = arith.constant 0 : index
      %36 = vector.load %arg1[%c0_25, %35, %c0_26] : memref<1x1440x96xbf16, #tpu.memory_space<vmem>>, vector<1x112x96xbf16>
      %37 = vector.shape_cast %36 : vector<1x112x96xbf16> to vector<112x96xbf16>
      %c1 = arith.constant 1 : index
      %c0_27 = arith.constant 0 : index
      %c0_28 = arith.constant 0 : index
      %38 = vector.load %arg2[%c1, %c0_27, %c0_28] : memref<9x96x64xbf16, #tpu.memory_space<vmem>>, vector<1x96x64xbf16>
      %39 = vector.shape_cast %38 : vector<1x96x64xbf16> to vector<96x64xbf16>
      %cst_29 = arith.constant dense<0.000000e+00> : vector<112x64xf32>
      %40 = tpu.matmul %37, %39, %cst_29 {dimension_numbers = #tpu.dot_dimension_numbers<[1], [0], [0], [1], [0, 0, 1, 1], [], []>} : vector<112x96xbf16>, vector<96x64xbf16>, vector<112x64xf32> -> vector<112x64xf32>
      %41 = arith.addf %31, %40 : vector<112x64xf32>
      %c0_i32_30 = arith.constant 0 : i32
      %42 = arith.addi %20, %c0_i32_30 : i32
      %c32_i32 = arith.constant 32 : i32
      %43 = arith.addi %42, %c32_i32 : i32
      %44 = tpu.assume_multiple %43, 16 : i32
      %c0_31 = arith.constant 0 : index
      %45 = arith.index_cast %44 : i32 to index
      %c0_32 = arith.constant 0 : index
      %46 = vector.load %arg1[%c0_31, %45, %c0_32] : memref<1x1440x96xbf16, #tpu.memory_space<vmem>>, vector<1x112x96xbf16>
      %47 = vector.shape_cast %46 : vector<1x112x96xbf16> to vector<112x96xbf16>
      %c2 = arith.constant 2 : index
      %c0_33 = arith.constant 0 : index
      %c0_34 = arith.constant 0 : index
      %48 = vector.load %arg2[%c2, %c0_33, %c0_34] : memref<9x96x64xbf16, #tpu.memory_space<vmem>>, vector<1x96x64xbf16>
      %49 = vector.shape_cast %48 : vector<1x96x64xbf16> to vector<96x64xbf16>
      %cst_35 = arith.constant dense<0.000000e+00> : vector<112x64xf32>
      %50 = tpu.matmul %47, %49, %cst_35 {dimension_numbers = #tpu.dot_dimension_numbers<[1], [0], [0], [1], [0, 0, 1, 1], [], []>} : vector<112x96xbf16>, vector<96x64xbf16>, vector<112x64xf32> -> vector<112x64xf32>
      %51 = arith.addf %41, %50 : vector<112x64xf32>
      %c144_i32_36 = arith.constant 144 : i32
      %52 = arith.addi %20, %c144_i32_36 : i32
      %c0_i32_37 = arith.constant 0 : i32
      %53 = arith.addi %52, %c0_i32_37 : i32
      %54 = tpu.assume_multiple %53, 16 : i32
      %c0_38 = arith.constant 0 : index
      %55 = arith.index_cast %54 : i32 to index
      %c0_39 = arith.constant 0 : index
      %56 = vector.load %arg1[%c0_38, %55, %c0_39] : memref<1x1440x96xbf16, #tpu.memory_space<vmem>>, vector<1x112x96xbf16>
      %57 = vector.shape_cast %56 : vector<1x112x96xbf16> to vector<112x96xbf16>
      %c3 = arith.constant 3 : index
      %c0_40 = arith.constant 0 : index
      %c0_41 = arith.constant 0 : index
      %58 = vector.load %arg2[%c3, %c0_40, %c0_41] : memref<9x96x64xbf16, #tpu.memory_space<vmem>>, vector<1x96x64xbf16>
      %59 = vector.shape_cast %58 : vector<1x96x64xbf16> to vector<96x64xbf16>
      %cst_42 = arith.constant dense<0.000000e+00> : vector<112x64xf32>
      %60 = tpu.matmul %57, %59, %cst_42 {dimension_numbers = #tpu.dot_dimension_numbers<[1], [0], [0], [1], [0, 0, 1, 1], [], []>} : vector<112x96xbf16>, vector<96x64xbf16>, vector<112x64xf32> -> vector<112x64xf32>
      %61 = arith.addf %51, %60 : vector<112x64xf32>
      %c144_i32_43 = arith.constant 144 : i32
      %62 = arith.addi %20, %c144_i32_43 : i32
      %c16_i32_44 = arith.constant 16 : i32
      %63 = arith.addi %62, %c16_i32_44 : i32
      %64 = tpu.assume_multiple %63, 16 : i32
      %c0_45 = arith.constant 0 : index
      %65 = arith.index_cast %64 : i32 to index
      %c0_46 = arith.constant 0 : index
      %66 = vector.load %arg1[%c0_45, %65, %c0_46] : memref<1x1440x96xbf16, #tpu.memory_space<vmem>>, vector<1x112x96xbf16>
      %67 = vector.shape_cast %66 : vector<1x112x96xbf16> to vector<112x96xbf16>
      %c4 = arith.constant 4 : index
      %c0_47 = arith.constant 0 : index
      %c0_48 = arith.constant 0 : index
      %68 = vector.load %arg2[%c4, %c0_47, %c0_48] : memref<9x96x64xbf16, #tpu.memory_space<vmem>>, vector<1x96x64xbf16>
      %69 = vector.shape_cast %68 : vector<1x96x64xbf16> to vector<96x64xbf16>
      %cst_49 = arith.constant dense<0.000000e+00> : vector<112x64xf32>
      %70 = tpu.matmul %67, %69, %cst_49 {dimension_numbers = #tpu.dot_dimension_numbers<[1], [0], [0], [1], [0, 0, 1, 1], [], []>} : vector<112x96xbf16>, vector<96x64xbf16>, vector<112x64xf32> -> vector<112x64xf32>
      %71 = arith.addf %61, %70 : vector<112x64xf32>
      %c144_i32_50 = arith.constant 144 : i32
      %72 = arith.addi %20, %c144_i32_50 : i32
      %c32_i32_51 = arith.constant 32 : i32
      %73 = arith.addi %72, %c32_i32_51 : i32
      %74 = tpu.assume_multiple %73, 16 : i32
      %c0_52 = arith.constant 0 : index
      %75 = arith.index_cast %74 : i32 to index
      %c0_53 = arith.constant 0 : index
      %76 = vector.load %arg1[%c0_52, %75, %c0_53] : memref<1x1440x96xbf16, #tpu.memory_space<vmem>>, vector<1x112x96xbf16>
      %77 = vector.shape_cast %76 : vector<1x112x96xbf16> to vector<112x96xbf16>
      %c5 = arith.constant 5 : index
      %c0_54 = arith.constant 0 : index
      %c0_55 = arith.constant 0 : index
      %78 = vector.load %arg2[%c5, %c0_54, %c0_55] : memref<9x96x64xbf16, #tpu.memory_space<vmem>>, vector<1x96x64xbf16>
      %79 = vector.shape_cast %78 : vector<1x96x64xbf16> to vector<96x64xbf16>
      %cst_56 = arith.constant dense<0.000000e+00> : vector<112x64xf32>
      %80 = tpu.matmul %77, %79, %cst_56 {dimension_numbers = #tpu.dot_dimension_numbers<[1], [0], [0], [1], [0, 0, 1, 1], [], []>} : vector<112x96xbf16>, vector<96x64xbf16>, vector<112x64xf32> -> vector<112x64xf32>
      %81 = arith.addf %71, %80 : vector<112x64xf32>
      %c288_i32 = arith.constant 288 : i32
      %82 = arith.addi %20, %c288_i32 : i32
      %c0_i32_57 = arith.constant 0 : i32
      %83 = arith.addi %82, %c0_i32_57 : i32
      %84 = tpu.assume_multiple %83, 16 : i32
      %c0_58 = arith.constant 0 : index
      %85 = arith.index_cast %84 : i32 to index
      %c0_59 = arith.constant 0 : index
      %86 = vector.load %arg1[%c0_58, %85, %c0_59] : memref<1x1440x96xbf16, #tpu.memory_space<vmem>>, vector<1x112x96xbf16>
      %87 = vector.shape_cast %86 : vector<1x112x96xbf16> to vector<112x96xbf16>
      %c6 = arith.constant 6 : index
      %c0_60 = arith.constant 0 : index
      %c0_61 = arith.constant 0 : index
      %88 = vector.load %arg2[%c6, %c0_60, %c0_61] : memref<9x96x64xbf16, #tpu.memory_space<vmem>>, vector<1x96x64xbf16>
      %89 = vector.shape_cast %88 : vector<1x96x64xbf16> to vector<96x64xbf16>
      %cst_62 = arith.constant dense<0.000000e+00> : vector<112x64xf32>
      %90 = tpu.matmul %87, %89, %cst_62 {dimension_numbers = #tpu.dot_dimension_numbers<[1], [0], [0], [1], [0, 0, 1, 1], [], []>} : vector<112x96xbf16>, vector<96x64xbf16>, vector<112x64xf32> -> vector<112x64xf32>
      %91 = arith.addf %81, %90 : vector<112x64xf32>
      %c288_i32_63 = arith.constant 288 : i32
      %92 = arith.addi %20, %c288_i32_63 : i32
      %c16_i32_64 = arith.constant 16 : i32
      %93 = arith.addi %92, %c16_i32_64 : i32
      %94 = tpu.assume_multiple %93, 16 : i32
      %c0_65 = arith.constant 0 : index
      %95 = arith.index_cast %94 : i32 to index
      %c0_66 = arith.constant 0 : index
      %96 = vector.load %arg1[%c0_65, %95, %c0_66] : memref<1x1440x96xbf16, #tpu.memory_space<vmem>>, vector<1x112x96xbf16>
      %97 = vector.shape_cast %96 : vector<1x112x96xbf16> to vector<112x96xbf16>
      %c7 = arith.constant 7 : index
      %c0_67 = arith.constant 0 : index
      %c0_68 = arith.constant 0 : index
      %98 = vector.load %arg2[%c7, %c0_67, %c0_68] : memref<9x96x64xbf16, #tpu.memory_space<vmem>>, vector<1x96x64xbf16>
      %99 = vector.shape_cast %98 : vector<1x96x64xbf16> to vector<96x64xbf16>
      %cst_69 = arith.constant dense<0.000000e+00> : vector<112x64xf32>
      %100 = tpu.matmul %97, %99, %cst_69 {dimension_numbers = #tpu.dot_dimension_numbers<[1], [0], [0], [1], [0, 0, 1, 1], [], []>} : vector<112x96xbf16>, vector<96x64xbf16>, vector<112x64xf32> -> vector<112x64xf32>
      %101 = arith.addf %91, %100 : vector<112x64xf32>
      %c288_i32_70 = arith.constant 288 : i32
      %102 = arith.addi %20, %c288_i32_70 : i32
      %c32_i32_71 = arith.constant 32 : i32
      %103 = arith.addi %102, %c32_i32_71 : i32
      %104 = tpu.assume_multiple %103, 16 : i32
      %c0_72 = arith.constant 0 : index
      %105 = arith.index_cast %104 : i32 to index
      %c0_73 = arith.constant 0 : index
      %106 = vector.load %arg1[%c0_72, %105, %c0_73] : memref<1x1440x96xbf16, #tpu.memory_space<vmem>>, vector<1x112x96xbf16>
      %107 = vector.shape_cast %106 : vector<1x112x96xbf16> to vector<112x96xbf16>
      %c8 = arith.constant 8 : index
      %c0_74 = arith.constant 0 : index
      %c0_75 = arith.constant 0 : index
      %108 = vector.load %arg2[%c8, %c0_74, %c0_75] : memref<9x96x64xbf16, #tpu.memory_space<vmem>>, vector<1x96x64xbf16>
      %109 = vector.shape_cast %108 : vector<1x96x64xbf16> to vector<96x64xbf16>
      %cst_76 = arith.constant dense<0.000000e+00> : vector<112x64xf32>
      %110 = tpu.matmul %107, %109, %cst_76 {dimension_numbers = #tpu.dot_dimension_numbers<[1], [0], [0], [1], [0, 0, 1, 1], [], []>} : vector<112x96xbf16>, vector<96x64xbf16>, vector<112x64xf32> -> vector<112x64xf32>
      %111 = arith.addf %101, %110 : vector<112x64xf32>
      %112 = vector.broadcast %2 : vector<1x64xf32> to vector<112x64xf32>
      %113 = arith.addf %111, %112 : vector<112x64xf32>
      %cst_77 = arith.constant 0.000000e+00 : f32
      %114 = vector.broadcast %cst_77 : f32 to vector<112x64xf32>
      %115 = arith.maximumf %113, %114 : vector<112x64xf32>
      %cst_78 = arith.constant 0.000000e+00 : f32
      %116 = vector.broadcast %cst_78 : f32 to vector<112x64xf32>
      %117 = arith.select %9, %115, %116 : vector<112x64xi1>, vector<112x64xf32>
      %c176_i32 = arith.constant 176 : i32
      %118 = arith.addi %c176_i32, %20 : i32
      %119 = tpu.assume_multiple %118, 16 : i32
      %120 = arith.truncf %117 : vector<112x64xf32> to vector<112x64xbf16>
      %121 = arith.index_cast %119 : i32 to index
      %c0_79 = arith.constant 0 : index
      %122 = vector.load %arg7[%121, %c0_79] : memref<1472x64xbf16, #tpu.memory_space<vmem>>, vector<112x64xbf16>
      tpu.vector_store %arg7[%121, %c0_79], %120 {strides = array<i32>} : memref<1472x64xbf16, #tpu.memory_space<vmem>>, vector<112x64xbf16>,
    }
    %c8_i32_5 = arith.constant 8 : i32
    %cst_6 = arith.constant 0.000000e+00 : f32
    %11 = vector.broadcast %cst_6 : f32 to vector<1x128xf32>
    %c0_i32_7 = arith.constant 0 : i32
    %c8_i32_8 = arith.constant 8 : i32
    %12 = arith.addi %c0_i32_7, %c8_i32_8 : i32
    %c1_i32_9 = arith.constant 1 : i32
    %13 = scf.for %arg8 = %c0_i32_7 to %12 step %c1_i32_9 iter_args(%arg9 = %11) -> (vector<1x128xf32>)  : i32 {
      %c144_i32 = arith.constant 144 : i32
      %19 = arith.muli %arg8, %c144_i32 : i32
      %20 = tpu.assume_multiple %19, 16 : i32
      %cst_15 = arith.constant 0.000000e+00 : f32
      %21 = vector.broadcast %cst_15 : f32 to vector<112x128xf32>
      %c0_i32_16 = arith.constant 0 : i32
      %22 = arith.addi %20, %c0_i32_16 : i32
      %23 = tpu.assume_multiple %22, 16 : i32
      %24 = arith.index_cast %23 : i32 to index
      %c0_17 = arith.constant 0 : index
      %25 = vector.load %arg7[%24, %c0_17] : memref<1472x64xbf16, #tpu.memory_space<vmem>>, vector<176x64xbf16>
      %26 = vector.extract_strided_slice %25 {offsets = [15, 0], sizes = [112, 64], strides = [1, 1]} : vector<176x64xbf16> to vector<112x64xbf16>
      %c0_18 = arith.constant 0 : index
      %c0_19 = arith.constant 0 : index
      %c0_20 = arith.constant 0 : index
      %27 = vector.load %arg4[%c0_18, %c0_19, %c0_20] : memref<27x64x128xbf16, #tpu.memory_space<vmem>>, vector<1x64x128xbf16>
      %28 = vector.shape_cast %27 : vector<1x64x128xbf16> to vector<64x128xbf16>
      %cst_21 = arith.constant dense<0.000000e+00> : vector<112x128xf32>
      %29 = tpu.matmul %26, %28, %cst_21 {dimension_numbers = #tpu.dot_dimension_numbers<[1], [0], [0], [1], [0, 0, 1, 1], [], []>} : vector<112x64xbf16>, vector<64x128xbf16>, vector<112x128xf32> -> vector<112x128xf32>
      %30 = arith.addf %21, %29 : vector<112x128xf32>
      %31 = vector.extract_strided_slice %25 {offsets = [16, 0], sizes = [112, 64], strides = [1, 1]} : vector<176x64xbf16> to vector<112x64xbf16>
      %c1 = arith.constant 1 : index
      %c0_22 = arith.constant 0 : index
      %c0_23 = arith.constant 0 : index
      %32 = vector.load %arg4[%c1, %c0_22, %c0_23] : memref<27x64x128xbf16, #tpu.memory_space<vmem>>, vector<1x64x128xbf16>
      %33 = vector.shape_cast %32 : vector<1x64x128xbf16> to vector<64x128xbf16>
      %cst_24 = arith.constant dense<0.000000e+00> : vector<112x128xf32>
      %34 = tpu.matmul %31, %33, %cst_24 {dimension_numbers = #tpu.dot_dimension_numbers<[1], [0], [0], [1], [0, 0, 1, 1], [], []>} : vector<112x64xbf16>, vector<64x128xbf16>, vector<112x128xf32> -> vector<112x128xf32>
      %35 = arith.addf %30, %34 : vector<112x128xf32>
      %36 = vector.extract_strided_slice %25 {offsets = [17, 0], sizes = [112, 64], strides = [1, 1]} : vector<176x64xbf16> to vector<112x64xbf16>
      %c2 = arith.constant 2 : index
      %c0_25 = arith.constant 0 : index
      %c0_26 = arith.constant 0 : index
      %37 = vector.load %arg4[%c2, %c0_25, %c0_26] : memref<27x64x128xbf16, #tpu.memory_space<vmem>>, vector<1x64x128xbf16>
      %38 = vector.shape_cast %37 : vector<1x64x128xbf16> to vector<64x128xbf16>
      %cst_27 = arith.constant dense<0.000000e+00> : vector<112x128xf32>
      %39 = tpu.matmul %36, %38, %cst_27 {dimension_numbers = #tpu.dot_dimension_numbers<[1], [0], [0], [1], [0, 0, 1, 1], [], []>} : vector<112x64xbf16>, vector<64x128xbf16>, vector<112x128xf32> -> vector<112x128xf32>
      %40 = arith.addf %35, %39 : vector<112x128xf32>
      %41 = vector.extract_strided_slice %25 {offsets = [31, 0], sizes = [112, 64], strides = [1, 1]} : vector<176x64xbf16> to vector<112x64xbf16>
      %c3 = arith.constant 3 : index
      %c0_28 = arith.constant 0 : index
      %c0_29 = arith.constant 0 : index
      %42 = vector.load %arg4[%c3, %c0_28, %c0_29] : memref<27x64x128xbf16, #tpu.memory_space<vmem>>, vector<1x64x128xbf16>
      %43 = vector.shape_cast %42 : vector<1x64x128xbf16> to vector<64x128xbf16>
      %cst_30 = arith.constant dense<0.000000e+00> : vector<112x128xf32>
      %44 = tpu.matmul %41, %43, %cst_30 {dimension_numbers = #tpu.dot_dimension_numbers<[1], [0], [0], [1], [0, 0, 1, 1], [], []>} : vector<112x64xbf16>, vector<64x128xbf16>, vector<112x128xf32> -> vector<112x128xf32>
      %45 = arith.addf %40, %44 : vector<112x128xf32>
      %46 = vector.extract_strided_slice %25 {offsets = [32, 0], sizes = [112, 64], strides = [1, 1]} : vector<176x64xbf16> to vector<112x64xbf16>
      %c4 = arith.constant 4 : index
      %c0_31 = arith.constant 0 : index
      %c0_32 = arith.constant 0 : index
      %47 = vector.load %arg4[%c4, %c0_31, %c0_32] : memref<27x64x128xbf16, #tpu.memory_space<vmem>>, vector<1x64x128xbf16>
      %48 = vector.shape_cast %47 : vector<1x64x128xbf16> to vector<64x128xbf16>
      %cst_33 = arith.constant dense<0.000000e+00> : vector<112x128xf32>
      %49 = tpu.matmul %46, %48, %cst_33 {dimension_numbers = #tpu.dot_dimension_numbers<[1], [0], [0], [1], [0, 0, 1, 1], [], []>} : vector<112x64xbf16>, vector<64x128xbf16>, vector<112x128xf32> -> vector<112x128xf32>
      %50 = arith.addf %45, %49 : vector<112x128xf32>
      %51 = vector.extract_strided_slice %25 {offsets = [33, 0], sizes = [112, 64], strides = [1, 1]} : vector<176x64xbf16> to vector<112x64xbf16>
      %c5 = arith.constant 5 : index
      %c0_34 = arith.constant 0 : index
      %c0_35 = arith.constant 0 : index
      %52 = vector.load %arg4[%c5, %c0_34, %c0_35] : memref<27x64x128xbf16, #tpu.memory_space<vmem>>, vector<1x64x128xbf16>
      %53 = vector.shape_cast %52 : vector<1x64x128xbf16> to vector<64x128xbf16>
      %cst_36 = arith.constant dense<0.000000e+00> : vector<112x128xf32>
      %54 = tpu.matmul %51, %53, %cst_36 {dimension_numbers = #tpu.dot_dimension_numbers<[1], [0], [0], [1], [0, 0, 1, 1], [], []>} : vector<112x64xbf16>, vector<64x128xbf16>, vector<112x128xf32> -> vector<112x128xf32>
      %55 = arith.addf %50, %54 : vector<112x128xf32>
      %56 = vector.extract_strided_slice %25 {offsets = [47, 0], sizes = [112, 64], strides = [1, 1]} : vector<176x64xbf16> to vector<112x64xbf16>
      %c6 = arith.constant 6 : index
      %c0_37 = arith.constant 0 : index
      %c0_38 = arith.constant 0 : index
      %57 = vector.load %arg4[%c6, %c0_37, %c0_38] : memref<27x64x128xbf16, #tpu.memory_space<vmem>>, vector<1x64x128xbf16>
      %58 = vector.shape_cast %57 : vector<1x64x128xbf16> to vector<64x128xbf16>
      %cst_39 = arith.constant dense<0.000000e+00> : vector<112x128xf32>
      %59 = tpu.matmul %56, %58, %cst_39 {dimension_numbers = #tpu.dot_dimension_numbers<[1], [0], [0], [1], [0, 0, 1, 1], [], []>} : vector<112x64xbf16>, vector<64x128xbf16>, vector<112x128xf32> -> vector<112x128xf32>
      %60 = arith.addf %55, %59 : vector<112x128xf32>
      %61 = vector.extract_strided_slice %25 {offsets = [48, 0], sizes = [112, 64], strides = [1, 1]} : vector<176x64xbf16> to vector<112x64xbf16>
      %c7 = arith.constant 7 : index
      %c0_40 = arith.constant 0 : index
      %c0_41 = arith.constant 0 : index
      %62 = vector.load %arg4[%c7, %c0_40, %c0_41] : memref<27x64x128xbf16, #tpu.memory_space<vmem>>, vector<1x64x128xbf16>
      %63 = vector.shape_cast %62 : vector<1x64x128xbf16> to vector<64x128xbf16>
      %cst_42 = arith.constant dense<0.000000e+00> : vector<112x128xf32>
      %64 = tpu.matmul %61, %63, %cst_42 {dimension_numbers = #tpu.dot_dimension_numbers<[1], [0], [0], [1], [0, 0, 1, 1], [], []>} : vector<112x64xbf16>, vector<64x128xbf16>, vector<112x128xf32> -> vector<112x128xf32>
      %65 = arith.addf %60, %64 : vector<112x128xf32>
      %66 = vector.extract_strided_slice %25 {offsets = [49, 0], sizes = [112, 64], strides = [1, 1]} : vector<176x64xbf16> to vector<112x64xbf16>
      %c8 = arith.constant 8 : index
      %c0_43 = arith.constant 0 : index
      %c0_44 = arith.constant 0 : index
      %67 = vector.load %arg4[%c8, %c0_43, %c0_44] : memref<27x64x128xbf16, #tpu.memory_space<vmem>>, vector<1x64x128xbf16>
      %68 = vector.shape_cast %67 : vector<1x64x128xbf16> to vector<64x128xbf16>
      %cst_45 = arith.constant dense<0.000000e+00> : vector<112x128xf32>
      %69 = tpu.matmul %66, %68, %cst_45 {dimension_numbers = #tpu.dot_dimension_numbers<[1], [0], [0], [1], [0, 0, 1, 1], [], []>} : vector<112x64xbf16>, vector<64x128xbf16>, vector<112x128xf32> -> vector<112x128xf32>
      %70 = arith.addf %65, %69 : vector<112x128xf32>
      %c144_i32_46 = arith.constant 144 : i32
      %71 = arith.addi %20, %c144_i32_46 : i32
      %72 = tpu.assume_multiple %71, 16 : i32
      %73 = arith.index_cast %72 : i32 to index
      %c0_47 = arith.constant 0 : index
      %74 = vector.load %arg7[%73, %c0_47] : memref<1472x64xbf16, #tpu.memory_space<vmem>>, vector<176x64xbf16>
      %75 = vector.extract_strided_slice %74 {offsets = [15, 0], sizes = [112, 64], strides = [1, 1]} : vector<176x64xbf16> to vector<112x64xbf16>
      %c9 = arith.constant 9 : index
      %c0_48 = arith.constant 0 : index
      %c0_49 = arith.constant 0 : index
      %76 = vector.load %arg4[%c9, %c0_48, %c0_49] : memref<27x64x128xbf16, #tpu.memory_space<vmem>>, vector<1x64x128xbf16>
      %77 = vector.shape_cast %76 : vector<1x64x128xbf16> to vector<64x128xbf16>
      %cst_50 = arith.constant dense<0.000000e+00> : vector<112x128xf32>
      %78 = tpu.matmul %75, %77, %cst_50 {dimension_numbers = #tpu.dot_dimension_numbers<[1], [0], [0], [1], [0, 0, 1, 1], [], []>} : vector<112x64xbf16>, vector<64x128xbf16>, vector<112x128xf32> -> vector<112x128xf32>
      %79 = arith.addf %70, %78 : vector<112x128xf32>
      %80 = vector.extract_strided_slice %74 {offsets = [16, 0], sizes = [112, 64], strides = [1, 1]} : vector<176x64xbf16> to vector<112x64xbf16>
      %c10 = arith.constant 10 : index
      %c0_51 = arith.constant 0 : index
      %c0_52 = arith.constant 0 : index
      %81 = vector.load %arg4[%c10, %c0_51, %c0_52] : memref<27x64x128xbf16, #tpu.memory_space<vmem>>, vector<1x64x128xbf16>
      %82 = vector.shape_cast %81 : vector<1x64x128xbf16> to vector<64x128xbf16>
      %cst_53 = arith.constant dense<0.000000e+00> : vector<112x128xf32>
      %83 = tpu.matmul %80, %82, %cst_53 {dimension_numbers = #tpu.dot_dimension_numbers<[1], [0], [0], [1], [0, 0, 1, 1], [], []>} : vector<112x64xbf16>, vector<64x128xbf16>, vector<112x128xf32> -> vector<112x128xf32>
      %84 = arith.addf %79, %83 : vector<112x128xf32>
      %85 = vector.extract_strided_slice %74 {offsets = [17, 0], sizes = [112, 64], strides = [1, 1]} : vector<176x64xbf16> to vector<112x64xbf16>
      %c11 = arith.constant 11 : index
      %c0_54 = arith.constant 0 : index
      %c0_55 = arith.constant 0 : index
      %86 = vector.load %arg4[%c11, %c0_54, %c0_55] : memref<27x64x128xbf16, #tpu.memory_space<vmem>>, vector<1x64x128xbf16>
      %87 = vector.shape_cast %86 : vector<1x64x128xbf16> to vector<64x128xbf16>
      %cst_56 = arith.constant dense<0.000000e+00> : vector<112x128xf32>
      %88 = tpu.matmul %85, %87, %cst_56 {dimension_numbers = #tpu.dot_dimension_numbers<[1], [0], [0], [1], [0, 0, 1, 1], [], []>} : vector<112x64xbf16>, vector<64x128xbf16>, vector<112x128xf32> -> vector<112x128xf32>
      %89 = arith.addf %84, %88 : vector<112x128xf32>
      %90 = vector.extract_strided_slice %74 {offsets = [31, 0], sizes = [112, 64], strides = [1, 1]} : vector<176x64xbf16> to vector<112x64xbf16>
      %c12 = arith.constant 12 : index
      %c0_57 = arith.constant 0 : index
      %c0_58 = arith.constant 0 : index
      %91 = vector.load %arg4[%c12, %c0_57, %c0_58] : memref<27x64x128xbf16, #tpu.memory_space<vmem>>, vector<1x64x128xbf16>
      %92 = vector.shape_cast %91 : vector<1x64x128xbf16> to vector<64x128xbf16>
      %cst_59 = arith.constant dense<0.000000e+00> : vector<112x128xf32>
      %93 = tpu.matmul %90, %92, %cst_59 {dimension_numbers = #tpu.dot_dimension_numbers<[1], [0], [0], [1], [0, 0, 1, 1], [], []>} : vector<112x64xbf16>, vector<64x128xbf16>, vector<112x128xf32> -> vector<112x128xf32>
      %94 = arith.addf %89, %93 : vector<112x128xf32>
      %95 = vector.extract_strided_slice %74 {offsets = [32, 0], sizes = [112, 64], strides = [1, 1]} : vector<176x64xbf16> to vector<112x64xbf16>
      %c13 = arith.constant 13 : index
      %c0_60 = arith.constant 0 : index
      %c0_61 = arith.constant 0 : index
      %96 = vector.load %arg4[%c13, %c0_60, %c0_61] : memref<27x64x128xbf16, #tpu.memory_space<vmem>>, vector<1x64x128xbf16>
      %97 = vector.shape_cast %96 : vector<1x64x128xbf16> to vector<64x128xbf16>
      %cst_62 = arith.constant dense<0.000000e+00> : vector<112x128xf32>
      %98 = tpu.matmul %95, %97, %cst_62 {dimension_numbers = #tpu.dot_dimension_numbers<[1], [0], [0], [1], [0, 0, 1, 1], [], []>} : vector<112x64xbf16>, vector<64x128xbf16>, vector<112x128xf32> -> vector<112x128xf32>
      %99 = arith.addf %94, %98 : vector<112x128xf32>
      %100 = vector.extract_strided_slice %74 {offsets = [33, 0], sizes = [112, 64], strides = [1, 1]} : vector<176x64xbf16> to vector<112x64xbf16>
      %c14 = arith.constant 14 : index
      %c0_63 = arith.constant 0 : index
      %c0_64 = arith.constant 0 : index
      %101 = vector.load %arg4[%c14, %c0_63, %c0_64] : memref<27x64x128xbf16, #tpu.memory_space<vmem>>, vector<1x64x128xbf16>
      %102 = vector.shape_cast %101 : vector<1x64x128xbf16> to vector<64x128xbf16>
      %cst_65 = arith.constant dense<0.000000e+00> : vector<112x128xf32>
      %103 = tpu.matmul %100, %102, %cst_65 {dimension_numbers = #tpu.dot_dimension_numbers<[1], [0], [0], [1], [0, 0, 1, 1], [], []>} : vector<112x64xbf16>, vector<64x128xbf16>, vector<112x128xf32> -> vector<112x128xf32>
      %104 = arith.addf %99, %103 : vector<112x128xf32>
      %105 = vector.extract_strided_slice %74 {offsets = [47, 0], sizes = [112, 64], strides = [1, 1]} : vector<176x64xbf16> to vector<112x64xbf16>
      %c15 = arith.constant 15 : index
      %c0_66 = arith.constant 0 : index
      %c0_67 = arith.constant 0 : index
      %106 = vector.load %arg4[%c15, %c0_66, %c0_67] : memref<27x64x128xbf16, #tpu.memory_space<vmem>>, vector<1x64x128xbf16>
      %107 = vector.shape_cast %106 : vector<1x64x128xbf16> to vector<64x128xbf16>
      %cst_68 = arith.constant dense<0.000000e+00> : vector<112x128xf32>
      %108 = tpu.matmul %105, %107, %cst_68 {dimension_numbers = #tpu.dot_dimension_numbers<[1], [0], [0], [1], [0, 0, 1, 1], [], []>} : vector<112x64xbf16>, vector<64x128xbf16>, vector<112x128xf32> -> vector<112x128xf32>
      %109 = arith.addf %104, %108 : vector<112x128xf32>
      %110 = vector.extract_strided_slice %74 {offsets = [48, 0], sizes = [112, 64], strides = [1, 1]} : vector<176x64xbf16> to vector<112x64xbf16>
      %c16 = arith.constant 16 : index
      %c0_69 = arith.constant 0 : index
      %c0_70 = arith.constant 0 : index
      %111 = vector.load %arg4[%c16, %c0_69, %c0_70] : memref<27x64x128xbf16, #tpu.memory_space<vmem>>, vector<1x64x128xbf16>
      %112 = vector.shape_cast %111 : vector<1x64x128xbf16> to vector<64x128xbf16>
      %cst_71 = arith.constant dense<0.000000e+00> : vector<112x128xf32>
      %113 = tpu.matmul %110, %112, %cst_71 {dimension_numbers = #tpu.dot_dimension_numbers<[1], [0], [0], [1], [0, 0, 1, 1], [], []>} : vector<112x64xbf16>, vector<64x128xbf16>, vector<112x128xf32> -> vector<112x128xf32>
      %114 = arith.addf %109, %113 : vector<112x128xf32>
      %115 = vector.extract_strided_slice %74 {offsets = [49, 0], sizes = [112, 64], strides = [1, 1]} : vector<176x64xbf16> to vector<112x64xbf16>
      %c17 = arith.constant 17 : index
      %c0_72 = arith.constant 0 : index
      %c0_73 = arith.constant 0 : index
      %116 = vector.load %arg4[%c17, %c0_72, %c0_73] : memref<27x64x128xbf16, #tpu.memory_space<vmem>>, vector<1x64x128xbf16>
      %117 = vector.shape_cast %116 : vector<1x64x128xbf16> to vector<64x128xbf16>
      %cst_74 = arith.constant dense<0.000000e+00> : vector<112x128xf32>
      %118 = tpu.matmul %115, %117, %cst_74 {dimension_numbers = #tpu.dot_dimension_numbers<[1], [0], [0], [1], [0, 0, 1, 1], [], []>} : vector<112x64xbf16>, vector<64x128xbf16>, vector<112x128xf32> -> vector<112x128xf32>
      %119 = arith.addf %114, %118 : vector<112x128xf32>
      %c288_i32 = arith.constant 288 : i32
      %120 = arith.addi %20, %c288_i32 : i32
      %121 = tpu.assume_multiple %120, 16 : i32
      %122 = arith.index_cast %121 : i32 to index
      %c0_75 = arith.constant 0 : index
      %123 = vector.load %arg7[%122, %c0_75] : memref<1472x64xbf16, #tpu.memory_space<vmem>>, vector<176x64xbf16>
      %124 = vector.extract_strided_slice %123 {offsets = [15, 0], sizes = [112, 64], strides = [1, 1]} : vector<176x64xbf16> to vector<112x64xbf16>
      %c18 = arith.constant 18 : index
      %c0_76 = arith.constant 0 : index
      %c0_77 = arith.constant 0 : index
      %125 = vector.load %arg4[%c18, %c0_76, %c0_77] : memref<27x64x128xbf16, #tpu.memory_space<vmem>>, vector<1x64x128xbf16>
      %126 = vector.shape_cast %125 : vector<1x64x128xbf16> to vector<64x128xbf16>
      %cst_78 = arith.constant dense<0.000000e+00> : vector<112x128xf32>
      %127 = tpu.matmul %124, %126, %cst_78 {dimension_numbers = #tpu.dot_dimension_numbers<[1], [0], [0], [1], [0, 0, 1, 1], [], []>} : vector<112x64xbf16>, vector<64x128xbf16>, vector<112x128xf32> -> vector<112x128xf32>
      %128 = arith.addf %119, %127 : vector<112x128xf32>
      %129 = vector.extract_strided_slice %123 {offsets = [16, 0], sizes = [112, 64], strides = [1, 1]} : vector<176x64xbf16> to vector<112x64xbf16>
      %c19 = arith.constant 19 : index
      %c0_79 = arith.constant 0 : index
      %c0_80 = arith.constant 0 : index
      %130 = vector.load %arg4[%c19, %c0_79, %c0_80] : memref<27x64x128xbf16, #tpu.memory_space<vmem>>, vector<1x64x128xbf16>
      %131 = vector.shape_cast %130 : vector<1x64x128xbf16> to vector<64x128xbf16>
      %cst_81 = arith.constant dense<0.000000e+00> : vector<112x128xf32>
      %132 = tpu.matmul %129, %131, %cst_81 {dimension_numbers = #tpu.dot_dimension_numbers<[1], [0], [0], [1], [0, 0, 1, 1], [], []>} : vector<112x64xbf16>, vector<64x128xbf16>, vector<112x128xf32> -> vector<112x128xf32>
      %133 = arith.addf %128, %132 : vector<112x128xf32>
      %134 = vector.extract_strided_slice %123 {offsets = [17, 0], sizes = [112, 64], strides = [1, 1]} : vector<176x64xbf16> to vector<112x64xbf16>
      %c20 = arith.constant 20 : index
      %c0_82 = arith.constant 0 : index
      %c0_83 = arith.constant 0 : index
      %135 = vector.load %arg4[%c20, %c0_82, %c0_83] : memref<27x64x128xbf16, #tpu.memory_space<vmem>>, vector<1x64x128xbf16>
      %136 = vector.shape_cast %135 : vector<1x64x128xbf16> to vector<64x128xbf16>
      %cst_84 = arith.constant dense<0.000000e+00> : vector<112x128xf32>
      %137 = tpu.matmul %134, %136, %cst_84 {dimension_numbers = #tpu.dot_dimension_numbers<[1], [0], [0], [1], [0, 0, 1, 1], [], []>} : vector<112x64xbf16>, vector<64x128xbf16>, vector<112x128xf32> -> vector<112x128xf32>
      %138 = arith.addf %133, %137 : vector<112x128xf32>
      %139 = vector.extract_strided_slice %123 {offsets = [31, 0], sizes = [112, 64], strides = [1, 1]} : vector<176x64xbf16> to vector<112x64xbf16>
      %c21 = arith.constant 21 : index
      %c0_85 = arith.constant 0 : index
      %c0_86 = arith.constant 0 : index
      %140 = vector.load %arg4[%c21, %c0_85, %c0_86] : memref<27x64x128xbf16, #tpu.memory_space<vmem>>, vector<1x64x128xbf16>
      %141 = vector.shape_cast %140 : vector<1x64x128xbf16> to vector<64x128xbf16>
      %cst_87 = arith.constant dense<0.000000e+00> : vector<112x128xf32>
      %142 = tpu.matmul %139, %141, %cst_87 {dimension_numbers = #tpu.dot_dimension_numbers<[1], [0], [0], [1], [0, 0, 1, 1], [], []>} : vector<112x64xbf16>, vector<64x128xbf16>, vector<112x128xf32> -> vector<112x128xf32>
      %143 = arith.addf %138, %142 : vector<112x128xf32>
      %144 = vector.extract_strided_slice %123 {offsets = [32, 0], sizes = [112, 64], strides = [1, 1]} : vector<176x64xbf16> to vector<112x64xbf16>
      %c22 = arith.constant 22 : index
      %c0_88 = arith.constant 0 : index
      %c0_89 = arith.constant 0 : index
      %145 = vector.load %arg4[%c22, %c0_88, %c0_89] : memref<27x64x128xbf16, #tpu.memory_space<vmem>>, vector<1x64x128xbf16>
      %146 = vector.shape_cast %145 : vector<1x64x128xbf16> to vector<64x128xbf16>
      %cst_90 = arith.constant dense<0.000000e+00> : vector<112x128xf32>
      %147 = tpu.matmul %144, %146, %cst_90 {dimension_numbers = #tpu.dot_dimension_numbers<[1], [0], [0], [1], [0, 0, 1, 1], [], []>} : vector<112x64xbf16>, vector<64x128xbf16>, vector<112x128xf32> -> vector<112x128xf32>
      %148 = arith.addf %143, %147 : vector<112x128xf32>
      %149 = vector.extract_strided_slice %123 {offsets = [33, 0], sizes = [112, 64], strides = [1, 1]} : vector<176x64xbf16> to vector<112x64xbf16>
      %c23 = arith.constant 23 : index
      %c0_91 = arith.constant 0 : index
      %c0_92 = arith.constant 0 : index
      %150 = vector.load %arg4[%c23, %c0_91, %c0_92] : memref<27x64x128xbf16, #tpu.memory_space<vmem>>, vector<1x64x128xbf16>
      %151 = vector.shape_cast %150 : vector<1x64x128xbf16> to vector<64x128xbf16>
      %cst_93 = arith.constant dense<0.000000e+00> : vector<112x128xf32>
      %152 = tpu.matmul %149, %151, %cst_93 {dimension_numbers = #tpu.dot_dimension_numbers<[1], [0], [0], [1], [0, 0, 1, 1], [], []>} : vector<112x64xbf16>, vector<64x128xbf16>, vector<112x128xf32> -> vector<112x128xf32>
      %153 = arith.addf %148, %152 : vector<112x128xf32>
      %154 = vector.extract_strided_slice %123 {offsets = [47, 0], sizes = [112, 64], strides = [1, 1]} : vector<176x64xbf16> to vector<112x64xbf16>
      %c24 = arith.constant 24 : index
      %c0_94 = arith.constant 0 : index
      %c0_95 = arith.constant 0 : index
      %155 = vector.load %arg4[%c24, %c0_94, %c0_95] : memref<27x64x128xbf16, #tpu.memory_space<vmem>>, vector<1x64x128xbf16>
      %156 = vector.shape_cast %155 : vector<1x64x128xbf16> to vector<64x128xbf16>
      %cst_96 = arith.constant dense<0.000000e+00> : vector<112x128xf32>
      %157 = tpu.matmul %154, %156, %cst_96 {dimension_numbers = #tpu.dot_dimension_numbers<[1], [0], [0], [1], [0, 0, 1, 1], [], []>} : vector<112x64xbf16>, vector<64x128xbf16>, vector<112x128xf32> -> vector<112x128xf32>
      %158 = arith.addf %153, %157 : vector<112x128xf32>
      %159 = vector.extract_strided_slice %123 {offsets = [48, 0], sizes = [112, 64], strides = [1, 1]} : vector<176x64xbf16> to vector<112x64xbf16>
      %c25 = arith.constant 25 : index
      %c0_97 = arith.constant 0 : index
      %c0_98 = arith.constant 0 : index
      %160 = vector.load %arg4[%c25, %c0_97, %c0_98] : memref<27x64x128xbf16, #tpu.memory_space<vmem>>, vector<1x64x128xbf16>
      %161 = vector.shape_cast %160 : vector<1x64x128xbf16> to vector<64x128xbf16>
      %cst_99 = arith.constant dense<0.000000e+00> : vector<112x128xf32>
      %162 = tpu.matmul %159, %161, %cst_99 {dimension_numbers = #tpu.dot_dimension_numbers<[1], [0], [0], [1], [0, 0, 1, 1], [], []>} : vector<112x64xbf16>, vector<64x128xbf16>, vector<112x128xf32> -> vector<112x128xf32>
      %163 = arith.addf %158, %162 : vector<112x128xf32>
      %164 = vector.extract_strided_slice %123 {offsets = [49, 0], sizes = [112, 64], strides = [1, 1]} : vector<176x64xbf16> to vector<112x64xbf16>
      %c26 = arith.constant 26 : index
      %c0_100 = arith.constant 0 : index
      %c0_101 = arith.constant 0 : index
      %165 = vector.load %arg4[%c26, %c0_100, %c0_101] : memref<27x64x128xbf16, #tpu.memory_space<vmem>>, vector<1x64x128xbf16>
      %166 = vector.shape_cast %165 : vector<1x64x128xbf16> to vector<64x128xbf16>
      %cst_102 = arith.constant dense<0.000000e+00> : vector<112x128xf32>
      %167 = tpu.matmul %164, %166, %cst_102 {dimension_numbers = #tpu.dot_dimension_numbers<[1], [0], [0], [1], [0, 0, 1, 1], [], []>} : vector<112x64xbf16>, vector<64x128xbf16>, vector<112x128xf32> -> vector<112x128xf32>
      %168 = arith.addf %163, %167 : vector<112x128xf32>
      %169 = vector.broadcast %3 : vector<1x128xf32> to vector<112x128xf32>
      %170 = arith.addf %168, %169 : vector<112x128xf32>
      %cst_103 = arith.constant 0.000000e+00 : f32
      %171 = vector.broadcast %cst_103 : f32 to vector<112x128xf32>
      %172 = arith.maximumf %170, %171 : vector<112x128xf32>
      %cst_104 = arith.constant 0.000000e+00 : f32
      %173 = vector.broadcast %cst_104 : f32 to vector<112x128xf32>
      %174 = arith.select %8, %172, %173 : vector<112x128xi1>, vector<112x128xf32>
      %cst_105 = arith.constant dense<0.000000e+00> : vector<128xf32>
      %175 = vector.multi_reduction <add>, %174, %cst_105 [0] : vector<112x128xf32> to vector<128xf32>
      %176 = vector.shape_cast %175 : vector<128xf32> to vector<1x128xf32>
      %177 = arith.addf %arg9, %176 : vector<1x128xf32>
      scf.yield %177 : vector<1x128xf32>
    }
    %c8_i32_10 = arith.constant 8 : i32
    %cst_11 = arith.constant 0.00255102036 : f32
    %14 = vector.broadcast %cst_11 : f32 to vector<1x128xf32>
    %15 = arith.mulf %13, %14 : vector<1x128xf32>
    %c0_12 = arith.constant 0 : index
    %c0_13 = arith.constant 0 : index
    %c0_14 = arith.constant 0 : index
    %16 = vector.load %arg6[%c0_12, %c0_13, %c0_14] : memref<1x1x128xf32, #tpu.memory_space<vmem>>, vector<1x1x128xf32>
    %17 = vector.shape_cast %16 : vector<1x1x128xf32> to vector<1x128xf32>
    %18 = vector.shape_cast %15 : vector<1x128xf32> to vector<1x1x128xf32>
    tpu.vector_store %arg6[%c0_12, %c0_13, %c0_14], %18 {strides = array<i32>} : memref<1x1x128xf32, #tpu.memory_space<vmem>>, vector<1x1x128xf32>,
    return
  }
  func.func @transform_0(%arg0: i32) -> (i32, i32, i32) {
    %c0_i32 = arith.constant 0 : i32
    %c0_i32_0 = arith.constant 0 : i32
    %c0_i32_1 = arith.constant 0 : i32
    return %arg0, %c0_i32, %c0_i32_0 : i32, i32, i32
  }
  func.func @transform_1(%arg0: i32) -> (i32, i32, i32) {
    %c0_i32 = arith.constant 0 : i32
    %c0_i32_0 = arith.constant 0 : i32
    %c0_i32_1 = arith.constant 0 : i32
    %c0_i32_2 = arith.constant 0 : i32
    return %c0_i32, %c0_i32_0, %c0_i32_1 : i32, i32, i32
  }
  func.func @transform_2(%arg0: i32) -> (i32, i32) {
    %c0_i32 = arith.constant 0 : i32
    %c0_i32_0 = arith.constant 0 : i32
    %c0_i32_1 = arith.constant 0 : i32
    return %c0_i32, %c0_i32_0 : i32, i32
  }
  func.func @transform_3(%arg0: i32) -> (i32, i32, i32) {
    %c0_i32 = arith.constant 0 : i32
    %c0_i32_0 = arith.constant 0 : i32
    %c0_i32_1 = arith.constant 0 : i32
    %c0_i32_2 = arith.constant 0 : i32
    return %c0_i32, %c0_i32_0, %c0_i32_1 : i32, i32, i32
  }
  func.func @transform_4(%arg0: i32) -> (i32, i32) {
    %c0_i32 = arith.constant 0 : i32
    %c0_i32_0 = arith.constant 0 : i32
    %c0_i32_1 = arith.constant 0 : i32
    return %c0_i32, %c0_i32_0 : i32, i32
  }
  func.func @transform_5(%arg0: i32) -> (i32, i32, i32) {
    %c0_i32 = arith.constant 0 : i32
    %c0_i32_0 = arith.constant 0 : i32
    %c0_i32_1 = arith.constant 0 : i32
    return %arg0, %c0_i32, %c0_i32_0 : i32, i32, i32
  }
}

</mosaic_0001>

<bundles_post_ra>
// kernel: _lambda_.2
= control target key start
LH: loop header
LB: loop body
LE: loop exit
PB: predicated region body
PF: predicated region fallthrough
CT: control target
= control target key end

     0   :  { %s4848_s12 = smov 0   ;;  %s5948_s0 = inlined_call_operand.vmem [shape: bf16[2,1808,128], index: 0, kind: input, shape index: {}]   ;;  %s5949_s1 = inlined_call_operand.vmem [shape: bf16[128,32], index: 1, kind: input, shape index: {}]   ;;  %s5950_s2 = inlined_call_operand.vmem [shape: f32[1,32], index: 2, kind: input, shape index: {}]   ;;  %s5951_s3 = inlined_call_operand.vmem [shape: bf16[2,1808,32], index: 3, kind: output, shape index: {}]  }
   0x1 LB: > { %s3496_s13 = sadd.s32 4294967295, %s4824_s12   ;;  %p3500_p0 = scmp.ge.s32.totalorder %s4824_s12, 1  ;;  %s4824_s12 = sphi %s4848_s12, %s13_s12  }
   0x2   : > { %p137_p1 = scmp.lt.s32.totalorder %s4824_s12, 3 }
   0x4   : > { %p138_p2 = pnand %p3500_p0, %p137_p1 }
   0x5   : > { %v4695_v0 = vld [vmem:[%s5949_s1] sm:$0xff] (!%p138_p2)   ;;  %v4826_v1 = vmov (!%p138_p2), 0.0   ;;  %v4696_v2 = vld [vmem:[%s5949_s1 + $0x8] sm:$0xff] (!%p138_p2)   ;;  %p161_p3 = scmp.lt.s32.totalorder (!%p138_p2), %s3496_s13, 1  ;;  %vm4827_vm0 = vmmov (!%p138_p2), 0   ;;  %v4697_v3 = vld [vmem:[%s5949_s1 + $0x10] sm:$0xff] (!%p138_p2)  }
   0x6   : > { %141 = sbr.rel (%p138_p2) target bundleno = 707 (0x2c3), region = 32  ;;  %4200 = vmatprep.subr.bf16.mxu0 (!%p138_p2), %v4826_v1  ;;  %4668 = vmatprep.subr.bf16.mxu1 (!%p138_p2), %v4826_v1  ;;  %v4698_v4 = vld [vmem:[%s5949_s1 + $0x18] sm:$0xff] (!%p138_p2)   ;;  %v4699_v5 = vld [vmem:[%s5949_s1 + $0x20] sm:$0xff] (!%p138_p2)   ;;  %v4700_v6 = vld [vmem:[%s5949_s1 + $0x28] sm:$0xff] (!%p138_p2)   ;;  %vm3214_vm1 = vcmask (!%p138_p2), 257024  }
   0x7   : > { %4201 = vmatpush3.bf16.msra.mxu0 (!%p138_p2), %v4695_v0  ;;  %4676 = vmatpush3.bf16.msra.mxu1 (!%p138_p2), %v4695_v0  ;;  %v4701_v7 = vld [vmem:[%s5949_s1 + $0x30] sm:$0xff] (!%p138_p2)   ;;  %v4702_v8 = vld [vmem:[%s5949_s1 + $0x38] sm:$0xff] (!%p138_p2)   ;;  %v5071_v63 = vld [vmem:[%s5950_s2] ss:$0 sm:$0xff] (!%p138_p2) }
   0x8   : > { %4202 = vmatprep.subr.bf16.mxu0 (!%p138_p2), %v4826_v1  ;;  %4669 = vmatprep.subr.bf16.mxu1 (!%p138_p2), %v4826_v1 }
   0x9   : > { %4216 = vmatprep.mubr.msk.bf16.mxu0 (!%p138_p2), %vm4827_vm0, %v4826_v1  ;;  %4444 = vmatprep.mubr.msk.bf16.mxu1 (!%p138_p2), %vm4827_vm0, %v4826_v1 }
   0xb   : > { %4203 = vmatpush3.bf16.msra.mxu0 (!%p138_p2), %v4696_v2  ;;  %4677 = vmatpush3.bf16.msra.mxu1 (!%p138_p2), %v4696_v2 }
   0xc   : > { %4204 = vmatprep.subr.bf16.mxu0 (!%p138_p2), %v4826_v1  ;;  %4670 = vmatprep.subr.bf16.mxu1 (!%p138_p2), %v4826_v1 }
   0xd   : > { %s5953_s13 = smov (!%p161_p3, %s3496_s13), 1 }
   0xe   : > { %s4684_s20 = smul.u32 904, %s5953_s13 }
   0xf   : > { %4205 = vmatpush3.bf16.msra.mxu0 %v4697_v3  ;;  %4678 = vmatpush3.bf16.msra.mxu1 %v4697_v3 }
  0x10   : > { %s4883_s23 = scalar_lea.vmem %s5948_s0, %s4684_s20  ;;  %4206 = vmatprep.subr.bf16.mxu0 %v4826_v1  ;;  %4671 = vmatprep.subr.bf16.mxu1 %v4826_v1  ;;  %s5088_s11 = scalar_lea.vmem %s5951_s3, %s4684_s20 }
  0x11   : > { %v4703_v9 = vld [vmem:[%s4883_s23] sm:$0xff]   ;;  %v4704_v10 = vld [vmem:[%s4883_s23 + $0x1c8] sm:$0xff]   ;;  %v4706_v12 = vld [vmem:[%s4883_s23 + $0x1d0] sm:$0xff]  }
  0x12   : > { %v4705_v11 = vld [vmem:[%s4883_s23 + $0x8] sm:$0xff]   ;;  %v4707_v13 = vld [vmem:[%s4883_s23 + $0x10] sm:$0xff]   ;;  %v4708_v14 = vld [vmem:[%s4883_s23 + $0x1d8] sm:$0xff]  }
  0x13   : > { %4207 = vmatpush3.bf16.msra.mxu0 %v4698_v4  ;;  %4679 = vmatpush3.bf16.msra.mxu1 %v4698_v4  ;;  %v4709_v15 = vld [vmem:[%s4883_s23 + $0x18] sm:$0xff]   ;;  %v4710_v16 = vld [vmem:[%s4883_s23 + $0x1e0] sm:$0xff]   ;;  %v4712_v18 = vld [vmem:[%s4883_s23 + $0x1e8] sm:$0xff]  }
  0x14   : > { %4208 = vmatprep.subr.bf16.mxu0 %v4826_v1  ;;  %4672 = vmatprep.subr.bf16.mxu1 %v4826_v1  ;;  %v4711_v17 = vld [vmem:[%s4883_s23 + $0x20] sm:$0xff]   ;;  %v4713_v19 = vld [vmem:[%s4883_s23 + $0x28] sm:$0xff]   ;;  %v4714_v20 = vld [vmem:[%s4883_s23 + $0x1f0] sm:$0xff]  }
  0x15   : > { %v4715_v21 = vld [vmem:[%s4883_s23 + $0x30] sm:$0xff]   ;;  %v4716_v22 = vld [vmem:[%s4883_s23 + $0x1f8] sm:$0xff]   ;;  %v4718_v24 = vld [vmem:[%s4883_s23 + $0x200] sm:$0xff]  }
  0x16   : > { %v4717_v23 = vld [vmem:[%s4883_s23 + $0x38] sm:$0xff]   ;;  %v4719_v25 = vld [vmem:[%s4883_s23 + $0x40] sm:$0xff]   ;;  %v4720_v26 = vld [vmem:[%s4883_s23 + $0x208] sm:$0xff]  }
  0x17   : > { %4209 = vmatpush3.bf16.msra.mxu0 %v4699_v5  ;;  %4680 = vmatpush3.bf16.msra.mxu1 %v4699_v5  ;;  %v4721_v27 = vld [vmem:[%s4883_s23 + $0x48] sm:$0xff]   ;;  %v4722_v28 = vld [vmem:[%s4883_s23 + $0x210] sm:$0xff]   ;;  %v4724_v30 = vld [vmem:[%s4883_s23 + $0x218] sm:$0xff]  }
  0x18   : > { %4210 = vmatprep.subr.bf16.mxu0 %v4826_v1  ;;  %4673 = vmatprep.subr.bf16.mxu1 %v4826_v1  ;;  %v4723_v29 = vld [vmem:[%s4883_s23 + $0x50] sm:$0xff]   ;;  %v4725_v31 = vld [vmem:[%s4883_s23 + $0x58] sm:$0xff]   ;;  %v4726_v32 = vld [vmem:[%s4883_s23 + $0x220] sm:$0xff]  }
  0x19   : > { %v4727_v33 = vld [vmem:[%s4883_s23 + $0x60] sm:$0xff]   ;;  %v4728_v34 = vld [vmem:[%s4883_s23 + $0x228] sm:$0xff]   ;;  %v4730_v36 = vld [vmem:[%s4883_s23 + $0x230] sm:$0xff]  }
  0x1a   : > { %v4729_v35 = vld [vmem:[%s4883_s23 + $0x68] sm:$0xff]   ;;  %v4731_v37 = vld [vmem:[%s4883_s23 + $0x70] sm:$0xff]   ;;  %v4732_v38 = vld [vmem:[%s4883_s23 + $0x238] sm:$0xff]  }
  0x1b   : > { %4211 = vmatpush3.bf16.msra.mxu0 %v4700_v6  ;;  %4681 = vmatpush3.bf16.msra.mxu1 %v4700_v6  ;;  %v4733_v39 = vld [vmem:[%s4883_s23 + $0x78] sm:$0xff]   ;;  %v4734_v40 = vld [vmem:[%s4883_s23 + $0x240] sm:$0xff]   ;;  %v4736_v42 = vld [vmem:[%s4883_s23 + $0x248] sm:$0xff]  }
  0x1c   : > { %4212 = vmatprep.subr.bf16.mxu0 %v4826_v1  ;;  %4674 = vmatprep.subr.bf16.mxu1 %v4826_v1  ;;  %v4735_v41 = vld [vmem:[%s4883_s23 + $0x80] sm:$0xff]   ;;  %v4737_v43 = vld [vmem:[%s4883_s23 + $0x88] sm:$0xff]   ;;  %v4738_v44 = vld [vmem:[%s4883_s23 + $0x250] sm:$0xff]  }
  0x1d   : > { %v4739_v45 = vld [vmem:[%s4883_s23 + $0x90] sm:$0xff]   ;;  %v4740_v46 = vld [vmem:[%s4883_s23 + $0x258] sm:$0xff]   ;;  %v4742_v48 = vld [vmem:[%s4883_s23 + $0x260] sm:$0xff]  }
  0x1e   : > { %v4741_v47 = vld [vmem:[%s4883_s23 + $0x98] sm:$0xff]   ;;  %v4743_v49 = vld [vmem:[%s4883_s23 + $0xa0] sm:$0xff]   ;;  %v4744_v50 = vld [vmem:[%s4883_s23 + $0x268] sm:$0xff]  }
  0x1f   : > { %4213 = vmatpush3.bf16.msra.mxu0 %v4701_v7  ;;  %4682 = vmatpush3.bf16.msra.mxu1 %v4701_v7  ;;  %v4745_v51 = vld [vmem:[%s4883_s23 + $0xa8] sm:$0xff]   ;;  %v4746_v52 = vld [vmem:[%s4883_s23 + $0x270] sm:$0xff]   ;;  %v4748_v54 = vld [vmem:[%s4883_s23 + $0x278] sm:$0xff]  }
  0x20   : > { %4214 = vmatprep.subr.bf16.mxu0 %v4826_v1  ;;  %4675 = vmatprep.subr.bf16.mxu1 %v4826_v1  ;;  %v4747_v53 = vld [vmem:[%s4883_s23 + $0xb0] sm:$0xff]   ;;  %v4749_v55 = vld [vmem:[%s4883_s23 + $0xb8] sm:$0xff]   ;;  %v4750_v56 = vld [vmem:[%s4883_s23 + $0x280] sm:$0xff]  }
  0x21   : > { %v4751_v57 = vld [vmem:[%s4883_s23 + $0xc0] sm:$0xff]   ;;  %v4752_v58 = vld [vmem:[%s4883_s23 + $0x288] sm:$0xff]   ;;  %v4754_v60 = vld [vmem:[%s4883_s23 + $0x290] sm:$0xff]  }
  0x22   : > { %v4753_v59 = vld [vmem:[%s4883_s23 + $0xc8] sm:$0xff]   ;;  %v4755_v61 = vld [vmem:[%s4883_s23 + $0xd0] sm:$0xff]   ;;  %v4756_v62 = vld [vmem:[%s4883_s23 + $0x298] sm:$0xff]  }
  0x23   : > { %4215 = vmatpush3.bf16.msra.mxu0 %v4702_v8  ;;  %4683 = vmatpush3.bf16.msra.mxu1 %v4702_v8  ;;  %v4757_v5 = vld [vmem:[%s4883_s23 + $0xd8] sm:$0xff]   ;;  %v4758_v8 = vld [vmem:[%s4883_s23 + $0x2a0] sm:$0xff]  }
  0x26   : > { %4217 = vmatmul.mubr.bf16.vlgmr.msra.gmra.mrb[0].mxu0 %v4703_v9  ;;  %4445 = vmatmul.mubr.bf16.vlgmr.msra.gmra.mrb[0].mxu1 %v4704_v10 }
  0x27   : > { %4220 = vmatprep.mubr.msk.bf16.mxu0 %vm4827_vm0, %v4826_v1  ;;  %4448 = vmatprep.mubr.msk.bf16.mxu1 %vm4827_vm0, %v4826_v1 }
  0x2e   : > { %4221 = vmatmul.mubr.bf16.gmra.mrb[4].mxu0 %v4705_v11  ;;  %4449 = vmatmul.mubr.bf16.gmra.mrb[4].mxu1 %v4706_v12 }
  0x2f   : > { %4224 = vmatprep.mubr.msk.bf16.mxu0 %vm4827_vm0, %v4826_v1  ;;  %4452 = vmatprep.mubr.msk.bf16.mxu1 %vm4827_vm0, %v4826_v1 }
  0x36   : > { %4225 = vmatmul.mubr.bf16.gmra.mrb[8].mxu0 %v4707_v13  ;;  %4453 = vmatmul.mubr.bf16.gmra.mrb[8].mxu1 %v4708_v14 }
  0x37   : > { %4228 = vmatprep.mubr.msk.bf16.mxu0 %vm4827_vm0, %v4826_v1  ;;  %4456 = vmatprep.mubr.msk.bf16.mxu1 %vm4827_vm0, %v4826_v1 }
  0x3e   : > { %4229 = vmatmul.mubr.bf16.gmra.mrb[12].mxu0 %v4709_v15  ;;  %4457 = vmatmul.mubr.bf16.gmra.mrb[12].mxu1 %v4710_v16 }
  0x3f   : > { %4232 = vmatprep.mubr.msk.bf16.mxu0 %vm4827_vm0, %v4826_v1  ;;  %4460 = vmatprep.mubr.msk.bf16.mxu1 %vm4827_vm0, %v4826_v1 }
  0x46   : > { %4233 = vmatmul.mubr.bf16.gmra.mrb[16].mxu0 %v4711_v17  ;;  %4461 = vmatmul.mubr.bf16.gmra.mrb[16].mxu1 %v4712_v18 }
  0x47   : > { %4236 = vmatprep.mubr.msk.bf16.mxu0 %vm4827_vm0, %v4826_v1  ;;  %4464 = vmatprep.mubr.msk.bf16.mxu1 %vm4827_vm0, %v4826_v1 }
  0x4e   : > { %4237 = vmatmul.mubr.bf16.gmra.mrb[20].mxu0 %v4713_v19  ;;  %4465 = vmatmul.mubr.bf16.gmra.mrb[20].mxu1 %v4714_v20 }
  0x4f   : > { %4240 = vmatprep.mubr.msk.bf16.mxu0 %vm4827_vm0, %v4826_v1  ;;  %4468 = vmatprep.mubr.msk.bf16.mxu1 %vm4827_vm0, %v4826_v1 }
  0x56   : > { %4241 = vmatmul.mubr.bf16.gmra.mrb[24].mxu0 %v4715_v21  ;;  %4469 = vmatmul.mubr.bf16.gmra.mrb[24].mxu1 %v4716_v22 }
  0x57   : > { %4244 = vmatprep.mubr.msk.bf16.mxu0 %vm4827_vm0, %v4826_v1  ;;  %4472 = vmatprep.mubr.msk.bf16.mxu1 %vm4827_vm0, %v4826_v1 }
  0x5e   : > { %4245 = vmatmul.mubr.bf16.gmra.mrb[28].mxu0 %v4717_v23  ;;  %4473 = vmatmul.mubr.bf16.gmra.mrb[28].mxu1 %v4718_v24 }
  0x5f   : > { %4248 = vmatprep.mubr.msk.bf16.mxu0 %vm4827_vm0, %v4826_v1  ;;  %4476 = vmatprep.mubr.msk.bf16.mxu1 %vm4827_vm0, %v4826_v1 }
  0x66   : > { %4249 = vmatmul.mubr.bf16.gmra.mrb[32].mxu0 %v4719_v25  ;;  %4477 = vmatmul.mubr.bf16.gmra.mrb[32].mxu1 %v4720_v26 }
  0x67   : > { %4252 = vmatprep.mubr.msk.bf16.mxu0 %vm4827_vm0, %v4826_v1  ;;  %4480 = vmatprep.mubr.msk.bf16.mxu1 %vm4827_vm0, %v4826_v1 }
  0x6e   : > { %4253 = vmatmul.mubr.bf16.gmra.mrb[36].mxu0 %v4721_v27  ;;  %4481 = vmatmul.mubr.bf16.gmra.mrb[36].mxu1 %v4722_v28  ;;  %v4759_v27 = vld [vmem:[%s4883_s23 + $0xe0] sm:$0xff]  }
  0x6f   : > { %4256 = vmatprep.mubr.msk.bf16.mxu0 %vm4827_vm0, %v4826_v1  ;;  %4484 = vmatprep.mubr.msk.bf16.mxu1 %vm4827_vm0, %v4826_v1 }
  0x76   : > { %4257 = vmatmul.mubr.bf16.gmra.mrb[40].mxu0 %v4723_v29  ;;  %4485 = vmatmul.mubr.bf16.gmra.mrb[40].mxu1 %v4724_v30  ;;  %v4760_v30 = vld [vmem:[%s4883_s23 + $0x2a8] sm:$0xff]  }
  0x77   : > { %4260 = vmatprep.mubr.msk.bf16.mxu0 %vm4827_vm0, %v4826_v1  ;;  %4488 = vmatprep.mubr.msk.bf16.mxu1 %vm4827_vm0, %v4826_v1 }
  0x7e   : > { %4261 = vmatmul.mubr.bf16.gmra.mrb[44].mxu0 %v4725_v31  ;;  %4489 = vmatmul.mubr.bf16.gmra.mrb[44].mxu1 %v4726_v32 }
  0x7f   : > { %4264 = vmatprep.mubr.msk.bf16.mxu0 %vm4827_vm0, %v4826_v1  ;;  %4492 = vmatprep.mubr.msk.bf16.mxu1 %vm4827_vm0, %v4826_v1 }
  0x86   : > { %4265 = vmatmul.mubr.bf16.gmra.mrb[48].mxu0 %v4727_v33  ;;  %4493 = vmatmul.mubr.bf16.gmra.mrb[48].mxu1 %v4728_v34 }
  0x87   : > { %4268 = vmatprep.mubr.msk.bf16.mxu0 %vm4827_vm0, %v4826_v1  ;;  %4496 = vmatprep.mubr.msk.bf16.mxu1 %vm4827_vm0, %v4826_v1 }
  0x8e   : > { %4269 = vmatmul.mubr.bf16.gmra.mrb[52].mxu0 %v4729_v35  ;;  %4497 = vmatmul.mubr.bf16.gmra.mrb[52].mxu1 %v4730_v36 }
  0x8f   : > { %4272 = vmatprep.mubr.msk.bf16.mxu0 %vm4827_vm0, %v4826_v1  ;;  %4500 = vmatprep.mubr.msk.bf16.mxu1 %vm4827_vm0, %v4826_v1 }
  0x96   : > { %4273 = vmatmul.mubr.bf16.gmra.mrb[56].mxu0 %v4731_v37  ;;  %4501 = vmatmul.mubr.bf16.gmra.mrb[56].mxu1 %v4732_v38 }
  0x97   : > { %4276 = vmatprep.mubr.msk.bf16.mxu0 %vm4827_vm0, %v4826_v1  ;;  %4504 = vmatprep.mubr.msk.bf16.mxu1 %vm4827_vm0, %v4826_v1 }
  0x9e   : > { %4277 = vmatmul.mubr.bf16.gmra.mrb[60].mxu0 %v4733_v39  ;;  %4505 = vmatmul.mubr.bf16.gmra.mrb[60].mxu1 %v4734_v40 }
  0x9f   : > { %4280 = vmatprep.mubr.msk.bf16.mxu0 %vm4827_vm0, %v4826_v1  ;;  %4508 = vmatprep.mubr.msk.bf16.mxu1 %vm4827_vm0, %v4826_v1 }
  0xa6   : > { %4281 = vmatmul.mubr.bf16.gmra.mrb[64].mxu0 %v4735_v41  ;;  %4509 = vmatmul.mubr.bf16.gmra.mrb[64].mxu1 %v4736_v42 }
  0xa7   : > { %4284 = vmatprep.mubr.msk.bf16.mxu0 %vm4827_vm0, %v4826_v1  ;;  %4512 = vmatprep.mubr.msk.bf16.mxu1 %vm4827_vm0, %v4826_v1 }
  0xae   : > { %4285 = vmatmul.mubr.bf16.gmra.mrb[68].mxu0 %v4737_v43  ;;  %4513 = vmatmul.mubr.bf16.gmra.mrb[68].mxu1 %v4738_v44 }
  0xaf   : > { %4288 = vmatprep.mubr.msk.bf16.mxu0 %vm4827_vm0, %v4826_v1  ;;  %4516 = vmatprep.mubr.msk.bf16.mxu1 %vm4827_vm0, %v4826_v1 }
  0xb6   : > { %4289 = vmatmul.mubr.bf16.gmra.mrb[72].mxu0 %v4739_v45  ;;  %4517 = vmatmul.mubr.bf16.gmra.mrb[72].mxu1 %v4740_v46 }
  0xb7   : > { %4292 = vmatprep.mubr.msk.bf16.mxu0 %vm4827_vm0, %v4826_v1  ;;  %4520 = vmatprep.mubr.msk.bf16.mxu1 %vm4827_vm0, %v4826_v1 }
  0xbe   : > { %4293 = vmatmul.mubr.bf16.gmra.mrb[76].mxu0 %v4741_v47  ;;  %4521 = vmatmul.mubr.bf16.gmra.mrb[76].mxu1 %v4742_v48 }
  0xbf   : > { %4296 = vmatprep.mubr.msk.bf16.mxu0 %vm4827_vm0, %v4826_v1  ;;  %4524 = vmatprep.mubr.msk.bf16.mxu1 %vm4827_vm0, %v4826_v1 }
  0xc6   : > { %4297 = vmatmul.mubr.bf16.gmra.mrb[80].mxu0 %v4743_v49  ;;  %4525 = vmatmul.mubr.bf16.gmra.mrb[80].mxu1 %v4744_v50  ;;  %v4761_v49 = vld [vmem:[%s4883_s23 + $0xe8] sm:$0xff]  }
  0xc7   : > { %4300 = vmatprep.mubr.msk.bf16.mxu0 %vm4827_vm0, %v4826_v1  ;;  %4528 = vmatprep.mubr.msk.bf16.mxu1 %vm4827_vm0, %v4826_v1 }
  0xce   : > { %4301 = vmatmul.mubr.bf16.gmra.mrb[84].mxu0 %v4745_v51  ;;  %4529 = vmatmul.mubr.bf16.gmra.mrb[84].mxu1 %v4746_v52  ;;  %v4762_v52 = vld [vmem:[%s4883_s23 + $0x2b0] sm:$0xff]  }
  0xcf   : > { %4304 = vmatprep.mubr.msk.bf16.mxu0 %vm4827_vm0, %v4826_v1  ;;  %4532 = vmatprep.mubr.msk.bf16.mxu1 %vm4827_vm0, %v4826_v1 }
  0xd6   : > { %4305 = vmatmul.mubr.bf16.gmra.mrb[88].mxu0 %v4747_v53  ;;  %4533 = vmatmul.mubr.bf16.gmra.mrb[88].mxu1 %v4748_v54 }
  0xd7   : > { %4308 = vmatprep.mubr.msk.bf16.mxu0 %vm4827_vm0, %v4826_v1  ;;  %4536 = vmatprep.mubr.msk.bf16.mxu1 %vm4827_vm0, %v4826_v1 }
  0xde   : > { %4309 = vmatmul.mubr.bf16.gmra.mrb[92].mxu0 %v4749_v55  ;;  %4537 = vmatmul.mubr.bf16.gmra.mrb[92].mxu1 %v4750_v56 }
  0xdf   : > { %4312 = vmatprep.mubr.msk.bf16.mxu0 %vm4827_vm0, %v4826_v1  ;;  %4540 = vmatprep.mubr.msk.bf16.mxu1 %vm4827_vm0, %v4826_v1 }
  0xe6   : > { %4313 = vmatmul.mubr.bf16.gmra.mrb[96].mxu0 %v4751_v57  ;;  %4541 = vmatmul.mubr.bf16.gmra.mrb[96].mxu1 %v4752_v58 }
  0xe7   : > { %4316 = vmatprep.mubr.msk.bf16.mxu0 %vm4827_vm0, %v4826_v1  ;;  %4544 = vmatprep.mubr.msk.bf16.mxu1 %vm4827_vm0, %v4826_v1 }
  0xee   : > { %4317 = vmatmul.mubr.bf16.gmra.mrb[100].mxu0 %v4753_v59  ;;  %4545 = vmatmul.mubr.bf16.gmra.mrb[100].mxu1 %v4754_v60 }
  0xef   : > { %4320 = vmatprep.mubr.msk.bf16.mxu0 %vm4827_vm0, %v4826_v1  ;;  %4548 = vmatprep.mubr.msk.bf16.mxu1 %vm4827_vm0, %v4826_v1 }
  0xf6   : > { %4321 = vmatmul.mubr.bf16.gmra.mrb[104].mxu0 %v4755_v61  ;;  %4549 = vmatmul.mubr.bf16.gmra.mrb[104].mxu1 %v4756_v62 }
  0xf7   : > { %4324 = vmatprep.mubr.msk.bf16.mxu0 %vm4827_vm0, %v4826_v1  ;;  %4552 = vmatprep.mubr.msk.bf16.mxu1 %vm4827_vm0, %v4826_v1 }
  0xf9   : > { %v1181_v0 = vpop.f32.mrb[0].mxu0  ;;  %v1637_v2 = vpop.f32.mrb[0].mxu1 }
  0xfa   : > { %v1182_v3 = vadd.f32 %v5071_v63, %v1181_v0  ;;  %v4218_v4 = vpop.f32.mrb[1].mxu0  ;;  %v1638_v6 = vadd.f32 %v5071_v63, %v1637_v2  ;;  %v4446_v7 = vpop.f32.mrb[1].mxu1 }
  0xfb   : > { %v1184_v9 = vpop.f32.mrb[2].mxu0  ;;  %v1640_v10 = vpop.f32.mrb[2].mxu1 }
  0xfc   : > { %v2084_v11 = vmax.f32 %v1182_v3, 0.0  ;;  %v1185_v12 = vadd.f32 %v5071_v63, %v1184_v9  ;;  %v4219_v13 = vpop.f32.mrb[3].mxu0  ;;  %v2198_v14 = vmax.f32 %v1638_v6, 0.0  ;;  %v1641_v15 = vadd.f32 %v5071_v63, %v1640_v10  ;;  %v4447_v16 = vpop.f32.mrb[3].mxu1  ;;  %v4763_v9 = vld [vmem:[%s4883_s23 + $0xf0] sm:$0xff]  }
  0xfe   : > { %v3853_v17 = vpack.c.bf16 %v2084_v11, %v2084_v11  ;;  %v2085_v18 = vmax.f32 %v1185_v12, 0.0  ;;  %4325 = vmatmul.mubr.bf16.gmra.mrb[108].mxu0 %v4757_v5  ;;  %v3967_v19 = vpack.c.bf16 %v2198_v14, %v2198_v14  ;;  %v2199_v20 = vmax.f32 %v1641_v15, 0.0  ;;  %4553 = vmatmul.mubr.bf16.gmra.mrb[108].mxu1 %v4758_v8  ;;  %v4764_v12 = vld [vmem:[%s4883_s23 + $0x2b8] sm:$0xff]  }
  0xff   : > { %4328 = vmatprep.mubr.msk.bf16.mxu0 %vm4827_vm0, %v4826_v1  ;;  %4556 = vmatprep.mubr.msk.bf16.mxu1 %vm4827_vm0, %v4826_v1 }
 0x100   : > { %3215 = vst.msk [vmem:[%s5088_s11] sm:$0xf] %vm3214_vm1, %v3853_v17  ;;  %v3854_v21 = vpack.c.bf16 %v2085_v18, %v2085_v18  ;;  %3329 = vst.msk [vmem:[%s5088_s11 + $0x1c8] sm:$0xf] %vm3214_vm1, %v3967_v19  ;;  %v3968_v22 = vpack.c.bf16 %v2199_v20, %v2199_v20 }
 0x101   : > { %v1189_v23 = vpop.f32.mrb[4].mxu0  ;;  %v1645_v24 = vpop.f32.mrb[4].mxu1 }
 0x102   : > { %3216 = vst.msk [vmem:[%s5088_s11 + $0x4] sm:$0xf] %vm3214_vm1, %v3854_v21  ;;  %3330 = vst.msk [vmem:[%s5088_s11 + $0x1cc] sm:$0xf] %vm3214_vm1, %v3968_v22  ;;  %v1190_v25 = vadd.f32 %v5071_v63, %v1189_v23  ;;  %v4222_v26 = vpop.f32.mrb[5].mxu0  ;;  %v1646_v28 = vadd.f32 %v5071_v63, %v1645_v24  ;;  %v4450_v29 = vpop.f32.mrb[5].mxu1 }
 0x103   : > { %v1192_v31 = vpop.f32.mrb[6].mxu0  ;;  %v1648_v32 = vpop.f32.mrb[6].mxu1 }
 0x104   : > { %v2086_v33 = vmax.f32 %v1190_v25, 0.0  ;;  %v1193_v34 = vadd.f32 %v5071_v63, %v1192_v31  ;;  %v4223_v35 = vpop.f32.mrb[7].mxu0  ;;  %v2200_v36 = vmax.f32 %v1646_v28, 0.0  ;;  %v1649_v37 = vadd.f32 %v5071_v63, %v1648_v32  ;;  %v4451_v38 = vpop.f32.mrb[7].mxu1  ;;  %v4765_v31 = vld [vmem:[%s4883_s23 + $0xf8] sm:$0xff]  }
 0x106   : > { %v3855_v39 = vpack.c.bf16 %v2086_v33, %v2086_v33  ;;  %v2087_v40 = vmax.f32 %v1193_v34, 0.0  ;;  %4329 = vmatmul.mubr.bf16.gmra.mrb[112].mxu0 %v4759_v27  ;;  %v3969_v41 = vpack.c.bf16 %v2200_v36, %v2200_v36  ;;  %v2201_v42 = vmax.f32 %v1649_v37, 0.0  ;;  %4557 = vmatmul.mubr.bf16.gmra.mrb[112].mxu1 %v4760_v30  ;;  %v4766_v34 = vld [vmem:[%s4883_s23 + $0x2c0] sm:$0xff]  }
 0x107   : > { %4332 = vmatprep.mubr.msk.bf16.mxu0 %vm4827_vm0, %v4826_v1  ;;  %4560 = vmatprep.mubr.msk.bf16.mxu1 %vm4827_vm0, %v4826_v1 }
 0x108   : > { %3217 = vst.msk [vmem:[%s5088_s11 + $0x8] sm:$0xf] %vm3214_vm1, %v3855_v39  ;;  %v3856_v43 = vpack.c.bf16 %v2087_v40, %v2087_v40  ;;  %3331 = vst.msk [vmem:[%s5088_s11 + $0x1d0] sm:$0xf] %vm3214_vm1, %v3969_v41  ;;  %v3970_v44 = vpack.c.bf16 %v2201_v42, %v2201_v42 }
 0x109   : > { %v1197_v45 = vpop.f32.mrb[8].mxu0  ;;  %v1653_v46 = vpop.f32.mrb[8].mxu1 }
 0x10a   : > { %3218 = vst.msk [vmem:[%s5088_s11 + $0xc] sm:$0xf] %vm3214_vm1, %v3856_v43  ;;  %3332 = vst.msk [vmem:[%s5088_s11 + $0x1d4] sm:$0xf] %vm3214_vm1, %v3970_v44  ;;  %v1198_v47 = vadd.f32 %v5071_v63, %v1197_v45  ;;  %v4226_v48 = vpop.f32.mrb[9].mxu0  ;;  %v1654_v50 = vadd.f32 %v5071_v63, %v1653_v46  ;;  %v4454_v51 = vpop.f32.mrb[9].mxu1 }
 0x10b   : > { %v1200_v53 = vpop.f32.mrb[10].mxu0  ;;  %v1656_v54 = vpop.f32.mrb[10].mxu1 }
 0x10c   : > { %v2088_v55 = vmax.f32 %v1198_v47, 0.0  ;;  %v1201_v56 = vadd.f32 %v5071_v63, %v1200_v53  ;;  %v4227_v57 = vpop.f32.mrb[11].mxu0  ;;  %v2202_v58 = vmax.f32 %v1654_v50, 0.0  ;;  %v1657_v59 = vadd.f32 %v5071_v63, %v1656_v54  ;;  %v4455_v60 = vpop.f32.mrb[11].mxu1  ;;  %v4767_v53 = vld [vmem:[%s4883_s23 + $0x100] sm:$0xff]  }
 0x10e   : > { %v3857_v61 = vpack.c.bf16 %v2088_v55, %v2088_v55  ;;  %v2089_v62 = vmax.f32 %v1201_v56, 0.0  ;;  %4333 = vmatmul.mubr.bf16.gmra.mrb[116].mxu0 %v4761_v49  ;;  %v3971_v0 = vpack.c.bf16 %v2202_v58, %v2202_v58  ;;  %v2203_v2 = vmax.f32 %v1657_v59, 0.0  ;;  %4561 = vmatmul.mubr.bf16.gmra.mrb[116].mxu1 %v4762_v52  ;;  %v4768_v56 = vld [vmem:[%s4883_s23 + $0x2c8] sm:$0xff]  }
 0x10f   : > { %4336 = vmatprep.mubr.msk.bf16.mxu0 %vm4827_vm0, %v4826_v1  ;;  %4564 = vmatprep.mubr.msk.bf16.mxu1 %vm4827_vm0, %v4826_v1 }
 0x110   : > { %3219 = vst.msk [vmem:[%s5088_s11 + $0x10] sm:$0xf] %vm3214_vm1, %v3857_v61  ;;  %v3858_v3 = vpack.c.bf16 %v2089_v62, %v2089_v62  ;;  %3333 = vst.msk [vmem:[%s5088_s11 + $0x1d8] sm:$0xf] %vm3214_vm1, %v3971_v0  ;;  %v3972_v4 = vpack.c.bf16 %v2203_v2, %v2203_v2 }
 0x111   : > { %v1205_v5 = vpop.f32.mrb[12].mxu0  ;;  %v1661_v6 = vpop.f32.mrb[12].mxu1 }
 0x112   : > { %3220 = vst.msk [vmem:[%s5088_s11 + $0x14] sm:$0xf] %vm3214_vm1, %v3858_v3  ;;  %3334 = vst.msk [vmem:[%s5088_s11 + $0x1dc] sm:$0xf] %vm3214_vm1, %v3972_v4  ;;  %v1206_v7 = vadd.f32 %v5071_v63, %v1205_v5  ;;  %v4230_v8 = vpop.f32.mrb[13].mxu0  ;;  %v1662_v10 = vadd.f32 %v5071_v63, %v1661_v6  ;;  %v4458_v11 = vpop.f32.mrb[13].mxu1 }
 0x113   : > { %v1208_v13 = vpop.f32.mrb[14].mxu0  ;;  %v1664_v14 = vpop.f32.mrb[14].mxu1 }
 0x114   : > { %v2090_v15 = vmax.f32 %v1206_v7, 0.0  ;;  %v1209_v16 = vadd.f32 %v5071_v63, %v1208_v13  ;;  %v4231_v17 = vpop.f32.mrb[15].mxu0  ;;  %v2204_v18 = vmax.f32 %v1662_v10, 0.0  ;;  %v1665_v19 = vadd.f32 %v5071_v63, %v1664_v14  ;;  %v4459_v20 = vpop.f32.mrb[15].mxu1  ;;  %v4769_v13 = vld [vmem:[%s4883_s23 + $0x108] sm:$0xff]  }
 0x116   : > { %v3859_v21 = vpack.c.bf16 %v2090_v15, %v2090_v15  ;;  %v2091_v22 = vmax.f32 %v1209_v16, 0.0  ;;  %4337 = vmatmul.mubr.bf16.gmra.mrb[120].mxu0 %v4763_v9  ;;  %v3973_v23 = vpack.c.bf16 %v2204_v18, %v2204_v18  ;;  %v2205_v24 = vmax.f32 %v1665_v19, 0.0  ;;  %4565 = vmatmul.mubr.bf16.gmra.mrb[120].mxu1 %v4764_v12  ;;  %v4770_v16 = vld [vmem:[%s4883_s23 + $0x2d0] sm:$0xff]  }
 0x117   : > { %4340 = vmatprep.mubr.msk.bf16.mxu0 %vm4827_vm0, %v4826_v1  ;;  %4568 = vmatprep.mubr.msk.bf16.mxu1 %vm4827_vm0, %v4826_v1 }
 0x118   : > { %3221 = vst.msk [vmem:[%s5088_s11 + $0x18] sm:$0xf] %vm3214_vm1, %v3859_v21  ;;  %v3860_v25 = vpack.c.bf16 %v2091_v22, %v2091_v22  ;;  %3335 = vst.msk [vmem:[%s5088_s11 + $0x1e0] sm:$0xf] %vm3214_vm1, %v3973_v23  ;;  %v3974_v26 = vpack.c.bf16 %v2205_v24, %v2205_v24 }
 0x119   : > { %v1213_v27 = vpop.f32.mrb[16].mxu0  ;;  %v1669_v28 = vpop.f32.mrb[16].mxu1 }
 0x11a   : > { %3222 = vst.msk [vmem:[%s5088_s11 + $0x1c] sm:$0xf] %vm3214_vm1, %v3860_v25  ;;  %3336 = vst.msk [vmem:[%s5088_s11 + $0x1e4] sm:$0xf] %vm3214_vm1, %v3974_v26  ;;  %v1214_v29 = vadd.f32 %v5071_v63, %v1213_v27  ;;  %v4234_v30 = vpop.f32.mrb[17].mxu0  ;;  %v1670_v32 = vadd.f32 %v5071_v63, %v1669_v28  ;;  %v4462_v33 = vpop.f32.mrb[17].mxu1 }
 0x11b   : > { %v1216_v35 = vpop.f32.mrb[18].mxu0  ;;  %v1672_v36 = vpop.f32.mrb[18].mxu1 }
 0x11c   : > { %v2092_v37 = vmax.f32 %v1214_v29, 0.0  ;;  %v1217_v38 = vadd.f32 %v5071_v63, %v1216_v35  ;;  %v4235_v39 = vpop.f32.mrb[19].mxu0  ;;  %v2206_v40 = vmax.f32 %v1670_v32, 0.0  ;;  %v1673_v41 = vadd.f32 %v5071_v63, %v1672_v36  ;;  %v4463_v42 = vpop.f32.mrb[19].mxu1  ;;  %v4771_v35 = vld [vmem:[%s4883_s23 + $0x110] sm:$0xff]  }
 0x11e   : > { %v3861_v43 = vpack.c.bf16 %v2092_v37, %v2092_v37  ;;  %v2093_v44 = vmax.f32 %v1217_v38, 0.0  ;;  %4341 = vmatmul.mubr.bf16.gmra.mrb[124].mxu0 %v4765_v31  ;;  %v3975_v45 = vpack.c.bf16 %v2206_v40, %v2206_v40  ;;  %v2207_v46 = vmax.f32 %v1673_v41, 0.0  ;;  %4569 = vmatmul.mubr.bf16.gmra.mrb[124].mxu1 %v4766_v34  ;;  %v4772_v38 = vld [vmem:[%s4883_s23 + $0x2d8] sm:$0xff]  }
 0x11f   : > { %4344 = vmatprep.mubr.msk.bf16.mxu0 %vm4827_vm0, %v4826_v1  ;;  %4572 = vmatprep.mubr.msk.bf16.mxu1 %vm4827_vm0, %v4826_v1 }
 0x120   : > { %3223 = vst.msk [vmem:[%s5088_s11 + $0x20] sm:$0xf] %vm3214_vm1, %v3861_v43  ;;  %v3862_v47 = vpack.c.bf16 %v2093_v44, %v2093_v44  ;;  %3337 = vst.msk [vmem:[%s5088_s11 + $0x1e8] sm:$0xf] %vm3214_vm1, %v3975_v45  ;;  %v3976_v48 = vpack.c.bf16 %v2207_v46, %v2207_v46 }
 0x121   : > { %v1221_v49 = vpop.f32.mrb[20].mxu0  ;;  %v1677_v50 = vpop.f32.mrb[20].mxu1 }
 0x122   : > { %3224 = vst.msk [vmem:[%s5088_s11 + $0x24] sm:$0xf] %vm3214_vm1, %v3862_v47  ;;  %3338 = vst.msk [vmem:[%s5088_s11 + $0x1ec] sm:$0xf] %vm3214_vm1, %v3976_v48  ;;  %v1222_v51 = vadd.f32 %v5071_v63, %v1221_v49  ;;  %v4238_v52 = vpop.f32.mrb[21].mxu0  ;;  %v1678_v54 = vadd.f32 %v5071_v63, %v1677_v50  ;;  %v4466_v55 = vpop.f32.mrb[21].mxu1 }
 0x123   : > { %v1224_v57 = vpop.f32.mrb[22].mxu0  ;;  %v1680_v58 = vpop.f32.mrb[22].mxu1 }
 0x124   : > { %v2094_v59 = vmax.f32 %v1222_v51, 0.0  ;;  %v1225_v60 = vadd.f32 %v5071_v63, %v1224_v57  ;;  %v4239_v61 = vpop.f32.mrb[23].mxu0  ;;  %v2208_v62 = vmax.f32 %v1678_v54, 0.0  ;;  %v1681_v0 = vadd.f32 %v5071_v63, %v1680_v58  ;;  %v4467_v2 = vpop.f32.mrb[23].mxu1  ;;  %v4773_v57 = vld [vmem:[%s4883_s23 + $0x118] sm:$0xff]  }
 0x126   : > { %v3863_v3 = vpack.c.bf16 %v2094_v59, %v2094_v59  ;;  %v2095_v4 = vmax.f32 %v1225_v60, 0.0  ;;  %4345 = vmatmul.mubr.bf16.gmra.mrb[128].mxu0 %v4767_v53  ;;  %v3977_v5 = vpack.c.bf16 %v2208_v62, %v2208_v62  ;;  %v2209_v6 = vmax.f32 %v1681_v0, 0.0  ;;  %4573 = vmatmul.mubr.bf16.gmra.mrb[128].mxu1 %v4768_v56  ;;  %v4774_v60 = vld [vmem:[%s4883_s23 + $0x2e0] sm:$0xff]  }
 0x127   : > { %4348 = vmatprep.mubr.msk.bf16.mxu0 %vm4827_vm0, %v4826_v1  ;;  %4576 = vmatprep.mubr.msk.bf16.mxu1 %vm4827_vm0, %v4826_v1 }
 0x128   : > { %3225 = vst.msk [vmem:[%s5088_s11 + $0x28] sm:$0xf] %vm3214_vm1, %v3863_v3  ;;  %v3864_v7 = vpack.c.bf16 %v2095_v4, %v2095_v4  ;;  %3339 = vst.msk [vmem:[%s5088_s11 + $0x1f0] sm:$0xf] %vm3214_vm1, %v3977_v5  ;;  %v3978_v8 = vpack.c.bf16 %v2209_v6, %v2209_v6 }
 0x129   : > { %v1229_v9 = vpop.f32.mrb[24].mxu0  ;;  %v1685_v10 = vpop.f32.mrb[24].mxu1 }
 0x12a   : > { %3226 = vst.msk [vmem:[%s5088_s11 + $0x2c] sm:$0xf] %vm3214_vm1, %v3864_v7  ;;  %3340 = vst.msk [vmem:[%s5088_s11 + $0x1f4] sm:$0xf] %vm3214_vm1, %v3978_v8  ;;  %v1230_v11 = vadd.f32 %v5071_v63, %v1229_v9  ;;  %v4242_v12 = vpop.f32.mrb[25].mxu0  ;;  %v1686_v14 = vadd.f32 %v5071_v63, %v1685_v10  ;;  %v4470_v15 = vpop.f32.mrb[25].mxu1 }
 0x12b   : > { %v1232_v17 = vpop.f32.mrb[26].mxu0  ;;  %v1688_v18 = vpop.f32.mrb[26].mxu1 }
 0x12c   : > { %v2096_v19 = vmax.f32 %v1230_v11, 0.0  ;;  %v1233_v20 = vadd.f32 %v5071_v63, %v1232_v17  ;;  %v4243_v21 = vpop.f32.mrb[27].mxu0  ;;  %v2210_v22 = vmax.f32 %v1686_v14, 0.0  ;;  %v1689_v23 = vadd.f32 %v5071_v63, %v1688_v18  ;;  %v4471_v24 = vpop.f32.mrb[27].mxu1  ;;  %v4775_v17 = vld [vmem:[%s4883_s23 + $0x120] sm:$0xff]  }
 0x12e   : > { %v3865_v25 = vpack.c.bf16 %v2096_v19, %v2096_v19  ;;  %v2097_v26 = vmax.f32 %v1233_v20, 0.0  ;;  %4349 = vmatmul.mubr.bf16.gmra.mrb[132].mxu0 %v4769_v13  ;;  %v3979_v27 = vpack.c.bf16 %v2210_v22, %v2210_v22  ;;  %v2211_v28 = vmax.f32 %v1689_v23, 0.0  ;;  %4577 = vmatmul.mubr.bf16.gmra.mrb[132].mxu1 %v4770_v16  ;;  %v4776_v20 = vld [vmem:[%s4883_s23 + $0x2e8] sm:$0xff]  }
 0x12f   : > { %4352 = vmatprep.mubr.msk.bf16.mxu0 %vm4827_vm0, %v4826_v1  ;;  %4580 = vmatprep.mubr.msk.bf16.mxu1 %vm4827_vm0, %v4826_v1 }
 0x130   : > { %3227 = vst.msk [vmem:[%s5088_s11 + $0x30] sm:$0xf] %vm3214_vm1, %v3865_v25  ;;  %v3866_v29 = vpack.c.bf16 %v2097_v26, %v2097_v26  ;;  %3341 = vst.msk [vmem:[%s5088_s11 + $0x1f8] sm:$0xf] %vm3214_vm1, %v3979_v27  ;;  %v3980_v30 = vpack.c.bf16 %v2211_v28, %v2211_v28 }
 0x131   : > { %v1237_v31 = vpop.f32.mrb[28].mxu0  ;;  %v1693_v32 = vpop.f32.mrb[28].mxu1 }
 0x132   : > { %3228 = vst.msk [vmem:[%s5088_s11 + $0x34] sm:$0xf] %vm3214_vm1, %v3866_v29  ;;  %3342 = vst.msk [vmem:[%s5088_s11 + $0x1fc] sm:$0xf] %vm3214_vm1, %v3980_v30  ;;  %v1238_v33 = vadd.f32 %v5071_v63, %v1237_v31  ;;  %v4246_v34 = vpop.f32.mrb[29].mxu0  ;;  %v1694_v36 = vadd.f32 %v5071_v63, %v1693_v32  ;;  %v4474_v37 = vpop.f32.mrb[29].mxu1 }
 0x133   : > { %v1240_v39 = vpop.f32.mrb[30].mxu0  ;;  %v1696_v40 = vpop.f32.mrb[30].mxu1 }
 0x134   : > { %v2098_v41 = vmax.f32 %v1238_v33, 0.0  ;;  %v1241_v42 = vadd.f32 %v5071_v63, %v1240_v39  ;;  %v4247_v43 = vpop.f32.mrb[31].mxu0  ;;  %v2212_v44 = vmax.f32 %v1694_v36, 0.0  ;;  %v1697_v45 = vadd.f32 %v5071_v63, %v1696_v40  ;;  %v4475_v46 = vpop.f32.mrb[31].mxu1  ;;  %v4777_v39 = vld [vmem:[%s4883_s23 + $0x128] sm:$0xff]  }
 0x136   : > { %v3867_v47 = vpack.c.bf16 %v2098_v41, %v2098_v41  ;;  %v2099_v48 = vmax.f32 %v1241_v42, 0.0  ;;  %4353 = vmatmul.mubr.bf16.gmra.mrb[136].mxu0 %v4771_v35  ;;  %v3981_v49 = vpack.c.bf16 %v2212_v44, %v2212_v44  ;;  %v2213_v50 = vmax.f32 %v1697_v45, 0.0  ;;  %4581 = vmatmul.mubr.bf16.gmra.mrb[136].mxu1 %v4772_v38  ;;  %v4778_v42 = vld [vmem:[%s4883_s23 + $0x2f0] sm:$0xff]  }
 0x137   : > { %4356 = vmatprep.mubr.msk.bf16.mxu0 %vm4827_vm0, %v4826_v1  ;;  %4584 = vmatprep.mubr.msk.bf16.mxu1 %vm4827_vm0, %v4826_v1 }
 0x138   : > { %3229 = vst.msk [vmem:[%s5088_s11 + $0x38] sm:$0xf] %vm3214_vm1, %v3867_v47  ;;  %v3868_v51 = vpack.c.bf16 %v2099_v48, %v2099_v48  ;;  %3343 = vst.msk [vmem:[%s5088_s11 + $0x200] sm:$0xf] %vm3214_vm1, %v3981_v49  ;;  %v3982_v52 = vpack.c.bf16 %v2213_v50, %v2213_v50 }
 0x139   : > { %v1245_v53 = vpop.f32.mrb[32].mxu0  ;;  %v1701_v54 = vpop.f32.mrb[32].mxu1 }
 0x13a   : > { %3230 = vst.msk [vmem:[%s5088_s11 + $0x3c] sm:$0xf] %vm3214_vm1, %v3868_v51  ;;  %3344 = vst.msk [vmem:[%s5088_s11 + $0x204] sm:$0xf] %vm3214_vm1, %v3982_v52  ;;  %v1246_v55 = vadd.f32 %v5071_v63, %v1245_v53  ;;  %v4250_v56 = vpop.f32.mrb[33].mxu0  ;;  %v1702_v58 = vadd.f32 %v5071_v63, %v1701_v54  ;;  %v4478_v59 = vpop.f32.mrb[33].mxu1 }
 0x13b   : > { %v1248_v61 = vpop.f32.mrb[34].mxu0  ;;  %v1704_v62 = vpop.f32.mrb[34].mxu1 }
 0x13c   : > { %v2100_v0 = vmax.f32 %v1246_v55, 0.0  ;;  %v1249_v2 = vadd.f32 %v5071_v63, %v1248_v61  ;;  %v4251_v3 = vpop.f32.mrb[35].mxu0  ;;  %v2214_v4 = vmax.f32 %v1702_v58, 0.0  ;;  %v1705_v5 = vadd.f32 %v5071_v63, %v1704_v62  ;;  %v4479_v6 = vpop.f32.mrb[35].mxu1  ;;  %v4779_v61 = vld [vmem:[%s4883_s23 + $0x130] sm:$0xff]  }
 0x13e   : > { %v3869_v7 = vpack.c.bf16 %v2100_v0, %v2100_v0  ;;  %v2101_v8 = vmax.f32 %v1249_v2, 0.0  ;;  %4357 = vmatmul.mubr.bf16.gmra.mrb[140].mxu0 %v4773_v57  ;;  %v3983_v9 = vpack.c.bf16 %v2214_v4, %v2214_v4  ;;  %v2215_v10 = vmax.f32 %v1705_v5, 0.0  ;;  %4585 = vmatmul.mubr.bf16.gmra.mrb[140].mxu1 %v4774_v60  ;;  %v4780_v2 = vld [vmem:[%s4883_s23 + $0x2f8] sm:$0xff]  }
 0x13f   : > { %4360 = vmatprep.mubr.msk.bf16.mxu0 %vm4827_vm0, %v4826_v1  ;;  %4588 = vmatprep.mubr.msk.bf16.mxu1 %vm4827_vm0, %v4826_v1 }
 0x140   : > { %3231 = vst.msk [vmem:[%s5088_s11 + $0x40] sm:$0xf] %vm3214_vm1, %v3869_v7  ;;  %v3870_v11 = vpack.c.bf16 %v2101_v8, %v2101_v8  ;;  %3345 = vst.msk [vmem:[%s5088_s11 + $0x208] sm:$0xf] %vm3214_vm1, %v3983_v9  ;;  %v3984_v12 = vpack.c.bf16 %v2215_v10, %v2215_v10 }
 0x141   : > { %v1253_v13 = vpop.f32.mrb[36].mxu0  ;;  %v1709_v14 = vpop.f32.mrb[36].mxu1 }
 0x142   : > { %3232 = vst.msk [vmem:[%s5088_s11 + $0x44] sm:$0xf] %vm3214_vm1, %v3870_v11  ;;  %3346 = vst.msk [vmem:[%s5088_s11 + $0x20c] sm:$0xf] %vm3214_vm1, %v3984_v12  ;;  %v1254_v15 = vadd.f32 %v5071_v63, %v1253_v13  ;;  %v4254_v16 = vpop.f32.mrb[37].mxu0  ;;  %v1710_v18 = vadd.f32 %v5071_v63, %v1709_v14  ;;  %v4482_v19 = vpop.f32.mrb[37].mxu1 }
 0x143   : > { %v1256_v21 = vpop.f32.mrb[38].mxu0  ;;  %v1712_v22 = vpop.f32.mrb[38].mxu1 }
 0x144   : > { %v2102_v23 = vmax.f32 %v1254_v15, 0.0  ;;  %v1257_v24 = vadd.f32 %v5071_v63, %v1256_v21  ;;  %v4255_v25 = vpop.f32.mrb[39].mxu0  ;;  %v2216_v26 = vmax.f32 %v1710_v18, 0.0  ;;  %v1713_v27 = vadd.f32 %v5071_v63, %v1712_v22  ;;  %v4483_v28 = vpop.f32.mrb[39].mxu1  ;;  %v4781_v21 = vld [vmem:[%s4883_s23 + $0x138] sm:$0xff]  }
 0x146   : > { %v3871_v29 = vpack.c.bf16 %v2102_v23, %v2102_v23  ;;  %v2103_v30 = vmax.f32 %v1257_v24, 0.0  ;;  %4361 = vmatmul.mubr.bf16.gmra.mrb[144].mxu0 %v4775_v17  ;;  %v3985_v31 = vpack.c.bf16 %v2216_v26, %v2216_v26  ;;  %v2217_v32 = vmax.f32 %v1713_v27, 0.0  ;;  %4589 = vmatmul.mubr.bf16.gmra.mrb[144].mxu1 %v4776_v20  ;;  %v4782_v24 = vld [vmem:[%s4883_s23 + $0x300] sm:$0xff]  }
 0x147   : > { %4364 = vmatprep.mubr.msk.bf16.mxu0 %vm4827_vm0, %v4826_v1  ;;  %4592 = vmatprep.mubr.msk.bf16.mxu1 %vm4827_vm0, %v4826_v1 }
 0x148   : > { %3233 = vst.msk [vmem:[%s5088_s11 + $0x48] sm:$0xf] %vm3214_vm1, %v3871_v29  ;;  %v3872_v33 = vpack.c.bf16 %v2103_v30, %v2103_v30  ;;  %3347 = vst.msk [vmem:[%s5088_s11 + $0x210] sm:$0xf] %vm3214_vm1, %v3985_v31  ;;  %v3986_v34 = vpack.c.bf16 %v2217_v32, %v2217_v32 }
 0x149   : > { %v1261_v35 = vpop.f32.mrb[40].mxu0  ;;  %v1717_v36 = vpop.f32.mrb[40].mxu1 }
 0x14a   : > { %3234 = vst.msk [vmem:[%s5088_s11 + $0x4c] sm:$0xf] %vm3214_vm1, %v3872_v33  ;;  %3348 = vst.msk [vmem:[%s5088_s11 + $0x214] sm:$0xf] %vm3214_vm1, %v3986_v34  ;;  %v1262_v37 = vadd.f32 %v5071_v63, %v1261_v35  ;;  %v4258_v38 = vpop.f32.mrb[41].mxu0  ;;  %v1718_v40 = vadd.f32 %v5071_v63, %v1717_v36  ;;  %v4486_v41 = vpop.f32.mrb[41].mxu1 }
 0x14b   : > { %v1264_v43 = vpop.f32.mrb[42].mxu0  ;;  %v1720_v44 = vpop.f32.mrb[42].mxu1 }
 0x14c   : > { %v2104_v45 = vmax.f32 %v1262_v37, 0.0  ;;  %v1265_v46 = vadd.f32 %v5071_v63, %v1264_v43  ;;  %v4259_v47 = vpop.f32.mrb[43].mxu0  ;;  %v2218_v48 = vmax.f32 %v1718_v40, 0.0  ;;  %v1721_v49 = vadd.f32 %v5071_v63, %v1720_v44  ;;  %v4487_v50 = vpop.f32.mrb[43].mxu1  ;;  %v4783_v43 = vld [vmem:[%s4883_s23 + $0x140] sm:$0xff]  }
 0x14e   : > { %v3873_v51 = vpack.c.bf16 %v2104_v45, %v2104_v45  ;;  %v2105_v52 = vmax.f32 %v1265_v46, 0.0  ;;  %4365 = vmatmul.mubr.bf16.gmra.mrb[148].mxu0 %v4777_v39  ;;  %v3987_v53 = vpack.c.bf16 %v2218_v48, %v2218_v48  ;;  %v2219_v54 = vmax.f32 %v1721_v49, 0.0  ;;  %4593 = vmatmul.mubr.bf16.gmra.mrb[148].mxu1 %v4778_v42  ;;  %v4784_v46 = vld [vmem:[%s4883_s23 + $0x308] sm:$0xff]  }
 0x14f   : > { %4368 = vmatprep.mubr.msk.bf16.mxu0 %vm4827_vm0, %v4826_v1  ;;  %4596 = vmatprep.mubr.msk.bf16.mxu1 %vm4827_vm0, %v4826_v1 }
 0x150   : > { %3235 = vst.msk [vmem:[%s5088_s11 + $0x50] sm:$0xf] %vm3214_vm1, %v3873_v51  ;;  %v3874_v55 = vpack.c.bf16 %v2105_v52, %v2105_v52  ;;  %3349 = vst.msk [vmem:[%s5088_s11 + $0x218] sm:$0xf] %vm3214_vm1, %v3987_v53  ;;  %v3988_v56 = vpack.c.bf16 %v2219_v54, %v2219_v54 }
 0x151   : > { %v1269_v57 = vpop.f32.mrb[44].mxu0  ;;  %v1725_v58 = vpop.f32.mrb[44].mxu1 }
 0x152   : > { %3236 = vst.msk [vmem:[%s5088_s11 + $0x54] sm:$0xf] %vm3214_vm1, %v3874_v55  ;;  %3350 = vst.msk [vmem:[%s5088_s11 + $0x21c] sm:$0xf] %vm3214_vm1, %v3988_v56  ;;  %v1270_v59 = vadd.f32 %v5071_v63, %v1269_v57  ;;  %v4262_v60 = vpop.f32.mrb[45].mxu0  ;;  %v1726_v62 = vadd.f32 %v5071_v63, %v1725_v58  ;;  %v4490_v0 = vpop.f32.mrb[45].mxu1 }
 0x153   : > { %v1272_v3 = vpop.f32.mrb[46].mxu0  ;;  %v1728_v4 = vpop.f32.mrb[46].mxu1 }
 0x154   : > { %v2106_v5 = vmax.f32 %v1270_v59, 0.0  ;;  %v1273_v6 = vadd.f32 %v5071_v63, %v1272_v3  ;;  %v4263_v7 = vpop.f32.mrb[47].mxu0  ;;  %v2220_v8 = vmax.f32 %v1726_v62, 0.0  ;;  %v1729_v9 = vadd.f32 %v5071_v63, %v1728_v4  ;;  %v4491_v10 = vpop.f32.mrb[47].mxu1  ;;  %v4785_v3 = vld [vmem:[%s4883_s23 + $0x148] sm:$0xff]  }
 0x156   : > { %v3875_v11 = vpack.c.bf16 %v2106_v5, %v2106_v5  ;;  %v2107_v12 = vmax.f32 %v1273_v6, 0.0  ;;  %4369 = vmatmul.mubr.bf16.gmra.mrb[152].mxu0 %v4779_v61  ;;  %v3989_v13 = vpack.c.bf16 %v2220_v8, %v2220_v8  ;;  %v2221_v14 = vmax.f32 %v1729_v9, 0.0  ;;  %4597 = vmatmul.mubr.bf16.gmra.mrb[152].mxu1 %v4780_v2  ;;  %v4786_v6 = vld [vmem:[%s4883_s23 + $0x310] sm:$0xff]  }
 0x157   : > { %4372 = vmatprep.mubr.msk.bf16.mxu0 %vm4827_vm0, %v4826_v1  ;;  %4600 = vmatprep.mubr.msk.bf16.mxu1 %vm4827_vm0, %v4826_v1 }
 0x158   : > { %3237 = vst.msk [vmem:[%s5088_s11 + $0x58] sm:$0xf] %vm3214_vm1, %v3875_v11  ;;  %v3876_v15 = vpack.c.bf16 %v2107_v12, %v2107_v12  ;;  %3351 = vst.msk [vmem:[%s5088_s11 + $0x220] sm:$0xf] %vm3214_vm1, %v3989_v13  ;;  %v3990_v16 = vpack.c.bf16 %v2221_v14, %v2221_v14 }
 0x159   : > { %v1277_v17 = vpop.f32.mrb[48].mxu0  ;;  %v1733_v18 = vpop.f32.mrb[48].mxu1 }
 0x15a   : > { %3238 = vst.msk [vmem:[%s5088_s11 + $0x5c] sm:$0xf] %vm3214_vm1, %v3876_v15  ;;  %3352 = vst.msk [vmem:[%s5088_s11 + $0x224] sm:$0xf] %vm3214_vm1, %v3990_v16  ;;  %v1278_v19 = vadd.f32 %v5071_v63, %v1277_v17  ;;  %v4266_v20 = vpop.f32.mrb[49].mxu0  ;;  %v1734_v22 = vadd.f32 %v5071_v63, %v1733_v18  ;;  %v4494_v23 = vpop.f32.mrb[49].mxu1 }
 0x15b   : > { %v1280_v25 = vpop.f32.mrb[50].mxu0  ;;  %v1736_v26 = vpop.f32.mrb[50].mxu1 }
 0x15c   : > { %v2108_v27 = vmax.f32 %v1278_v19, 0.0  ;;  %v1281_v28 = vadd.f32 %v5071_v63, %v1280_v25  ;;  %v4267_v29 = vpop.f32.mrb[51].mxu0  ;;  %v2222_v30 = vmax.f32 %v1734_v22, 0.0  ;;  %v1737_v31 = vadd.f32 %v5071_v63, %v1736_v26  ;;  %v4495_v32 = vpop.f32.mrb[51].mxu1  ;;  %v4787_v25 = vld [vmem:[%s4883_s23 + $0x150] sm:$0xff]  }
 0x15e   : > { %v3877_v33 = vpack.c.bf16 %v2108_v27, %v2108_v27  ;;  %v2109_v34 = vmax.f32 %v1281_v28, 0.0  ;;  %4373 = vmatmul.mubr.bf16.gmra.mrb[156].mxu0 %v4781_v21  ;;  %v3991_v35 = vpack.c.bf16 %v2222_v30, %v2222_v30  ;;  %v2223_v36 = vmax.f32 %v1737_v31, 0.0  ;;  %4601 = vmatmul.mubr.bf16.gmra.mrb[156].mxu1 %v4782_v24  ;;  %v4788_v28 = vld [vmem:[%s4883_s23 + $0x318] sm:$0xff]  }
 0x15f   : > { %4376 = vmatprep.mubr.msk.bf16.mxu0 %vm4827_vm0, %v4826_v1  ;;  %4604 = vmatprep.mubr.msk.bf16.mxu1 %vm4827_vm0, %v4826_v1 }
 0x160   : > { %3239 = vst.msk [vmem:[%s5088_s11 + $0x60] sm:$0xf] %vm3214_vm1, %v3877_v33  ;;  %v3878_v37 = vpack.c.bf16 %v2109_v34, %v2109_v34  ;;  %3353 = vst.msk [vmem:[%s5088_s11 + $0x228] sm:$0xf] %vm3214_vm1, %v3991_v35  ;;  %v3992_v38 = vpack.c.bf16 %v2223_v36, %v2223_v36 }
 0x161   : > { %v1285_v39 = vpop.f32.mrb[52].mxu0  ;;  %v1741_v40 = vpop.f32.mrb[52].mxu1 }
 0x162   : > { %3240 = vst.msk [vmem:[%s5088_s11 + $0x64] sm:$0xf] %vm3214_vm1, %v3878_v37  ;;  %3354 = vst.msk [vmem:[%s5088_s11 + $0x22c] sm:$0xf] %vm3214_vm1, %v3992_v38  ;;  %v1286_v41 = vadd.f32 %v5071_v63, %v1285_v39  ;;  %v4270_v42 = vpop.f32.mrb[53].mxu0  ;;  %v1742_v44 = vadd.f32 %v5071_v63, %v1741_v40  ;;  %v4498_v45 = vpop.f32.mrb[53].mxu1 }
 0x163   : > { %v1288_v47 = vpop.f32.mrb[54].mxu0  ;;  %v1744_v48 = vpop.f32.mrb[54].mxu1 }
 0x164   : > { %v2110_v49 = vmax.f32 %v1286_v41, 0.0  ;;  %v1289_v50 = vadd.f32 %v5071_v63, %v1288_v47  ;;  %v4271_v51 = vpop.f32.mrb[55].mxu0  ;;  %v2224_v52 = vmax.f32 %v1742_v44, 0.0  ;;  %v1745_v53 = vadd.f32 %v5071_v63, %v1744_v48  ;;  %v4499_v54 = vpop.f32.mrb[55].mxu1  ;;  %v4789_v47 = vld [vmem:[%s4883_s23 + $0x158] sm:$0xff]  }
 0x166   : > { %v3879_v55 = vpack.c.bf16 %v2110_v49, %v2110_v49  ;;  %v2111_v56 = vmax.f32 %v1289_v50, 0.0  ;;  %4377 = vmatmul.mubr.bf16.gmra.mrb[160].mxu0 %v4783_v43  ;;  %v3993_v57 = vpack.c.bf16 %v2224_v52, %v2224_v52  ;;  %v2225_v58 = vmax.f32 %v1745_v53, 0.0  ;;  %4605 = vmatmul.mubr.bf16.gmra.mrb[160].mxu1 %v4784_v46  ;;  %v4790_v50 = vld [vmem:[%s4883_s23 + $0x320] sm:$0xff]  }
 0x167   : > { %4380 = vmatprep.mubr.msk.bf16.mxu0 %vm4827_vm0, %v4826_v1  ;;  %4608 = vmatprep.mubr.msk.bf16.mxu1 %vm4827_vm0, %v4826_v1 }
 0x168   : > { %3241 = vst.msk [vmem:[%s5088_s11 + $0x68] sm:$0xf] %vm3214_vm1, %v3879_v55  ;;  %v3880_v59 = vpack.c.bf16 %v2111_v56, %v2111_v56  ;;  %3355 = vst.msk [vmem:[%s5088_s11 + $0x230] sm:$0xf] %vm3214_vm1, %v3993_v57  ;;  %v3994_v60 = vpack.c.bf16 %v2225_v58, %v2225_v58 }
 0x169   : > { %v1293_v61 = vpop.f32.mrb[56].mxu0  ;;  %v1749_v62 = vpop.f32.mrb[56].mxu1 }
 0x16a   : > { %3242 = vst.msk [vmem:[%s5088_s11 + $0x6c] sm:$0xf] %vm3214_vm1, %v3880_v59  ;;  %3356 = vst.msk [vmem:[%s5088_s11 + $0x234] sm:$0xf] %vm3214_vm1, %v3994_v60  ;;  %v1294_v0 = vadd.f32 %v5071_v63, %v1293_v61  ;;  %v4274_v2 = vpop.f32.mrb[57].mxu0  ;;  %v1750_v4 = vadd.f32 %v5071_v63, %v1749_v62  ;;  %v4502_v5 = vpop.f32.mrb[57].mxu1 }
 0x16b   : > { %v1296_v7 = vpop.f32.mrb[58].mxu0  ;;  %v1752_v8 = vpop.f32.mrb[58].mxu1 }
 0x16c   : > { %v2112_v9 = vmax.f32 %v1294_v0, 0.0  ;;  %v1297_v10 = vadd.f32 %v5071_v63, %v1296_v7  ;;  %v4275_v11 = vpop.f32.mrb[59].mxu0  ;;  %v2226_v12 = vmax.f32 %v1750_v4, 0.0  ;;  %v1753_v13 = vadd.f32 %v5071_v63, %v1752_v8  ;;  %v4503_v14 = vpop.f32.mrb[59].mxu1  ;;  %v5393_v4 = vld [vmem:[%s5950_s2] ss:$0 sm:$0xff] }
 0x16d   : > { %v4791_v7 = vld [vmem:[%s4883_s23 + $0x160] sm:$0xff]  }
 0x16e   : > { %v3881_v15 = vpack.c.bf16 %v2112_v9, %v2112_v9  ;;  %v2113_v16 = vmax.f32 %v1297_v10, 0.0  ;;  %4381 = vmatmul.mubr.bf16.gmra.mrb[164].mxu0 %v4785_v3  ;;  %v3995_v17 = vpack.c.bf16 %v2226_v12, %v2226_v12  ;;  %v2227_v18 = vmax.f32 %v1753_v13, 0.0  ;;  %4609 = vmatmul.mubr.bf16.gmra.mrb[164].mxu1 %v4786_v6  ;;  %v4792_v10 = vld [vmem:[%s4883_s23 + $0x328] sm:$0xff]  }
 0x16f   : > { %4384 = vmatprep.mubr.msk.bf16.mxu0 %vm4827_vm0, %v4826_v1  ;;  %4612 = vmatprep.mubr.msk.bf16.mxu1 %vm4827_vm0, %v4826_v1 }
 0x170   : > { %3243 = vst.msk [vmem:[%s5088_s11 + $0x70] sm:$0xf] %vm3214_vm1, %v3881_v15  ;;  %v3882_v19 = vpack.c.bf16 %v2113_v16, %v2113_v16  ;;  %3357 = vst.msk [vmem:[%s5088_s11 + $0x238] sm:$0xf] %vm3214_vm1, %v3995_v17  ;;  %v3996_v20 = vpack.c.bf16 %v2227_v18, %v2227_v18 }
 0x171   : > { %v1301_v21 = vpop.f32.mrb[60].mxu0  ;;  %v1757_v22 = vpop.f32.mrb[60].mxu1 }
 0x172   : > { %3244 = vst.msk [vmem:[%s5088_s11 + $0x74] sm:$0xf] %vm3214_vm1, %v3882_v19  ;;  %3358 = vst.msk [vmem:[%s5088_s11 + $0x23c] sm:$0xf] %vm3214_vm1, %v3996_v20  ;;  %v1302_v23 = vadd.f32 %v5071_v63, %v1301_v21  ;;  %v4278_v24 = vpop.f32.mrb[61].mxu0  ;;  %v1758_v26 = vadd.f32 %v5071_v63, %v1757_v22  ;;  %v4506_v27 = vpop.f32.mrb[61].mxu1 }
 0x173   : > { %v1304_v29 = vpop.f32.mrb[62].mxu0  ;;  %v1760_v30 = vpop.f32.mrb[62].mxu1 }
 0x174   : > { %v2114_v31 = vmax.f32 %v1302_v23, 0.0  ;;  %v1305_v32 = vadd.f32 %v5071_v63, %v1304_v29  ;;  %v4279_v33 = vpop.f32.mrb[63].mxu0  ;;  %v2228_v34 = vmax.f32 %v1758_v26, 0.0  ;;  %v1761_v35 = vadd.f32 %v5071_v63, %v1760_v30  ;;  %v4507_v36 = vpop.f32.mrb[63].mxu1  ;;  %v4793_v29 = vld [vmem:[%s4883_s23 + $0x168] sm:$0xff]  }
 0x176   : > { %v3883_v37 = vpack.c.bf16 %v2114_v31, %v2114_v31  ;;  %v2115_v38 = vmax.f32 %v1305_v32, 0.0  ;;  %4385 = vmatmul.mubr.bf16.gmra.mrb[168].mxu0 %v4787_v25  ;;  %v3997_v39 = vpack.c.bf16 %v2228_v34, %v2228_v34  ;;  %v2229_v40 = vmax.f32 %v1761_v35, 0.0  ;;  %4613 = vmatmul.mubr.bf16.gmra.mrb[168].mxu1 %v4788_v28  ;;  %v4794_v32 = vld [vmem:[%s4883_s23 + $0x330] sm:$0xff]  }
 0x177   : > { %4388 = vmatprep.mubr.msk.bf16.mxu0 %vm4827_vm0, %v4826_v1  ;;  %4616 = vmatprep.mubr.msk.bf16.mxu1 %vm4827_vm0, %v4826_v1 }
 0x178   : > { %3245 = vst.msk [vmem:[%s5088_s11 + $0x78] sm:$0xf] %vm3214_vm1, %v3883_v37  ;;  %v3884_v41 = vpack.c.bf16 %v2115_v38, %v2115_v38  ;;  %3359 = vst.msk [vmem:[%s5088_s11 + $0x240] sm:$0xf] %vm3214_vm1, %v3997_v39  ;;  %v3998_v42 = vpack.c.bf16 %v2229_v40, %v2229_v40 }
 0x179   : > { %v1309_v43 = vpop.f32.mrb[64].mxu0  ;;  %v1765_v44 = vpop.f32.mrb[64].mxu1 }
 0x17a   : > { %3246 = vst.msk [vmem:[%s5088_s11 + $0x7c] sm:$0xf] %vm3214_vm1, %v3884_v41  ;;  %3360 = vst.msk [vmem:[%s5088_s11 + $0x244] sm:$0xf] %vm3214_vm1, %v3998_v42  ;;  %v1310_v45 = vadd.f32 %v5071_v63, %v1309_v43  ;;  %v4282_v46 = vpop.f32.mrb[65].mxu0  ;;  %v1766_v48 = vadd.f32 %v5071_v63, %v1765_v44  ;;  %v4510_v49 = vpop.f32.mrb[65].mxu1 }
 0x17b   : > { %v1312_v51 = vpop.f32.mrb[66].mxu0  ;;  %v1768_v52 = vpop.f32.mrb[66].mxu1 }
 0x17c   : > { %v2116_v53 = vmax.f32 %v1310_v45, 0.0  ;;  %v1313_v54 = vadd.f32 %v5071_v63, %v1312_v51  ;;  %v4283_v55 = vpop.f32.mrb[67].mxu0  ;;  %v2230_v56 = vmax.f32 %v1766_v48, 0.0  ;;  %v1769_v57 = vadd.f32 %v5071_v63, %v1768_v52  ;;  %v4511_v58 = vpop.f32.mrb[67].mxu1  ;;  %v4795_v51 = vld [vmem:[%s4883_s23 + $0x170] sm:$0xff]  }
 0x17e   : > { %v3885_v59 = vpack.c.bf16 %v2116_v53, %v2116_v53  ;;  %v2117_v60 = vmax.f32 %v1313_v54, 0.0  ;;  %4389 = vmatmul.mubr.bf16.gmra.mrb[172].mxu0 %v4789_v47  ;;  %v3999_v61 = vpack.c.bf16 %v2230_v56, %v2230_v56  ;;  %v2231_v62 = vmax.f32 %v1769_v57, 0.0  ;;  %4617 = vmatmul.mubr.bf16.gmra.mrb[172].mxu1 %v4790_v50  ;;  %v4796_v54 = vld [vmem:[%s4883_s23 + $0x338] sm:$0xff]  }
 0x17f   : > { %4392 = vmatprep.mubr.msk.bf16.mxu0 %vm4827_vm0, %v4826_v1  ;;  %4620 = vmatprep.mubr.msk.bf16.mxu1 %vm4827_vm0, %v4826_v1 }
 0x180   : > { %3247 = vst.msk [vmem:[%s5088_s11 + $0x80] sm:$0xf] %vm3214_vm1, %v3885_v59  ;;  %v3886_v63 = vpack.c.bf16 %v2117_v60, %v2117_v60  ;;  %3361 = vst.msk [vmem:[%s5088_s11 + $0x248] sm:$0xf] %vm3214_vm1, %v3999_v61  ;;  %v4000_v0 = vpack.c.bf16 %v2231_v62, %v2231_v62 }
 0x181   : > { %v1317_v2 = vpop.f32.mrb[68].mxu0  ;;  %v1773_v3 = vpop.f32.mrb[68].mxu1 }
 0x182   : > { %3248 = vst.msk [vmem:[%s5088_s11 + $0x84] sm:$0xf] %vm3214_vm1, %v3886_v63  ;;  %3362 = vst.msk [vmem:[%s5088_s11 + $0x24c] sm:$0xf] %vm3214_vm1, %v4000_v0  ;;  %v1318_v5 = vadd.f32 %v5393_v4, %v1317_v2  ;;  %v4286_v6 = vpop.f32.mrb[69].mxu0  ;;  %v1774_v8 = vadd.f32 %v5393_v4, %v1773_v3  ;;  %v4514_v9 = vpop.f32.mrb[69].mxu1 }
 0x183   : > { %v1320_v11 = vpop.f32.mrb[70].mxu0  ;;  %v1776_v12 = vpop.f32.mrb[70].mxu1 }
 0x184   : > { %v2118_v13 = vmax.f32 %v1318_v5, 0.0  ;;  %v1321_v14 = vadd.f32 %v5393_v4, %v1320_v11  ;;  %v4287_v15 = vpop.f32.mrb[71].mxu0  ;;  %v2232_v16 = vmax.f32 %v1774_v8, 0.0  ;;  %v1777_v17 = vadd.f32 %v5393_v4, %v1776_v12  ;;  %v4515_v18 = vpop.f32.mrb[71].mxu1  ;;  %v4797_v11 = vld [vmem:[%s4883_s23 + $0x178] sm:$0xff]  }
 0x186   : > { %v3887_v19 = vpack.c.bf16 %v2118_v13, %v2118_v13  ;;  %v2119_v20 = vmax.f32 %v1321_v14, 0.0  ;;  %4393 = vmatmul.mubr.bf16.gmra.mrb[176].mxu0 %v4791_v7  ;;  %v4001_v21 = vpack.c.bf16 %v2232_v16, %v2232_v16  ;;  %v2233_v22 = vmax.f32 %v1777_v17, 0.0  ;;  %4621 = vmatmul.mubr.bf16.gmra.mrb[176].mxu1 %v4792_v10  ;;  %v4798_v14 = vld [vmem:[%s4883_s23 + $0x340] sm:$0xff]  }
 0x187   : > { %4396 = vmatprep.mubr.msk.bf16.mxu0 %vm4827_vm0, %v4826_v1  ;;  %4624 = vmatprep.mubr.msk.bf16.mxu1 %vm4827_vm0, %v4826_v1 }
 0x188   : > { %3249 = vst.msk [vmem:[%s5088_s11 + $0x88] sm:$0xf] %vm3214_vm1, %v3887_v19  ;;  %v3888_v23 = vpack.c.bf16 %v2119_v20, %v2119_v20  ;;  %3363 = vst.msk [vmem:[%s5088_s11 + $0x250] sm:$0xf] %vm3214_vm1, %v4001_v21  ;;  %v4002_v24 = vpack.c.bf16 %v2233_v22, %v2233_v22 }
 0x189   : > { %v1325_v25 = vpop.f32.mrb[72].mxu0  ;;  %v1781_v26 = vpop.f32.mrb[72].mxu1 }
 0x18a   : > { %3250 = vst.msk [vmem:[%s5088_s11 + $0x8c] sm:$0xf] %vm3214_vm1, %v3888_v23  ;;  %3364 = vst.msk [vmem:[%s5088_s11 + $0x254] sm:$0xf] %vm3214_vm1, %v4002_v24  ;;  %v1326_v27 = vadd.f32 %v5393_v4, %v1325_v25  ;;  %v4290_v28 = vpop.f32.mrb[73].mxu0  ;;  %v1782_v30 = vadd.f32 %v5393_v4, %v1781_v26  ;;  %v4518_v31 = vpop.f32.mrb[73].mxu1 }
 0x18b   : > { %v1328_v33 = vpop.f32.mrb[74].mxu0  ;;  %v1784_v34 = vpop.f32.mrb[74].mxu1 }
 0x18c   : > { %v2120_v35 = vmax.f32 %v1326_v27, 0.0  ;;  %v1329_v36 = vadd.f32 %v5393_v4, %v1328_v33  ;;  %v4291_v37 = vpop.f32.mrb[75].mxu0  ;;  %v2234_v38 = vmax.f32 %v1782_v30, 0.0  ;;  %v1785_v39 = vadd.f32 %v5393_v4, %v1784_v34  ;;  %v4519_v40 = vpop.f32.mrb[75].mxu1  ;;  %v4799_v33 = vld [vmem:[%s4883_s23 + $0x180] sm:$0xff]  }
 0x18e   : > { %v3889_v41 = vpack.c.bf16 %v2120_v35, %v2120_v35  ;;  %v2121_v42 = vmax.f32 %v1329_v36, 0.0  ;;  %4397 = vmatmul.mubr.bf16.gmra.mrb[180].mxu0 %v4793_v29  ;;  %v4003_v43 = vpack.c.bf16 %v2234_v38, %v2234_v38  ;;  %v2235_v44 = vmax.f32 %v1785_v39, 0.0  ;;  %4625 = vmatmul.mubr.bf16.gmra.mrb[180].mxu1 %v4794_v32  ;;  %v4800_v36 = vld [vmem:[%s4883_s23 + $0x348] sm:$0xff]  }
 0x18f   : > { %4400 = vmatprep.mubr.msk.bf16.mxu0 %vm4827_vm0, %v4826_v1  ;;  %4628 = vmatprep.mubr.msk.bf16.mxu1 %vm4827_vm0, %v4826_v1 }
 0x190   : > { %3251 = vst.msk [vmem:[%s5088_s11 + $0x90] sm:$0xf] %vm3214_vm1, %v3889_v41  ;;  %v3890_v45 = vpack.c.bf16 %v2121_v42, %v2121_v42  ;;  %3365 = vst.msk [vmem:[%s5088_s11 + $0x258] sm:$0xf] %vm3214_vm1, %v4003_v43  ;;  %v4004_v46 = vpack.c.bf16 %v2235_v44, %v2235_v44 }
 0x191   : > { %v1333_v47 = vpop.f32.mrb[76].mxu0  ;;  %v1789_v48 = vpop.f32.mrb[76].mxu1 }
 0x192   : > { %3252 = vst.msk [vmem:[%s5088_s11 + $0x94] sm:$0xf] %vm3214_vm1, %v3890_v45  ;;  %3366 = vst.msk [vmem:[%s5088_s11 + $0x25c] sm:$0xf] %vm3214_vm1, %v4004_v46  ;;  %v1334_v49 = vadd.f32 %v5393_v4, %v1333_v47  ;;  %v4294_v50 = vpop.f32.mrb[77].mxu0  ;;  %v1790_v52 = vadd.f32 %v5393_v4, %v1789_v48  ;;  %v4522_v53 = vpop.f32.mrb[77].mxu1 }
 0x193   : > { %v1336_v55 = vpop.f32.mrb[78].mxu0  ;;  %v1792_v56 = vpop.f32.mrb[78].mxu1 }
 0x194   : > { %v2122_v57 = vmax.f32 %v1334_v49, 0.0  ;;  %v1337_v58 = vadd.f32 %v5393_v4, %v1336_v55  ;;  %v4295_v59 = vpop.f32.mrb[79].mxu0  ;;  %v2236_v60 = vmax.f32 %v1790_v52, 0.0  ;;  %v1793_v61 = vadd.f32 %v5393_v4, %v1792_v56  ;;  %v4523_v62 = vpop.f32.mrb[79].mxu1  ;;  %v4801_v55 = vld [vmem:[%s4883_s23 + $0x188] sm:$0xff]  }
 0x196   : > { %v3891_v63 = vpack.c.bf16 %v2122_v57, %v2122_v57  ;;  %v2123_v0 = vmax.f32 %v1337_v58, 0.0  ;;  %4401 = vmatmul.mubr.bf16.gmra.mrb[184].mxu0 %v4795_v51  ;;  %v4005_v2 = vpack.c.bf16 %v2236_v60, %v2236_v60  ;;  %v2237_v3 = vmax.f32 %v1793_v61, 0.0  ;;  %4629 = vmatmul.mubr.bf16.gmra.mrb[184].mxu1 %v4796_v54  ;;  %v4802_v58 = vld [vmem:[%s4883_s23 + $0x350] sm:$0xff]  }
 0x197   : > { %4404 = vmatprep.mubr.msk.bf16.mxu0 %vm4827_vm0, %v4826_v1  ;;  %4632 = vmatprep.mubr.msk.bf16.mxu1 %vm4827_vm0, %v4826_v1 }
 0x198   : > { %3253 = vst.msk [vmem:[%s5088_s11 + $0x98] sm:$0xf] %vm3214_vm1, %v3891_v63  ;;  %v3892_v5 = vpack.c.bf16 %v2123_v0, %v2123_v0  ;;  %3367 = vst.msk [vmem:[%s5088_s11 + $0x260] sm:$0xf] %vm3214_vm1, %v4005_v2  ;;  %v4006_v6 = vpack.c.bf16 %v2237_v3, %v2237_v3 }
 0x199   : > { %v1341_v7 = vpop.f32.mrb[80].mxu0  ;;  %v1797_v8 = vpop.f32.mrb[80].mxu1 }
 0x19a   : > { %3254 = vst.msk [vmem:[%s5088_s11 + $0x9c] sm:$0xf] %vm3214_vm1, %v3892_v5  ;;  %3368 = vst.msk [vmem:[%s5088_s11 + $0x264] sm:$0xf] %vm3214_vm1, %v4006_v6  ;;  %v1342_v9 = vadd.f32 %v5393_v4, %v1341_v7  ;;  %v4298_v10 = vpop.f32.mrb[81].mxu0  ;;  %v1798_v12 = vadd.f32 %v5393_v4, %v1797_v8  ;;  %v4526_v13 = vpop.f32.mrb[81].mxu1 }
 0x19b   : > { %v1344_v15 = vpop.f32.mrb[82].mxu0  ;;  %v1800_v16 = vpop.f32.mrb[82].mxu1 }
 0x19c   : > { %v2124_v17 = vmax.f32 %v1342_v9, 0.0  ;;  %v1345_v18 = vadd.f32 %v5393_v4, %v1344_v15  ;;  %v4299_v19 = vpop.f32.mrb[83].mxu0  ;;  %v2238_v20 = vmax.f32 %v1798_v12, 0.0  ;;  %v1801_v21 = vadd.f32 %v5393_v4, %v1800_v16  ;;  %v4527_v22 = vpop.f32.mrb[83].mxu1  ;;  %v4803_v15 = vld [vmem:[%s4883_s23 + $0x190] sm:$0xff]  }
 0x19e   : > { %v3893_v23 = vpack.c.bf16 %v2124_v17, %v2124_v17  ;;  %v2125_v24 = vmax.f32 %v1345_v18, 0.0  ;;  %4405 = vmatmul.mubr.bf16.gmra.mrb[188].mxu0 %v4797_v11  ;;  %v4007_v25 = vpack.c.bf16 %v2238_v20, %v2238_v20  ;;  %v2239_v26 = vmax.f32 %v1801_v21, 0.0  ;;  %4633 = vmatmul.mubr.bf16.gmra.mrb[188].mxu1 %v4798_v14  ;;  %v4804_v18 = vld [vmem:[%s4883_s23 + $0x358] sm:$0xff]  }
 0x19f   : > { %4408 = vmatprep.mubr.msk.bf16.mxu0 %vm4827_vm0, %v4826_v1  ;;  %4636 = vmatprep.mubr.msk.bf16.mxu1 %vm4827_vm0, %v4826_v1 }
 0x1a0   : > { %3255 = vst.msk [vmem:[%s5088_s11 + $0xa0] sm:$0xf] %vm3214_vm1, %v3893_v23  ;;  %v3894_v27 = vpack.c.bf16 %v2125_v24, %v2125_v24  ;;  %3369 = vst.msk [vmem:[%s5088_s11 + $0x268] sm:$0xf] %vm3214_vm1, %v4007_v25  ;;  %v4008_v28 = vpack.c.bf16 %v2239_v26, %v2239_v26 }
 0x1a1   : > { %v1349_v29 = vpop.f32.mrb[84].mxu0  ;;  %v1805_v30 = vpop.f32.mrb[84].mxu1 }
 0x1a2   : > { %3256 = vst.msk [vmem:[%s5088_s11 + $0xa4] sm:$0xf] %vm3214_vm1, %v3894_v27  ;;  %3370 = vst.msk [vmem:[%s5088_s11 + $0x26c] sm:$0xf] %vm3214_vm1, %v4008_v28  ;;  %v1350_v31 = vadd.f32 %v5393_v4, %v1349_v29  ;;  %v4302_v32 = vpop.f32.mrb[85].mxu0  ;;  %v1806_v34 = vadd.f32 %v5393_v4, %v1805_v30  ;;  %v4530_v35 = vpop.f32.mrb[85].mxu1 }
 0x1a3   : > { %v1352_v37 = vpop.f32.mrb[86].mxu0  ;;  %v1808_v38 = vpop.f32.mrb[86].mxu1 }
 0x1a4   : > { %v2126_v39 = vmax.f32 %v1350_v31, 0.0  ;;  %v1353_v40 = vadd.f32 %v5393_v4, %v1352_v37  ;;  %v4303_v41 = vpop.f32.mrb[87].mxu0  ;;  %v2240_v42 = vmax.f32 %v1806_v34, 0.0  ;;  %v1809_v43 = vadd.f32 %v5393_v4, %v1808_v38  ;;  %v4531_v44 = vpop.f32.mrb[87].mxu1  ;;  %v4805_v37 = vld [vmem:[%s4883_s23 + $0x198] sm:$0xff]  }
 0x1a6   : > { %v3895_v45 = vpack.c.bf16 %v2126_v39, %v2126_v39  ;;  %v2127_v46 = vmax.f32 %v1353_v40, 0.0  ;;  %4409 = vmatmul.mubr.bf16.gmra.mrb[192].mxu0 %v4799_v33  ;;  %v4009_v47 = vpack.c.bf16 %v2240_v42, %v2240_v42  ;;  %v2241_v48 = vmax.f32 %v1809_v43, 0.0  ;;  %4637 = vmatmul.mubr.bf16.gmra.mrb[192].mxu1 %v4800_v36  ;;  %v4806_v40 = vld [vmem:[%s4883_s23 + $0x360] sm:$0xff]  }
 0x1a7   : > { %4412 = vmatprep.mubr.msk.bf16.mxu0 %vm4827_vm0, %v4826_v1  ;;  %4640 = vmatprep.mubr.msk.bf16.mxu1 %vm4827_vm0, %v4826_v1 }
 0x1a8   : > { %3257 = vst.msk [vmem:[%s5088_s11 + $0xa8] sm:$0xf] %vm3214_vm1, %v3895_v45  ;;  %v3896_v49 = vpack.c.bf16 %v2127_v46, %v2127_v46  ;;  %3371 = vst.msk [vmem:[%s5088_s11 + $0x270] sm:$0xf] %vm3214_vm1, %v4009_v47  ;;  %v4010_v50 = vpack.c.bf16 %v2241_v48, %v2241_v48 }
 0x1a9   : > { %v1357_v51 = vpop.f32.mrb[88].mxu0  ;;  %v1813_v52 = vpop.f32.mrb[88].mxu1 }
 0x1aa   : > { %3258 = vst.msk [vmem:[%s5088_s11 + $0xac] sm:$0xf] %vm3214_vm1, %v3896_v49  ;;  %3372 = vst.msk [vmem:[%s5088_s11 + $0x274] sm:$0xf] %vm3214_vm1, %v4010_v50  ;;  %v1358_v53 = vadd.f32 %v5393_v4, %v1357_v51  ;;  %v4306_v54 = vpop.f32.mrb[89].mxu0  ;;  %v1814_v56 = vadd.f32 %v5393_v4, %v1813_v52  ;;  %v4534_v57 = vpop.f32.mrb[89].mxu1 }
 0x1ab   : > { %v1360_v59 = vpop.f32.mrb[90].mxu0  ;;  %v1816_v60 = vpop.f32.mrb[90].mxu1 }
 0x1ac   : > { %v2128_v61 = vmax.f32 %v1358_v53, 0.0  ;;  %v1361_v62 = vadd.f32 %v5393_v4, %v1360_v59  ;;  %v4307_v63 = vpop.f32.mrb[91].mxu0  ;;  %v2242_v0 = vmax.f32 %v1814_v56, 0.0  ;;  %v1817_v2 = vadd.f32 %v5393_v4, %v1816_v60  ;;  %v4535_v3 = vpop.f32.mrb[91].mxu1  ;;  %v4807_v59 = vld [vmem:[%s4883_s23 + $0x1a0] sm:$0xff]  }
 0x1ae   : > { %v3897_v5 = vpack.c.bf16 %v2128_v61, %v2128_v61  ;;  %v2129_v6 = vmax.f32 %v1361_v62, 0.0  ;;  %4413 = vmatmul.mubr.bf16.gmra.mrb[196].mxu0 %v4801_v55  ;;  %v4011_v7 = vpack.c.bf16 %v2242_v0, %v2242_v0  ;;  %v2243_v8 = vmax.f32 %v1817_v2, 0.0  ;;  %4641 = vmatmul.mubr.bf16.gmra.mrb[196].mxu1 %v4802_v58  ;;  %v4808_v62 = vld [vmem:[%s4883_s23 + $0x368] sm:$0xff]  }
 0x1af   : > { %4416 = vmatprep.mubr.msk.bf16.mxu0 %vm4827_vm0, %v4826_v1  ;;  %4644 = vmatprep.mubr.msk.bf16.mxu1 %vm4827_vm0, %v4826_v1 }
 0x1b0   : > { %3259 = vst.msk [vmem:[%s5088_s11 + $0xb0] sm:$0xf] %vm3214_vm1, %v3897_v5  ;;  %v3898_v9 = vpack.c.bf16 %v2129_v6, %v2129_v6  ;;  %3373 = vst.msk [vmem:[%s5088_s11 + $0x278] sm:$0xf] %vm3214_vm1, %v4011_v7  ;;  %v4012_v10 = vpack.c.bf16 %v2243_v8, %v2243_v8 }
 0x1b1   : > { %v1365_v11 = vpop.f32.mrb[92].mxu0  ;;  %v1821_v12 = vpop.f32.mrb[92].mxu1 }
 0x1b2   : > { %3260 = vst.msk [vmem:[%s5088_s11 + $0xb4] sm:$0xf] %vm3214_vm1, %v3898_v9  ;;  %3374 = vst.msk [vmem:[%s5088_s11 + $0x27c] sm:$0xf] %vm3214_vm1, %v4012_v10  ;;  %v1366_v13 = vadd.f32 %v5393_v4, %v1365_v11  ;;  %v4310_v14 = vpop.f32.mrb[93].mxu0  ;;  %v1822_v16 = vadd.f32 %v5393_v4, %v1821_v12  ;;  %v4538_v17 = vpop.f32.mrb[93].mxu1 }
 0x1b3   : > { %v1368_v19 = vpop.f32.mrb[94].mxu0  ;;  %v1824_v20 = vpop.f32.mrb[94].mxu1 }
 0x1b4   : > { %v2130_v21 = vmax.f32 %v1366_v13, 0.0  ;;  %v1369_v22 = vadd.f32 %v5393_v4, %v1368_v19  ;;  %v4311_v23 = vpop.f32.mrb[95].mxu0  ;;  %v2244_v24 = vmax.f32 %v1822_v16, 0.0  ;;  %v1825_v25 = vadd.f32 %v5393_v4, %v1824_v20  ;;  %v4539_v26 = vpop.f32.mrb[95].mxu1  ;;  %v4809_v19 = vld [vmem:[%s4883_s23 + $0x1a8] sm:$0xff]  }
 0x1b6   : > { %v3899_v27 = vpack.c.bf16 %v2130_v21, %v2130_v21  ;;  %v2131_v28 = vmax.f32 %v1369_v22, 0.0  ;;  %4417 = vmatmul.mubr.bf16.gmra.mrb[200].mxu0 %v4803_v15  ;;  %v4013_v29 = vpack.c.bf16 %v2244_v24, %v2244_v24  ;;  %v2245_v30 = vmax.f32 %v1825_v25, 0.0  ;;  %4645 = vmatmul.mubr.bf16.gmra.mrb[200].mxu1 %v4804_v18  ;;  %v4810_v22 = vld [vmem:[%s4883_s23 + $0x370] sm:$0xff]  }
 0x1b7   : > { %4420 = vmatprep.mubr.msk.bf16.mxu0 %vm4827_vm0, %v4826_v1  ;;  %4648 = vmatprep.mubr.msk.bf16.mxu1 %vm4827_vm0, %v4826_v1 }
 0x1b8   : > { %3261 = vst.msk [vmem:[%s5088_s11 + $0xb8] sm:$0xf] %vm3214_vm1, %v3899_v27  ;;  %v3900_v31 = vpack.c.bf16 %v2131_v28, %v2131_v28  ;;  %3375 = vst.msk [vmem:[%s5088_s11 + $0x280] sm:$0xf] %vm3214_vm1, %v4013_v29  ;;  %v4014_v32 = vpack.c.bf16 %v2245_v30, %v2245_v30 }
 0x1b9   : > { %v1373_v33 = vpop.f32.mrb[96].mxu0  ;;  %v1829_v34 = vpop.f32.mrb[96].mxu1 }
 0x1ba   : > { %3262 = vst.msk [vmem:[%s5088_s11 + $0xbc] sm:$0xf] %vm3214_vm1, %v3900_v31  ;;  %3376 = vst.msk [vmem:[%s5088_s11 + $0x284] sm:$0xf] %vm3214_vm1, %v4014_v32  ;;  %v1374_v35 = vadd.f32 %v5393_v4, %v1373_v33  ;;  %v4314_v36 = vpop.f32.mrb[97].mxu0  ;;  %v1830_v38 = vadd.f32 %v5393_v4, %v1829_v34  ;;  %v4542_v39 = vpop.f32.mrb[97].mxu1 }
 0x1bb   : > { %v1376_v41 = vpop.f32.mrb[98].mxu0  ;;  %v1832_v42 = vpop.f32.mrb[98].mxu1 }
 0x1bc   : > { %v2132_v43 = vmax.f32 %v1374_v35, 0.0  ;;  %v1377_v44 = vadd.f32 %v5393_v4, %v1376_v41  ;;  %v4315_v45 = vpop.f32.mrb[99].mxu0  ;;  %v2246_v46 = vmax.f32 %v1830_v38, 0.0  ;;  %v1833_v47 = vadd.f32 %v5393_v4, %v1832_v42  ;;  %v4543_v48 = vpop.f32.mrb[99].mxu1  ;;  %v4811_v41 = vld [vmem:[%s4883_s23 + $0x1b0] sm:$0xff]  }
 0x1be   : > { %v3901_v49 = vpack.c.bf16 %v2132_v43, %v2132_v43  ;;  %v2133_v50 = vmax.f32 %v1377_v44, 0.0  ;;  %4421 = vmatmul.mubr.bf16.gmra.mrb[204].mxu0 %v4805_v37  ;;  %v4015_v51 = vpack.c.bf16 %v2246_v46, %v2246_v46  ;;  %v2247_v52 = vmax.f32 %v1833_v47, 0.0  ;;  %4649 = vmatmul.mubr.bf16.gmra.mrb[204].mxu1 %v4806_v40  ;;  %v4812_v44 = vld [vmem:[%s4883_s23 + $0x378] sm:$0xff]  }
 0x1bf   : > { %4424 = vmatprep.mubr.msk.bf16.mxu0 %vm4827_vm0, %v4826_v1  ;;  %4652 = vmatprep.mubr.msk.bf16.mxu1 %vm4827_vm0, %v4826_v1 }
 0x1c0   : > { %3263 = vst.msk [vmem:[%s5088_s11 + $0xc0] sm:$0xf] %vm3214_vm1, %v3901_v49  ;;  %v3902_v53 = vpack.c.bf16 %v2133_v50, %v2133_v50  ;;  %3377 = vst.msk [vmem:[%s5088_s11 + $0x288] sm:$0xf] %vm3214_vm1, %v4015_v51  ;;  %v4016_v54 = vpack.c.bf16 %v2247_v52, %v2247_v52 }
 0x1c1   : > { %v1381_v55 = vpop.f32.mrb[100].mxu0  ;;  %v1837_v56 = vpop.f32.mrb[100].mxu1 }
 0x1c2   : > { %3264 = vst.msk [vmem:[%s5088_s11 + $0xc4] sm:$0xf] %vm3214_vm1, %v3902_v53  ;;  %3378 = vst.msk [vmem:[%s5088_s11 + $0x28c] sm:$0xf] %vm3214_vm1, %v4016_v54  ;;  %v1382_v57 = vadd.f32 %v5393_v4, %v1381_v55  ;;  %v4318_v58 = vpop.f32.mrb[101].mxu0  ;;  %v1838_v60 = vadd.f32 %v5393_v4, %v1837_v56  ;;  %v4546_v61 = vpop.f32.mrb[101].mxu1 }
 0x1c3   : > { %v1384_v63 = vpop.f32.mrb[102].mxu0  ;;  %v1840_v0 = vpop.f32.mrb[102].mxu1 }
 0x1c4   : > { %v2134_v2 = vmax.f32 %v1382_v57, 0.0  ;;  %v1385_v3 = vadd.f32 %v5393_v4, %v1384_v63  ;;  %v4319_v5 = vpop.f32.mrb[103].mxu0  ;;  %v2248_v6 = vmax.f32 %v1838_v60, 0.0  ;;  %v1841_v7 = vadd.f32 %v5393_v4, %v1840_v0  ;;  %v4547_v8 = vpop.f32.mrb[103].mxu1  ;;  %v4813_v63 = vld [vmem:[%s4883_s23 + $0x1b8] sm:$0xff]  }
 0x1c6   : > { %v3903_v9 = vpack.c.bf16 %v2134_v2, %v2134_v2  ;;  %v2135_v10 = vmax.f32 %v1385_v3, 0.0  ;;  %4425 = vmatmul.mubr.bf16.gmra.mrb[208].mxu0 %v4807_v59  ;;  %v4017_v11 = vpack.c.bf16 %v2248_v6, %v2248_v6  ;;  %v2249_v12 = vmax.f32 %v1841_v7, 0.0  ;;  %4653 = vmatmul.mubr.bf16.gmra.mrb[208].mxu1 %v4808_v62  ;;  %v4814_v3 = vld [vmem:[%s4883_s23 + $0x380] sm:$0xff]  }
 0x1c7   : > { %4428 = vmatprep.mubr.msk.bf16.mxu0 %vm4827_vm0, %v4826_v1  ;;  %4656 = vmatprep.mubr.msk.bf16.mxu1 %vm4827_vm0, %v4826_v1 }
 0x1c8   : > { %3265 = vst.msk [vmem:[%s5088_s11 + $0xc8] sm:$0xf] %vm3214_vm1, %v3903_v9  ;;  %v3904_v13 = vpack.c.bf16 %v2135_v10, %v2135_v10  ;;  %3379 = vst.msk [vmem:[%s5088_s11 + $0x290] sm:$0xf] %vm3214_vm1, %v4017_v11  ;;  %v4018_v14 = vpack.c.bf16 %v2249_v12, %v2249_v12 }
 0x1c9   : > { %v1389_v15 = vpop.f32.mrb[104].mxu0  ;;  %v1845_v16 = vpop.f32.mrb[104].mxu1 }
 0x1ca   : > { %3266 = vst.msk [vmem:[%s5088_s11 + $0xcc] sm:$0xf] %vm3214_vm1, %v3904_v13  ;;  %3380 = vst.msk [vmem:[%s5088_s11 + $0x294] sm:$0xf] %vm3214_vm1, %v4018_v14  ;;  %v1390_v17 = vadd.f32 %v5393_v4, %v1389_v15  ;;  %v4322_v18 = vpop.f32.mrb[105].mxu0  ;;  %v1846_v20 = vadd.f32 %v5393_v4, %v1845_v16  ;;  %v4550_v21 = vpop.f32.mrb[105].mxu1 }
 0x1cb   : > { %v1392_v23 = vpop.f32.mrb[106].mxu0  ;;  %v1848_v24 = vpop.f32.mrb[106].mxu1 }
 0x1cc   : > { %v2136_v25 = vmax.f32 %v1390_v17, 0.0  ;;  %v1393_v26 = vadd.f32 %v5393_v4, %v1392_v23  ;;  %v4323_v27 = vpop.f32.mrb[107].mxu0  ;;  %v2250_v28 = vmax.f32 %v1846_v20, 0.0  ;;  %v1849_v29 = vadd.f32 %v5393_v4, %v1848_v24  ;;  %v4551_v30 = vpop.f32.mrb[107].mxu1  ;;  %v4815_v23 = vld [vmem:[%s4883_s23 + $0x1c0] sm:$0xff]  }
 0x1ce   : > { %v3905_v31 = vpack.c.bf16 %v2136_v25, %v2136_v25  ;;  %v2137_v32 = vmax.f32 %v1393_v26, 0.0  ;;  %4429 = vmatmul.mubr.bf16.gmra.mrb[212].mxu0 %v4809_v19  ;;  %v4019_v33 = vpack.c.bf16 %v2250_v28, %v2250_v28  ;;  %v2251_v34 = vmax.f32 %v1849_v29, 0.0  ;;  %4657 = vmatmul.mubr.bf16.gmra.mrb[212].mxu1 %v4810_v22 }
 0x1cf   : > { %4432 = vmatprep.mubr.msk.bf16.mxu0 %vm4827_vm0, %v4826_v1  ;;  %4660 = vmatprep.mubr.msk.bf16.mxu1 %vm4827_vm0, %v4826_v1 }
 0x1d0   : > { %3267 = vst.msk [vmem:[%s5088_s11 + $0xd0] sm:$0xf] %vm3214_vm1, %v3905_v31  ;;  %v3906_v35 = vpack.c.bf16 %v2137_v32, %v2137_v32  ;;  %3381 = vst.msk [vmem:[%s5088_s11 + $0x298] sm:$0xf] %vm3214_vm1, %v4019_v33  ;;  %v4020_v36 = vpack.c.bf16 %v2251_v34, %v2251_v34 }
 0x1d1   : > { %v1397_v37 = vpop.f32.mrb[108].mxu0  ;;  %v1853_v38 = vpop.f32.mrb[108].mxu1 }
 0x1d2   : > { %3268 = vst.msk [vmem:[%s5088_s11 + $0xd4] sm:$0xf] %vm3214_vm1, %v3906_v35  ;;  %3382 = vst.msk [vmem:[%s5088_s11 + $0x29c] sm:$0xf] %vm3214_vm1, %v4020_v36  ;;  %v1398_v39 = vadd.f32 %v5393_v4, %v1397_v37  ;;  %v4326_v40 = vpop.f32.mrb[109].mxu0  ;;  %v1854_v42 = vadd.f32 %v5393_v4, %v1853_v38  ;;  %v4554_v43 = vpop.f32.mrb[109].mxu1 }
 0x1d3   : > { %v1400_v45 = vpop.f32.mrb[110].mxu0  ;;  %v1856_v46 = vpop.f32.mrb[110].mxu1 }
 0x1d4   : > { %v2138_v47 = vmax.f32 %v1398_v39, 0.0  ;;  %v1401_v48 = vadd.f32 %v5393_v4, %v1400_v45  ;;  %v4327_v49 = vpop.f32.mrb[111].mxu0  ;;  %v2252_v50 = vmax.f32 %v1854_v42, 0.0  ;;  %v1857_v51 = vadd.f32 %v5393_v4, %v1856_v46  ;;  %v4555_v52 = vpop.f32.mrb[111].mxu1 }
 0x1d6   : > { %v3907_v53 = vpack.c.bf16 %v2138_v47, %v2138_v47  ;;  %v2139_v54 = vmax.f32 %v1401_v48, 0.0  ;;  %4433 = vmatmul.mubr.bf16.gmra.mrb[216].mxu0 %v4811_v41  ;;  %v4021_v55 = vpack.c.bf16 %v2252_v50, %v2252_v50  ;;  %v2253_v56 = vmax.f32 %v1857_v51, 0.0  ;;  %4661 = vmatmul.mubr.bf16.gmra.mrb[216].mxu1 %v4812_v44 }
 0x1d7   : > { %4436 = vmatprep.mubr.msk.bf16.mxu0 %vm4827_vm0, %v4826_v1  ;;  %4664 = vmatprep.mubr.msk.bf16.mxu1 %vm4827_vm0, %v4826_v1 }
 0x1d8   : > { %3269 = vst.msk [vmem:[%s5088_s11 + $0xd8] sm:$0xf] %vm3214_vm1, %v3907_v53  ;;  %v3908_v57 = vpack.c.bf16 %v2139_v54, %v2139_v54  ;;  %3383 = vst.msk [vmem:[%s5088_s11 + $0x2a0] sm:$0xf] %vm3214_vm1, %v4021_v55  ;;  %v4022_v58 = vpack.c.bf16 %v2253_v56, %v2253_v56 }
 0x1d9   : > { %v1405_v59 = vpop.f32.mrb[112].mxu0  ;;  %v1861_v60 = vpop.f32.mrb[112].mxu1 }
 0x1da   : > { %3270 = vst.msk [vmem:[%s5088_s11 + $0xdc] sm:$0xf] %vm3214_vm1, %v3908_v57  ;;  %3384 = vst.msk [vmem:[%s5088_s11 + $0x2a4] sm:$0xf] %vm3214_vm1, %v4022_v58  ;;  %v1406_v61 = vadd.f32 %v5393_v4, %v1405_v59  ;;  %v4330_v62 = vpop.f32.mrb[113].mxu0  ;;  %v1862_v0 = vadd.f32 %v5393_v4, %v1861_v60  ;;  %v4558_v2 = vpop.f32.mrb[113].mxu1 }
 0x1db   : > { %v1408_v5 = vpop.f32.mrb[114].mxu0  ;;  %v1864_v6 = vpop.f32.mrb[114].mxu1 }
 0x1dc   : > { %v2140_v7 = vmax.f32 %v1406_v61, 0.0  ;;  %v1409_v8 = vadd.f32 %v5393_v4, %v1408_v5  ;;  %v4331_v9 = vpop.f32.mrb[115].mxu0  ;;  %v2254_v10 = vmax.f32 %v1862_v0, 0.0  ;;  %v1865_v11 = vadd.f32 %v5393_v4, %v1864_v6  ;;  %v4559_v12 = vpop.f32.mrb[115].mxu1 }
 0x1de   : > { %v3909_v13 = vpack.c.bf16 %v2140_v7, %v2140_v7  ;;  %v2141_v14 = vmax.f32 %v1409_v8, 0.0  ;;  %4437 = vmatmul.mubr.bf16.gmra.mrb[220].mxu0 %v4813_v63  ;;  %v4023_v15 = vpack.c.bf16 %v2254_v10, %v2254_v10  ;;  %v2255_v16 = vmax.f32 %v1865_v11, 0.0  ;;  %4665 = vmatmul.mubr.bf16.gmra.mrb[220].mxu1 %v4814_v3 }
 0x1df   : > { %4440 = vmatprep.mubr.msk.bf16.mxu0 %vm4827_vm0, %v4826_v1 }
 0x1e0   : > { %3271 = vst.msk [vmem:[%s5088_s11 + $0xe0] sm:$0xf] %vm3214_vm1, %v3909_v13  ;;  %v3910_v17 = vpack.c.bf16 %v2141_v14, %v2141_v14  ;;  %3385 = vst.msk [vmem:[%s5088_s11 + $0x2a8] sm:$0xf] %vm3214_vm1, %v4023_v15  ;;  %v4024_v18 = vpack.c.bf16 %v2255_v16, %v2255_v16 }
 0x1e1   : > { %v1413_v19 = vpop.f32.mrb[116].mxu0  ;;  %v1869_v20 = vpop.f32.mrb[116].mxu1 }
 0x1e2   : > { %3272 = vst.msk [vmem:[%s5088_s11 + $0xe4] sm:$0xf] %vm3214_vm1, %v3910_v17  ;;  %3386 = vst.msk [vmem:[%s5088_s11 + $0x2ac] sm:$0xf] %vm3214_vm1, %v4024_v18  ;;  %v1414_v21 = vadd.f32 %v5393_v4, %v1413_v19  ;;  %v4334_v22 = vpop.f32.mrb[117].mxu0  ;;  %v1870_v24 = vadd.f32 %v5393_v4, %v1869_v20  ;;  %v4562_v1 = vpop.f32.mrb[117].mxu1 }
 0x1e3   : > { %v1416_v25 = vpop.f32.mrb[118].mxu0  ;;  %v1872_v26 = vpop.f32.mrb[118].mxu1 }
 0x1e4   : > { %v2142_v27 = vmax.f32 %v1414_v21, 0.0  ;;  %v1417_v28 = vadd.f32 %v5393_v4, %v1416_v25  ;;  %v4335_v29 = vpop.f32.mrb[119].mxu0  ;;  %v2256_v30 = vmax.f32 %v1870_v24, 0.0  ;;  %v1873_v31 = vadd.f32 %v5393_v4, %v1872_v26  ;;  %v4563_v32 = vpop.f32.mrb[119].mxu1 }
 0x1e6   : > { %v3911_v33 = vpack.c.bf16 %v2142_v27, %v2142_v27  ;;  %v2143_v34 = vmax.f32 %v1417_v28, 0.0  ;;  %4441 = vmatmul.mubr.bf16.gmra.mrb[224].mxu0 %v4815_v23  ;;  %v4025_v35 = vpack.c.bf16 %v2256_v30, %v2256_v30  ;;  %v2257_v36 = vmax.f32 %v1873_v31, 0.0 }
 0x1e8   : > { %3273 = vst.msk [vmem:[%s5088_s11 + $0xe8] sm:$0xf] %vm3214_vm1, %v3911_v33  ;;  %v3912_v37 = vpack.c.bf16 %v2143_v34, %v2143_v34  ;;  %3387 = vst.msk [vmem:[%s5088_s11 + $0x2b0] sm:$0xf] %vm3214_vm1, %v4025_v35  ;;  %v4026_v38 = vpack.c.bf16 %v2257_v36, %v2257_v36 }
 0x1e9   : > { %v1421_v39 = vpop.f32.mrb[120].mxu0  ;;  %v1877_v40 = vpop.f32.mrb[120].mxu1 }
 0x1ea   : > { %3274 = vst.msk [vmem:[%s5088_s11 + $0xec] sm:$0xf] %vm3214_vm1, %v3912_v37  ;;  %3388 = vst.msk [vmem:[%s5088_s11 + $0x2b4] sm:$0xf] %vm3214_vm1, %v4026_v38  ;;  %v1422_v41 = vadd.f32 %v5393_v4, %v1421_v39  ;;  %v4338_v42 = vpop.f32.mrb[121].mxu0  ;;  %v1878_v43 = vadd.f32 %v5393_v4, %v1877_v40  ;;  %v4566_v44 = vpop.f32.mrb[121].mxu1 }
 0x1eb   : > { %v1424_v45 = vpop.f32.mrb[122].mxu0  ;;  %v1880_v46 = vpop.f32.mrb[122].mxu1 }
 0x1ec   : > { %v2144_v47 = vmax.f32 %v1422_v41, 0.0  ;;  %v1425_v48 = vadd.f32 %v5393_v4, %v1424_v45  ;;  %v4339_v49 = vpop.f32.mrb[123].mxu0  ;;  %v2258_v50 = vmax.f32 %v1878_v43, 0.0  ;;  %v1881_v51 = vadd.f32 %v5393_v4, %v1880_v46  ;;  %v4567_v52 = vpop.f32.mrb[123].mxu1 }
 0x1ee   : > { %v3913_v53 = vpack.c.bf16 %v2144_v47, %v2144_v47  ;;  %v2145_v54 = vmax.f32 %v1425_v48, 0.0  ;;  %v4027_v55 = vpack.c.bf16 %v2258_v50, %v2258_v50  ;;  %v2259_v56 = vmax.f32 %v1881_v51, 0.0 }
 0x1f0   : > { %3275 = vst.msk [vmem:[%s5088_s11 + $0xf0] sm:$0xf] %vm3214_vm1, %v3913_v53  ;;  %v3914_v57 = vpack.c.bf16 %v2145_v54, %v2145_v54  ;;  %3389 = vst.msk [vmem:[%s5088_s11 + $0x2b8] sm:$0xf] %vm3214_vm1, %v4027_v55  ;;  %v4028_v58 = vpack.c.bf16 %v2259_v56, %v2259_v56 }
 0x1f1   : > { %v1429_v59 = vpop.f32.mrb[124].mxu0  ;;  %v1885_v60 = vpop.f32.mrb[124].mxu1 }
 0x1f2   : > { %3276 = vst.msk [vmem:[%s5088_s11 + $0xf4] sm:$0xf] %vm3214_vm1, %v3914_v57  ;;  %3390 = vst.msk [vmem:[%s5088_s11 + $0x2bc] sm:$0xf] %vm3214_vm1, %v4028_v58  ;;  %v1430_v61 = vadd.f32 %v5393_v4, %v1429_v59  ;;  %v4342_v62 = vpop.f32.mrb[125].mxu0  ;;  %v1886_v63 = vadd.f32 %v5393_v4, %v1885_v60  ;;  %v4570_v0 = vpop.f32.mrb[125].mxu1 }
 0x1f3   : > { %v1432_v2 = vpop.f32.mrb[126].mxu0  ;;  %v1888_v3 = vpop.f32.mrb[126].mxu1 }
 0x1f4   : > { %v2146_v5 = vmax.f32 %v1430_v61, 0.0  ;;  %v1433_v6 = vadd.f32 %v5393_v4, %v1432_v2  ;;  %v4343_v7 = vpop.f32.mrb[127].mxu0  ;;  %v2260_v8 = vmax.f32 %v1886_v63, 0.0  ;;  %v1889_v9 = vadd.f32 %v5393_v4, %v1888_v3  ;;  %v4571_v10 = vpop.f32.mrb[127].mxu1 }
 0x1f6   : > { %v3915_v11 = vpack.c.bf16 %v2146_v5, %v2146_v5  ;;  %v2147_v12 = vmax.f32 %v1433_v6, 0.0  ;;  %v4029_v13 = vpack.c.bf16 %v2260_v8, %v2260_v8  ;;  %v2261_v14 = vmax.f32 %v1889_v9, 0.0 }
 0x1f8   : > { %3277 = vst.msk [vmem:[%s5088_s11 + $0xf8] sm:$0xf] %vm3214_vm1, %v3915_v11  ;;  %v3916_v15 = vpack.c.bf16 %v2147_v12, %v2147_v12  ;;  %3391 = vst.msk [vmem:[%s5088_s11 + $0x2c0] sm:$0xf] %vm3214_vm1, %v4029_v13  ;;  %v4030_v16 = vpack.c.bf16 %v2261_v14, %v2261_v14 }
 0x1f9   : > { %v1437_v17 = vpop.f32.mrb[128].mxu0  ;;  %v1893_v18 = vpop.f32.mrb[128].mxu1 }
 0x1fa   : > { %3278 = vst.msk [vmem:[%s5088_s11 + $0xfc] sm:$0xf] %vm3214_vm1, %v3916_v15  ;;  %3392 = vst.msk [vmem:[%s5088_s11 + $0x2c4] sm:$0xf] %vm3214_vm1, %v4030_v16  ;;  %v1438_v19 = vadd.f32 %v5393_v4, %v1437_v17  ;;  %v4346_v20 = vpop.f32.mrb[129].mxu0  ;;  %v1894_v21 = vadd.f32 %v5393_v4, %v1893_v18  ;;  %v4574_v22 = vpop.f32.mrb[129].mxu1 }
 0x1fb   : > { %v1440_v23 = vpop.f32.mrb[130].mxu0  ;;  %v1896_v24 = vpop.f32.mrb[130].mxu1 }
 0x1fc   : > { %v2148_v1 = vmax.f32 %v1438_v19, 0.0  ;;  %v1441_v25 = vadd.f32 %v5393_v4, %v1440_v23  ;;  %v4347_v26 = vpop.f32.mrb[131].mxu0  ;;  %v2262_v27 = vmax.f32 %v1894_v21, 0.0  ;;  %v1897_v28 = vadd.f32 %v5393_v4, %v1896_v24  ;;  %v4575_v29 = vpop.f32.mrb[131].mxu1  ;;  %v5687_v23 = vld [vmem:[%s5950_s2] ss:$0 sm:$0xff] }
 0x1fe   : > { %v3917_v30 = vpack.c.bf16 %v2148_v1, %v2148_v1  ;;  %v2149_v31 = vmax.f32 %v1441_v25, 0.0  ;;  %v4031_v32 = vpack.c.bf16 %v2262_v27, %v2262_v27  ;;  %v2263_v33 = vmax.f32 %v1897_v28, 0.0 }
 0x200   : > { %3279 = vst.msk [vmem:[%s5088_s11 + $0x100] sm:$0xf] %vm3214_vm1, %v3917_v30  ;;  %v3918_v34 = vpack.c.bf16 %v2149_v31, %v2149_v31  ;;  %3393 = vst.msk [vmem:[%s5088_s11 + $0x2c8] sm:$0xf] %vm3214_vm1, %v4031_v32  ;;  %v4032_v35 = vpack.c.bf16 %v2263_v33, %v2263_v33 }
 0x201   : > { %v1445_v36 = vpop.f32.mrb[132].mxu0  ;;  %v1901_v37 = vpop.f32.mrb[132].mxu1 }
 0x202   : > { %3280 = vst.msk [vmem:[%s5088_s11 + $0x104] sm:$0xf] %vm3214_vm1, %v3918_v34  ;;  %3394 = vst.msk [vmem:[%s5088_s11 + $0x2cc] sm:$0xf] %vm3214_vm1, %v4032_v35  ;;  %v1446_v38 = vadd.f32 %v5393_v4, %v1445_v36  ;;  %v4350_v39 = vpop.f32.mrb[133].mxu0  ;;  %v1902_v40 = vadd.f32 %v5393_v4, %v1901_v37  ;;  %v4578_v41 = vpop.f32.mrb[133].mxu1 }
 0x203   : > { %v1448_v42 = vpop.f32.mrb[134].mxu0  ;;  %v1904_v43 = vpop.f32.mrb[134].mxu1 }
 0x204   : > { %v2150_v44 = vmax.f32 %v1446_v38, 0.0  ;;  %v1449_v45 = vadd.f32 %v5393_v4, %v1448_v42  ;;  %v4351_v46 = vpop.f32.mrb[135].mxu0  ;;  %v2264_v47 = vmax.f32 %v1902_v40, 0.0  ;;  %v1905_v48 = vadd.f32 %v5393_v4, %v1904_v43  ;;  %v4579_v49 = vpop.f32.mrb[135].mxu1 }
 0x206   : > { %v3919_v50 = vpack.c.bf16 %v2150_v44, %v2150_v44  ;;  %v2151_v51 = vmax.f32 %v1449_v45, 0.0  ;;  %v4033_v52 = vpack.c.bf16 %v2264_v47, %v2264_v47  ;;  %v2265_v53 = vmax.f32 %v1905_v48, 0.0 }
 0x208   : > { %3281 = vst.msk [vmem:[%s5088_s11 + $0x108] sm:$0xf] %vm3214_vm1, %v3919_v50  ;;  %v3920_v54 = vpack.c.bf16 %v2151_v51, %v2151_v51  ;;  %3395 = vst.msk [vmem:[%s5088_s11 + $0x2d0] sm:$0xf] %vm3214_vm1, %v4033_v52  ;;  %v4034_v55 = vpack.c.bf16 %v2265_v53, %v2265_v53 }
 0x209   : > { %v1453_v56 = vpop.f32.mrb[136].mxu0  ;;  %v1909_v57 = vpop.f32.mrb[136].mxu1 }
 0x20a   : > { %3282 = vst.msk [vmem:[%s5088_s11 + $0x10c] sm:$0xf] %vm3214_vm1, %v3920_v54  ;;  %3396 = vst.msk [vmem:[%s5088_s11 + $0x2d4] sm:$0xf] %vm3214_vm1, %v4034_v55  ;;  %v1454_v58 = vadd.f32 %v5393_v4, %v1453_v56  ;;  %v4354_v59 = vpop.f32.mrb[137].mxu0  ;;  %v1910_v60 = vadd.f32 %v5393_v4, %v1909_v57  ;;  %v4582_v61 = vpop.f32.mrb[137].mxu1 }
 0x20b   : > { %v1456_v62 = vpop.f32.mrb[138].mxu0  ;;  %v1912_v63 = vpop.f32.mrb[138].mxu1 }
 0x20c   : > { %v2152_v0 = vmax.f32 %v1454_v58, 0.0  ;;  %v1457_v2 = vadd.f32 %v5393_v4, %v1456_v62  ;;  %v4355_v3 = vpop.f32.mrb[139].mxu0  ;;  %v2266_v5 = vmax.f32 %v1910_v60, 0.0  ;;  %v1913_v6 = vadd.f32 %v5393_v4, %v1912_v63  ;;  %v4583_v7 = vpop.f32.mrb[139].mxu1 }
 0x20e   : > { %v3921_v8 = vpack.c.bf16 %v2152_v0, %v2152_v0  ;;  %v2153_v9 = vmax.f32 %v1457_v2, 0.0  ;;  %v4035_v10 = vpack.c.bf16 %v2266_v5, %v2266_v5  ;;  %v2267_v11 = vmax.f32 %v1913_v6, 0.0 }
 0x210   : > { %3283 = vst.msk [vmem:[%s5088_s11 + $0x110] sm:$0xf] %vm3214_vm1, %v3921_v8  ;;  %v3922_v12 = vpack.c.bf16 %v2153_v9, %v2153_v9  ;;  %3397 = vst.msk [vmem:[%s5088_s11 + $0x2d8] sm:$0xf] %vm3214_vm1, %v4035_v10  ;;  %v4036_v13 = vpack.c.bf16 %v2267_v11, %v2267_v11 }
 0x211   : > { %v1461_v14 = vpop.f32.mrb[140].mxu0  ;;  %v1917_v15 = vpop.f32.mrb[140].mxu1 }
 0x212   : > { %3284 = vst.msk [vmem:[%s5088_s11 + $0x114] sm:$0xf] %vm3214_vm1, %v3922_v12  ;;  %3398 = vst.msk [vmem:[%s5088_s11 + $0x2dc] sm:$0xf] %vm3214_vm1, %v4036_v13  ;;  %v1462_v16 = vadd.f32 %v5393_v4, %v1461_v14  ;;  %v4358_v17 = vpop.f32.mrb[141].mxu0  ;;  %v1918_v18 = vadd.f32 %v5393_v4, %v1917_v15  ;;  %v4586_v19 = vpop.f32.mrb[141].mxu1 }
 0x213   : > { %v1464_v20 = vpop.f32.mrb[142].mxu0  ;;  %v1920_v21 = vpop.f32.mrb[142].mxu1 }
 0x214   : > { %v2154_v22 = vmax.f32 %v1462_v16, 0.0  ;;  %v1465_v24 = vadd.f32 %v5687_v23, %v1464_v20  ;;  %v4359_v1 = vpop.f32.mrb[143].mxu0  ;;  %v2268_v25 = vmax.f32 %v1918_v18, 0.0  ;;  %v1921_v26 = vadd.f32 %v5687_v23, %v1920_v21  ;;  %v4587_v27 = vpop.f32.mrb[143].mxu1 }
 0x216   : > { %v3923_v4 = vpack.c.bf16 %v2154_v22, %v2154_v22  ;;  %v2155_v28 = vmax.f32 %v1465_v24, 0.0  ;;  %v4037_v29 = vpack.c.bf16 %v2268_v25, %v2268_v25  ;;  %v2269_v30 = vmax.f32 %v1921_v26, 0.0 }
 0x218   : > { %3285 = vst.msk [vmem:[%s5088_s11 + $0x118] sm:$0xf] %vm3214_vm1, %v3923_v4  ;;  %v3924_v31 = vpack.c.bf16 %v2155_v28, %v2155_v28  ;;  %3399 = vst.msk [vmem:[%s5088_s11 + $0x2e0] sm:$0xf] %vm3214_vm1, %v4037_v29  ;;  %v4038_v32 = vpack.c.bf16 %v2269_v30, %v2269_v30 }
 0x219   : > { %v1469_v33 = vpop.f32.mrb[144].mxu0  ;;  %v1925_v34 = vpop.f32.mrb[144].mxu1 }
 0x21a   : > { %3286 = vst.msk [vmem:[%s5088_s11 + $0x11c] sm:$0xf] %vm3214_vm1, %v3924_v31  ;;  %3400 = vst.msk [vmem:[%s5088_s11 + $0x2e4] sm:$0xf] %vm3214_vm1, %v4038_v32  ;;  %v1470_v35 = vadd.f32 %v5687_v23, %v1469_v33  ;;  %v4362_v36 = vpop.f32.mrb[145].mxu0  ;;  %v1926_v37 = vadd.f32 %v5687_v23, %v1925_v34  ;;  %v4590_v38 = vpop.f32.mrb[145].mxu1 }
 0x21b   : > { %v1472_v39 = vpop.f32.mrb[146].mxu0  ;;  %v1928_v40 = vpop.f32.mrb[146].mxu1 }
 0x21c   : > { %v2156_v41 = vmax.f32 %v1470_v35, 0.0  ;;  %v1473_v42 = vadd.f32 %v5687_v23, %v1472_v39  ;;  %v4363_v43 = vpop.f32.mrb[147].mxu0  ;;  %v2270_v44 = vmax.f32 %v1926_v37, 0.0  ;;  %v1929_v45 = vadd.f32 %v5687_v23, %v1928_v40  ;;  %v4591_v46 = vpop.f32.mrb[147].mxu1 }
 0x21e   : > { %v3925_v47 = vpack.c.bf16 %v2156_v41, %v2156_v41  ;;  %v2157_v48 = vmax.f32 %v1473_v42, 0.0  ;;  %v4039_v49 = vpack.c.bf16 %v2270_v44, %v2270_v44  ;;  %v2271_v50 = vmax.f32 %v1929_v45, 0.0 }
 0x220   : > { %3287 = vst.msk [vmem:[%s5088_s11 + $0x120] sm:$0xf] %vm3214_vm1, %v3925_v47  ;;  %v3926_v51 = vpack.c.bf16 %v2157_v48, %v2157_v48  ;;  %3401 = vst.msk [vmem:[%s5088_s11 + $0x2e8] sm:$0xf] %vm3214_vm1, %v4039_v49  ;;  %v4040_v52 = vpack.c.bf16 %v2271_v50, %v2271_v50 }
 0x221   : > { %v1477_v53 = vpop.f32.mrb[148].mxu0  ;;  %v1933_v54 = vpop.f32.mrb[148].mxu1 }
 0x222   : > { %3288 = vst.msk [vmem:[%s5088_s11 + $0x124] sm:$0xf] %vm3214_vm1, %v3926_v51  ;;  %3402 = vst.msk [vmem:[%s5088_s11 + $0x2ec] sm:$0xf] %vm3214_vm1, %v4040_v52  ;;  %v1478_v55 = vadd.f32 %v5687_v23, %v1477_v53  ;;  %v4366_v56 = vpop.f32.mrb[149].mxu0  ;;  %v1934_v57 = vadd.f32 %v5687_v23, %v1933_v54  ;;  %v4594_v58 = vpop.f32.mrb[149].mxu1 }
 0x223   : > { %v1480_v59 = vpop.f32.mrb[150].mxu0  ;;  %v1936_v60 = vpop.f32.mrb[150].mxu1 }
 0x224   : > { %v2158_v61 = vmax.f32 %v1478_v55, 0.0  ;;  %v1481_v62 = vadd.f32 %v5687_v23, %v1480_v59  ;;  %v4367_v63 = vpop.f32.mrb[151].mxu0  ;;  %v2272_v0 = vmax.f32 %v1934_v57, 0.0  ;;  %v1937_v2 = vadd.f32 %v5687_v23, %v1936_v60  ;;  %v4595_v3 = vpop.f32.mrb[151].mxu1 }
 0x226   : > { %v3927_v5 = vpack.c.bf16 %v2158_v61, %v2158_v61  ;;  %v2159_v6 = vmax.f32 %v1481_v62, 0.0  ;;  %v4041_v7 = vpack.c.bf16 %v2272_v0, %v2272_v0  ;;  %v2273_v8 = vmax.f32 %v1937_v2, 0.0 }
 0x228   : > { %3289 = vst.msk [vmem:[%s5088_s11 + $0x128] sm:$0xf] %vm3214_vm1, %v3927_v5  ;;  %v3928_v9 = vpack.c.bf16 %v2159_v6, %v2159_v6  ;;  %3403 = vst.msk [vmem:[%s5088_s11 + $0x2f0] sm:$0xf] %vm3214_vm1, %v4041_v7  ;;  %v4042_v10 = vpack.c.bf16 %v2273_v8, %v2273_v8 }
 0x229   : > { %v1485_v11 = vpop.f32.mrb[152].mxu0  ;;  %v1941_v12 = vpop.f32.mrb[152].mxu1 }
 0x22a   : > { %3290 = vst.msk [vmem:[%s5088_s11 + $0x12c] sm:$0xf] %vm3214_vm1, %v3928_v9  ;;  %3404 = vst.msk [vmem:[%s5088_s11 + $0x2f4] sm:$0xf] %vm3214_vm1, %v4042_v10  ;;  %v1486_v13 = vadd.f32 %v5687_v23, %v1485_v11  ;;  %v4370_v14 = vpop.f32.mrb[153].mxu0  ;;  %v1942_v15 = vadd.f32 %v5687_v23, %v1941_v12  ;;  %v4598_v16 = vpop.f32.mrb[153].mxu1 }
 0x22b   : > { %v1488_v17 = vpop.f32.mrb[154].mxu0  ;;  %v1944_v18 = vpop.f32.mrb[154].mxu1 }
 0x22c   : > { %v2160_v19 = vmax.f32 %v1486_v13, 0.0  ;;  %v1489_v20 = vadd.f32 %v5687_v23, %v1488_v17  ;;  %v4371_v21 = vpop.f32.mrb[155].mxu0  ;;  %v2274_v22 = vmax.f32 %v1942_v15, 0.0  ;;  %v1945_v24 = vadd.f32 %v5687_v23, %v1944_v18  ;;  %v4599_v1 = vpop.f32.mrb[155].mxu1 }
 0x22e   : > { %v3929_v25 = vpack.c.bf16 %v2160_v19, %v2160_v19  ;;  %v2161_v26 = vmax.f32 %v1489_v20, 0.0  ;;  %v4043_v27 = vpack.c.bf16 %v2274_v22, %v2274_v22  ;;  %v2275_v4 = vmax.f32 %v1945_v24, 0.0 }
 0x230   : > { %3291 = vst.msk [vmem:[%s5088_s11 + $0x130] sm:$0xf] %vm3214_vm1, %v3929_v25  ;;  %v3930_v28 = vpack.c.bf16 %v2161_v26, %v2161_v26  ;;  %3405 = vst.msk [vmem:[%s5088_s11 + $0x2f8] sm:$0xf] %vm3214_vm1, %v4043_v27  ;;  %v4044_v29 = vpack.c.bf16 %v2275_v4, %v2275_v4 }
 0x231   : > { %v1493_v30 = vpop.f32.mrb[156].mxu0  ;;  %v1949_v31 = vpop.f32.mrb[156].mxu1 }
 0x232   : > { %3292 = vst.msk [vmem:[%s5088_s11 + $0x134] sm:$0xf] %vm3214_vm1, %v3930_v28  ;;  %3406 = vst.msk [vmem:[%s5088_s11 + $0x2fc] sm:$0xf] %vm3214_vm1, %v4044_v29  ;;  %v1494_v32 = vadd.f32 %v5687_v23, %v1493_v30  ;;  %v4374_v33 = vpop.f32.mrb[157].mxu0  ;;  %v1950_v34 = vadd.f32 %v5687_v23, %v1949_v31  ;;  %v4602_v35 = vpop.f32.mrb[157].mxu1 }
 0x233   : > { %v1496_v36 = vpop.f32.mrb[158].mxu0  ;;  %v1952_v37 = vpop.f32.mrb[158].mxu1 }
 0x234   : > { %v2162_v38 = vmax.f32 %v1494_v32, 0.0  ;;  %v1497_v39 = vadd.f32 %v5687_v23, %v1496_v36  ;;  %v4375_v40 = vpop.f32.mrb[159].mxu0  ;;  %v2276_v41 = vmax.f32 %v1950_v34, 0.0  ;;  %v1953_v42 = vadd.f32 %v5687_v23, %v1952_v37  ;;  %v4603_v43 = vpop.f32.mrb[159].mxu1 }
 0x236   : > { %v3931_v44 = vpack.c.bf16 %v2162_v38, %v2162_v38  ;;  %v2163_v45 = vmax.f32 %v1497_v39, 0.0  ;;  %v4045_v46 = vpack.c.bf16 %v2276_v41, %v2276_v41  ;;  %v2277_v47 = vmax.f32 %v1953_v42, 0.0 }
 0x238   : > { %3293 = vst.msk [vmem:[%s5088_s11 + $0x138] sm:$0xf] %vm3214_vm1, %v3931_v44  ;;  %v3932_v48 = vpack.c.bf16 %v2163_v45, %v2163_v45  ;;  %3407 = vst.msk [vmem:[%s5088_s11 + $0x300] sm:$0xf] %vm3214_vm1, %v4045_v46  ;;  %v4046_v49 = vpack.c.bf16 %v2277_v47, %v2277_v47 }
 0x239   : > { %v1501_v50 = vpop.f32.mrb[160].mxu0  ;;  %v1957_v51 = vpop.f32.mrb[160].mxu1 }
 0x23a   : > { %3294 = vst.msk [vmem:[%s5088_s11 + $0x13c] sm:$0xf] %vm3214_vm1, %v3932_v48  ;;  %3408 = vst.msk [vmem:[%s5088_s11 + $0x304] sm:$0xf] %vm3214_vm1, %v4046_v49  ;;  %v1502_v52 = vadd.f32 %v5687_v23, %v1501_v50  ;;  %v4378_v53 = vpop.f32.mrb[161].mxu0  ;;  %v1958_v54 = vadd.f32 %v5687_v23, %v1957_v51  ;;  %v4606_v55 = vpop.f32.mrb[161].mxu1 }
 0x23b   : > { %v1504_v56 = vpop.f32.mrb[162].mxu0  ;;  %v1960_v57 = vpop.f32.mrb[162].mxu1 }
 0x23c   : > { %v2164_v58 = vmax.f32 %v1502_v52, 0.0  ;;  %v1505_v59 = vadd.f32 %v5687_v23, %v1504_v56  ;;  %v4379_v60 = vpop.f32.mrb[163].mxu0  ;;  %v2278_v61 = vmax.f32 %v1958_v54, 0.0  ;;  %v1961_v62 = vadd.f32 %v5687_v23, %v1960_v57  ;;  %v4607_v63 = vpop.f32.mrb[163].mxu1 }
 0x23e   : > { %v3933_v0 = vpack.c.bf16 %v2164_v58, %v2164_v58  ;;  %v2165_v2 = vmax.f32 %v1505_v59, 0.0  ;;  %v4047_v3 = vpack.c.bf16 %v2278_v61, %v2278_v61  ;;  %v2279_v5 = vmax.f32 %v1961_v62, 0.0 }
 0x240   : > { %3295 = vst.msk [vmem:[%s5088_s11 + $0x140] sm:$0xf] %vm3214_vm1, %v3933_v0  ;;  %v3934_v6 = vpack.c.bf16 %v2165_v2, %v2165_v2  ;;  %3409 = vst.msk [vmem:[%s5088_s11 + $0x308] sm:$0xf] %vm3214_vm1, %v4047_v3  ;;  %v4048_v7 = vpack.c.bf16 %v2279_v5, %v2279_v5 }
 0x241   : > { %v1509_v8 = vpop.f32.mrb[164].mxu0  ;;  %v1965_v9 = vpop.f32.mrb[164].mxu1 }
 0x242   : > { %3296 = vst.msk [vmem:[%s5088_s11 + $0x144] sm:$0xf] %vm3214_vm1, %v3934_v6  ;;  %3410 = vst.msk [vmem:[%s5088_s11 + $0x30c] sm:$0xf] %vm3214_vm1, %v4048_v7  ;;  %v1510_v10 = vadd.f32 %v5687_v23, %v1509_v8  ;;  %v4382_v11 = vpop.f32.mrb[165].mxu0  ;;  %v1966_v12 = vadd.f32 %v5687_v23, %v1965_v9  ;;  %v4610_v13 = vpop.f32.mrb[165].mxu1 }
 0x243   : > { %v1512_v14 = vpop.f32.mrb[166].mxu0  ;;  %v1968_v15 = vpop.f32.mrb[166].mxu1 }
 0x244   : > { %v2166_v16 = vmax.f32 %v1510_v10, 0.0  ;;  %v1513_v17 = vadd.f32 %v5687_v23, %v1512_v14  ;;  %v4383_v18 = vpop.f32.mrb[167].mxu0  ;;  %v2280_v19 = vmax.f32 %v1966_v12, 0.0  ;;  %v1969_v20 = vadd.f32 %v5687_v23, %v1968_v15  ;;  %v4611_v21 = vpop.f32.mrb[167].mxu1 }
 0x246   : > { %v3935_v22 = vpack.c.bf16 %v2166_v16, %v2166_v16  ;;  %v2167_v24 = vmax.f32 %v1513_v17, 0.0  ;;  %v4049_v1 = vpack.c.bf16 %v2280_v19, %v2280_v19  ;;  %v2281_v25 = vmax.f32 %v1969_v20, 0.0 }
 0x248   : > { %3297 = vst.msk [vmem:[%s5088_s11 + $0x148] sm:$0xf] %vm3214_vm1, %v3935_v22  ;;  %v3936_v26 = vpack.c.bf16 %v2167_v24, %v2167_v24  ;;  %3411 = vst.msk [vmem:[%s5088_s11 + $0x310] sm:$0xf] %vm3214_vm1, %v4049_v1  ;;  %v4050_v27 = vpack.c.bf16 %v2281_v25, %v2281_v25 }
 0x249   : > { %v1517_v4 = vpop.f32.mrb[168].mxu0  ;;  %v1973_v28 = vpop.f32.mrb[168].mxu1 }
 0x24a   : > { %3298 = vst.msk [vmem:[%s5088_s11 + $0x14c] sm:$0xf] %vm3214_vm1, %v3936_v26  ;;  %3412 = vst.msk [vmem:[%s5088_s11 + $0x314] sm:$0xf] %vm3214_vm1, %v4050_v27  ;;  %v1518_v29 = vadd.f32 %v5687_v23, %v1517_v4  ;;  %v4386_v30 = vpop.f32.mrb[169].mxu0  ;;  %v1974_v31 = vadd.f32 %v5687_v23, %v1973_v28  ;;  %v4614_v32 = vpop.f32.mrb[169].mxu1 }
 0x24b   : > { %v1520_v33 = vpop.f32.mrb[170].mxu0  ;;  %v1976_v34 = vpop.f32.mrb[170].mxu1 }
 0x24c   : > { %v2168_v35 = vmax.f32 %v1518_v29, 0.0  ;;  %v1521_v36 = vadd.f32 %v5687_v23, %v1520_v33  ;;  %v4387_v37 = vpop.f32.mrb[171].mxu0  ;;  %v2282_v38 = vmax.f32 %v1974_v31, 0.0  ;;  %v1977_v39 = vadd.f32 %v5687_v23, %v1976_v34  ;;  %v4615_v40 = vpop.f32.mrb[171].mxu1 }
 0x24e   : > { %v3937_v41 = vpack.c.bf16 %v2168_v35, %v2168_v35  ;;  %v2169_v42 = vmax.f32 %v1521_v36, 0.0  ;;  %v4051_v43 = vpack.c.bf16 %v2282_v38, %v2282_v38  ;;  %v2283_v44 = vmax.f32 %v1977_v39, 0.0 }
 0x250   : > { %3299 = vst.msk [vmem:[%s5088_s11 + $0x150] sm:$0xf] %vm3214_vm1, %v3937_v41  ;;  %v3938_v45 = vpack.c.bf16 %v2169_v42, %v2169_v42  ;;  %3413 = vst.msk [vmem:[%s5088_s11 + $0x318] sm:$0xf] %vm3214_vm1, %v4051_v43  ;;  %v4052_v46 = vpack.c.bf16 %v2283_v44, %v2283_v44 }
 0x251   : > { %v1525_v47 = vpop.f32.mrb[172].mxu0  ;;  %v1981_v48 = vpop.f32.mrb[172].mxu1 }
 0x252   : > { %3300 = vst.msk [vmem:[%s5088_s11 + $0x154] sm:$0xf] %vm3214_vm1, %v3938_v45  ;;  %3414 = vst.msk [vmem:[%s5088_s11 + $0x31c] sm:$0xf] %vm3214_vm1, %v4052_v46  ;;  %v1526_v49 = vadd.f32 %v5687_v23, %v1525_v47  ;;  %v4390_v50 = vpop.f32.mrb[173].mxu0  ;;  %v1982_v51 = vadd.f32 %v5687_v23, %v1981_v48  ;;  %v4618_v52 = vpop.f32.mrb[173].mxu1 }
 0x253   : > { %v1528_v53 = vpop.f32.mrb[174].mxu0  ;;  %v1984_v54 = vpop.f32.mrb[174].mxu1 }
 0x254   : > { %v2170_v55 = vmax.f32 %v1526_v49, 0.0  ;;  %v1529_v56 = vadd.f32 %v5687_v23, %v1528_v53  ;;  %v4391_v57 = vpop.f32.mrb[175].mxu0  ;;  %v2284_v58 = vmax.f32 %v1982_v51, 0.0  ;;  %v1985_v59 = vadd.f32 %v5687_v23, %v1984_v54  ;;  %v4619_v60 = vpop.f32.mrb[175].mxu1 }
 0x256   : > { %v3939_v61 = vpack.c.bf16 %v2170_v55, %v2170_v55  ;;  %v2171_v62 = vmax.f32 %v1529_v56, 0.0  ;;  %v4053_v63 = vpack.c.bf16 %v2284_v58, %v2284_v58  ;;  %v2285_v0 = vmax.f32 %v1985_v59, 0.0 }
 0x258   : > { %3301 = vst.msk [vmem:[%s5088_s11 + $0x158] sm:$0xf] %vm3214_vm1, %v3939_v61  ;;  %v3940_v2 = vpack.c.bf16 %v2171_v62, %v2171_v62  ;;  %3415 = vst.msk [vmem:[%s5088_s11 + $0x320] sm:$0xf] %vm3214_vm1, %v4053_v63  ;;  %v4054_v3 = vpack.c.bf16 %v2285_v0, %v2285_v0 }
 0x259   : > { %v1533_v5 = vpop.f32.mrb[176].mxu0  ;;  %v1989_v6 = vpop.f32.mrb[176].mxu1 }
 0x25a   : > { %3302 = vst.msk [vmem:[%s5088_s11 + $0x15c] sm:$0xf] %vm3214_vm1, %v3940_v2  ;;  %3416 = vst.msk [vmem:[%s5088_s11 + $0x324] sm:$0xf] %vm3214_vm1, %v4054_v3  ;;  %v1534_v7 = vadd.f32 %v5687_v23, %v1533_v5  ;;  %v4394_v8 = vpop.f32.mrb[177].mxu0  ;;  %v1990_v9 = vadd.f32 %v5687_v23, %v1989_v6  ;;  %v4622_v10 = vpop.f32.mrb[177].mxu1 }
 0x25b   : > { %v1536_v11 = vpop.f32.mrb[178].mxu0  ;;  %v1992_v12 = vpop.f32.mrb[178].mxu1 }
 0x25c   : > { %v2172_v13 = vmax.f32 %v1534_v7, 0.0  ;;  %v1537_v14 = vadd.f32 %v5687_v23, %v1536_v11  ;;  %v4395_v15 = vpop.f32.mrb[179].mxu0  ;;  %v2286_v16 = vmax.f32 %v1990_v9, 0.0  ;;  %v1993_v17 = vadd.f32 %v5687_v23, %v1992_v12  ;;  %v4623_v18 = vpop.f32.mrb[179].mxu1 }
 0x25e   : > { %v3941_v19 = vpack.c.bf16 %v2172_v13, %v2172_v13  ;;  %v2173_v20 = vmax.f32 %v1537_v14, 0.0  ;;  %v4055_v21 = vpack.c.bf16 %v2286_v16, %v2286_v16  ;;  %v2287_v22 = vmax.f32 %v1993_v17, 0.0 }
 0x260   : > { %3303 = vst.msk [vmem:[%s5088_s11 + $0x160] sm:$0xf] %vm3214_vm1, %v3941_v19  ;;  %v3942_v24 = vpack.c.bf16 %v2173_v20, %v2173_v20  ;;  %3417 = vst.msk [vmem:[%s5088_s11 + $0x328] sm:$0xf] %vm3214_vm1, %v4055_v21  ;;  %v4056_v1 = vpack.c.bf16 %v2287_v22, %v2287_v22 }
 0x261   : > { %v1541_v25 = vpop.f32.mrb[180].mxu0  ;;  %v1997_v26 = vpop.f32.mrb[180].mxu1 }
 0x262   : > { %3304 = vst.msk [vmem:[%s5088_s11 + $0x164] sm:$0xf] %vm3214_vm1, %v3942_v24  ;;  %3418 = vst.msk [vmem:[%s5088_s11 + $0x32c] sm:$0xf] %vm3214_vm1, %v4056_v1  ;;  %v1542_v27 = vadd.f32 %v5687_v23, %v1541_v25  ;;  %v4398_v4 = vpop.f32.mrb[181].mxu0  ;;  %v1998_v28 = vadd.f32 %v5687_v23, %v1997_v26  ;;  %v4626_v29 = vpop.f32.mrb[181].mxu1 }
 0x263   : > { %v1544_v30 = vpop.f32.mrb[182].mxu0  ;;  %v2000_v31 = vpop.f32.mrb[182].mxu1 }
 0x264   : > { %v2174_v32 = vmax.f32 %v1542_v27, 0.0  ;;  %v1545_v33 = vadd.f32 %v5687_v23, %v1544_v30  ;;  %v4399_v34 = vpop.f32.mrb[183].mxu0  ;;  %v2288_v35 = vmax.f32 %v1998_v28, 0.0  ;;  %v2001_v36 = vadd.f32 %v5687_v23, %v2000_v31  ;;  %v4627_v37 = vpop.f32.mrb[183].mxu1 }
 0x266   : > { %v3943_v38 = vpack.c.bf16 %v2174_v32, %v2174_v32  ;;  %v2175_v39 = vmax.f32 %v1545_v33, 0.0  ;;  %v4057_v40 = vpack.c.bf16 %v2288_v35, %v2288_v35  ;;  %v2289_v41 = vmax.f32 %v2001_v36, 0.0 }
 0x268   : > { %3305 = vst.msk [vmem:[%s5088_s11 + $0x168] sm:$0xf] %vm3214_vm1, %v3943_v38  ;;  %v3944_v42 = vpack.c.bf16 %v2175_v39, %v2175_v39  ;;  %3419 = vst.msk [vmem:[%s5088_s11 + $0x330] sm:$0xf] %vm3214_vm1, %v4057_v40  ;;  %v4058_v43 = vpack.c.bf16 %v2289_v41, %v2289_v41 }
 0x269   : > { %v1549_v44 = vpop.f32.mrb[184].mxu0  ;;  %v2005_v45 = vpop.f32.mrb[184].mxu1 }
 0x26a   : > { %3306 = vst.msk [vmem:[%s5088_s11 + $0x16c] sm:$0xf] %vm3214_vm1, %v3944_v42  ;;  %3420 = vst.msk [vmem:[%s5088_s11 + $0x334] sm:$0xf] %vm3214_vm1, %v4058_v43  ;;  %v1550_v46 = vadd.f32 %v5687_v23, %v1549_v44  ;;  %v4402_v47 = vpop.f32.mrb[185].mxu0  ;;  %v2006_v48 = vadd.f32 %v5687_v23, %v2005_v45  ;;  %v4630_v49 = vpop.f32.mrb[185].mxu1 }
 0x26b   : > { %v1552_v50 = vpop.f32.mrb[186].mxu0  ;;  %v2008_v51 = vpop.f32.mrb[186].mxu1 }
 0x26c   : > { %v2176_v52 = vmax.f32 %v1550_v46, 0.0  ;;  %v1553_v53 = vadd.f32 %v5687_v23, %v1552_v50  ;;  %v4403_v54 = vpop.f32.mrb[187].mxu0  ;;  %v2290_v55 = vmax.f32 %v2006_v48, 0.0  ;;  %v2009_v56 = vadd.f32 %v5687_v23, %v2008_v51  ;;  %v4631_v57 = vpop.f32.mrb[187].mxu1 }
 0x26e   : > { %v3945_v58 = vpack.c.bf16 %v2176_v52, %v2176_v52  ;;  %v2177_v59 = vmax.f32 %v1553_v53, 0.0  ;;  %v4059_v60 = vpack.c.bf16 %v2290_v55, %v2290_v55  ;;  %v2291_v61 = vmax.f32 %v2009_v56, 0.0 }
 0x270   : > { %3307 = vst.msk [vmem:[%s5088_s11 + $0x170] sm:$0xf] %vm3214_vm1, %v3945_v58  ;;  %v3946_v62 = vpack.c.bf16 %v2177_v59, %v2177_v59  ;;  %3421 = vst.msk [vmem:[%s5088_s11 + $0x338] sm:$0xf] %vm3214_vm1, %v4059_v60  ;;  %v4060_v63 = vpack.c.bf16 %v2291_v61, %v2291_v61 }
 0x271   : > { %v1557_v0 = vpop.f32.mrb[188].mxu0  ;;  %v2013_v2 = vpop.f32.mrb[188].mxu1 }
 0x272   : > { %3308 = vst.msk [vmem:[%s5088_s11 + $0x174] sm:$0xf] %vm3214_vm1, %v3946_v62  ;;  %3422 = vst.msk [vmem:[%s5088_s11 + $0x33c] sm:$0xf] %vm3214_vm1, %v4060_v63  ;;  %v1558_v3 = vadd.f32 %v5687_v23, %v1557_v0  ;;  %v4406_v5 = vpop.f32.mrb[189].mxu0  ;;  %v2014_v6 = vadd.f32 %v5687_v23, %v2013_v2  ;;  %v4634_v7 = vpop.f32.mrb[189].mxu1 }
 0x273   : > { %v1560_v8 = vpop.f32.mrb[190].mxu0  ;;  %v2016_v9 = vpop.f32.mrb[190].mxu1 }
 0x274   : > { %v2178_v10 = vmax.f32 %v1558_v3, 0.0  ;;  %v1561_v11 = vadd.f32 %v5687_v23, %v1560_v8  ;;  %v4407_v12 = vpop.f32.mrb[191].mxu0  ;;  %v2292_v13 = vmax.f32 %v2014_v6, 0.0  ;;  %v2017_v14 = vadd.f32 %v5687_v23, %v2016_v9  ;;  %v4635_v15 = vpop.f32.mrb[191].mxu1 }
 0x276   : > { %v3947_v16 = vpack.c.bf16 %v2178_v10, %v2178_v10  ;;  %v2179_v17 = vmax.f32 %v1561_v11, 0.0  ;;  %v4061_v18 = vpack.c.bf16 %v2292_v13, %v2292_v13  ;;  %v2293_v19 = vmax.f32 %v2017_v14, 0.0 }
 0x278   : > { %3309 = vst.msk [vmem:[%s5088_s11 + $0x178] sm:$0xf] %vm3214_vm1, %v3947_v16  ;;  %v3948_v20 = vpack.c.bf16 %v2179_v17, %v2179_v17  ;;  %3423 = vst.msk [vmem:[%s5088_s11 + $0x340] sm:$0xf] %vm3214_vm1, %v4061_v18  ;;  %v4062_v21 = vpack.c.bf16 %v2293_v19, %v2293_v19 }
 0x279   : > { %v1565_v22 = vpop.f32.mrb[192].mxu0  ;;  %v2021_v24 = vpop.f32.mrb[192].mxu1 }
 0x27a   : > { %3310 = vst.msk [vmem:[%s5088_s11 + $0x17c] sm:$0xf] %vm3214_vm1, %v3948_v20  ;;  %3424 = vst.msk [vmem:[%s5088_s11 + $0x344] sm:$0xf] %vm3214_vm1, %v4062_v21  ;;  %v1566_v1 = vadd.f32 %v5687_v23, %v1565_v22  ;;  %v4410_v25 = vpop.f32.mrb[193].mxu0  ;;  %v2022_v26 = vadd.f32 %v5687_v23, %v2021_v24  ;;  %v4638_v27 = vpop.f32.mrb[193].mxu1 }
 0x27b   : > { %v1568_v4 = vpop.f32.mrb[194].mxu0  ;;  %v2024_v28 = vpop.f32.mrb[194].mxu1 }
 0x27c   : > { %v2180_v29 = vmax.f32 %v1566_v1, 0.0  ;;  %v1569_v30 = vadd.f32 %v5687_v23, %v1568_v4  ;;  %v4411_v31 = vpop.f32.mrb[195].mxu0  ;;  %v2294_v32 = vmax.f32 %v2022_v26, 0.0  ;;  %v2025_v33 = vadd.f32 %v5687_v23, %v2024_v28  ;;  %v4639_v34 = vpop.f32.mrb[195].mxu1 }
 0x27e   : > { %v3949_v35 = vpack.c.bf16 %v2180_v29, %v2180_v29  ;;  %v2181_v36 = vmax.f32 %v1569_v30, 0.0  ;;  %v4063_v37 = vpack.c.bf16 %v2294_v32, %v2294_v32  ;;  %v2295_v38 = vmax.f32 %v2025_v33, 0.0 }
 0x280   : > { %3311 = vst.msk [vmem:[%s5088_s11 + $0x180] sm:$0xf] %vm3214_vm1, %v3949_v35  ;;  %v3950_v39 = vpack.c.bf16 %v2181_v36, %v2181_v36  ;;  %3425 = vst.msk [vmem:[%s5088_s11 + $0x348] sm:$0xf] %vm3214_vm1, %v4063_v37  ;;  %v4064_v40 = vpack.c.bf16 %v2295_v38, %v2295_v38 }
 0x281   : > { %v1573_v41 = vpop.f32.mrb[196].mxu0  ;;  %v2029_v42 = vpop.f32.mrb[196].mxu1 }
 0x282   : > { %3312 = vst.msk [vmem:[%s5088_s11 + $0x184] sm:$0xf] %vm3214_vm1, %v3950_v39  ;;  %3426 = vst.msk [vmem:[%s5088_s11 + $0x34c] sm:$0xf] %vm3214_vm1, %v4064_v40  ;;  %v1574_v43 = vadd.f32 %v5687_v23, %v1573_v41  ;;  %v4414_v44 = vpop.f32.mrb[197].mxu0  ;;  %v2030_v45 = vadd.f32 %v5687_v23, %v2029_v42  ;;  %v4642_v46 = vpop.f32.mrb[197].mxu1 }
 0x283   : > { %v1576_v47 = vpop.f32.mrb[198].mxu0  ;;  %v2032_v48 = vpop.f32.mrb[198].mxu1 }
 0x284   : > { %v2182_v49 = vmax.f32 %v1574_v43, 0.0  ;;  %v1577_v50 = vadd.f32 %v5687_v23, %v1576_v47  ;;  %v4415_v51 = vpop.f32.mrb[199].mxu0  ;;  %v2296_v52 = vmax.f32 %v2030_v45, 0.0  ;;  %v2033_v53 = vadd.f32 %v5687_v23, %v2032_v48  ;;  %v4643_v54 = vpop.f32.mrb[199].mxu1 }
 0x286   : > { %v3951_v55 = vpack.c.bf16 %v2182_v49, %v2182_v49  ;;  %v2183_v56 = vmax.f32 %v1577_v50, 0.0  ;;  %v4065_v57 = vpack.c.bf16 %v2296_v52, %v2296_v52  ;;  %v2297_v58 = vmax.f32 %v2033_v53, 0.0 }
 0x288   : > { %3313 = vst.msk [vmem:[%s5088_s11 + $0x188] sm:$0xf] %vm3214_vm1, %v3951_v55  ;;  %v3952_v59 = vpack.c.bf16 %v2183_v56, %v2183_v56  ;;  %3427 = vst.msk [vmem:[%s5088_s11 + $0x350] sm:$0xf] %vm3214_vm1, %v4065_v57  ;;  %v4066_v60 = vpack.c.bf16 %v2297_v58, %v2297_v58 }
 0x289   : > { %v1581_v61 = vpop.f32.mrb[200].mxu0  ;;  %v2037_v62 = vpop.f32.mrb[200].mxu1 }
 0x28a   : > { %3314 = vst.msk [vmem:[%s5088_s11 + $0x18c] sm:$0xf] %vm3214_vm1, %v3952_v59  ;;  %3428 = vst.msk [vmem:[%s5088_s11 + $0x354] sm:$0xf] %vm3214_vm1, %v4066_v60  ;;  %v1582_v63 = vadd.f32 %v5687_v23, %v1581_v61  ;;  %v4418_v0 = vpop.f32.mrb[201].mxu0  ;;  %v2038_v2 = vadd.f32 %v5687_v23, %v2037_v62  ;;  %v4646_v3 = vpop.f32.mrb[201].mxu1 }
 0x28b   : > { %v1584_v5 = vpop.f32.mrb[202].mxu0  ;;  %v2040_v6 = vpop.f32.mrb[202].mxu1 }
 0x28c   : > { %v2184_v7 = vmax.f32 %v1582_v63, 0.0  ;;  %v1585_v8 = vadd.f32 %v5687_v23, %v1584_v5  ;;  %v4419_v9 = vpop.f32.mrb[203].mxu0  ;;  %v2298_v10 = vmax.f32 %v2038_v2, 0.0  ;;  %v2041_v11 = vadd.f32 %v5687_v23, %v2040_v6  ;;  %v4647_v12 = vpop.f32.mrb[203].mxu1 }
 0x28e   : > { %v3953_v13 = vpack.c.bf16 %v2184_v7, %v2184_v7  ;;  %v2185_v14 = vmax.f32 %v1585_v8, 0.0  ;;  %v4067_v15 = vpack.c.bf16 %v2298_v10, %v2298_v10  ;;  %v2299_v16 = vmax.f32 %v2041_v11, 0.0 }
 0x290   : > { %3315 = vst.msk [vmem:[%s5088_s11 + $0x190] sm:$0xf] %vm3214_vm1, %v3953_v13  ;;  %v3954_v17 = vpack.c.bf16 %v2185_v14, %v2185_v14  ;;  %3429 = vst.msk [vmem:[%s5088_s11 + $0x358] sm:$0xf] %vm3214_vm1, %v4067_v15  ;;  %v4068_v18 = vpack.c.bf16 %v2299_v16, %v2299_v16 }
 0x291   : > { %v1589_v19 = vpop.f32.mrb[204].mxu0  ;;  %v2045_v20 = vpop.f32.mrb[204].mxu1 }
 0x292   : > { %3316 = vst.msk [vmem:[%s5088_s11 + $0x194] sm:$0xf] %vm3214_vm1, %v3954_v17  ;;  %3430 = vst.msk [vmem:[%s5088_s11 + $0x35c] sm:$0xf] %vm3214_vm1, %v4068_v18  ;;  %v1590_v21 = vadd.f32 %v5687_v23, %v1589_v19  ;;  %v4422_v22 = vpop.f32.mrb[205].mxu0  ;;  %v2046_v24 = vadd.f32 %v5687_v23, %v2045_v20  ;;  %v4650_v1 = vpop.f32.mrb[205].mxu1 }
 0x293   : > { %v1592_v25 = vpop.f32.mrb[206].mxu0  ;;  %v2048_v26 = vpop.f32.mrb[206].mxu1 }
 0x294   : > { %v2186_v27 = vmax.f32 %v1590_v21, 0.0  ;;  %v1593_v4 = vadd.f32 %v5687_v23, %v1592_v25  ;;  %v4423_v28 = vpop.f32.mrb[207].mxu0  ;;  %v2300_v29 = vmax.f32 %v2046_v24, 0.0  ;;  %v2049_v30 = vadd.f32 %v5687_v23, %v2048_v26  ;;  %v4651_v31 = vpop.f32.mrb[207].mxu1 }
 0x296   : > { %v3955_v32 = vpack.c.bf16 %v2186_v27, %v2186_v27  ;;  %v2187_v33 = vmax.f32 %v1593_v4, 0.0  ;;  %v4069_v34 = vpack.c.bf16 %v2300_v29, %v2300_v29  ;;  %v2301_v35 = vmax.f32 %v2049_v30, 0.0 }
 0x298   : > { %3317 = vst.msk [vmem:[%s5088_s11 + $0x198] sm:$0xf] %vm3214_vm1, %v3955_v32  ;;  %v3956_v36 = vpack.c.bf16 %v2187_v33, %v2187_v33  ;;  %3431 = vst.msk [vmem:[%s5088_s11 + $0x360] sm:$0xf] %vm3214_vm1, %v4069_v34  ;;  %v4070_v37 = vpack.c.bf16 %v2301_v35, %v2301_v35 }
 0x299   : > { %v1597_v38 = vpop.f32.mrb[208].mxu0  ;;  %v2053_v39 = vpop.f32.mrb[208].mxu1 }
 0x29a   : > { %3318 = vst.msk [vmem:[%s5088_s11 + $0x19c] sm:$0xf] %vm3214_vm1, %v3956_v36  ;;  %3432 = vst.msk [vmem:[%s5088_s11 + $0x364] sm:$0xf] %vm3214_vm1, %v4070_v37  ;;  %v1598_v40 = vadd.f32 %v5687_v23, %v1597_v38  ;;  %v4426_v41 = vpop.f32.mrb[209].mxu0  ;;  %v2054_v42 = vadd.f32 %v5687_v23, %v2053_v39  ;;  %v4654_v43 = vpop.f32.mrb[209].mxu1 }
 0x29b   : > { %v1600_v44 = vpop.f32.mrb[210].mxu0  ;;  %v2056_v45 = vpop.f32.mrb[210].mxu1 }
 0x29c   : > { %v2188_v46 = vmax.f32 %v1598_v40, 0.0  ;;  %v1601_v47 = vadd.f32 %v5687_v23, %v1600_v44  ;;  %v4427_v48 = vpop.f32.mrb[211].mxu0  ;;  %v2302_v49 = vmax.f32 %v2054_v42, 0.0  ;;  %v2057_v50 = vadd.f32 %v5687_v23, %v2056_v45  ;;  %v4655_v51 = vpop.f32.mrb[211].mxu1 }
 0x29e   : > { %v3957_v52 = vpack.c.bf16 %v2188_v46, %v2188_v46  ;;  %v2189_v53 = vmax.f32 %v1601_v47, 0.0  ;;  %v4071_v54 = vpack.c.bf16 %v2302_v49, %v2302_v49  ;;  %v2303_v55 = vmax.f32 %v2057_v50, 0.0 }
 0x2a0   : > { %3319 = vst.msk [vmem:[%s5088_s11 + $0x1a0] sm:$0xf] %vm3214_vm1, %v3957_v52  ;;  %v3958_v56 = vpack.c.bf16 %v2189_v53, %v2189_v53  ;;  %3433 = vst.msk [vmem:[%s5088_s11 + $0x368] sm:$0xf] %vm3214_vm1, %v4071_v54  ;;  %v4072_v57 = vpack.c.bf16 %v2303_v55, %v2303_v55 }
 0x2a1   : > { %v1605_v58 = vpop.f32.mrb[212].mxu0  ;;  %v2061_v59 = vpop.f32.mrb[212].mxu1 }
 0x2a2   : > { %3320 = vst.msk [vmem:[%s5088_s11 + $0x1a4] sm:$0xf] %vm3214_vm1, %v3958_v56  ;;  %3434 = vst.msk [vmem:[%s5088_s11 + $0x36c] sm:$0xf] %vm3214_vm1, %v4072_v57  ;;  %v1606_v60 = vadd.f32 %v5687_v23, %v1605_v58  ;;  %v4430_v61 = vpop.f32.mrb[213].mxu0  ;;  %v2062_v62 = vadd.f32 %v5687_v23, %v2061_v59  ;;  %v4658_v63 = vpop.f32.mrb[213].mxu1 }
 0x2a3   : > { %v1608_v0 = vpop.f32.mrb[214].mxu0  ;;  %v2064_v2 = vpop.f32.mrb[214].mxu1 }
 0x2a4   : > { %v2190_v3 = vmax.f32 %v1606_v60, 0.0  ;;  %v1609_v5 = vadd.f32 %v5687_v23, %v1608_v0  ;;  %v4431_v6 = vpop.f32.mrb[215].mxu0  ;;  %v2304_v7 = vmax.f32 %v2062_v62, 0.0  ;;  %v2065_v8 = vadd.f32 %v5687_v23, %v2064_v2  ;;  %v4659_v9 = vpop.f32.mrb[215].mxu1 }
 0x2a6   : > { %v3959_v10 = vpack.c.bf16 %v2190_v3, %v2190_v3  ;;  %v2191_v11 = vmax.f32 %v1609_v5, 0.0  ;;  %v4073_v12 = vpack.c.bf16 %v2304_v7, %v2304_v7  ;;  %v2305_v13 = vmax.f32 %v2065_v8, 0.0 }
 0x2a8   : > { %3321 = vst.msk [vmem:[%s5088_s11 + $0x1a8] sm:$0xf] %vm3214_vm1, %v3959_v10  ;;  %v3960_v14 = vpack.c.bf16 %v2191_v11, %v2191_v11  ;;  %3435 = vst.msk [vmem:[%s5088_s11 + $0x370] sm:$0xf] %vm3214_vm1, %v4073_v12  ;;  %v4074_v15 = vpack.c.bf16 %v2305_v13, %v2305_v13 }
 0x2a9   : > { %v1613_v16 = vpop.f32.mrb[216].mxu0  ;;  %v2069_v17 = vpop.f32.mrb[216].mxu1 }
 0x2aa   : > { %3322 = vst.msk [vmem:[%s5088_s11 + $0x1ac] sm:$0xf] %vm3214_vm1, %v3960_v14  ;;  %3436 = vst.msk [vmem:[%s5088_s11 + $0x374] sm:$0xf] %vm3214_vm1, %v4074_v15  ;;  %v1614_v18 = vadd.f32 %v5687_v23, %v1613_v16  ;;  %v4434_v19 = vpop.f32.mrb[217].mxu0  ;;  %v2070_v20 = vadd.f32 %v5687_v23, %v2069_v17  ;;  %v4662_v21 = vpop.f32.mrb[217].mxu1 }
 0x2ab   : > { %v1616_v22 = vpop.f32.mrb[218].mxu0  ;;  %v2072_v24 = vpop.f32.mrb[218].mxu1 }
 0x2ac   : > { %v2192_v1 = vmax.f32 %v1614_v18, 0.0  ;;  %v1617_v25 = vadd.f32 %v5687_v23, %v1616_v22  ;;  %v4435_v26 = vpop.f32.mrb[219].mxu0  ;;  %v2306_v27 = vmax.f32 %v2070_v20, 0.0  ;;  %v2073_v4 = vadd.f32 %v5687_v23, %v2072_v24  ;;  %v4663_v28 = vpop.f32.mrb[219].mxu1 }
 0x2ae   : > { %v3961_v29 = vpack.c.bf16 %v2192_v1, %v2192_v1  ;;  %v2193_v30 = vmax.f32 %v1617_v25, 0.0  ;;  %v4075_v31 = vpack.c.bf16 %v2306_v27, %v2306_v27  ;;  %v2307_v32 = vmax.f32 %v2073_v4, 0.0 }
 0x2b0   : > { %3323 = vst.msk [vmem:[%s5088_s11 + $0x1b0] sm:$0xf] %vm3214_vm1, %v3961_v29  ;;  %v3962_v33 = vpack.c.bf16 %v2193_v30, %v2193_v30  ;;  %3437 = vst.msk [vmem:[%s5088_s11 + $0x378] sm:$0xf] %vm3214_vm1, %v4075_v31  ;;  %v4076_v34 = vpack.c.bf16 %v2307_v32, %v2307_v32 }
 0x2b1   : > { %v1621_v35 = vpop.f32.mrb[220].mxu0  ;;  %v2077_v36 = vpop.f32.mrb[220].mxu1 }
 0x2b2   : > { %3324 = vst.msk [vmem:[%s5088_s11 + $0x1b4] sm:$0xf] %vm3214_vm1, %v3962_v33  ;;  %3438 = vst.msk [vmem:[%s5088_s11 + $0x37c] sm:$0xf] %vm3214_vm1, %v4076_v34  ;;  %v1622_v37 = vadd.f32 %v5687_v23, %v1621_v35  ;;  %v4438_v38 = vpop.f32.mrb[221].mxu0  ;;  %v2078_v39 = vadd.f32 %v5687_v23, %v2077_v36  ;;  %v4666_v40 = vpop.f32.mrb[221].mxu1 }
 0x2b3   : > { %v1624_v41 = vpop.f32.mrb[222].mxu0  ;;  %v2080_v42 = vpop.f32.mrb[222].mxu1 }
 0x2b4   : > { %v2194_v43 = vmax.f32 %v1622_v37, 0.0  ;;  %v1625_v44 = vadd.f32 %v5687_v23, %v1624_v41  ;;  %v4439_v45 = vpop.f32.mrb[223].mxu0  ;;  %v2308_v46 = vmax.f32 %v2078_v39, 0.0  ;;  %v2081_v47 = vadd.f32 %v5687_v23, %v2080_v42  ;;  %v4667_v48 = vpop.f32.mrb[223].mxu1 }
 0x2b6   : > { %v3963_v49 = vpack.c.bf16 %v2194_v43, %v2194_v43  ;;  %v2195_v50 = vmax.f32 %v1625_v44, 0.0  ;;  %v4077_v51 = vpack.c.bf16 %v2308_v46, %v2308_v46  ;;  %v2309_v52 = vmax.f32 %v2081_v47, 0.0 }
 0x2b8   : > { %3325 = vst.msk [vmem:[%s5088_s11 + $0x1b8] sm:$0xf] %vm3214_vm1, %v3963_v49  ;;  %v3964_v53 = vpack.c.bf16 %v2195_v50, %v2195_v50  ;;  %3439 = vst.msk [vmem:[%s5088_s11 + $0x380] sm:$0xf] %vm3214_vm1, %v4077_v51  ;;  %v4078_v54 = vpack.c.bf16 %v2309_v52, %v2309_v52 }
 0x2b9   : > { %v1629_v55 = vpop.f32.mrb[224].mxu0 }
 0x2ba   : > { %3326 = vst.msk [vmem:[%s5088_s11 + $0x1bc] sm:$0xf] %vm3214_vm1, %v3964_v53  ;;  %3440 = vst.msk [vmem:[%s5088_s11 + $0x384] sm:$0xf] %vm3214_vm1, %v4078_v54  ;;  %v1630_v56 = vadd.f32 %v5687_v23, %v1629_v55  ;;  %v4442_v57 = vpop.f32.mrb[225].mxu0 }
 0x2bb   : > { %v1632_v58 = vpop.f32.mrb[226].mxu0 }
 0x2bc   : > { %v2196_v59 = vmax.f32 %v1630_v56, 0.0  ;;  %v1633_v60 = vadd.f32 %v5687_v23, %v1632_v58  ;;  %v4443_v61 = vpop.f32.mrb[227].mxu0 }
 0x2be   : > { %v3965_v62 = vpack.c.bf16 %v2196_v59, %v2196_v59  ;;  %v2197_v63 = vmax.f32 %v1633_v60, 0.0 }
 0x2c0   : > { %3327 = vst.msk [vmem:[%s5088_s11 + $0x1c0] sm:$0xf] %vm3214_vm1, %v3965_v62  ;;  %v3966_v0 = vpack.c.bf16 %v2197_v63, %v2197_v63 }
 0x2c2   : > { %3328 = vst.msk [vmem:[%s5088_s11 + $0x1c4] sm:$0xf] %vm3214_vm1, %v3966_v0 }
 0x2c3 PF: > { %s13_s12 = sadd.s32 1, %s4824_s12  }
 0x2c4   : > { %p10_p4 = scmp.ge.s32.totalorder %s13_s12, 4  }
 0x2c6   :  { %12 = sbr.rel (!%p10_p4) target bundleno = 1 (0x1), region = 62 }

// kernel: _lambda_.3
= control target key start
LH: loop header
LB: loop body
LE: loop exit
PB: predicated region body
PF: predicated region fallthrough
CT: control target
= control target key end

     0   :  { %s9743_s18 = smov 0   ;;  %s12564_s0 = inlined_call_operand.vmem [shape: bf16[2,1440,96], index: 0, kind: input, shape index: {}]   ;;  %s12565_s1 = inlined_call_operand.vmem [shape: bf16[9,96,64], index: 1, kind: input, shape index: {}]   ;;  %s12566_s2 = inlined_call_operand.vmem [shape: f32[1,64], index: 2, kind: input, shape index: {}]   ;;  %s12567_s3 = inlined_call_operand.vmem [shape: bf16[27,64,128], index: 3, kind: input, shape index: {}]   ;;  %s12568_s4 = inlined_call_operand.vmem [shape: f32[1,128], index: 4, kind: input, shape index: {}]   ;;  %s12569_s5 = inlined_call_operand.vmem [shape: f32[2,1,128], index: 5, kind: output, shape index: {}]  }
   0x1 LB: > { %s6840_s19 = sadd.s32 4294967295, %s9694_s18   ;;  %p6844_p0 = scmp.ge.s32.totalorder %s9694_s18, 1  ;;  %s9694_s18 = sphi %s9743_s18, %s15_s18  }
   0x2   : > { %p187_p1 = scmp.lt.s32.totalorder %s9694_s18, 3 }
   0x4   : > { %p188_p2 = pnand %p6844_p0, %p187_p1 }
   0x5   : > { %p9753_p3 = scmp.lt.s32.totalorder (!%p188_p2), %s6840_s19, 1  ;;  %vm222_vm0 = vcmask (!%p188_p2), 523264   ;;  %v9760_v0 = vld [vmem:[%s12566_s2] ss:$0 sm:$0xff] (!%p188_p2)  ;;  %v317_v1 = vlaneseq (!%p188_p2)  ;;  %v9708_v2 = vmov (!%p188_p2), 0   ;;  %s9996_s7 = smov (!%p188_p2), 0  }
   0x6   : > { %191 = sbr.rel (%p188_p2) target bundleno = 1556 (0x614), region = 40  ;;  %223 = vst.msk [vmem:[#allocation2] sm:$0xff] (!%p188_p2), %vm222_vm0, %v9708_v2  ;;  %224 = vst.msk [vmem:[#allocation2 + $0x8] sm:$0xff] (!%p188_p2), %vm222_vm0, %v9708_v2  ;;  %v9949_v3 = vld [vmem:[%s12568_s4] ss:$0 sm:$0xff] (!%p188_p2) }
   0x7   : > { %225 = vst.msk [vmem:[#allocation2 + $0x10] sm:$0xff] (!%p188_p2), %vm222_vm0, %v9708_v2  ;;  %226 = vst.msk [vmem:[#allocation2 + $0x18] sm:$0xff] (!%p188_p2), %vm222_vm0, %v9708_v2  ;;  %v318_v4 = vshrl.u32 (!%p188_p2), %v317_v1, 7 }
   0x8   : > { %227 = vst.msk [vmem:[#allocation2 + $0x20] sm:$0xff] (!%p188_p2), %vm222_vm0, %v9708_v2  ;;  %228 = vst.msk [vmem:[#allocation2 + $0x28] sm:$0xff] (!%p188_p2), %vm222_vm0, %v9708_v2 }
   0x9   : > { %229 = vst.msk [vmem:[#allocation2 + $0x30] sm:$0xff] (!%p188_p2), %vm222_vm0, %v9708_v2  ;;  %230 = vst.msk [vmem:[#allocation2 + $0x38] sm:$0xff] (!%p188_p2), %vm222_vm0, %v9708_v2  ;;  %v320_v5 = vadd.s32 (!%p188_p2), 16, %v318_v4  ;;  %v322_v6 = vadd.s32 (!%p188_p2), 32, %v318_v4  ;;  %v324_v7 = vadd.s32 (!%p188_p2), 48, %v318_v4  ;;  %v326_v8 = vadd.s32 (!%p188_p2), 64, %v318_v4 }
   0xa   : > { %231 = vst.msk [vmem:[#allocation2 + $0x40] sm:$0xff] (!%p188_p2), %vm222_vm0, %v9708_v2  ;;  %232 = vst.msk [vmem:[#allocation2 + $0x48] sm:$0xff] (!%p188_p2), %vm222_vm0, %v9708_v2  ;;  %v328_v9 = vadd.s32 (!%p188_p2), 80, %v318_v4  ;;  %v330_v10 = vadd.s32 (!%p188_p2), 96, %v318_v4  ;;  %v332_v11 = vand.u32 (!%p188_p2), 15, %v318_v4 }
   0xb   : > { %233 = vst.msk [vmem:[#allocation2 + $0x50] sm:$0xff] (!%p188_p2), %vm222_vm0, %v9708_v2  ;;  %234 = vst.msk [vmem:[#allocation2 + $0x58] sm:$0xff] (!%p188_p2), %vm222_vm0, %v9708_v2  ;;  %v334_v12 = vand.u32 (!%p188_p2), 15, %v320_v5  ;;  %v336_v13 = vand.u32 (!%p188_p2), 15, %v322_v6  ;;  %v338_v14 = vand.u32 (!%p188_p2), 15, %v324_v7  ;;  %v340_v15 = vand.u32 (!%p188_p2), 15, %v326_v8 }
   0xc   : > { %235 = vst.msk [vmem:[#allocation2 + $0x60] sm:$0xff] (!%p188_p2), %vm222_vm0, %v9708_v2  ;;  %236 = vst.msk [vmem:[#allocation2 + $0x68] sm:$0xff] (!%p188_p2), %vm222_vm0, %v9708_v2  ;;  %v342_v16 = vand.u32 (!%p188_p2), 15, %v328_v9  ;;  %v344_v17 = vand.u32 (!%p188_p2), 15, %v330_v10  ;;  %vm9968_vm1 = vcmp.lt.s32.totalorder (!%p188_p2), %v332_v11, 7 }
   0xd   : > { %237 = vst.msk [vmem:[#allocation2 + $0x70] sm:$0xff] %vm222_vm0, %v9708_v2  ;;  %238 = vst.msk [vmem:[#allocation2 + $0x78] sm:$0xff] %vm222_vm0, %v9708_v2  ;;  %s12587_s19 = smov (!%p9753_p3, %s6840_s19), 1  ;;  %vm9972_vm2 = vcmp.lt.s32.totalorder %v334_v12, 7  ;;  %vm9976_vm3 = vcmp.lt.s32.totalorder %v336_v13, 7  ;;  %vm9980_vm4 = vcmp.lt.s32.totalorder %v338_v14, 7 }
   0xe   : > { %239 = vst.msk [vmem:[#allocation2 + $0x80] sm:$0xff] %vm222_vm0, %v9708_v2  ;;  %240 = vst.msk [vmem:[#allocation2 + $0x88] sm:$0xff] %vm222_vm0, %v9708_v2  ;;  %s9410_s25 = smul.u32 720, %s12587_s19  ;;  %s220_s28 = scalar_lea.vmem %s12569_s5, %s12587_s19  ;;  %vm9984_vm5 = vcmp.lt.s32.totalorder %v340_v15, 7  ;;  %vm9988_vm6 = vcmp.lt.s32.totalorder %v342_v16, 7  ;;  %vm9992_vm7 = vcmp.lt.s32.totalorder %v344_v17, 7 }
   0xf   : > { %241 = vst.msk [vmem:[#allocation2 + $0x90] sm:$0xff] %vm222_vm0, %v9708_v2  ;;  %242 = vst.msk [vmem:[#allocation2 + $0x98] sm:$0xff] %vm222_vm0, %v9708_v2 }
  0x10   : > { %243 = vst.msk [vmem:[#allocation2 + $0xa0] sm:$0xff] %vm222_vm0, %v9708_v2  ;;  %244 = vst.msk [vmem:[#allocation2 + $0xa8] sm:$0xff] %vm222_vm0, %v9708_v2  ;;  %s9966_s6 = scalar_lea.vmem %s12564_s0, %s9410_s25 }
  0x11   : > { %245 = vst.msk [vmem:[#allocation2 + $0xb0] sm:$0xff] %vm222_vm0, %v9708_v2  ;;  %246 = vst.msk [vmem:[#allocation2 + $0xb8] sm:$0xff] %vm222_vm0, %v9708_v2 }
  0x12   : > { %247 = vst.msk [vmem:[#allocation2 + $0xc0] sm:$0xff] %vm222_vm0, %v9708_v2  ;;  %248 = vst.msk [vmem:[#allocation2 + $0xc8] sm:$0xff] %vm222_vm0, %v9708_v2 }
  0x13   : > { %249 = vst.msk [vmem:[#allocation2 + $0xd0] sm:$0xff] %vm222_vm0, %v9708_v2  ;;  %250 = vst.msk [vmem:[#allocation2 + $0xd8] sm:$0xff] %vm222_vm0, %v9708_v2 }
  0x14   : > { %251 = vst.msk [vmem:[#allocation2 + $0xe0] sm:$0xff] %vm222_vm0, %v9708_v2  ;;  %252 = vst.msk [vmem:[#allocation2 + $0xe8] sm:$0xff] %vm222_vm0, %v9708_v2 }
  0x15   : > { %253 = vst.msk [vmem:[#allocation2 + $0xf0] sm:$0xff] %vm222_vm0, %v9708_v2  ;;  %254 = vst.msk [vmem:[#allocation2 + $0xf8] sm:$0xff] %vm222_vm0, %v9708_v2 }
  0x16   : > { %255 = vst.msk [vmem:[#allocation2 + $0x100] sm:$0xff] %vm222_vm0, %v9708_v2  ;;  %256 = vst.msk [vmem:[#allocation2 + $0x108] sm:$0xff] %vm222_vm0, %v9708_v2 }
  0x17   : > { %257 = vst.msk [vmem:[#allocation2 + $0x110] sm:$0xff] %vm222_vm0, %v9708_v2  ;;  %258 = vst.msk [vmem:[#allocation2 + $0x118] sm:$0xff] %vm222_vm0, %v9708_v2 }
  0x18   : > { %259 = vst.msk [vmem:[#allocation2 + $0x120] sm:$0xff] %vm222_vm0, %v9708_v2  ;;  %260 = vst.msk [vmem:[#allocation2 + $0x128] sm:$0xff] %vm222_vm0, %v9708_v2 }
  0x19   : > { %261 = vst.msk [vmem:[#allocation2 + $0x130] sm:$0xff] %vm222_vm0, %v9708_v2  ;;  %262 = vst.msk [vmem:[#allocation2 + $0x138] sm:$0xff] %vm222_vm0, %v9708_v2 }
  0x1a   : > { %263 = vst.msk [vmem:[#allocation2 + $0x140] sm:$0xff] %vm222_vm0, %v9708_v2  ;;  %264 = vst.msk [vmem:[#allocation2 + $0x148] sm:$0xff] %vm222_vm0, %v9708_v2 }
  0x1b   : > { %265 = vst.msk [vmem:[#allocation2 + $0x150] sm:$0xff] %vm222_vm0, %v9708_v2  ;;  %266 = vst.msk [vmem:[#allocation2 + $0x158] sm:$0xff] %vm222_vm0, %v9708_v2 }
  0x1c   : > { %267 = vst.msk [vmem:[#allocation2 + $0x160] sm:$0xff] %vm222_vm0, %v9708_v2  ;;  %268 = vst.msk [vmem:[#allocation2 + $0x168] sm:$0xff] %vm222_vm0, %v9708_v2 }
  0x1d   : > { %269 = vst.msk [vmem:[#allocation2 + $0x170] sm:$0xff] %vm222_vm0, %v9708_v2  ;;  %270 = vst.msk [vmem:[#allocation2 + $0x178] sm:$0xff] %vm222_vm0, %v9708_v2 }
  0x1e   : > { %271 = vst.msk [vmem:[#allocation2 + $0x180] sm:$0xff] %vm222_vm0, %v9708_v2  ;;  %272 = vst.msk [vmem:[#allocation2 + $0x188] sm:$0xff] %vm222_vm0, %v9708_v2 }
  0x1f   : > { %273 = vst.msk [vmem:[#allocation2 + $0x190] sm:$0xff] %vm222_vm0, %v9708_v2  ;;  %274 = vst.msk [vmem:[#allocation2 + $0x198] sm:$0xff] %vm222_vm0, %v9708_v2 }
  0x20   : > { %275 = vst.msk [vmem:[#allocation2 + $0x1a0] sm:$0xff] %vm222_vm0, %v9708_v2  ;;  %276 = vst.msk [vmem:[#allocation2 + $0x1a8] sm:$0xff] %vm222_vm0, %v9708_v2 }
  0x21   : > { %277 = vst.msk [vmem:[#allocation2 + $0x1b0] sm:$0xff] %vm222_vm0, %v9708_v2  ;;  %278 = vst.msk [vmem:[#allocation2 + $0x1b8] sm:$0xff] %vm222_vm0, %v9708_v2 }
  0x22   : > { %279 = vst.msk [vmem:[#allocation2 + $0x1c0] sm:$0xff] %vm222_vm0, %v9708_v2  ;;  %280 = vst.msk [vmem:[#allocation2 + $0x1c8] sm:$0xff] %vm222_vm0, %v9708_v2 }
  0x23   : > { %281 = vst.msk [vmem:[#allocation2 + $0x1d0] sm:$0xff] %vm222_vm0, %v9708_v2  ;;  %282 = vst.msk [vmem:[#allocation2 + $0x1d8] sm:$0xff] %vm222_vm0, %v9708_v2 }
  0x24   : > { %283 = vst.msk [vmem:[#allocation2 + $0x1e0] sm:$0xff] %vm222_vm0, %v9708_v2  ;;  %284 = vst.msk [vmem:[#allocation2 + $0x1e8] sm:$0xff] %vm222_vm0, %v9708_v2 }
  0x25   : > { %285 = vst.msk [vmem:[#allocation2 + $0x1f0] sm:$0xff] %vm222_vm0, %v9708_v2  ;;  %286 = vst.msk [vmem:[#allocation2 + $0x1f8] sm:$0xff] %vm222_vm0, %v9708_v2 }
  0x26   : > { %287 = vst.msk [vmem:[#allocation2 + $0x200] sm:$0xff] %vm222_vm0, %v9708_v2  ;;  %288 = vst.msk [vmem:[#allocation2 + $0x208] sm:$0xff] %vm222_vm0, %v9708_v2 }
  0x27   : > { %289 = vst.msk [vmem:[#allocation2 + $0x210] sm:$0xff] %vm222_vm0, %v9708_v2  ;;  %290 = vst.msk [vmem:[#allocation2 + $0x218] sm:$0xff] %vm222_vm0, %v9708_v2 }
  0x28   : > { %291 = vst.msk [vmem:[#allocation2 + $0x220] sm:$0xff] %vm222_vm0, %v9708_v2  ;;  %292 = vst.msk [vmem:[#allocation2 + $0x228] sm:$0xff] %vm222_vm0, %v9708_v2 }
  0x29   : > { %293 = vst.msk [vmem:[#allocation2 + $0x230] sm:$0xff] %vm222_vm0, %v9708_v2  ;;  %294 = vst.msk [vmem:[#allocation2 + $0x238] sm:$0xff] %vm222_vm0, %v9708_v2 }
  0x2a   : > { %295 = vst.msk [vmem:[#allocation2 + $0x240] sm:$0xff] %vm222_vm0, %v9708_v2  ;;  %296 = vst.msk [vmem:[#allocation2 + $0x248] sm:$0xff] %vm222_vm0, %v9708_v2 }
  0x2b   : > { %297 = vst.msk [vmem:[#allocation2 + $0x250] sm:$0xff] %vm222_vm0, %v9708_v2  ;;  %298 = vst.msk [vmem:[#allocation2 + $0x258] sm:$0xff] %vm222_vm0, %v9708_v2 }
  0x2c   : > { %299 = vst.msk [vmem:[#allocation2 + $0x260] sm:$0xff] %vm222_vm0, %v9708_v2  ;;  %300 = vst.msk [vmem:[#allocation2 + $0x268] sm:$0xff] %vm222_vm0, %v9708_v2 }
  0x2d   : > { %301 = vst.msk [vmem:[#allocation2 + $0x270] sm:$0xff] %vm222_vm0, %v9708_v2  ;;  %302 = vst.msk [vmem:[#allocation2 + $0x278] sm:$0xff] %vm222_vm0, %v9708_v2 }
  0x2e   : > { %303 = vst.msk [vmem:[#allocation2 + $0x280] sm:$0xff] %vm222_vm0, %v9708_v2  ;;  %304 = vst.msk [vmem:[#allocation2 + $0x288] sm:$0xff] %vm222_vm0, %v9708_v2 }
  0x2f   : > { %305 = vst.msk [vmem:[#allocation2 + $0x290] sm:$0xff] %vm222_vm0, %v9708_v2  ;;  %306 = vst.msk [vmem:[#allocation2 + $0x298] sm:$0xff] %vm222_vm0, %v9708_v2 }
  0x30   : > { %307 = vst.msk [vmem:[#allocation2 + $0x2a0] sm:$0xff] %vm222_vm0, %v9708_v2  ;;  %308 = vst.msk [vmem:[#allocation2 + $0x2a8] sm:$0xff] %vm222_vm0, %v9708_v2 }
  0x31   : > { %309 = vst.msk [vmem:[#allocation2 + $0x2b0] sm:$0xff] %vm222_vm0, %v9708_v2  ;;  %310 = vst.msk [vmem:[#allocation2 + $0x2b8] sm:$0xff] %vm222_vm0, %v9708_v2 }
  0x32   : > { %311 = vst.msk [vmem:[#allocation2 + $0x2c0] sm:$0xff] %vm222_vm0, %v9708_v2  ;;  %312 = vst.msk [vmem:[#allocation2 + $0x2c8] sm:$0xff] %vm222_vm0, %v9708_v2 }
  0x33   : > { %313 = vst.msk [vmem:[#allocation2 + $0x2d0] sm:$0xff] %vm222_vm0, %v9708_v2  ;;  %314 = vst.msk [vmem:[#allocation2 + $0x2d8] sm:$0xff] %vm222_vm0, %v9708_v2 }
  0x34 LB: >> { %v9448_v25 = vld [vmem:[%s12565_s1 + $0x30] sm:$0xff]   ;;  %v9709_v26 = vmov 0.0   ;;  %v9449_v27 = vld [vmem:[%s12565_s1 + $0x38] sm:$0xff]   ;;  %s10010_s12 = smul.u32 144, %s9698_s7  ;;  %vm9710_vm8 = vmmov 0   ;;  %v9450_v28 = vld [vmem:[%s12565_s1 + $0x40] sm:$0xff]   ;;  %s9698_s7 = sphi %s9996_s7, %s365_s7  }
  0x35   : >> { %9390 = vmatprep.subr.bf16.mxu1 %v9709_v26  ;;  %8058 = vmatprep.subr.bf16.mxu0 %v9709_v26  ;;  %v9451_v29 = vld [vmem:[%s12565_s1 + $0x48] sm:$0xff]   ;;  %v9452_v30 = vld [vmem:[%s12565_s1 + $0x50] sm:$0xff]   ;;  %v9453_v31 = vld [vmem:[%s12565_s1 + $0x58] sm:$0xff]   ;;  %vm500_vm9 = vcmask 785408   ;;  %s365_s7 = sadd.s32 1, %s9698_s7  }
  0x36   : >> { %9396 = vmatpush3.bf16.msra.mxu1 %v9448_v25  ;;  %8059 = vmatpush3.bf16.msra.mxu0 %v9448_v25  ;;  %s397_s13 = sadd.s32 16, %s10010_s12  ;;  %s792_s25 = sadd.s32 32, %s10010_s12  ;;  %v9455_v34 = vld [vmem:[%s12565_s1] sm:$0xff]   ;;  %v9456_v36 = vld [vmem:[%s12565_s1 + $0x8] sm:$0xff]   ;;  %v9460_v40 = vld [vmem:[%s12565_s1 + $0x10] sm:$0xff]  }
  0x37   : >> { %9391 = vmatprep.subr.bf16.mxu1 %v9709_v26  ;;  %8060 = vmatprep.subr.bf16.mxu0 %v9709_v26  ;;  %s398_s14 = sshra.s32 %s397_s13, 3  ;;  %s367_s29 = sshra.s32 %s10010_s12, 3  ;;  %v9459_v35 = vld [vmem:[%s12565_s1 + $0x60] sm:$0xff]   ;;  %v9461_v37 = vld [vmem:[%s12565_s1 + $0x68] sm:$0xff]   ;;  %v9465_v41 = vld [vmem:[%s12565_s1 + $0x70] sm:$0xff]  }
  0x38   : >> { %8082 = vmatprep.mubr.msk.bf16.mxu1 %vm9710_vm8, %v9709_v26  ;;  %8070 = vmatprep.mubr.msk.bf16.mxu0 %vm9710_vm8, %v9709_v26  ;;  %s6847_s17 = sshll.u32 %s398_s14, 2  ;;  %s793_s30 = sshra.s32 %s792_s25, 3  ;;  %v9464_v42 = vld [vmem:[%s12565_s1 + $0x18] sm:$0xff]   ;;  %v9467_v46 = vld [vmem:[%s12565_s1 + $0x20] sm:$0xff]   ;;  %v9471_v48 = vld [vmem:[%s12565_s1 + $0x28] sm:$0xff]  }
  0x39   : >> { %s10025_s20 = scalar_lea.vmem %s9966_s6, %s6847_s17  ;;  %s6846_s8 = sshll.u32 %s367_s29, 2  ;;  %v9466_v43 = vld [vmem:[%s12565_s1 + $0x78] sm:$0xff]   ;;  %v9470_v47 = vld [vmem:[%s12565_s1 + $0x80] sm:$0xff]   ;;  %v9472_v49 = vld [vmem:[%s12565_s1 + $0x88] sm:$0xff]  }
  0x3a   : >> { %9397 = vmatpush3.bf16.msra.mxu1 %v9449_v27  ;;  %8061 = vmatpush3.bf16.msra.mxu0 %v9449_v27  ;;  %v9454_v32 = vld [vmem:[%s10025_s20 + $0x18] sm:$0xff]   ;;  %v9457_v33 = vld [vmem:[%s10025_s20] sm:$0xff]   ;;  %s6900_s11 = sshll.u32 %s793_s30, 2  ;;  %s10055_s15 = scalar_lea.vmem %s9966_s6, %s6846_s8  ;;  %v9462_v39 = vld [vmem:[%s10025_s20 + $0x8] sm:$0xff]  }
  0x3b   : >> { %9392 = vmatprep.subr.bf16.mxu1 %v9709_v26  ;;  %8062 = vmatprep.subr.bf16.mxu0 %v9709_v26  ;;  %s10060_s16 = scalar_lea.vmem %s9966_s6, %s6900_s11  ;;  %v9458_v38 = vld [vmem:[%s10025_s20 + $0x20] sm:$0xff]   ;;  %v9463_v44 = vld [vmem:[%s10025_s20 + $0x28] sm:$0xff]   ;;  %v9468_v45 = vld [vmem:[%s10025_s20 + $0x10] sm:$0xff]   ;;  %s1019_s17 = sadd.s32 144, %s10010_s12 }
  0x3c   : >> { %s1246_s23 = sadd.s32 160, %s10010_s12  ;;  %s1020_s26 = sshra.s32 %s1019_s17, 3  ;;  %v9469_v50 = vld [vmem:[%s10025_s20 + $0x30] sm:$0xff]   ;;  %v9474_v51 = vld [vmem:[%s10060_s16] sm:$0xff]   ;;  %v9480_v53 = vld [vmem:[%s12565_s1 + $0xc8] sm:$0xff]  }
  0x3d   : >> { %s1247_s27 = sshra.s32 %s1246_s23, 3  ;;  %v9476_v52 = vld [vmem:[%s12565_s1 + $0xc0] sm:$0xff]   ;;  %s6933_s8 = sshll.u32 %s1020_s26, 2  ;;  %v9475_v55 = vld [vmem:[%s12565_s1 + $0x90] sm:$0xff]   ;;  %v9478_v56 = vld [vmem:[%s10060_s16 + $0x8] sm:$0xff]  }
  0x3e   : >> { %9398 = vmatpush3.bf16.msra.mxu1 %v9450_v28  ;;  %8063 = vmatpush3.bf16.msra.mxu0 %v9450_v28  ;;  %s6966_s9 = sshll.u32 %s1247_s27, 2  ;;  %s10136_s20 = scalar_lea.vmem %s9966_s6, %s6933_s8  ;;  %v9473_v54 = vld [vmem:[%s10055_s15] sm:$0xff]   ;;  %v9484_v57 = vld [vmem:[%s12565_s1 + $0xd0] sm:$0xff]   ;;  %v9479_v58 = vld [vmem:[%s12565_s1 + $0x98] sm:$0xff]  }
  0x3f   : >> { %9393 = vmatprep.subr.bf16.mxu1 %v9709_v26  ;;  %8064 = vmatprep.subr.bf16.mxu0 %v9709_v26  ;;  %s10144_s13 = scalar_lea.vmem %s9966_s6, %s6966_s9  ;;  %v9488_v59 = vld [vmem:[%s12565_s1 + $0xd8] sm:$0xff]   ;;  %v9477_v60 = vld [vmem:[%s10055_s15 + $0x8] sm:$0xff]   ;;  %v9483_v61 = vld [vmem:[%s12565_s1 + $0xa0] sm:$0xff]   ;;  %s1473_s11 = sadd.s32 176, %s10010_s12 }
  0x40   : >> { %v9482_v62 = vld [vmem:[%s10060_s16 + $0x10] sm:$0xff]   ;;  %v9494_v63 = vld [vmem:[%s12565_s1 + $0xe0] sm:$0xff]   ;;  %v9487_v1 = vld [vmem:[%s12565_s1 + $0xa8] sm:$0xff]   ;;  %s1700_s21 = sadd.s32 288, %s10010_s12  ;;  %s1474_s24 = sshra.s32 %s1473_s11, 3 }
  0x41   : >> { %v9498_v2 = vld [vmem:[%s12565_s1 + $0xe8] sm:$0xff]   ;;  %v9481_v4 = vld [vmem:[%s10055_s15 + $0x10] sm:$0xff]   ;;  %v9486_v6 = vld [vmem:[%s10060_s16 + $0x18] sm:$0xff]   ;;  %s1701_s25 = sshra.s32 %s1700_s21, 3  ;;  %s6999_s26 = sshll.u32 %s1474_s24, 2 }
  0x42   : >> { %9399 = vmatpush3.bf16.msra.mxu1 %v9451_v29  ;;  %8065 = vmatpush3.bf16.msra.mxu0 %v9451_v29  ;;  %v9491_v5 = vld [vmem:[%s12565_s1 + $0xb0] sm:$0xff]   ;;  %v9497_v7 = vld [vmem:[%s12565_s1 + $0xb8] sm:$0xff]   ;;  %s7032_s30 = sshll.u32 %s1701_s25, 2  ;;  %s10216_s8 = scalar_lea.vmem %s9966_s6, %s6999_s26  ;;  %v9490_v9 = vld [vmem:[%s10060_s16 + $0x20] sm:$0xff]  }
  0x43   : >> { %9394 = vmatprep.subr.bf16.mxu1 %v9709_v26  ;;  %8066 = vmatprep.subr.bf16.mxu0 %v9709_v26  ;;  %v9485_v8 = vld [vmem:[%s10055_s15 + $0x18] sm:$0xff]   ;;  %s10220_s9 = scalar_lea.vmem %s9966_s6, %s7032_s30  ;;  %v9489_v10 = vld [vmem:[%s10055_s15 + $0x20] sm:$0xff]   ;;  %v9493_v11 = vld [vmem:[%s10060_s16 + $0x28] sm:$0xff]   ;;  %s1927_s10 = sadd.s32 304, %s10010_s12 }
  0x44   : >> { %v9492_v12 = vld [vmem:[%s10055_s15 + $0x28] sm:$0xff]   ;;  %s2154_s14 = sadd.s32 320, %s10010_s12  ;;  %v9496_v13 = vld [vmem:[%s10060_s16 + $0x30] sm:$0xff]   ;;  %s1928_s17 = sshra.s32 %s1927_s10, 3  ;;  %v9500_v15 = vld [vmem:[%s10144_s13] sm:$0xff]  }
  0x45   : >> { %s2155_s21 = sshra.s32 %s2154_s14, 3  ;;  %s7065_s22 = sshll.u32 %s1928_s17, 2  ;;  %v9495_v14 = vld [vmem:[%s10055_s15 + $0x30] sm:$0xff]   ;;  %v9502_v16 = vld [vmem:[%s12565_s1 + $0x120] sm:$0xff]   ;;  %v9506_v17 = vld [vmem:[%s12565_s1 + $0x128] sm:$0xff]  }
  0x46   : >> { %9400 = vmatpush3.bf16.msra.mxu1 %v9452_v30  ;;  %8067 = vmatpush3.bf16.msra.mxu0 %v9452_v30  ;;  %s7098_s23 = sshll.u32 %s2155_s21, 2  ;;  %s10250_s24 = scalar_lea.vmem %s9966_s6, %s7065_s22  ;;  %v9499_v25 = vld [vmem:[%s10136_s20] sm:$0xff]   ;;  %v9501_v27 = vld [vmem:[%s12565_s1 + $0xf0] sm:$0xff]   ;;  %v9504_v28 = vld [vmem:[%s10144_s13 + $0x8] sm:$0xff]  }
  0x47   : >> { %9395 = vmatprep.subr.bf16.mxu1 %v9709_v26  ;;  %8068 = vmatprep.subr.bf16.mxu0 %v9709_v26  ;;  %s10254_s16 = scalar_lea.vmem %s9966_s6, %s7098_s23  ;;  %v9510_v29 = vld [vmem:[%s12565_s1 + $0x130] sm:$0xff]   ;;  %v9505_v30 = vld [vmem:[%s12565_s1 + $0xf8] sm:$0xff]   ;;  %p362_p4 = scmp.ge.s32.totalorder %s365_s7, 8  }
  0x4a   : >> { %9401 = vmatpush3.bf16.msra.mxu1 %v9453_v31  ;;  %8069 = vmatpush3.bf16.msra.mxu0 %v9453_v31  ;;  %v9514_v31 = vld [vmem:[%s12565_s1 + $0x138] sm:$0xff]  }
  0x4b   : >> { %8098 = vmatprep.subr.bf16.mxu1 %v9709_v26  ;;  %8138 = vmatprep.subr.bf16.mxu0 %v9709_v26 }
  0x4d   : >> { %8083 = vmatmul.mubr.msk.bf16.vlgmr.msra.gmra.mrb[0].mxu1 %vm500_vm9, %v9454_v32  ;;  %8071 = vmatmul.mubr.msk.bf16.vlgmr.msra.gmra.mrb[0].mxu0 %vm500_vm9, %v9457_v33  ;;  %v9503_v32 = vld [vmem:[%s10136_s20 + $0x8] sm:$0xff]   ;;  %v9509_v33 = vld [vmem:[%s12565_s1 + $0x100] sm:$0xff]  }
  0x4e   : >> { %8099 = vmatpush3.bf16.msra.mxu1 %v9455_v34  ;;  %8086 = vmatprep.mubr.msk.bf16.mxu1 %vm9710_vm8, %v9709_v26  ;;  %v9508_v34 = vld [vmem:[%s10144_s13 + $0x10] sm:$0xff]  }
  0x4f   : >> { %8100 = vmatprep.subr.bf16.mxu1 %v9709_v26  ;;  %8139 = vmatpush3.bf16.msra.mxu0 %v9459_v35  ;;  %v9520_v35 = vld [vmem:[%s12565_s1 + $0x140] sm:$0xff]  }
  0x50   : >> { %8140 = vmatprep.subr.bf16.mxu0 %v9709_v26  ;;  %8074 = vmatprep.mubr.msk.bf16.mxu0 %vm9710_vm8, %v9709_v26 }
  0x52   : >> { %8101 = vmatpush3.bf16.msra.mxu1 %v9456_v36  ;;  %v9513_v36 = vld [vmem:[%s12565_s1 + $0x108] sm:$0xff]  }
  0x53   : >> { %8102 = vmatprep.subr.bf16.mxu1 %v9709_v26  ;;  %8141 = vmatpush3.bf16.msra.mxu0 %v9461_v37  ;;  %v9524_v37 = vld [vmem:[%s12565_s1 + $0x148] sm:$0xff]  }
  0x54   : >> { %8142 = vmatprep.subr.bf16.mxu0 %v9709_v26 }
  0x55   : >> { %8087 = vmatmul.mubr.msk.bf16.gmra.mrb[4].mxu1 %vm500_vm9, %v9458_v38  ;;  %8075 = vmatmul.mubr.msk.bf16.gmra.mrb[4].mxu0 %vm500_vm9, %v9462_v39  ;;  %v9507_v38 = vld [vmem:[%s10136_s20 + $0x10] sm:$0xff]  }
  0x56   : >> { %8103 = vmatpush3.bf16.msra.mxu1 %v9460_v40  ;;  %8090 = vmatprep.mubr.msk.bf16.mxu1 %vm9710_vm8, %v9709_v26  ;;  %v9517_v39 = vld [vmem:[%s12565_s1 + $0x110] sm:$0xff]   ;;  %v9512_v40 = vld [vmem:[%s10144_s13 + $0x18] sm:$0xff]  }
  0x57   : >> { %8104 = vmatprep.subr.bf16.mxu1 %v9709_v26  ;;  %8143 = vmatpush3.bf16.msra.mxu0 %v9465_v41  ;;  %v9523_v41 = vld [vmem:[%s12565_s1 + $0x118] sm:$0xff]  }
  0x58   : >> { %8144 = vmatprep.subr.bf16.mxu0 %v9709_v26  ;;  %8078 = vmatprep.mubr.msk.bf16.mxu0 %vm9710_vm8, %v9709_v26 }
  0x5a   : >> { %8105 = vmatpush3.bf16.msra.mxu1 %v9464_v42  ;;  %v9511_v42 = vld [vmem:[%s10136_s20 + $0x18] sm:$0xff]  }
  0x5b   : >> { %8145 = vmatpush3.bf16.msra.mxu0 %v9466_v43  ;;  %8106 = vmatprep.subr.bf16.mxu1 %v9709_v26  ;;  %v9516_v43 = vld [vmem:[%s10144_s13 + $0x20] sm:$0xff]  }
  0x5c   : >> { %8146 = vmatprep.subr.bf16.mxu0 %v9709_v26 }
  0x5d   : >> { %8091 = vmatmul.mubr.msk.bf16.gmra.mrb[8].mxu1 %vm500_vm9, %v9463_v44  ;;  %8079 = vmatmul.mubr.msk.bf16.gmra.mrb[8].mxu0 %vm500_vm9, %v9468_v45  ;;  %v9515_v44 = vld [vmem:[%s10136_s20 + $0x20] sm:$0xff]   ;;  %v9519_v45 = vld [vmem:[%s10144_s13 + $0x28] sm:$0xff]  }
  0x5e   : >> { %8094 = vmatprep.mubr.msk.bf16.mxu1 %vm9710_vm8, %v9709_v26  ;;  %8107 = vmatpush3.bf16.msra.mxu1 %v9467_v46  ;;  %v9518_v46 = vld [vmem:[%s10136_s20 + $0x28] sm:$0xff]  }
  0x5f   : >> { %8147 = vmatpush3.bf16.msra.mxu0 %v9470_v47  ;;  %8108 = vmatprep.subr.bf16.mxu1 %v9709_v26  ;;  %v9522_v47 = vld [vmem:[%s10144_s13 + $0x30] sm:$0xff]  }
  0x60   : >> { %8148 = vmatprep.subr.bf16.mxu0 %v9709_v26  ;;  %8150 = vmatprep.mubr.msk.bf16.mxu0 %vm9710_vm8, %v9709_v26 }
  0x62   : >> { %8109 = vmatpush3.bf16.msra.mxu1 %v9471_v48  ;;  %v9521_v48 = vld [vmem:[%s10136_s20 + $0x30] sm:$0xff]  }
  0x63   : >> { %8149 = vmatpush3.bf16.msra.mxu0 %v9472_v49  ;;  %8178 = vmatprep.subr.bf16.mxu1 %v9709_v26  ;;  %v9526_v49 = vld [vmem:[%s10220_s9] sm:$0xff]  }
  0x64   : >> { %8218 = vmatprep.subr.bf16.mxu0 %v9709_v26 }
  0x65   : >> { %8095 = vmatmul.mubr.msk.bf16.gmra.mrb[12].mxu1 %vm500_vm9, %v9469_v50  ;;  %v9528_v50 = vld [vmem:[%s12565_s1 + $0x180] sm:$0xff]  }
  0x66   : >> { %8110 = vmatprep.mubr.msk.bf16.mxu1 %vm9710_vm8, %v9709_v26  ;;  %8151 = vmatmul.mubr.msk.bf16.vlgmr.msra.gmra.mrb[12].mxu0 %vm500_vm9, %v9474_v51  ;;  %v9532_v51 = vld [vmem:[%s12565_s1 + $0x188] sm:$0xff]  }
  0x67   : >> { %8219 = vmatpush3.bf16.msra.mxu0 %v9476_v52  ;;  %8154 = vmatprep.mubr.msk.bf16.mxu0 %vm9710_vm8, %v9709_v26  ;;  %v9525_v52 = vld [vmem:[%s10216_s8] sm:$0xff]  }
  0x68   : >> { %8220 = vmatprep.subr.bf16.mxu0 %v9709_v26 }
  0x6b   : >> { %8221 = vmatpush3.bf16.msra.mxu0 %v9480_v53  ;;  %v9527_v53 = vld [vmem:[%s12565_s1 + $0x150] sm:$0xff]  }
  0x6c   : >> { %8222 = vmatprep.subr.bf16.mxu0 %v9709_v26 }
  0x6d   : >> { %8111 = vmatmul.mubr.msk.bf16.vlgmr.msra.gmra.mrb[16].mxu1 %vm500_vm9, %v9473_v54  ;;  %v9530_v54 = vld [vmem:[%s10220_s9 + $0x8] sm:$0xff]  }
  0x6e   : >> { %8179 = vmatpush3.bf16.msra.mxu1 %v9475_v55  ;;  %8114 = vmatprep.mubr.msk.bf16.mxu1 %vm9710_vm8, %v9709_v26  ;;  %v9536_v55 = vld [vmem:[%s12565_s1 + $0x190] sm:$0xff]  }
  0x6f   : >> { %8155 = vmatmul.mubr.msk.bf16.gmra.mrb[16].mxu0 %vm500_vm9, %v9478_v56  ;;  %8180 = vmatprep.subr.bf16.mxu1 %v9709_v26  ;;  %v9531_v56 = vld [vmem:[%s12565_s1 + $0x158] sm:$0xff]  }
  0x70   : >> { %8158 = vmatprep.mubr.msk.bf16.mxu0 %vm9710_vm8, %v9709_v26  ;;  %8223 = vmatpush3.bf16.msra.mxu0 %v9484_v57  ;;  %v9540_v57 = vld [vmem:[%s12565_s1 + $0x198] sm:$0xff]  }
  0x71   : >> { %8224 = vmatprep.subr.bf16.mxu0 %v9709_v26 }
  0x72   : >> { %8181 = vmatpush3.bf16.msra.mxu1 %v9479_v58  ;;  %v9529_v58 = vld [vmem:[%s10216_s8 + $0x8] sm:$0xff]  }
  0x73   : >> { %8182 = vmatprep.subr.bf16.mxu1 %v9709_v26 }
  0x74   : >> { %8225 = vmatpush3.bf16.msra.mxu0 %v9488_v59  ;;  %v9535_v59 = vld [vmem:[%s12565_s1 + $0x160] sm:$0xff]  }
  0x75   : >> { %8115 = vmatmul.mubr.msk.bf16.gmra.mrb[20].mxu1 %vm500_vm9, %v9477_v60  ;;  %8226 = vmatprep.subr.bf16.mxu0 %v9709_v26  ;;  %v9534_v60 = vld [vmem:[%s10220_s9 + $0x10] sm:$0xff]  }
  0x76   : >> { %8118 = vmatprep.mubr.msk.bf16.mxu1 %vm9710_vm8, %v9709_v26  ;;  %8183 = vmatpush3.bf16.msra.mxu1 %v9483_v61  ;;  %v9546_v61 = vld [vmem:[%s12565_s1 + $0x1a0] sm:$0xff]  }
  0x77   : >> { %8159 = vmatmul.mubr.msk.bf16.gmra.mrb[20].mxu0 %vm500_vm9, %v9482_v62  ;;  %8184 = vmatprep.subr.bf16.mxu1 %v9709_v26  ;;  %v9539_v62 = vld [vmem:[%s12565_s1 + $0x168] sm:$0xff]  }
  0x78   : >> { %8162 = vmatprep.mubr.msk.bf16.mxu0 %vm9710_vm8, %v9709_v26  ;;  %8227 = vmatpush3.bf16.msra.mxu0 %v9494_v63  ;;  %v9550_v63 = vld [vmem:[%s12565_s1 + $0x1a8] sm:$0xff]  }
  0x79   : >> { %8228 = vmatprep.subr.bf16.mxu0 %v9709_v26 }
  0x7a   : >> { %8185 = vmatpush3.bf16.msra.mxu1 %v9487_v1  ;;  %v9533_v1 = vld [vmem:[%s10216_s8 + $0x10] sm:$0xff]  }
  0x7b   : >> { %8186 = vmatprep.subr.bf16.mxu1 %v9709_v26 }
  0x7c   : >> { %8229 = vmatpush3.bf16.msra.mxu0 %v9498_v2  ;;  %v9543_v2 = vld [vmem:[%s12565_s1 + $0x170] sm:$0xff]  }
  0x7d   : >> { %8119 = vmatmul.mubr.msk.bf16.gmra.mrb[24].mxu1 %vm500_vm9, %v9481_v4  ;;  %8298 = vmatprep.subr.bf16.mxu0 %v9709_v26  ;;  %v9538_v4 = vld [vmem:[%s10220_s9 + $0x18] sm:$0xff]  }
  0x7e   : >> { %8122 = vmatprep.mubr.msk.bf16.mxu1 %vm9710_vm8, %v9709_v26  ;;  %8187 = vmatpush3.bf16.msra.mxu1 %v9491_v5  ;;  %v9549_v5 = vld [vmem:[%s12565_s1 + $0x178] sm:$0xff]  }
  0x7f   : >> { %8163 = vmatmul.mubr.msk.bf16.gmra.mrb[24].mxu0 %vm500_vm9, %v9486_v6  ;;  %8188 = vmatprep.subr.bf16.mxu1 %v9709_v26  ;;  %v9537_v6 = vld [vmem:[%s10216_s8 + $0x18] sm:$0xff]  }
  0x80   : >> { %8166 = vmatprep.mubr.msk.bf16.mxu0 %vm9710_vm8, %v9709_v26 }
  0x82   : >> { %8189 = vmatpush3.bf16.msra.mxu1 %v9497_v7  ;;  %v9542_v7 = vld [vmem:[%s10220_s9 + $0x20] sm:$0xff]  }
  0x83   : >> { %8258 = vmatprep.subr.bf16.mxu1 %v9709_v26 }
  0x85   : >> { %8123 = vmatmul.mubr.msk.bf16.gmra.mrb[28].mxu1 %vm500_vm9, %v9485_v8  ;;  %v9541_v8 = vld [vmem:[%s10216_s8 + $0x20] sm:$0xff]  }
  0x86   : >> { %8126 = vmatprep.mubr.msk.bf16.mxu1 %vm9710_vm8, %v9709_v26 }
  0x87   : >> { %8167 = vmatmul.mubr.msk.bf16.gmra.mrb[28].mxu0 %vm500_vm9, %v9490_v9  ;;  %v9545_v9 = vld [vmem:[%s10220_s9 + $0x28] sm:$0xff]  }
  0x88   : >> { %8170 = vmatprep.mubr.msk.bf16.mxu0 %vm9710_vm8, %v9709_v26 }
  0x8d   : >> { %8127 = vmatmul.mubr.msk.bf16.gmra.mrb[32].mxu1 %vm500_vm9, %v9489_v10  ;;  %v9544_v10 = vld [vmem:[%s10216_s8 + $0x28] sm:$0xff]  }
  0x8e   : >> { %8130 = vmatprep.mubr.msk.bf16.mxu1 %vm9710_vm8, %v9709_v26 }
  0x8f   : >> { %8171 = vmatmul.mubr.msk.bf16.gmra.mrb[32].mxu0 %vm500_vm9, %v9493_v11  ;;  %v9548_v11 = vld [vmem:[%s10220_s9 + $0x30] sm:$0xff]  }
  0x90   : >> { %8174 = vmatprep.mubr.msk.bf16.mxu0 %vm9710_vm8, %v9709_v26 }
  0x95   : >> { %8131 = vmatmul.mubr.msk.bf16.gmra.mrb[36].mxu1 %vm500_vm9, %v9492_v12  ;;  %v9547_v12 = vld [vmem:[%s10216_s8 + $0x30] sm:$0xff]   ;;  %s2436_s8 = sshra.s32 %s1473_s11, 4  ;;  %s10642_s11 = smov (%p362_p4), 0  }
  0x96   : >> { %8134 = vmatprep.mubr.msk.bf16.mxu1 %vm9710_vm8, %v9709_v26  ;;  %s7132_s9 = sshll.u32 %s2436_s8, 3 }
  0x97   : >> { %8175 = vmatmul.mubr.msk.bf16.gmra.mrb[36].mxu0 %vm500_vm9, %v9496_v13  ;;  %v9552_v13 = vld [vmem:[%s10254_s16] sm:$0xff]   ;;  %s10592_s12 = scalar_lea.vmem [#allocation2], %s7132_s9 }
  0x98   : >> { %8230 = vmatprep.mubr.msk.bf16.mxu0 %vm9710_vm8, %v9709_v26 }
  0x9d   : >> { %8135 = vmatmul.mubr.msk.bf16.gmra.mrb[40].mxu1 %vm500_vm9, %v9495_v14  ;;  %v9551_v14 = vld [vmem:[%s10250_s24] sm:$0xff]  }
  0x9e   : >> { %8190 = vmatprep.mubr.msk.bf16.mxu1 %vm9710_vm8, %v9709_v26 }
  0x9f   : >> { %8231 = vmatmul.mubr.msk.bf16.vlgmr.msra.gmra.mrb[40].mxu0 %vm500_vm9, %v9500_v15  ;;  %v9554_v15 = vld [vmem:[%s10254_s16 + $0x8] sm:$0xff]  }
  0xa0   : >> { %8299 = vmatpush3.bf16.msra.mxu0 %v9502_v16  ;;  %8234 = vmatprep.mubr.msk.bf16.mxu0 %vm9710_vm8, %v9709_v26  ;;  %v9553_v16 = vld [vmem:[%s10250_s24 + $0x8] sm:$0xff]  }
  0xa1   : >> { %8300 = vmatprep.subr.bf16.mxu0 %v9709_v26 }
  0xa4   : >> { %8301 = vmatpush3.bf16.msra.mxu0 %v9506_v17  ;;  %v9556_v17 = vld [vmem:[%s10254_s16 + $0x10] sm:$0xff]  }
  0xa5   : >> { %8191 = vmatmul.mubr.msk.bf16.vlgmr.msra.gmra.mrb[44].mxu1 %vm500_vm9, %v9499_v25  ;;  %8302 = vmatprep.subr.bf16.mxu0 %v9709_v26 }
  0xa6   : >> { %8259 = vmatpush3.bf16.msra.mxu1 %v9501_v27  ;;  %8194 = vmatprep.mubr.msk.bf16.mxu1 %vm9710_vm8, %v9709_v26 }
  0xa7   : >> { %8235 = vmatmul.mubr.msk.bf16.gmra.mrb[44].mxu0 %vm500_vm9, %v9504_v28  ;;  %8260 = vmatprep.subr.bf16.mxu1 %v9709_v26 }
  0xa8   : >> { %8238 = vmatprep.mubr.msk.bf16.mxu0 %vm9710_vm8, %v9709_v26  ;;  %8303 = vmatpush3.bf16.msra.mxu0 %v9510_v29  ;;  %v9555_v29 = vld [vmem:[%s10250_s24 + $0x10] sm:$0xff]  }
  0xa9   : >> { %8304 = vmatprep.subr.bf16.mxu0 %v9709_v26 }
  0xaa   : >> { %8261 = vmatpush3.bf16.msra.mxu1 %v9505_v30 }
  0xab   : >> { %8262 = vmatprep.subr.bf16.mxu1 %v9709_v26 }
  0xac   : >> { %8305 = vmatpush3.bf16.msra.mxu0 %v9514_v31 }
  0xad   : >> { %8195 = vmatmul.mubr.msk.bf16.gmra.mrb[48].mxu1 %vm500_vm9, %v9503_v32  ;;  %8306 = vmatprep.subr.bf16.mxu0 %v9709_v26 }
  0xae   : >> { %8198 = vmatprep.mubr.msk.bf16.mxu1 %vm9710_vm8, %v9709_v26  ;;  %8263 = vmatpush3.bf16.msra.mxu1 %v9509_v33 }
  0xaf   : >> { %8239 = vmatmul.mubr.msk.bf16.gmra.mrb[48].mxu0 %vm500_vm9, %v9508_v34  ;;  %8264 = vmatprep.subr.bf16.mxu1 %v9709_v26 }
  0xb0   : >> { %8242 = vmatprep.mubr.msk.bf16.mxu0 %vm9710_vm8, %v9709_v26  ;;  %8307 = vmatpush3.bf16.msra.mxu0 %v9520_v35  ;;  %v9558_v35 = vld [vmem:[%s10254_s16 + $0x18] sm:$0xff]  }
  0xb1   : >> { %8308 = vmatprep.subr.bf16.mxu0 %v9709_v26 }
  0xb2   : >> { %8265 = vmatpush3.bf16.msra.mxu1 %v9513_v36 }
  0xb3   : >> { %8266 = vmatprep.subr.bf16.mxu1 %v9709_v26 }
  0xb4   : >> { %8309 = vmatpush3.bf16.msra.mxu0 %v9524_v37 }
  0xb5   : >> { %8199 = vmatmul.mubr.msk.bf16.gmra.mrb[52].mxu1 %vm500_vm9, %v9507_v38  ;;  %8378 = vmatprep.subr.bf16.mxu0 %v9709_v26 }
  0xb6   : >> { %8202 = vmatprep.mubr.msk.bf16.mxu1 %vm9710_vm8, %v9709_v26  ;;  %8267 = vmatpush3.bf16.msra.mxu1 %v9517_v39  ;;  %v9557_v39 = vld [vmem:[%s10250_s24 + $0x18] sm:$0xff]  }
  0xb7   : >> { %8243 = vmatmul.mubr.msk.bf16.gmra.mrb[52].mxu0 %vm500_vm9, %v9512_v40  ;;  %8268 = vmatprep.subr.bf16.mxu1 %v9709_v26 }
  0xb8   : >> { %8246 = vmatprep.mubr.msk.bf16.mxu0 %vm9710_vm8, %v9709_v26 }
  0xba   : >> { %8269 = vmatpush3.bf16.msra.mxu1 %v9523_v41 }
  0xbb   : >> { %8338 = vmatprep.subr.bf16.mxu1 %v9709_v26 }
  0xbd   : >> { %8203 = vmatmul.mubr.msk.bf16.gmra.mrb[56].mxu1 %vm500_vm9, %v9511_v42 }
  0xbe   : >> { %8206 = vmatprep.mubr.msk.bf16.mxu1 %vm9710_vm8, %v9709_v26 }
  0xbf   : >> { %8247 = vmatmul.mubr.msk.bf16.gmra.mrb[56].mxu0 %vm500_vm9, %v9516_v43 }
  0xc0   : >> { %8250 = vmatprep.mubr.msk.bf16.mxu0 %vm9710_vm8, %v9709_v26 }
  0xc5   : >> { %8207 = vmatmul.mubr.msk.bf16.gmra.mrb[60].mxu1 %vm500_vm9, %v9515_v44 }
  0xc6   : >> { %8210 = vmatprep.mubr.msk.bf16.mxu1 %vm9710_vm8, %v9709_v26 }
  0xc7   : >> { %8251 = vmatmul.mubr.msk.bf16.gmra.mrb[60].mxu0 %vm500_vm9, %v9519_v45  ;;  %v9560_v45 = vld [vmem:[%s10254_s16 + $0x20] sm:$0xff]  }
  0xc8   : >> { %8254 = vmatprep.mubr.msk.bf16.mxu0 %vm9710_vm8, %v9709_v26 }
  0xcd   : >> { %8211 = vmatmul.mubr.msk.bf16.gmra.mrb[64].mxu1 %vm500_vm9, %v9518_v46 }
  0xce   : >> { %8214 = vmatprep.mubr.msk.bf16.mxu1 %vm9710_vm8, %v9709_v26 }
  0xcf   : >> { %8255 = vmatmul.mubr.msk.bf16.gmra.mrb[64].mxu0 %vm500_vm9, %v9522_v47 }
  0xd0   : >> { %8310 = vmatprep.mubr.msk.bf16.mxu0 %vm9710_vm8, %v9709_v26 }
  0xd5   : >> { %8215 = vmatmul.mubr.msk.bf16.gmra.mrb[68].mxu1 %vm500_vm9, %v9521_v48 }
  0xd6   : >> { %8270 = vmatprep.mubr.msk.bf16.mxu1 %vm9710_vm8, %v9709_v26 }
  0xd7   : >> { %8311 = vmatmul.mubr.msk.bf16.vlgmr.msra.gmra.mrb[68].mxu0 %vm500_vm9, %v9526_v49  ;;  %v9559_v49 = vld [vmem:[%s10250_s24 + $0x20] sm:$0xff]  }
  0xd8   : >> { %8379 = vmatpush3.bf16.msra.mxu0 %v9528_v50  ;;  %8314 = vmatprep.mubr.msk.bf16.mxu0 %vm9710_vm8, %v9709_v26 }
  0xd9   : >> { %8380 = vmatprep.subr.bf16.mxu0 %v9709_v26 }
  0xdc   : >> { %8381 = vmatpush3.bf16.msra.mxu0 %v9532_v51 }
  0xdd   : >> { %8271 = vmatmul.mubr.msk.bf16.vlgmr.msra.gmra.mrb[72].mxu1 %vm500_vm9, %v9525_v52  ;;  %8382 = vmatprep.subr.bf16.mxu0 %v9709_v26 }
  0xde   : >> { %8339 = vmatpush3.bf16.msra.mxu1 %v9527_v53  ;;  %8274 = vmatprep.mubr.msk.bf16.mxu1 %vm9710_vm8, %v9709_v26 }
  0xdf   : >> { %8315 = vmatmul.mubr.msk.bf16.gmra.mrb[72].mxu0 %vm500_vm9, %v9530_v54  ;;  %8340 = vmatprep.subr.bf16.mxu1 %v9709_v26 }
  0xe0   : >> { %8318 = vmatprep.mubr.msk.bf16.mxu0 %vm9710_vm8, %v9709_v26  ;;  %8383 = vmatpush3.bf16.msra.mxu0 %v9536_v55  ;;  %v9562_v55 = vld [vmem:[%s10254_s16 + $0x28] sm:$0xff]  }
  0xe1   : >> { %8384 = vmatprep.subr.bf16.mxu0 %v9709_v26 }
  0xe2   : >> { %8341 = vmatpush3.bf16.msra.mxu1 %v9531_v56 }
  0xe3   : >> { %8342 = vmatprep.subr.bf16.mxu1 %v9709_v26 }
  0xe4   : >> { %8385 = vmatpush3.bf16.msra.mxu0 %v9540_v57 }
  0xe5   : >> { %8275 = vmatmul.mubr.msk.bf16.gmra.mrb[76].mxu1 %vm500_vm9, %v9529_v58  ;;  %8386 = vmatprep.subr.bf16.mxu0 %v9709_v26  ;;  %v9561_v58 = vld [vmem:[%s10250_s24 + $0x28] sm:$0xff]  }
  0xe6   : >> { %8278 = vmatprep.mubr.msk.bf16.mxu1 %vm9710_vm8, %v9709_v26  ;;  %8343 = vmatpush3.bf16.msra.mxu1 %v9535_v59 }
  0xe7   : >> { %8319 = vmatmul.mubr.msk.bf16.gmra.mrb[76].mxu0 %vm500_vm9, %v9534_v60  ;;  %8344 = vmatprep.subr.bf16.mxu1 %v9709_v26 }
  0xe8   : >> { %8322 = vmatprep.mubr.msk.bf16.mxu0 %vm9710_vm8, %v9709_v26  ;;  %8387 = vmatpush3.bf16.msra.mxu0 %v9546_v61 }
  0xe9   : >> { %8388 = vmatprep.subr.bf16.mxu0 %v9709_v26 }
  0xea   : >> { %8345 = vmatpush3.bf16.msra.mxu1 %v9539_v62 }
  0xeb   : >> { %8346 = vmatprep.subr.bf16.mxu1 %v9709_v26 }
  0xec   : >> { %8389 = vmatpush3.bf16.msra.mxu0 %v9550_v63 }
  0xed   : >> { %8279 = vmatmul.mubr.msk.bf16.gmra.mrb[80].mxu1 %vm500_vm9, %v9533_v1  ;;  %v9564_v1 = vld [vmem:[%s10254_s16 + $0x30] sm:$0xff]  }
  0xee   : >> { %8282 = vmatprep.mubr.msk.bf16.mxu1 %vm9710_vm8, %v9709_v26  ;;  %8347 = vmatpush3.bf16.msra.mxu1 %v9543_v2 }
  0xef   : >> { %8323 = vmatmul.mubr.msk.bf16.gmra.mrb[80].mxu0 %vm500_vm9, %v9538_v4  ;;  %8348 = vmatprep.subr.bf16.mxu1 %v9709_v26 }
  0xf0   : >> { %8326 = vmatprep.mubr.msk.bf16.mxu0 %vm9710_vm8, %v9709_v26 }
  0xf2   : >> { %8349 = vmatpush3.bf16.msra.mxu1 %v9549_v5 }
  0xf5   : >> { %8283 = vmatmul.mubr.msk.bf16.gmra.mrb[84].mxu1 %vm500_vm9, %v9537_v6 }
  0xf6   : >> { %8286 = vmatprep.mubr.msk.bf16.mxu1 %vm9710_vm8, %v9709_v26 }
  0xf7   : >> { %8327 = vmatmul.mubr.msk.bf16.gmra.mrb[84].mxu0 %vm500_vm9, %v9542_v7  ;;  %v9563_v7 = vld [vmem:[%s10250_s24 + $0x30] sm:$0xff]  }
  0xf8   : >> { %8330 = vmatprep.mubr.msk.bf16.mxu0 %vm9710_vm8, %v9709_v26 }
  0xfd   : >> { %8287 = vmatmul.mubr.msk.bf16.gmra.mrb[88].mxu1 %vm500_vm9, %v9541_v8 }
  0xfe   : >> { %8290 = vmatprep.mubr.msk.bf16.mxu1 %vm9710_vm8, %v9709_v26 }
  0xff   : >> { %8331 = vmatmul.mubr.msk.bf16.gmra.mrb[88].mxu0 %vm500_vm9, %v9545_v9 }
 0x100   : >> { %8334 = vmatprep.mubr.msk.bf16.mxu0 %vm9710_vm8, %v9709_v26 }
 0x105   : >> { %8291 = vmatmul.mubr.msk.bf16.gmra.mrb[92].mxu1 %vm500_vm9, %v9544_v10 }
 0x106   : >> { %8294 = vmatprep.mubr.msk.bf16.mxu1 %vm9710_vm8, %v9709_v26 }
 0x107   : >> { %8335 = vmatmul.mubr.msk.bf16.gmra.mrb[92].mxu0 %vm500_vm9, %v9548_v11 }
 0x108   : >> { %8390 = vmatprep.mubr.msk.bf16.mxu0 %vm9710_vm8, %v9709_v26 }
 0x10d   : >> { %8295 = vmatmul.mubr.msk.bf16.gmra.mrb[96].mxu1 %vm500_vm9, %v9547_v12 }
 0x10e   : >> { %8350 = vmatprep.mubr.msk.bf16.mxu1 %vm9710_vm8, %v9709_v26 }
 0x10f   : >> { %8391 = vmatmul.mubr.msk.bf16.vlgmr.msra.gmra.mrb[96].mxu0 %vm500_vm9, %v9552_v13 }
 0x110   : >> { %8394 = vmatprep.mubr.msk.bf16.mxu0 %vm9710_vm8, %v9709_v26 }
 0x115   : >> { %8351 = vmatmul.mubr.msk.bf16.vlgmr.msra.gmra.mrb[100].mxu1 %vm500_vm9, %v9551_v14 }
 0x116   : >> { %8354 = vmatprep.mubr.msk.bf16.mxu1 %vm9710_vm8, %v9709_v26 }
 0x117   : >> { %8395 = vmatmul.mubr.msk.bf16.gmra.mrb[100].mxu0 %vm500_vm9, %v9554_v15 }
 0x118   : >> { %8398 = vmatprep.mubr.msk.bf16.mxu0 %vm9710_vm8, %v9709_v26 }
 0x11d   : >> { %8355 = vmatmul.mubr.msk.bf16.gmra.mrb[104].mxu1 %vm500_vm9, %v9553_v16 }
 0x11e   : >> { %8358 = vmatprep.mubr.msk.bf16.mxu1 %vm9710_vm8, %v9709_v26 }
 0x11f   : >> { %8399 = vmatmul.mubr.msk.bf16.gmra.mrb[104].mxu0 %vm500_vm9, %v9556_v17 }
 0x120   : >> { %v10482_v25 = vpop.f32.mrb[0].mxu1  ;;  %v556_v27 = vpop.f32.mrb[0].mxu0  ;;  %8402 = vmatprep.mubr.msk.bf16.mxu0 %vm9710_vm8, %v9709_v26 }
 0x121   : >> { %v8084_v28 = vpop.f32.mrb[1].mxu1  ;;  %v8072_v30 = vpop.f32.mrb[1].mxu0 }
 0x122   : >> { %v583_v31 = vpop.f32.mrb[2].mxu1  ;;  %v559_v32 = vpop.f32.mrb[2].mxu0 }
 0x123   : >> { %v8085_v33 = vpop.f32.mrb[3].mxu1  ;;  %v8073_v34 = vpop.f32.mrb[3].mxu0 }
 0x125   : >> { %8359 = vmatmul.mubr.msk.bf16.gmra.mrb[108].mxu1 %vm500_vm9, %v9555_v29 }
 0x126   : >> { %8362 = vmatprep.mubr.msk.bf16.mxu1 %vm9710_vm8, %v9709_v26 }
 0x127   : >> { %8403 = vmatmul.mubr.msk.bf16.gmra.mrb[108].mxu0 %vm500_vm9, %v9558_v35 }
 0x128   : >> { %v10492_v36 = vpop.f32.mrb[4].mxu1  ;;  %v564_v37 = vpop.f32.mrb[4].mxu0  ;;  %8406 = vmatprep.mubr.msk.bf16.mxu0 %vm9710_vm8, %v9709_v26 }
 0x129   : >> { %v8088_v38 = vpop.f32.mrb[5].mxu1  ;;  %v8076_v40 = vpop.f32.mrb[5].mxu0 }
 0x12a   : >> { %v591_v41 = vpop.f32.mrb[6].mxu1  ;;  %v567_v42 = vpop.f32.mrb[6].mxu0 }
 0x12b   : >> { %v8089_v43 = vpop.f32.mrb[7].mxu1  ;;  %v8077_v44 = vpop.f32.mrb[7].mxu0 }
 0x12d   : >> { %8363 = vmatmul.mubr.msk.bf16.gmra.mrb[112].mxu1 %vm500_vm9, %v9557_v39 }
 0x12e   : >> { %8366 = vmatprep.mubr.msk.bf16.mxu1 %vm9710_vm8, %v9709_v26 }
 0x12f   : >> { %8407 = vmatmul.mubr.msk.bf16.gmra.mrb[112].mxu0 %vm500_vm9, %v9560_v45 }
 0x130   : >> { %v10502_v46 = vpop.f32.mrb[8].mxu1  ;;  %v572_v47 = vpop.f32.mrb[8].mxu0  ;;  %8410 = vmatprep.mubr.msk.bf16.mxu0 %vm9710_vm8, %v9709_v26 }
 0x131   : >> { %v8092_v48 = vpop.f32.mrb[9].mxu1  ;;  %v8080_v50 = vpop.f32.mrb[9].mxu0 }
 0x132   : >> { %v599_v51 = vpop.f32.mrb[10].mxu1  ;;  %v575_v52 = vpop.f32.mrb[10].mxu0 }
 0x133   : >> { %v8093_v53 = vpop.f32.mrb[11].mxu1  ;;  %v8081_v54 = vpop.f32.mrb[11].mxu0 }
 0x135   : >> { %8367 = vmatmul.mubr.msk.bf16.gmra.mrb[116].mxu1 %vm500_vm9, %v9559_v49 }
 0x136   : >> { %8370 = vmatprep.mubr.msk.bf16.mxu1 %vm9710_vm8, %v9709_v26 }
 0x137   : >> { %8411 = vmatmul.mubr.msk.bf16.gmra.mrb[116].mxu0 %vm500_vm9, %v9562_v55 }
 0x138   : >> { %v10512_v56 = vpop.f32.mrb[12].mxu1  ;;  %8414 = vmatprep.mubr.msk.bf16.mxu0 %vm9710_vm8, %v9709_v26 }
 0x139   : >> { %v8096_v57 = vpop.f32.mrb[13].mxu1  ;;  %v950_v59 = vpop.f32.mrb[12].mxu0 }
 0x13a   : >> { %v607_v60 = vpop.f32.mrb[14].mxu1  ;;  %v8152_v61 = vpop.f32.mrb[13].mxu0 }
 0x13b   : >> { %v8097_v62 = vpop.f32.mrb[15].mxu1  ;;  %v953_v63 = vpop.f32.mrb[14].mxu0 }
 0x13c   : >> { %v8153_v2 = vpop.f32.mrb[15].mxu0 }
 0x13d   : >> { %8371 = vmatmul.mubr.msk.bf16.gmra.mrb[120].mxu1 %vm500_vm9, %v9561_v58 }
 0x13e   : >> { %8374 = vmatprep.mubr.msk.bf16.mxu1 %vm9710_vm8, %v9709_v26 }
 0x13f   : >> { %8415 = vmatmul.mubr.msk.bf16.gmra.mrb[120].mxu0 %vm500_vm9, %v9564_v1 }
 0x140   : >> { %v737_v4 = vpop.f32.mrb[16].mxu1 }
 0x141   : >> { %v738_v5 = vadd.f32 %v737_v4, %v556_v27  ;;  %v8112_v6 = vpop.f32.mrb[17].mxu1 }
 0x142   : >> { %v740_v8 = vpop.f32.mrb[18].mxu1  ;;  %v958_v9 = vpop.f32.mrb[16].mxu0 }
 0x143   : >> { %v10523_v10 = vadd.f32 %v950_v59, %v738_v5  ;;  %v8113_v11 = vpop.f32.mrb[19].mxu1  ;;  %v8156_v12 = vpop.f32.mrb[17].mxu0 }
 0x144   : >> { %v961_v13 = vpop.f32.mrb[18].mxu0 }
 0x145   : >> { %8375 = vmatmul.mubr.msk.bf16.gmra.mrb[124].mxu1 %vm500_vm9, %v9563_v7  ;;  %v8157_v14 = vpop.f32.mrb[19].mxu0 }
 0x148   : >> { %v745_v15 = vpop.f32.mrb[20].mxu1 }
 0x149   : >> { %v746_v16 = vadd.f32 %v745_v15, %v564_v37  ;;  %v8116_v17 = vpop.f32.mrb[21].mxu1 }
 0x14a   : >> { %v748_v28 = vpop.f32.mrb[22].mxu1  ;;  %v966_v29 = vpop.f32.mrb[20].mxu0 }
 0x14b   : >> { %v10526_v30 = vadd.f32 %v958_v9, %v746_v16  ;;  %v8117_v27 = vpop.f32.mrb[23].mxu1  ;;  %v8160_v31 = vpop.f32.mrb[21].mxu0 }
 0x14c   : >> { %v969_v32 = vpop.f32.mrb[22].mxu0 }
 0x14d   : >> { %v8161_v33 = vpop.f32.mrb[23].mxu0 }
 0x150   : >> { %v753_v34 = vpop.f32.mrb[24].mxu1 }
 0x151   : >> { %v754_v35 = vadd.f32 %v753_v34, %v572_v47  ;;  %v8120_v38 = vpop.f32.mrb[25].mxu1 }
 0x152   : >> { %v756_v39 = vpop.f32.mrb[26].mxu1  ;;  %v974_v40 = vpop.f32.mrb[24].mxu0 }
 0x153   : >> { %v10528_v41 = vadd.f32 %v966_v29, %v754_v35  ;;  %v8121_v42 = vpop.f32.mrb[27].mxu1  ;;  %v8164_v43 = vpop.f32.mrb[25].mxu0 }
 0x154   : >> { %v977_v44 = vpop.f32.mrb[26].mxu0 }
 0x155   : >> { %v8165_v37 = vpop.f32.mrb[27].mxu0 }
 0x158   : >> { %v761_v45 = vpop.f32.mrb[28].mxu1 }
 0x159   : >> { %v762_v48 = vadd.f32 %v761_v45, %v10482_v25  ;;  %v8124_v49 = vpop.f32.mrb[29].mxu1 }
 0x15a   : >> { %v764_v50 = vpop.f32.mrb[30].mxu1  ;;  %v982_v51 = vpop.f32.mrb[28].mxu0 }
 0x15b   : >> { %v10531_v52 = vadd.f32 %v974_v40, %v762_v48  ;;  %v8125_v53 = vpop.f32.mrb[31].mxu1  ;;  %v8168_v54 = vpop.f32.mrb[29].mxu0 }
 0x15c   : >> { %v985_v47 = vpop.f32.mrb[30].mxu0 }
 0x15d   : >> { %v8169_v55 = vpop.f32.mrb[31].mxu0 }
 0x160   : >> { %v769_v57 = vpop.f32.mrb[32].mxu1 }
 0x161   : >> { %v770_v58 = vadd.f32 %v769_v57, %v10492_v36  ;;  %v8128_v59 = vpop.f32.mrb[33].mxu1 }
 0x162   : >> { %v772_v60 = vpop.f32.mrb[34].mxu1  ;;  %v990_v61 = vpop.f32.mrb[32].mxu0 }
 0x163   : >> { %v10534_v62 = vadd.f32 %v982_v51, %v770_v58  ;;  %v8129_v63 = vpop.f32.mrb[35].mxu1  ;;  %v8172_v1 = vpop.f32.mrb[33].mxu0 }
 0x164   : >> { %v993_v25 = vpop.f32.mrb[34].mxu0 }
 0x165   : >> { %v8173_v2 = vpop.f32.mrb[35].mxu0 }
 0x168   : >> { %v777_v4 = vpop.f32.mrb[36].mxu1 }
 0x169   : >> { %v778_v5 = vadd.f32 %v777_v4, %v10502_v46  ;;  %v8132_v6 = vpop.f32.mrb[37].mxu1 }
 0x16a   : >> { %v780_v7 = vpop.f32.mrb[38].mxu1  ;;  %v998_v8 = vpop.f32.mrb[36].mxu0 }
 0x16b   : >> { %v10537_v9 = vadd.f32 %v990_v61, %v778_v5  ;;  %v8133_v11 = vpop.f32.mrb[39].mxu1  ;;  %v8176_v12 = vpop.f32.mrb[37].mxu0 }
 0x16c   : >> { %v1001_v36 = vpop.f32.mrb[38].mxu0 }
 0x16d   : >> { %v8177_v13 = vpop.f32.mrb[39].mxu0 }
 0x170   : >> { %v785_v14 = vpop.f32.mrb[40].mxu1 }
 0x171   : >> { %v786_v15 = vadd.f32 %v785_v14, %v10512_v56  ;;  %v8136_v16 = vpop.f32.mrb[41].mxu1 }
 0x172   : >> { %v788_v17 = vpop.f32.mrb[42].mxu1  ;;  %v1404_v28 = vpop.f32.mrb[40].mxu0 }
 0x173   : >> { %v10540_v29 = vadd.f32 %v998_v8, %v786_v15  ;;  %v8137_v27 = vpop.f32.mrb[43].mxu1  ;;  %v8232_v31 = vpop.f32.mrb[41].mxu0 }
 0x174   : >> { %v1407_v46 = vpop.f32.mrb[42].mxu0 }
 0x175   : >> { %v8233_v32 = vpop.f32.mrb[43].mxu0 }
 0x178   : >> { %v1177_v33 = vpop.f32.mrb[44].mxu1 }
 0x179   : >> { %v1232_v34 = vadd.f32 %v1177_v33, %v10523_v10  ;;  %v8192_v35 = vpop.f32.mrb[45].mxu1 }
 0x17a   : >> { %v1180_v38 = vpop.f32.mrb[46].mxu1  ;;  %v1412_v39 = vpop.f32.mrb[44].mxu0 }
 0x17b   : >> { %v10543_v40 = vadd.f32 %v1404_v28, %v1232_v34  ;;  %v8193_v42 = vpop.f32.mrb[47].mxu1  ;;  %v8236_v43 = vpop.f32.mrb[45].mxu0 }
 0x17c   : >> { %v1415_v56 = vpop.f32.mrb[46].mxu0 }
 0x17d   : >> { %v8237_v44 = vpop.f32.mrb[47].mxu0 }
 0x180   : >> { %v1185_v37 = vpop.f32.mrb[48].mxu1 }
 0x181   : >> { %v1234_v45 = vadd.f32 %v1185_v37, %v10526_v30  ;;  %v8196_v48 = vpop.f32.mrb[49].mxu1 }
 0x182   : >> { %v1188_v49 = vpop.f32.mrb[50].mxu1  ;;  %v1420_v50 = vpop.f32.mrb[48].mxu0 }
 0x183   : >> { %v10546_v51 = vadd.f32 %v1412_v39, %v1234_v45  ;;  %v8197_v53 = vpop.f32.mrb[51].mxu1  ;;  %v8240_v54 = vpop.f32.mrb[49].mxu0 }
 0x184   : >> { %v1423_v10 = vpop.f32.mrb[50].mxu0 }
 0x185   : >> { %v8241_v47 = vpop.f32.mrb[51].mxu0 }
 0x188   : >> { %v1193_v55 = vpop.f32.mrb[52].mxu1 }
 0x189   : >> { %v1236_v57 = vadd.f32 %v1193_v55, %v10528_v41  ;;  %v8200_v58 = vpop.f32.mrb[53].mxu1 }
 0x18a   : >> { %v1196_v59 = vpop.f32.mrb[54].mxu1  ;;  %v1428_v60 = vpop.f32.mrb[52].mxu0 }
 0x18b   : >> { %v10549_v61 = vadd.f32 %v1420_v50, %v1236_v57  ;;  %v8201_v63 = vpop.f32.mrb[55].mxu1  ;;  %v8244_v1 = vpop.f32.mrb[53].mxu0 }
 0x18c   : >> { %v1431_v30 = vpop.f32.mrb[54].mxu0 }
 0x18d   : >> { %v8245_v25 = vpop.f32.mrb[55].mxu0 }
 0x190   : >> { %v1201_v2 = vpop.f32.mrb[56].mxu1 }
 0x191   : >> { %v1238_v4 = vadd.f32 %v1201_v2, %v10531_v52  ;;  %v8204_v5 = vpop.f32.mrb[57].mxu1 }
 0x192   : >> { %v1204_v6 = vpop.f32.mrb[58].mxu1  ;;  %v1436_v7 = vpop.f32.mrb[56].mxu0 }
 0x193   : >> { %v10552_v8 = vadd.f32 %v1428_v60, %v1238_v4  ;;  %v8205_v11 = vpop.f32.mrb[59].mxu1  ;;  %v8248_v12 = vpop.f32.mrb[57].mxu0 }
 0x194   : >> { %v1439_v41 = vpop.f32.mrb[58].mxu0 }
 0x195   : >> { %v8249_v36 = vpop.f32.mrb[59].mxu0 }
 0x198   : >> { %v1209_v13 = vpop.f32.mrb[60].mxu1 }
 0x199   : >> { %v1240_v14 = vadd.f32 %v1209_v13, %v10534_v62  ;;  %v8208_v15 = vpop.f32.mrb[61].mxu1 }
 0x19a   : >> { %v1212_v16 = vpop.f32.mrb[62].mxu1  ;;  %v1444_v17 = vpop.f32.mrb[60].mxu0 }
 0x19b   : >> { %v10555_v28 = vadd.f32 %v1436_v7, %v1240_v14  ;;  %v8209_v27 = vpop.f32.mrb[63].mxu1  ;;  %v8252_v31 = vpop.f32.mrb[61].mxu0 }
 0x19c   : >> { %v1447_v52 = vpop.f32.mrb[62].mxu0 }
 0x19d   : >> { %v8253_v46 = vpop.f32.mrb[63].mxu0 }
 0x1a0   : >> { %v1217_v32 = vpop.f32.mrb[64].mxu1 }
 0x1a1   : >> { %v1242_v33 = vadd.f32 %v1217_v32, %v10537_v9  ;;  %v8212_v34 = vpop.f32.mrb[65].mxu1 }
 0x1a2   : >> { %v1220_v35 = vpop.f32.mrb[66].mxu1  ;;  %v1452_v38 = vpop.f32.mrb[64].mxu0 }
 0x1a3   : >> { %v10558_v39 = vadd.f32 %v1444_v17, %v1242_v33  ;;  %v8213_v42 = vpop.f32.mrb[67].mxu1  ;;  %v8256_v43 = vpop.f32.mrb[65].mxu0 }
 0x1a4   : >> { %v1455_v62 = vpop.f32.mrb[66].mxu0 }
 0x1a5   : >> { %v8257_v56 = vpop.f32.mrb[67].mxu0 }
 0x1a8   : >> { %v1225_v44 = vpop.f32.mrb[68].mxu1 }
 0x1a9   : >> { %v1244_v37 = vadd.f32 %v1225_v44, %v10540_v29  ;;  %v8216_v45 = vpop.f32.mrb[69].mxu1 }
 0x1aa   : >> { %v1228_v48 = vpop.f32.mrb[70].mxu1  ;;  %v1858_v49 = vpop.f32.mrb[68].mxu0 }
 0x1ab   : >> { %v10561_v50 = vadd.f32 %v1452_v38, %v1244_v37  ;;  %v8217_v53 = vpop.f32.mrb[71].mxu1  ;;  %v8312_v54 = vpop.f32.mrb[69].mxu0 }
 0x1ac   : >> { %v1861_v9 = vpop.f32.mrb[70].mxu0 }
 0x1ad   : >> { %v8313_v10 = vpop.f32.mrb[71].mxu0 }
 0x1b0   : >> { %v1631_v47 = vpop.f32.mrb[72].mxu1 }
 0x1b1   : >> { %v1686_v55 = vadd.f32 %v1631_v47, %v10543_v40  ;;  %v8272_v57 = vpop.f32.mrb[73].mxu1 }
 0x1b2   : >> { %v1634_v58 = vpop.f32.mrb[74].mxu1  ;;  %v1866_v59 = vpop.f32.mrb[72].mxu0 }
 0x1b3   : >> { %v10564_v60 = vadd.f32 %v1858_v49, %v1686_v55  ;;  %v8273_v63 = vpop.f32.mrb[75].mxu1  ;;  %v8316_v1 = vpop.f32.mrb[73].mxu0 }
 0x1b4   : >> { %v1869_v29 = vpop.f32.mrb[74].mxu0 }
 0x1b5   : >> { %v8317_v30 = vpop.f32.mrb[75].mxu0 }
 0x1b8   : >> { %v1639_v25 = vpop.f32.mrb[76].mxu1 }
 0x1b9   : >> { %v1688_v2 = vadd.f32 %v1639_v25, %v10546_v51  ;;  %v8276_v4 = vpop.f32.mrb[77].mxu1 }
 0x1ba   : >> { %v1642_v5 = vpop.f32.mrb[78].mxu1  ;;  %v1874_v6 = vpop.f32.mrb[76].mxu0 }
 0x1bb   : >> { %v10567_v7 = vadd.f32 %v1866_v59, %v1688_v2  ;;  %v8277_v11 = vpop.f32.mrb[79].mxu1  ;;  %v8320_v12 = vpop.f32.mrb[77].mxu0 }
 0x1bc   : >> { %v1877_v40 = vpop.f32.mrb[78].mxu0 }
 0x1bd   : >> { %v8321_v41 = vpop.f32.mrb[79].mxu0 }
 0x1c0   : >> { %v1647_v36 = vpop.f32.mrb[80].mxu1 }
 0x1c1   : >> { %v1690_v13 = vadd.f32 %v1647_v36, %v10549_v61  ;;  %v8280_v14 = vpop.f32.mrb[81].mxu1 }
 0x1c2   : >> { %v1650_v15 = vpop.f32.mrb[82].mxu1  ;;  %v1882_v16 = vpop.f32.mrb[80].mxu0 }
 0x1c3   : >> { %v10570_v17 = vadd.f32 %v1874_v6, %v1690_v13  ;;  %v8281_v27 = vpop.f32.mrb[83].mxu1  ;;  %v8324_v31 = vpop.f32.mrb[81].mxu0 }
 0x1c4   : >> { %v1885_v51 = vpop.f32.mrb[82].mxu0 }
 0x1c5   : >> { %v8325_v52 = vpop.f32.mrb[83].mxu0 }
 0x1c8   : >> { %v1655_v46 = vpop.f32.mrb[84].mxu1 }
 0x1c9   : >> { %v1692_v32 = vadd.f32 %v1655_v46, %v10552_v8  ;;  %v8284_v33 = vpop.f32.mrb[85].mxu1 }
 0x1ca   : >> { %v1658_v34 = vpop.f32.mrb[86].mxu1  ;;  %v1890_v35 = vpop.f32.mrb[84].mxu0 }
 0x1cb   : >> { %v10573_v38 = vadd.f32 %v1882_v16, %v1692_v32  ;;  %v8285_v42 = vpop.f32.mrb[87].mxu1  ;;  %v8328_v43 = vpop.f32.mrb[85].mxu0 }
 0x1cc   : >> { %v1893_v61 = vpop.f32.mrb[86].mxu0 }
 0x1cd   : >> { %v8329_v62 = vpop.f32.mrb[87].mxu0 }
 0x1d0   : >> { %v1663_v56 = vpop.f32.mrb[88].mxu1 }
 0x1d1   : >> { %v1694_v44 = vadd.f32 %v1663_v56, %v10555_v28  ;;  %v8288_v37 = vpop.f32.mrb[89].mxu1 }
 0x1d2   : >> { %v1666_v45 = vpop.f32.mrb[90].mxu1  ;;  %v1898_v48 = vpop.f32.mrb[88].mxu0 }
 0x1d3   : >> { %v10576_v49 = vadd.f32 %v1890_v35, %v1694_v44  ;;  %v8289_v53 = vpop.f32.mrb[91].mxu1  ;;  %v8332_v54 = vpop.f32.mrb[89].mxu0 }
 0x1d4   : >> { %v1901_v8 = vpop.f32.mrb[90].mxu0 }
 0x1d5   : >> { %v8333_v9 = vpop.f32.mrb[91].mxu0 }
 0x1d8   : >> { %v1671_v10 = vpop.f32.mrb[92].mxu1 }
 0x1d9   : >> { %v1696_v47 = vadd.f32 %v1671_v10, %v10558_v39  ;;  %v8292_v55 = vpop.f32.mrb[93].mxu1 }
 0x1da   : >> { %v1674_v57 = vpop.f32.mrb[94].mxu1  ;;  %v1906_v58 = vpop.f32.mrb[92].mxu0 }
 0x1db   : >> { %v10579_v59 = vadd.f32 %v1898_v48, %v1696_v47  ;;  %v8293_v63 = vpop.f32.mrb[95].mxu1  ;;  %v8336_v1 = vpop.f32.mrb[93].mxu0 }
 0x1dc   : >> { %v1909_v28 = vpop.f32.mrb[94].mxu0 }
 0x1dd   : >> { %v8337_v29 = vpop.f32.mrb[95].mxu0 }
 0x1e0   : >> { %v1679_v30 = vpop.f32.mrb[96].mxu1 }
 0x1e1   : >> { %v1698_v25 = vadd.f32 %v1679_v30, %v10561_v50  ;;  %v8296_v2 = vpop.f32.mrb[97].mxu1 }
 0x1e2   : >> { %v1682_v4 = vpop.f32.mrb[98].mxu1  ;;  %v2312_v5 = vpop.f32.mrb[96].mxu0 }
 0x1e3   : >> { %v10582_v6 = vadd.f32 %v1906_v58, %v1698_v25  ;;  %v8297_v11 = vpop.f32.mrb[99].mxu1  ;;  %v8392_v39 = vpop.f32.mrb[97].mxu0 }
 0x1e4   : >> { %v2315_v12 = vpop.f32.mrb[98].mxu0 }
 0x1e5   : >> { %v8393_v40 = vpop.f32.mrb[99].mxu0 }
 0x1e8   : >> { %v2085_v41 = vpop.f32.mrb[100].mxu1 }
 0x1e9   : >> { %v2140_v36 = vadd.f32 %v2085_v41, %v10564_v60  ;;  %v8352_v13 = vpop.f32.mrb[101].mxu1 }
 0x1ea   : >> { %v2088_v14 = vpop.f32.mrb[102].mxu1  ;;  %v2320_v15 = vpop.f32.mrb[100].mxu0 }
 0x1eb   : >> { %v2367_v16 = vadd.f32 %v2312_v5, %v2140_v36  ;;  %v8353_v27 = vpop.f32.mrb[103].mxu1  ;;  %v8396_v50 = vpop.f32.mrb[101].mxu0 }
 0x1ec   : >> { %v2323_v31 = vpop.f32.mrb[102].mxu0 }
 0x1ed   : >> { %v2387_v51 = vadd.f32 %v9760_v0, %v2367_v16  ;;  %v8397_v52 = vpop.f32.mrb[103].mxu0 }
 0x1ef   : >> { %v2401_v46 = vmax.f32 %v2387_v51, 0.0 }
 0x1f0   : >> { %v2093_v32 = vpop.f32.mrb[104].mxu1 }
 0x1f1   : >> { %v2415_v33 = vsel %vm9968_vm1, %v2401_v46, 0.0  ;;  %v2142_v60 = vadd.f32 %v2093_v32, %v10567_v7  ;;  %v8356_v34 = vpop.f32.mrb[105].mxu1 }
 0x1f2   : >> { %v2429_v35 = vpack.c.bf16 %v9709_v26, %v2415_v33  ;;  %v2096_v42 = vpop.f32.mrb[106].mxu1  ;;  %v2328_v43 = vpop.f32.mrb[104].mxu0 }
 0x1f3   : >> { %v2369_v61 = vadd.f32 %v2320_v15, %v2142_v60  ;;  %v8357_v62 = vpop.f32.mrb[107].mxu1  ;;  %v8400_v56 = vpop.f32.mrb[105].mxu0 }
 0x1f4   : >> { %2440 = vst.msk [vmem:[%s10592_s12] sm:$0xff] %vm222_vm0, %v2429_v35  ;;  %v2331_v44 = vpop.f32.mrb[106].mxu0 }
 0x1f5   : >> { %v2389_v37 = vadd.f32 %v9760_v0, %v2369_v61  ;;  %v8401_v45 = vpop.f32.mrb[107].mxu0 }
 0x1f7   : >> { %v2403_v48 = vmax.f32 %v2389_v37, 0.0 }
 0x1f8   : >> { %v2101_v7 = vpop.f32.mrb[108].mxu1 }
 0x1f9   : >> { %v2417_v53 = vsel %vm9972_vm2, %v2403_v48, 0.0  ;;  %v2144_v54 = vadd.f32 %v2101_v7, %v10570_v17  ;;  %v8360_v8 = vpop.f32.mrb[109].mxu1 }
 0x1fa   : >> { %v2430_v9 = vpack.c.bf16 %v9709_v26, %v2417_v53  ;;  %v2104_v10 = vpop.f32.mrb[110].mxu1  ;;  %v2336_v47 = vpop.f32.mrb[108].mxu0 }
 0x1fb   : >> { %v2371_v55 = vadd.f32 %v2328_v43, %v2144_v54  ;;  %v8361_v57 = vpop.f32.mrb[111].mxu1  ;;  %v8404_v58 = vpop.f32.mrb[109].mxu0 }
 0x1fc   : >> { %2441 = vst.msk [vmem:[%s10592_s12 + $0x8] sm:$0xff] %vm222_vm0, %v2430_v9  ;;  %v2339_v63 = vpop.f32.mrb[110].mxu0 }
 0x1fd   : >> { %v2391_v1 = vadd.f32 %v9760_v0, %v2371_v55  ;;  %v8405_v28 = vpop.f32.mrb[111].mxu0 }
 0x1ff   : >> { %v2405_v29 = vmax.f32 %v2391_v1, 0.0 }
 0x200   : >> { %v2109_v30 = vpop.f32.mrb[112].mxu1 }
 0x201   : >> { %v2419_v17 = vsel %vm9976_vm3, %v2405_v29, 0.0  ;;  %v2146_v25 = vadd.f32 %v2109_v30, %v10573_v38  ;;  %v8364_v2 = vpop.f32.mrb[113].mxu1 }
 0x202   : >> { %v2431_v4 = vpack.c.bf16 %v9709_v26, %v2419_v17  ;;  %v2112_v5 = vpop.f32.mrb[114].mxu1  ;;  %v2344_v11 = vpop.f32.mrb[112].mxu0 }
 0x203   : >> { %v2373_v39 = vadd.f32 %v2336_v47, %v2146_v25  ;;  %v8365_v12 = vpop.f32.mrb[115].mxu1  ;;  %v8408_v40 = vpop.f32.mrb[113].mxu0 }
 0x204   : >> { %2442 = vst.msk [vmem:[%s10592_s12 + $0x10] sm:$0xff] %vm222_vm0, %v2431_v4  ;;  %v2347_v41 = vpop.f32.mrb[114].mxu0 }
 0x205   : >> { %v2393_v36 = vadd.f32 %v9760_v0, %v2373_v39  ;;  %v8409_v13 = vpop.f32.mrb[115].mxu0 }
 0x207   : >> { %v2407_v14 = vmax.f32 %v2393_v36, 0.0 }
 0x208   : >> { %v2117_v15 = vpop.f32.mrb[116].mxu1 }
 0x209   : >> { %v2421_v38 = vsel %vm9980_vm4, %v2407_v14, 0.0  ;;  %v2148_v16 = vadd.f32 %v2117_v15, %v10576_v49  ;;  %v8368_v27 = vpop.f32.mrb[117].mxu1 }
 0x20a   : >> { %v2432_v50 = vpack.c.bf16 %v9709_v26, %v2421_v38  ;;  %v2120_v31 = vpop.f32.mrb[118].mxu1  ;;  %v2352_v51 = vpop.f32.mrb[116].mxu0 }
 0x20b   : >> { %v2375_v52 = vadd.f32 %v2344_v11, %v2148_v16  ;;  %v8369_v46 = vpop.f32.mrb[119].mxu1  ;;  %v8412_v32 = vpop.f32.mrb[117].mxu0 }
 0x20c   : >> { %2443 = vst.msk [vmem:[%s10592_s12 + $0x18] sm:$0xff] %vm222_vm0, %v2432_v50  ;;  %v2355_v33 = vpop.f32.mrb[118].mxu0 }
 0x20d   : >> { %v2395_v60 = vadd.f32 %v9760_v0, %v2375_v52  ;;  %v8413_v34 = vpop.f32.mrb[119].mxu0 }
 0x20f   : >> { %v2409_v35 = vmax.f32 %v2395_v60, 0.0 }
 0x210   : >> { %v2125_v42 = vpop.f32.mrb[120].mxu1 }
 0x211   : >> { %v2423_v49 = vsel %vm9984_vm5, %v2409_v35, 0.0  ;;  %v2150_v43 = vadd.f32 %v2125_v42, %v10579_v59  ;;  %v8372_v61 = vpop.f32.mrb[121].mxu1 }
 0x212   : >> { %v2433_v62 = vpack.c.bf16 %v9709_v26, %v2423_v49  ;;  %v2128_v56 = vpop.f32.mrb[122].mxu1  ;;  %v2360_v44 = vpop.f32.mrb[120].mxu0 }
 0x213   : >> { %v2377_v37 = vadd.f32 %v2352_v51, %v2150_v43  ;;  %v8373_v45 = vpop.f32.mrb[123].mxu1  ;;  %v8416_v48 = vpop.f32.mrb[121].mxu0 }
 0x214   : >> { %2444 = vst.msk [vmem:[%s10592_s12 + $0x20] sm:$0xff] %vm222_vm0, %v2433_v62  ;;  %v2363_v7 = vpop.f32.mrb[122].mxu0 }
 0x215   : >> { %v2397_v53 = vadd.f32 %v9760_v0, %v2377_v37  ;;  %v8417_v54 = vpop.f32.mrb[123].mxu0 }
 0x217   : >> { %v2411_v8 = vmax.f32 %v2397_v53, 0.0 }
 0x218   : >> { %v2133_v9 = vpop.f32.mrb[124].mxu1 }
 0x219   : >> { %v2425_v59 = vsel %vm9988_vm6, %v2411_v8, 0.0  ;;  %v2152_v10 = vadd.f32 %v2133_v9, %v10582_v6  ;;  %v8376_v47 = vpop.f32.mrb[125].mxu1  ;;  %v10640_v6 = vmov (%p362_p4), 0.0  }
 0x21a   : >> { %v2434_v55 = vpack.c.bf16 %v9709_v26, %v2425_v59  ;;  %v2136_v57 = vpop.f32.mrb[126].mxu1 }
 0x21b   : >> { %v2379_v58 = vadd.f32 %v2360_v44, %v2152_v10  ;;  %v8377_v63 = vpop.f32.mrb[127].mxu1 }
 0x21c   : >> { %2445 = vst.msk [vmem:[%s10592_s12 + $0x28] sm:$0xff] %vm222_vm0, %v2434_v55 }
 0x21d   : >> { %v2399_v1 = vadd.f32 %v9760_v0, %v2379_v58 }
 0x21e   : > { %364 = sbr.rel (!%p362_p4) target bundleno = 52 (0x34), region = 131 }
 0x21f   : >> { %v2413_v28 = vmax.f32 %v2399_v1, 0.0 }
 0x221   : >> { %v2427_v29 = vsel %vm9992_vm7, %v2413_v28, 0.0 }
 0x222   : >> { %v2435_v30 = vpack.c.bf16 %v9709_v26, %v2427_v29 }
 0x224   : >> { %2446 = vst.msk [vmem:[%s10592_s12 + $0x30] sm:$0xff] %vm222_vm0, %v2435_v30 }
 0x225 LB: >> { %v9565_v26 = vld [vmem:[%s12567_s3 + $0x20] sm:$0xff]   ;;  %v9711_v17 = vmov 0.0   ;;  %v9566_v0 = vld [vmem:[%s12567_s3 + $0x28] sm:$0xff]   ;;  %s10659_s17 = smul.u32 144, %s9706_s11  ;;  %vm9712_vm10 = vmmov 0   ;;  %v9567_v25 = vld [vmem:[%s12567_s3 + $0x30] sm:$0xff]   ;;  %s9706_s11 = sphi %s10642_s11, %s2452_s11   ;;  %v9702_v6 = vphi %v10640_v6, %v12585_v6  }
 0x226   : >> { %8418 = vmatprep.subr.bf16.mxu0 %v9711_v17  ;;  %9402 = vmatprep.subr.bf16.mxu1 %v9711_v17  ;;  %v9568_v2 = vld [vmem:[%s12567_s3 + $0x38] sm:$0xff]   ;;  %v9569_v5 = vld [vmem:[%s12567_s3 + $0x40] sm:$0xff]   ;;  %v9571_v12 = vld [vmem:[%s12567_s3 + $0x48] sm:$0xff]   ;;  %vm2621_vm11 = vsmask.f32 256  ;;  %s2452_s11 = sadd.s32 1, %s9706_s11  }
 0x227   : >> { %8419 = vmatpush3.bf16.msra.mxu0 %v9565_v26  ;;  %9406 = vmatpush3.bf16.msra.mxu1 %v9565_v26  ;;  %s2455_s21 = sshra.s32 %s10659_s17, 4  ;;  %v9570_v39 = vld [vmem:[%s12567_s3] sm:$0xff]   ;;  %v9572_v40 = vld [vmem:[%s12567_s3 + $0x8] sm:$0xff]   ;;  %v9573_v13 = vld [vmem:[%s12567_s3 + $0x10] sm:$0xff]   ;;  %vm2818_vm12 = vsmask.f32 7424 }
 0x228   : >> { %8420 = vmatprep.subr.bf16.mxu0 %v9711_v17  ;;  %9403 = vmatprep.subr.bf16.mxu1 %v9711_v17  ;;  %s7133_s25 = sshll.u32 %s2455_s21, 3  ;;  %v9574_v14 = vld [vmem:[%s12567_s3 + $0x50] sm:$0xff]   ;;  %v9575_v38 = vld [vmem:[%s12567_s3 + $0x18] sm:$0xff]   ;;  %v9577_v45 = vld [vmem:[%s12567_s3 + $0x60] sm:$0xff]   ;;  %s3846_s10 = sadd.s32 144, %s10659_s17 }
 0x229   : >> { %8426 = vmatprep.mubr.msk.bf16.mxu0 %vm9712_vm10, %v9711_v17  ;;  %8442 = vmatprep.mubr.msk.bf16.mxu1 %vm9712_vm10, %v9711_v17  ;;  %s10678_s27 = scalar_lea.vmem [#allocation2], %s7133_s25  ;;  %v9576_v31 = vld [vmem:[%s12567_s3 + $0x58] sm:$0xff]   ;;  %v9579_v7 = vld [vmem:[%s12567_s3 + $0x68] sm:$0xff]   ;;  %v9578_v47 = vld [vmem:[%s12567_s3 + $0x80] sm:$0xff]   ;;  %s3847_s14 = sshra.s32 %s3846_s10, 4 }
 0x22a   : >> { %v9581_v58 = vld [vmem:[%s12567_s3 + $0x70] sm:$0xff]   ;;  %v9580_v63 = vld [vmem:[%s12567_s3 + $0x88] sm:$0xff]   ;;  %v9583_v29 = vld [vmem:[%s12567_s3 + $0x78] sm:$0xff]   ;;  %s7297_s8 = sshll.u32 %s3847_s14, 3  ;;  %s5265_s22 = sadd.s32 288, %s10659_s17 }
 0x22b   : >> { %8421 = vmatpush3.bf16.msra.mxu0 %v9566_v0  ;;  %9407 = vmatpush3.bf16.msra.mxu1 %v9566_v0  ;;  %v10681_v4 = vld [vmem:[%s10678_s27 + $0x8] sm:$0xff]  ;;  %v10711_v41 = vld [vmem:[%s10678_s27 + $0x10] sm:$0xff]  ;;  %v2459_v27 = vld [vmem:[%s10678_s27] sm:$0xff]  ;;  %s11192_s9 = scalar_lea.vmem [#allocation2], %s7297_s8  ;;  %s5266_s23 = sshra.s32 %s5265_s22, 4 }
 0x22c   : >> { %8422 = vmatprep.subr.bf16.mxu0 %v9711_v17  ;;  %9404 = vmatprep.subr.bf16.mxu1 %v9711_v17  ;;  %v10687_v11 = vld [vmem:[%s10678_s27 + $0x28] sm:$0xff]  ;;  %v10714_v36 = vld [vmem:[%s10678_s27 + $0x30] sm:$0xff]  ;;  %v2626_v15 = vshrl.u32 %v10681_v4, 16  ;;  %v2629_v16 = vshll.u32 %v10681_v4, 16  ;;  %v2633_v50 = vshrl.u32 %v10711_v41, 16  ;;  %v2636_v51 = vshll.u32 %v10711_v41, 16 }
 0x22d   : >> { %v10744_v52 = vld [vmem:[%s10678_s27 + $0x18] sm:$0xff]  ;;  %v2623_v33 = vshrl.u32 %v2459_v27, 16  ;;  %v10760_v49 = vld [vmem:[%s10678_s27 + $0x20] sm:$0xff]  ;;  %v2654_v54 = vshrl.u32 %v10687_v11, 16  ;;  %v2657_v10 = vshll.u32 %v10687_v11, 16  ;;  %v9582_v30 = vld [vmem:[%s12567_s3 + $0x90] sm:$0xff]  }
 0x22e   : >> { %v2628_v46 = vrot.slane %v2626_v15, 7  ;;  %v10749_v32 = vld [vmem:[%s10678_s27 + $0x38] sm:$0xff]  ;;  %v2640_v60 = vshrl.u32 %v10744_v52, 16  ;;  %v2643_v34 = vshll.u32 %v10744_v52, 16  ;;  %v2819_v35 = vrot.slane %v2629_v16, 1  ;;  %s7469_s17 = sshll.u32 %s5266_s23, 3 }
 0x22f   : >> { %8423 = vmatpush3.bf16.msra.mxu0 %v9567_v25  ;;  %9408 = vmatpush3.bf16.msra.mxu1 %v9567_v25  ;;  %v2821_v42 = vrot.slane %v2636_v51, 1  ;;  %v2635_v43 = vrot.slane %v2633_v50, 7  ;;  %v2625_v62 = vrot.slane %v2623_v33, 7  ;;  %v2647_v37 = vshrl.u32 %v10760_v49, 16  ;;  %s11814_s25 = scalar_lea.vmem [#allocation2], %s7469_s17  ;;  %p2449_p5 = scmp.ge.s32.totalorder %s2452_s11, 8  }
 0x230   : >> { %8424 = vmatprep.subr.bf16.mxu0 %v9711_v17  ;;  %9405 = vmatprep.subr.bf16.mxu1 %v9711_v17  ;;  %v2631_v61 = vor.u32 %v2629_v16, %v2628_v46  ;;  %v2642_v56 = vrot.slane %v2640_v60, 7  ;;  %v2824_v44 = vrot.slane %v2643_v34, 1  ;;  %v2650_v53 = vshll.u32 %v10760_v49, 16 }
 0x231   : >> { %v2820_v8 = vor.u32 %v2819_v35, %v2626_v15  ;;  %v2638_v9 = vor.u32 %v2636_v51, %v2635_v43  ;;  %v2649_v59 = vrot.slane %v2647_v37, 7  ;;  %v2823_v28 = vor.u32 %v2821_v42, %v2633_v50 }
 0x232   : >> { %v2632_v48 = vsel %vm2621_vm11, %v2625_v62, %v2631_v61  ;;  %v2645_v1 = vor.u32 %v2643_v34, %v2642_v56  ;;  %v2827_v25 = vrot.slane %v2650_v53, 1  ;;  %v2664_v16 = vshll.u32 %v10714_v36, 16 }
 0x233   : >> { %8425 = vmatpush3.bf16.msra.mxu0 %v9568_v2  ;;  %9409 = vmatpush3.bf16.msra.mxu1 %v9568_v2  ;;  %v10791_v55 = vsel %vm2621_vm11, %v2628_v46, %v2638_v9  ;;  %v2822_v57 = vsel %vm2818_vm12, %v2820_v8, %v2821_v42  ;;  %v10820_v0 = vsel %vm2818_vm12, %v2823_v28, %v2824_v44  ;;  %v2656_v2 = vrot.slane %v2654_v54, 7  ;;  %v10878_v42 = vld [vmem:[%s10678_s27 + $0x40] sm:$0xff]  ;;  %v9587_v9 = vld [vmem:[%s12567_s3 + $0xa8] sm:$0xff]  }
 0x234   : >> { %8490 = vmatprep.subr.bf16.mxu0 %v9711_v17  ;;  %8454 = vmatprep.subr.bf16.mxu1 %v9711_v17  ;;  %v10817_v26 = vsel %vm2621_vm11, %v2635_v43, %v2645_v1  ;;  %v2829_v15 = vor.u32 %v2827_v25, %v2647_v37  ;;  %v2668_v50 = vshrl.u32 %v10749_v32, 16  ;;  %v2671_v35 = vshll.u32 %v10749_v32, 16  ;;  %v9585_v8 = vld [vmem:[%s12567_s3 + $0xa0] sm:$0xff]  }
 0x235   : >> { %v2840_v37 = vshll.u32 %v10878_v42, 16 }
 0x236   : >> { %8427 = vmatmul.mubr.msk.bf16.vlgmr.msra.gmra.mrb[0].mxu0 %vm222_vm0, %v10681_v4  ;;  %8443 = vmatmul.mubr.msk.bf16.vlgmr.msra.gmra.mrb[0].mxu1 %vm222_vm0, %v10687_v11  ;;  %v2661_v4 = vshrl.u32 %v10714_v36, 16  ;;  %v10874_v34 = vrot.slane %v2668_v50, 7 }
 0x237   : >> { %8491 = vmatpush3.bf16.msra.mxu0 %v9569_v5  ;;  %8430 = vmatprep.mubr.msk.bf16.mxu0 %vm9712_vm10, %v9711_v17  ;;  %v9584_v5 = vld [vmem:[%s12567_s3 + $0x98] sm:$0xff]  }
 0x238   : >> { %8446 = vmatprep.mubr.msk.bf16.mxu1 %vm9712_vm10, %v9711_v17  ;;  %8455 = vmatpush3.bf16.msra.mxu1 %v9570_v39  ;;  %v2652_v39 = vor.u32 %v2650_v53, %v2649_v59  ;;  %v2663_v27 = vrot.slane %v2661_v4, 7  ;;  %v2673_v62 = vor.u32 %v2671_v35, %v10874_v34 }
 0x239   : >> { %8492 = vmatprep.subr.bf16.mxu0 %v9711_v17  ;;  %8456 = vmatprep.subr.bf16.mxu1 %v9711_v17 }
 0x23a   : >> { %v2666_v46 = vor.u32 %v2664_v16, %v2663_v27 }
 0x23b   : >> { %8493 = vmatpush3.bf16.msra.mxu0 %v9571_v12  ;;  %v2826_v12 = vor.u32 %v2824_v44, %v2640_v60  ;;  %v2833_v60 = vrot.slane %v2664_v16, 1  ;;  %v2836_v44 = vrot.slane %v2671_v35, 1 }
 0x23c   : >> { %8457 = vmatpush3.bf16.msra.mxu1 %v9572_v40  ;;  %8494 = vmatprep.subr.bf16.mxu0 %v9711_v17  ;;  %v10842_v40 = vsel %vm2621_vm11, %v2642_v56, %v2652_v39  ;;  %v10881_v43 = vsel %vm2621_vm11, %v2656_v2, %v2666_v46  ;;  %v11082_v39 = vld [vmem:[%s10678_s27 + $0x48] sm:$0xff] }
 0x23d   : >> { %8458 = vmatprep.subr.bf16.mxu1 %v9711_v17  ;;  %v2835_v56 = vor.u32 %v2833_v60, %v2661_v4  ;;  %v2838_v53 = vor.u32 %v2836_v44, %v2668_v50  ;;  %v9599_v4 = vld [vmem:[%s12567_s3 + $0xf8] sm:$0xff]   ;;  %v9603_v46 = vld [vmem:[%s12567_s3 + $0x128] sm:$0xff]  }
 0x23e   : >> { %8431 = vmatmul.mubr.msk.bf16.gmra.mrb[4].mxu0 %vm222_vm0, %v10711_v41  ;;  %8447 = vmatmul.mubr.msk.bf16.gmra.mrb[4].mxu1 %vm222_vm0, %v10714_v36 }
 0x23f   : >> { %8434 = vmatprep.mubr.msk.bf16.mxu0 %vm9712_vm10, %v9711_v17  ;;  %8450 = vmatprep.mubr.msk.bf16.mxu1 %vm9712_vm10, %v9711_v17 }
 0x240   : >> { %8459 = vmatpush3.bf16.msra.mxu1 %v9573_v13  ;;  %8495 = vmatpush3.bf16.msra.mxu0 %v9574_v14  ;;  %v10845_v13 = vsel %vm2818_vm12, %v2826_v12, %v2827_v25  ;;  %v2659_v14 = vor.u32 %v2657_v10, %v2656_v2  ;;  %v9594_v25 = vld [vmem:[%s12567_s3 + $0x100] sm:$0xff]   ;;  %v9596_v2 = vld [vmem:[%s12567_s3 + $0x108] sm:$0xff]   ;;  %v3285_v12 = vshll.u32 %v11082_v39, 16 }
 0x241   : >> { %8460 = vmatprep.subr.bf16.mxu1 %v9711_v17  ;;  %8496 = vmatprep.subr.bf16.mxu0 %v9711_v17 }
 0x244   : >> { %8461 = vmatpush3.bf16.msra.mxu1 %v9575_v38  ;;  %8497 = vmatpush3.bf16.msra.mxu0 %v9576_v31  ;;  %v2830_v38 = vrot.slane %v2657_v10, 1  ;;  %v10859_v31 = vsel %vm2621_vm11, %v2649_v59, %v2659_v14  ;;  %v9586_v59 = vld [vmem:[%s12567_s3 + $0xc0] sm:$0xff]   ;;  %v9589_v10 = vld [vmem:[%s12567_s3 + $0xb0] sm:$0xff]   ;;  %v11094_v14 = vrot.slane %v3285_v12, 1 }
 0x245   : >> { %8526 = vmatprep.subr.bf16.mxu1 %v9711_v17  ;;  %8562 = vmatprep.subr.bf16.mxu0 %v9711_v17 }
 0x246   : >> { %8435 = vmatmul.mubr.msk.bf16.gmra.mrb[8].mxu0 %vm222_vm0, %v10744_v52  ;;  %8451 = vmatmul.mubr.msk.bf16.gmra.mrb[8].mxu1 %vm222_vm0, %v10749_v32  ;;  %v10862_v51 = vsel %vm2818_vm12, %v2829_v15, %v2830_v38  ;;  %v2832_v33 = vor.u32 %v2830_v38, %v2654_v54  ;;  %v3428_v15 = vshrl.u32 %v11082_v39, 16 }
 0x247   : >> { %8438 = vmatprep.mubr.msk.bf16.mxu0 %vm9712_vm10, %v9711_v17  ;;  %8462 = vmatprep.mubr.msk.bf16.mxu1 %vm9712_vm10, %v9711_v17 }
 0x248   : >> { %v10884_v61 = vsel %vm2818_vm12, %v2832_v33, %v2833_v60  ;;  %v3430_v16 = vrot.slane %v3428_v15, 7  ;;  %v9602_v33 = vld [vmem:[%s12567_s3 + $0x140] sm:$0xff]   ;;  %v9604_v60 = vld [vmem:[%s12567_s3 + $0x148] sm:$0xff]  }
 0x24e   : >> { %8439 = vmatmul.mubr.msk.bf16.gmra.mrb[12].mxu0 %vm222_vm0, %v10760_v49  ;;  %8463 = vmatmul.mubr.msk.bf16.vlgmr.msra.gmra.mrb[12].mxu1 %vm222_vm0, %v2632_v48  ;;  %v10900_v48 = vsel %vm2818_vm12, %v2835_v56, %v2836_v44 }
 0x24f   : >> { %8466 = vmatprep.mubr.msk.bf16.mxu1 %vm9712_vm10, %v9711_v17  ;;  %8498 = vmatprep.mubr.msk.bf16.mxu0 %vm9712_vm10, %v9711_v17 }
 0x250   : >> { %8527 = vmatpush3.bf16.msra.mxu1 %v9577_v45  ;;  %v10897_v45 = vsel %vm2621_vm11, %v2663_v27, %v2673_v62  ;;  %v3431_v27 = vor.u32 %v3430_v16, %v3285_v12 }
 0x251   : >> { %8528 = vmatprep.subr.bf16.mxu1 %v9711_v17 }
 0x254   : >> { %8529 = vmatpush3.bf16.msra.mxu1 %v9579_v7  ;;  %v10906_v7 = vrot.slane %v2840_v37, 1 }
 0x255   : >> { %8530 = vmatprep.subr.bf16.mxu1 %v9711_v17 }
 0x256   : >> { %8467 = vmatmul.mubr.msk.bf16.gmra.mrb[16].mxu1 %vm222_vm0, %v10791_v55  ;;  %8499 = vmatmul.mubr.msk.bf16.vlgmr.msra.gmra.mrb[16].mxu0 %vm222_vm0, %v2822_v57  ;;  %v10914_v54 = vsel %vm2818_vm12, %v2838_v53, %v10906_v7  ;;  %v9592_v57 = vld [vmem:[%s12567_s3 + $0xd8] sm:$0xff]  }
 0x257   : >> { %8563 = vmatpush3.bf16.msra.mxu0 %v9578_v47  ;;  %8470 = vmatprep.mubr.msk.bf16.mxu1 %vm9712_vm10, %v9711_v17  ;;  %v9588_v47 = vld [vmem:[%s12567_s3 + $0xc8] sm:$0xff]  }
 0x258   : >> { %8502 = vmatprep.mubr.msk.bf16.mxu0 %vm9712_vm10, %v9711_v17  ;;  %8564 = vmatprep.subr.bf16.mxu0 %v9711_v17 }
 0x259   : >> { %8531 = vmatpush3.bf16.msra.mxu1 %v9581_v58  ;;  %v3001_v58 = vshrl.u32 %v10878_v42, 16 }
 0x25a   : >> { %8532 = vmatprep.subr.bf16.mxu1 %v9711_v17 }
 0x25b   : >> { %8565 = vmatpush3.bf16.msra.mxu0 %v9580_v63  ;;  %v10989_v63 = vrot.slane %v3001_v58, 7 }
 0x25c   : >> { %8566 = vmatprep.subr.bf16.mxu0 %v9711_v17 }
 0x25d   : >> { %8533 = vmatpush3.bf16.msra.mxu1 %v9583_v29  ;;  %v3004_v1 = vor.u32 %v10989_v63, %v2840_v37  ;;  %v9593_v29 = vld [vmem:[%s12567_s3 + $0xe0] sm:$0xff]   ;;  %v3432_v50 = vsel %vm2621_vm11, %v10989_v63, %v3431_v27 }
 0x25e   : >> { %8471 = vmatmul.mubr.msk.bf16.gmra.mrb[20].mxu1 %vm222_vm0, %v10817_v26  ;;  %8503 = vmatmul.mubr.msk.bf16.gmra.mrb[20].mxu0 %vm222_vm0, %v10820_v0 }
 0x25f   : >> { %8474 = vmatprep.mubr.msk.bf16.mxu1 %vm9712_vm10, %v9711_v17  ;;  %8506 = vmatprep.mubr.msk.bf16.mxu0 %vm9712_vm10, %v9711_v17  ;;  %v3005_v28 = vsel %vm2621_vm11, %v10874_v34, %v3004_v1  ;;  %v9608_v34 = vld [vmem:[%s12567_s3 + $0x158] sm:$0xff]  }
 0x260   : >> { %8567 = vmatpush3.bf16.msra.mxu0 %v9582_v30  ;;  %8598 = vmatprep.subr.bf16.mxu1 %v9711_v17  ;;  %v9595_v30 = vld [vmem:[%s12567_s3 + $0xe8] sm:$0xff]  }
 0x261   : >> { %8568 = vmatprep.subr.bf16.mxu0 %v9711_v17 }
 0x264   : >> { %8569 = vmatpush3.bf16.msra.mxu0 %v9584_v5  ;;  %v9600_v5 = vld [vmem:[%s12567_s3 + $0x118] sm:$0xff]  }
 0x265   : >> { %8634 = vmatprep.subr.bf16.mxu0 %v9711_v17 }
 0x266   : >> { %8475 = vmatmul.mubr.msk.bf16.gmra.mrb[24].mxu1 %vm222_vm0, %v10842_v40  ;;  %8507 = vmatmul.mubr.msk.bf16.gmra.mrb[24].mxu0 %vm222_vm0, %v10845_v13 }
 0x267   : >> { %8478 = vmatprep.mubr.msk.bf16.mxu1 %vm9712_vm10, %v9711_v17  ;;  %8510 = vmatprep.mubr.msk.bf16.mxu0 %vm9712_vm10, %v9711_v17 }
 0x26e   : >> { %8479 = vmatmul.mubr.msk.bf16.gmra.mrb[28].mxu1 %vm222_vm0, %v10859_v31  ;;  %8511 = vmatmul.mubr.msk.bf16.gmra.mrb[28].mxu0 %vm222_vm0, %v10862_v51 }
 0x26f   : >> { %8482 = vmatprep.mubr.msk.bf16.mxu1 %vm9712_vm10, %v9711_v17  ;;  %8514 = vmatprep.mubr.msk.bf16.mxu0 %vm9712_vm10, %v9711_v17 }
 0x276   : >> { %8483 = vmatmul.mubr.msk.bf16.gmra.mrb[32].mxu1 %vm222_vm0, %v10881_v43  ;;  %8515 = vmatmul.mubr.msk.bf16.gmra.mrb[32].mxu0 %vm222_vm0, %v10884_v61 }
 0x277   : >> { %8486 = vmatprep.mubr.msk.bf16.mxu1 %vm9712_vm10, %v9711_v17  ;;  %8518 = vmatprep.mubr.msk.bf16.mxu0 %vm9712_vm10, %v9711_v17 }
 0x27e   : >> { %8487 = vmatmul.mubr.msk.bf16.gmra.mrb[36].mxu1 %vm222_vm0, %v10897_v45  ;;  %8519 = vmatmul.mubr.msk.bf16.gmra.mrb[36].mxu0 %vm222_vm0, %v10900_v48 }
 0x27f   : >> { %8522 = vmatprep.mubr.msk.bf16.mxu0 %vm9712_vm10, %v9711_v17  ;;  %8534 = vmatprep.mubr.msk.bf16.mxu1 %vm9712_vm10, %v9711_v17 }
 0x286   : >> { %8523 = vmatmul.mubr.msk.bf16.gmra.mrb[40].mxu0 %vm222_vm0, %v10914_v54  ;;  %8535 = vmatmul.mubr.msk.bf16.vlgmr.msra.gmra.mrb[40].mxu1 %vm222_vm0, %v10791_v55  ;;  %v9591_v55 = vld [vmem:[%s12567_s3 + $0xb8] sm:$0xff]  }
 0x287   : >> { %8538 = vmatprep.mubr.msk.bf16.mxu1 %vm9712_vm10, %v9711_v17  ;;  %8570 = vmatprep.mubr.msk.bf16.mxu0 %vm9712_vm10, %v9711_v17 }
 0x288   : >> { %8599 = vmatpush3.bf16.msra.mxu1 %v9585_v8 }
 0x289   : >> { %8600 = vmatprep.subr.bf16.mxu1 %v9711_v17 }
 0x28c   : >> { %8601 = vmatpush3.bf16.msra.mxu1 %v9587_v9 }
 0x28d   : >> { %8602 = vmatprep.subr.bf16.mxu1 %v9711_v17 }
 0x28e   : >> { %8539 = vmatmul.mubr.msk.bf16.gmra.mrb[44].mxu1 %vm222_vm0, %v10817_v26  ;;  %8571 = vmatmul.mubr.msk.bf16.vlgmr.msra.gmra.mrb[44].mxu0 %vm222_vm0, %v10711_v41  ;;  %v9590_v41 = vld [vmem:[%s12567_s3 + $0xd0] sm:$0xff]  }
 0x28f   : >> { %8635 = vmatpush3.bf16.msra.mxu0 %v9586_v59  ;;  %8542 = vmatprep.mubr.msk.bf16.mxu1 %vm9712_vm10, %v9711_v17 }
 0x290   : >> { %8574 = vmatprep.mubr.msk.bf16.mxu0 %vm9712_vm10, %v9711_v17  ;;  %8636 = vmatprep.subr.bf16.mxu0 %v9711_v17 }
 0x291   : >> { %8603 = vmatpush3.bf16.msra.mxu1 %v9589_v10 }
 0x292   : >> { %8604 = vmatprep.subr.bf16.mxu1 %v9711_v17 }
 0x293   : >> { %8637 = vmatpush3.bf16.msra.mxu0 %v9588_v47 }
 0x294   : >> { %8638 = vmatprep.subr.bf16.mxu0 %v9711_v17 }
 0x295   : >> { %8605 = vmatpush3.bf16.msra.mxu1 %v9591_v55 }
 0x296   : >> { %8543 = vmatmul.mubr.msk.bf16.gmra.mrb[48].mxu1 %vm222_vm0, %v10842_v40  ;;  %8575 = vmatmul.mubr.msk.bf16.gmra.mrb[48].mxu0 %vm222_vm0, %v10744_v52 }
 0x297   : >> { %8546 = vmatprep.mubr.msk.bf16.mxu1 %vm9712_vm10, %v9711_v17  ;;  %8578 = vmatprep.mubr.msk.bf16.mxu0 %vm9712_vm10, %v9711_v17 }
 0x298   : >> { %8639 = vmatpush3.bf16.msra.mxu0 %v9590_v41  ;;  %8670 = vmatprep.subr.bf16.mxu1 %v9711_v17 }
 0x299   : >> { %8640 = vmatprep.subr.bf16.mxu0 %v9711_v17 }
 0x29c   : >> { %8641 = vmatpush3.bf16.msra.mxu0 %v9592_v57 }
 0x29d   : >> { %8706 = vmatprep.subr.bf16.mxu0 %v9711_v17 }
 0x29e   : >> { %8547 = vmatmul.mubr.msk.bf16.gmra.mrb[52].mxu1 %vm222_vm0, %v10859_v31  ;;  %8579 = vmatmul.mubr.msk.bf16.gmra.mrb[52].mxu0 %vm222_vm0, %v10760_v49 }
 0x29f   : >> { %8550 = vmatprep.mubr.msk.bf16.mxu1 %vm9712_vm10, %v9711_v17  ;;  %8582 = vmatprep.mubr.msk.bf16.mxu0 %vm9712_vm10, %v9711_v17 }
 0x2a6   : >> { %8551 = vmatmul.mubr.msk.bf16.gmra.mrb[56].mxu1 %vm222_vm0, %v10881_v43  ;;  %8583 = vmatmul.mubr.msk.bf16.gmra.mrb[56].mxu0 %vm222_vm0, %v10687_v11 }
 0x2a7   : >> { %8554 = vmatprep.mubr.msk.bf16.mxu1 %vm9712_vm10, %v9711_v17  ;;  %8586 = vmatprep.mubr.msk.bf16.mxu0 %vm9712_vm10, %v9711_v17 }
 0x2ae   : >> { %8555 = vmatmul.mubr.msk.bf16.gmra.mrb[60].mxu1 %vm222_vm0, %v10897_v45  ;;  %8587 = vmatmul.mubr.msk.bf16.gmra.mrb[60].mxu0 %vm222_vm0, %v10714_v36 }
 0x2af   : >> { %8558 = vmatprep.mubr.msk.bf16.mxu1 %vm9712_vm10, %v9711_v17  ;;  %8590 = vmatprep.mubr.msk.bf16.mxu0 %vm9712_vm10, %v9711_v17 }
 0x2b6   : >> { %8559 = vmatmul.mubr.msk.bf16.gmra.mrb[64].mxu1 %vm222_vm0, %v3005_v28  ;;  %8591 = vmatmul.mubr.msk.bf16.gmra.mrb[64].mxu0 %vm222_vm0, %v10749_v32 }
 0x2b7   : >> { %8594 = vmatprep.mubr.msk.bf16.mxu0 %vm9712_vm10, %v9711_v17  ;;  %8606 = vmatprep.mubr.msk.bf16.mxu1 %vm9712_vm10, %v9711_v17 }
 0x2be   : >> { %8595 = vmatmul.mubr.msk.bf16.gmra.mrb[68].mxu0 %vm222_vm0, %v10878_v42  ;;  %8607 = vmatmul.mubr.msk.bf16.vlgmr.msra.gmra.mrb[68].mxu1 %vm222_vm0, %v10820_v0  ;;  %v9597_v0 = vld [vmem:[%s12567_s3 + $0xf0] sm:$0xff]  }
 0x2bf   : >> { %8610 = vmatprep.mubr.msk.bf16.mxu1 %vm9712_vm10, %v9711_v17  ;;  %8642 = vmatprep.mubr.msk.bf16.mxu0 %vm9712_vm10, %v9711_v17 }
 0x2c0   : >> { %8671 = vmatpush3.bf16.msra.mxu1 %v9593_v29  ;;  %v3851_v29 = vld [vmem:[%s11192_s9] sm:$0xff] }
 0x2c1   : >> { %8672 = vmatprep.subr.bf16.mxu1 %v9711_v17 }
 0x2c4   : >> { %8673 = vmatpush3.bf16.msra.mxu1 %v9595_v30 }
 0x2c5   : >> { %8674 = vmatprep.subr.bf16.mxu1 %v9711_v17 }
 0x2c6   : >> { %8611 = vmatmul.mubr.msk.bf16.gmra.mrb[72].mxu1 %vm222_vm0, %v10845_v13  ;;  %8643 = vmatmul.mubr.msk.bf16.vlgmr.msra.gmra.mrb[72].mxu0 %vm222_vm0, %v10817_v26  ;;  %v9598_v26 = vld [vmem:[%s12567_s3 + $0x110] sm:$0xff]  }
 0x2c7   : >> { %8707 = vmatpush3.bf16.msra.mxu0 %v9594_v25  ;;  %8614 = vmatprep.mubr.msk.bf16.mxu1 %vm9712_vm10, %v9711_v17 }
 0x2c8   : >> { %8646 = vmatprep.mubr.msk.bf16.mxu0 %vm9712_vm10, %v9711_v17  ;;  %8708 = vmatprep.subr.bf16.mxu0 %v9711_v17 }
 0x2c9   : >> { %8675 = vmatpush3.bf16.msra.mxu1 %v9597_v0 }
 0x2ca   : >> { %8676 = vmatprep.subr.bf16.mxu1 %v9711_v17 }
 0x2cb   : >> { %8709 = vmatpush3.bf16.msra.mxu0 %v9596_v2 }
 0x2cc   : >> { %8710 = vmatprep.subr.bf16.mxu0 %v9711_v17 }
 0x2cd   : >> { %8677 = vmatpush3.bf16.msra.mxu1 %v9599_v4 }
 0x2ce   : >> { %8615 = vmatmul.mubr.msk.bf16.gmra.mrb[76].mxu1 %vm222_vm0, %v10862_v51  ;;  %8647 = vmatmul.mubr.msk.bf16.gmra.mrb[76].mxu0 %vm222_vm0, %v10842_v40  ;;  %v3283_v40 = vor.u32 %v3001_v58, %v10906_v7 }
 0x2cf   : >> { %8618 = vmatprep.mubr.msk.bf16.mxu1 %vm9712_vm10, %v9711_v17  ;;  %8650 = vmatprep.mubr.msk.bf16.mxu0 %vm9712_vm10, %v9711_v17 }
 0x2d0   : >> { %8711 = vmatpush3.bf16.msra.mxu0 %v9598_v26  ;;  %8742 = vmatprep.subr.bf16.mxu1 %v9711_v17  ;;  %v11099_v38 = vsel %vm2818_vm12, %v3283_v40, %v11094_v14 }
 0x2d1   : >> { %8712 = vmatprep.subr.bf16.mxu0 %v9711_v17 }
 0x2d4   : >> { %8713 = vmatpush3.bf16.msra.mxu0 %v9600_v5  ;;  %v3872_v5 = vshrl.u32 %v3851_v29, 16  ;;  %v9610_v29 = vld [vmem:[%s12567_s3 + $0x180] sm:$0xff]  }
 0x2d5   : >> { %8778 = vmatprep.subr.bf16.mxu0 %v9711_v17 }
 0x2d6   : >> { %8619 = vmatmul.mubr.msk.bf16.gmra.mrb[80].mxu1 %vm222_vm0, %v10884_v61  ;;  %8651 = vmatmul.mubr.msk.bf16.gmra.mrb[80].mxu0 %vm222_vm0, %v10859_v31  ;;  %v9601_v31 = vld [vmem:[%s12567_s3 + $0x120] sm:$0xff]  }
 0x2d7   : >> { %8622 = vmatprep.mubr.msk.bf16.mxu1 %vm9712_vm10, %v9711_v17  ;;  %8654 = vmatprep.mubr.msk.bf16.mxu0 %vm9712_vm10, %v9711_v17 }
 0x2de   : >> { %8623 = vmatmul.mubr.msk.bf16.gmra.mrb[84].mxu1 %vm222_vm0, %v10900_v48  ;;  %8655 = vmatmul.mubr.msk.bf16.gmra.mrb[84].mxu0 %vm222_vm0, %v10881_v43 }
 0x2df   : >> { %8626 = vmatprep.mubr.msk.bf16.mxu1 %vm9712_vm10, %v9711_v17  ;;  %8658 = vmatprep.mubr.msk.bf16.mxu0 %vm9712_vm10, %v9711_v17 }
 0x2e6   : >> { %8627 = vmatmul.mubr.msk.bf16.gmra.mrb[88].mxu1 %vm222_vm0, %v10914_v54  ;;  %8659 = vmatmul.mubr.msk.bf16.gmra.mrb[88].mxu0 %vm222_vm0, %v10897_v45 }
 0x2e7   : >> { %8630 = vmatprep.mubr.msk.bf16.mxu1 %vm9712_vm10, %v9711_v17  ;;  %8662 = vmatprep.mubr.msk.bf16.mxu0 %vm9712_vm10, %v9711_v17 }
 0x2ee   : >> { %8631 = vmatmul.mubr.msk.bf16.gmra.mrb[92].mxu1 %vm222_vm0, %v11099_v38  ;;  %8663 = vmatmul.mubr.msk.bf16.gmra.mrb[92].mxu0 %vm222_vm0, %v3005_v28  ;;  %v2469_v28 = vld [vmem:[%s10678_s27 + $0x50] sm:$0xff] }
 0x2ef   : >> { %8666 = vmatprep.mubr.msk.bf16.mxu0 %vm9712_vm10, %v9711_v17  ;;  %8678 = vmatprep.mubr.msk.bf16.mxu1 %vm9712_vm10, %v9711_v17 }
 0x2f6   : >> { %8667 = vmatmul.mubr.msk.bf16.gmra.mrb[96].mxu0 %vm222_vm0, %v3432_v50  ;;  %8679 = vmatmul.mubr.msk.bf16.vlgmr.msra.gmra.mrb[96].mxu1 %vm222_vm0, %v10744_v52  ;;  %v9605_v52 = vld [vmem:[%s12567_s3 + $0x130] sm:$0xff]  }
 0x2f7   : >> { %8682 = vmatprep.mubr.msk.bf16.mxu1 %vm9712_vm10, %v9711_v17  ;;  %8714 = vmatprep.mubr.msk.bf16.mxu0 %vm9712_vm10, %v9711_v17  ;;  %v11214_v50 = vld [vmem:[%s11192_s9 + $0x10] sm:$0xff] }
 0x2f8   : >> { %8743 = vmatpush3.bf16.msra.mxu1 %v9601_v31  ;;  %v3710_v31 = vor.u32 %v3428_v15, %v11094_v14 }
 0x2f9   : >> { %8744 = vmatprep.subr.bf16.mxu1 %v9711_v17 }
 0x2fc   : >> { %8745 = vmatpush3.bf16.msra.mxu1 %v9603_v46 }
 0x2fd   : >> { %8746 = vmatprep.subr.bf16.mxu1 %v9711_v17 }
 0x2fe   : >> { %8683 = vmatmul.mubr.msk.bf16.gmra.mrb[100].mxu1 %vm222_vm0, %v10760_v49  ;;  %8715 = vmatmul.mubr.msk.bf16.vlgmr.msra.gmra.mrb[100].mxu0 %vm222_vm0, %v10845_v13  ;;  %v9607_v49 = vld [vmem:[%s12567_s3 + $0x138] sm:$0xff]   ;;  %v9606_v13 = vld [vmem:[%s12567_s3 + $0x150] sm:$0xff]  }
 0x2ff   : >> { %8779 = vmatpush3.bf16.msra.mxu0 %v9602_v33  ;;  %8686 = vmatprep.mubr.msk.bf16.mxu1 %vm9712_vm10, %v9711_v17  ;;  %v3874_v33 = vrot.slane %v3872_v5, 7 }
 0x300   : >> { %8718 = vmatprep.mubr.msk.bf16.mxu0 %vm9712_vm10, %v9711_v17  ;;  %8780 = vmatprep.subr.bf16.mxu0 %v9711_v17 }
 0x301   : >> { %8747 = vmatpush3.bf16.msra.mxu1 %v9605_v52 }
 0x302   : >> { %8748 = vmatprep.subr.bf16.mxu1 %v9711_v17 }
 0x303   : >> { %8781 = vmatpush3.bf16.msra.mxu0 %v9604_v60  ;;  %v3884_v60 = vshrl.u32 %v11214_v50, 16 }
 0x304   : >> { %8782 = vmatprep.subr.bf16.mxu0 %v9711_v17 }
 0x305   : >> { %8749 = vmatpush3.bf16.msra.mxu1 %v9607_v49 }
 0x306   : >> { %8687 = vmatmul.mubr.msk.bf16.gmra.mrb[104].mxu1 %vm222_vm0, %v10687_v11  ;;  %8719 = vmatmul.mubr.msk.bf16.gmra.mrb[104].mxu0 %vm222_vm0, %v10862_v51 }
 0x307   : >> { %8690 = vmatprep.mubr.msk.bf16.mxu1 %vm9712_vm10, %v9711_v17  ;;  %8722 = vmatprep.mubr.msk.bf16.mxu0 %vm9712_vm10, %v9711_v17 }
 0x308   : >> { %8783 = vmatpush3.bf16.msra.mxu0 %v9606_v13  ;;  %8814 = vmatprep.subr.bf16.mxu1 %v9711_v17 }
 0x309   : >> { %v2566_v35 = vpop.f32.mrb[0].mxu0  ;;  %v11165_v43 = vpop.f32.mrb[0].mxu1  ;;  %8784 = vmatprep.subr.bf16.mxu0 %v9711_v17 }
 0x30a   : >> { %v8428_v11 = vpop.f32.mrb[1].mxu0  ;;  %v8444_v51 = vpop.f32.mrb[1].mxu1 }
 0x30b   : >> { %v2569_v62 = vpop.f32.mrb[2].mxu0  ;;  %v2601_v56 = vpop.f32.mrb[2].mxu1 }
 0x30c   : >> { %v8429_v44 = vpop.f32.mrb[3].mxu0  ;;  %v8445_v37 = vpop.f32.mrb[3].mxu1  ;;  %8785 = vmatpush3.bf16.msra.mxu0 %v9608_v34  ;;  %v3886_v62 = vrot.slane %v3884_v60, 7  ;;  %v3887_v56 = vshll.u32 %v11214_v50, 16 }
 0x30d   : >> { %8850 = vmatprep.subr.bf16.mxu0 %v9711_v17 }
 0x30e   : >> { %8691 = vmatmul.mubr.msk.bf16.gmra.mrb[108].mxu1 %vm222_vm0, %v10714_v36  ;;  %8723 = vmatmul.mubr.msk.bf16.gmra.mrb[108].mxu0 %vm222_vm0, %v10884_v61 }
 0x30f   : >> { %8694 = vmatprep.mubr.msk.bf16.mxu1 %vm9712_vm10, %v9711_v17  ;;  %8726 = vmatprep.mubr.msk.bf16.mxu0 %vm9712_vm10, %v9711_v17 }
 0x311   : >> { %v2574_v45 = vpop.f32.mrb[4].mxu0  ;;  %v11178_v7 = vpop.f32.mrb[4].mxu1 }
 0x312   : >> { %v8432_v53 = vpop.f32.mrb[5].mxu0  ;;  %v8448_v8 = vpop.f32.mrb[5].mxu1 }
 0x313   : >> { %v2577_v9 = vpop.f32.mrb[6].mxu0  ;;  %v2609_v59 = vpop.f32.mrb[6].mxu1  ;;  %v11241_v53 = vld [vmem:[%s11192_s9 + $0x18] sm:$0xff]  ;;  %v3889_v8 = vor.u32 %v3887_v56, %v3886_v62 }
 0x314   : >> { %v8433_v10 = vpop.f32.mrb[7].mxu0  ;;  %v8449_v36 = vpop.f32.mrb[7].mxu1  ;;  %v3892_v9 = vshrl.u32 %v11241_v53, 16  ;;  %v9611_v59 = vld [vmem:[%s12567_s3 + $0x168] sm:$0xff]  }
 0x316   : >> { %8695 = vmatmul.mubr.msk.bf16.gmra.mrb[112].mxu1 %vm222_vm0, %v10749_v32  ;;  %8727 = vmatmul.mubr.msk.bf16.gmra.mrb[112].mxu0 %vm222_vm0, %v10900_v48  ;;  %v11195_v48 = vld [vmem:[%s11192_s9 + $0x8] sm:$0xff] }
 0x317   : >> { %8698 = vmatprep.mubr.msk.bf16.mxu1 %vm9712_vm10, %v9711_v17  ;;  %8730 = vmatprep.mubr.msk.bf16.mxu0 %vm9712_vm10, %v9711_v17  ;;  %v3876_v1 = vshrl.u32 %v11195_v48, 16  ;;  %v3879_v40 = vshll.u32 %v11195_v48, 16 }
 0x319   : >> { %v11188_v61 = vpop.f32.mrb[8].mxu0  ;;  %v11190_v47 = vpop.f32.mrb[8].mxu1  ;;  %v3878_v12 = vrot.slane %v3876_v1, 7 }
 0x31a   : >> { %v8436_v55 = vpop.f32.mrb[9].mxu0  ;;  %v8452_v41 = vpop.f32.mrb[9].mxu1 }
 0x31b   : >> { %v2585_v57 = vpop.f32.mrb[10].mxu0  ;;  %v2617_v58 = vpop.f32.mrb[10].mxu1  ;;  %v3881_v52 = vor.u32 %v3879_v40, %v3878_v12 }
 0x31c   : >> { %v8437_v32 = vpop.f32.mrb[11].mxu0  ;;  %v8453_v63 = vpop.f32.mrb[11].mxu1 }
 0x31d   : >> { %v3882_v11 = vsel %vm2621_vm11, %v3874_v33, %v3881_v52  ;;  %v11260_v63 = vsel %vm2621_vm11, %v3878_v12, %v3889_v8 }
 0x31e   : >> { %8699 = vmatmul.mubr.msk.bf16.gmra.mrb[116].mxu1 %vm222_vm0, %v10878_v42  ;;  %8731 = vmatmul.mubr.msk.bf16.gmra.mrb[116].mxu0 %vm222_vm0, %v10914_v54  ;;  %v3712_v54 = vshll.u32 %v2469_v28, 16 }
 0x31f   : >> { %8702 = vmatprep.mubr.msk.bf16.mxu1 %vm9712_vm10, %v9711_v17  ;;  %8734 = vmatprep.mubr.msk.bf16.mxu0 %vm9712_vm10, %v9711_v17 }
 0x320   : >> { %v3714_v46 = vrot.slane %v3712_v54, 1  ;;  %v9612_v54 = vld [vmem:[%s12567_s3 + $0x188] sm:$0xff]  }
 0x321   : >> { %v11208_v30 = vpop.f32.mrb[12].mxu0  ;;  %v2754_v25 = vpop.f32.mrb[12].mxu1 }
 0x322   : >> { %v2755_v0 = vadd.f32 %v2754_v25, %v2566_v35  ;;  %v8440_v2 = vpop.f32.mrb[13].mxu0  ;;  %v8464_v42 = vpop.f32.mrb[13].mxu1  ;;  %v3715_v35 = vsel %vm2818_vm12, %v3710_v31, %v3714_v46  ;;  %v3894_v25 = vrot.slane %v3892_v9, 7 }
 0x323   : >> { %v2593_v4 = vpop.f32.mrb[14].mxu0  ;;  %v2757_v26 = vpop.f32.mrb[14].mxu1  ;;  %v11269_v42 = vld [vmem:[%s11192_s9 + $0x20] sm:$0xff] }
 0x324   : >> { %v8441_v16 = vpop.f32.mrb[15].mxu0  ;;  %v8465_v27 = vpop.f32.mrb[15].mxu1  ;;  %v9613_v4 = vld [vmem:[%s12567_s3 + $0x170] sm:$0xff]   ;;  %v3900_v5 = vshrl.u32 %v11269_v42, 16 }
 0x325   : >> { %v9615_v27 = vld [vmem:[%s12567_s3 + $0x178] sm:$0xff]  }
 0x326   : >> { %8703 = vmatmul.mubr.msk.bf16.gmra.mrb[120].mxu1 %vm222_vm0, %v11082_v39  ;;  %8735 = vmatmul.mubr.msk.bf16.gmra.mrb[120].mxu0 %vm222_vm0, %v11099_v38 }
 0x327   : >> { %8738 = vmatprep.mubr.msk.bf16.mxu0 %vm9712_vm10, %v9711_v17  ;;  %8750 = vmatprep.mubr.msk.bf16.mxu1 %vm9712_vm10, %v9711_v17 }
 0x329   : >> { %v2762_v49 = vpop.f32.mrb[16].mxu1  ;;  %v2923_v38 = vpop.f32.mrb[16].mxu0 }
 0x32a   : >> { %v2763_v13 = vadd.f32 %v2762_v49, %v2574_v45  ;;  %v11230_v34 = vadd.f32 %v2923_v38, %v2755_v0  ;;  %v8500_v39 = vpop.f32.mrb[17].mxu0  ;;  %v8468_v14 = vpop.f32.mrb[17].mxu1  ;;  %v9609_v45 = vld [vmem:[%s12567_s3 + $0x160] sm:$0xff]   ;;  %v3895_v0 = vshll.u32 %v11241_v53, 16 }
 0x32b   : >> { %v2926_v15 = vpop.f32.mrb[18].mxu0  ;;  %v2765_v51 = vpop.f32.mrb[18].mxu1  ;;  %v3902_v39 = vrot.slane %v3900_v5, 7  ;;  %v3903_v14 = vshll.u32 %v11269_v42, 16 }
 0x32c   : >> { %v8501_v44 = vpop.f32.mrb[19].mxu0  ;;  %v8469_v37 = vpop.f32.mrb[19].mxu1  ;;  %v3897_v26 = vor.u32 %v3895_v0, %v3894_v25 }
 0x32d   : >> { %v3905_v51 = vor.u32 %v3903_v14, %v3902_v39  ;;  %v9616_v44 = vld [vmem:[%s12567_s3 + $0x198] sm:$0xff]  }
 0x32e   : >> { %8739 = vmatmul.mubr.msk.bf16.gmra.mrb[124].mxu0 %vm222_vm0, %v3715_v35  ;;  %8751 = vmatmul.mubr.msk.bf16.vlgmr.msra.gmra.mrb[124].mxu1 %vm222_vm0, %v3882_v11  ;;  %v11298_v38 = vsel %vm2621_vm11, %v3886_v62, %v3897_v26  ;;  %v9614_v11 = vld [vmem:[%s12567_s3 + $0x190] sm:$0xff]  }
 0x32f   : >> { %8754 = vmatprep.mubr.msk.bf16.mxu1 %vm9712_vm10, %v9711_v17  ;;  %8786 = vmatprep.mubr.msk.bf16.mxu0 %vm9712_vm10, %v9711_v17 }
 0x330   : >> { %8815 = vmatpush3.bf16.msra.mxu1 %v9609_v45 }
 0x331   : >> { %v2770_v10 = vpop.f32.mrb[20].mxu1  ;;  %v2931_v36 = vpop.f32.mrb[20].mxu0  ;;  %8816 = vmatprep.subr.bf16.mxu1 %v9711_v17 }
 0x332   : >> { %v2771_v55 = vadd.f32 %v2770_v10, %v11188_v61  ;;  %v11257_v41 = vadd.f32 %v2931_v36, %v2763_v13  ;;  %v8504_v57 = vpop.f32.mrb[21].mxu0  ;;  %v8472_v58 = vpop.f32.mrb[21].mxu1 }
 0x333   : >> { %v2934_v32 = vpop.f32.mrb[22].mxu0  ;;  %v2773_v28 = vpop.f32.mrb[22].mxu1  ;;  %v11330_v57 = vsel %vm2621_vm11, %v3894_v25, %v3905_v51 }
 0x334   : >> { %v8505_v2 = vpop.f32.mrb[23].mxu0  ;;  %v8473_v61 = vpop.f32.mrb[23].mxu1  ;;  %8817 = vmatpush3.bf16.msra.mxu1 %v9611_v59 }
 0x335   : >> { %8818 = vmatprep.subr.bf16.mxu1 %v9711_v17  ;;  %v11336_v61 = vld [vmem:[%s11192_s9 + $0x30] sm:$0xff] }
 0x336   : >> { %8755 = vmatmul.mubr.msk.bf16.gmra.mrb[128].mxu1 %vm222_vm0, %v11260_v63  ;;  %8787 = vmatmul.mubr.msk.bf16.vlgmr.msra.gmra.mrb[128].mxu0 %vm222_vm0, %v11195_v48  ;;  %v3916_v25 = vshrl.u32 %v11336_v61, 16  ;;  %v9617_v48 = vld [vmem:[%s12567_s3 + $0x1a0] sm:$0xff]  }
 0x337   : >> { %8851 = vmatpush3.bf16.msra.mxu0 %v9610_v29  ;;  %8758 = vmatprep.mubr.msk.bf16.mxu1 %vm9712_vm10, %v9711_v17 }
 0x338   : >> { %8790 = vmatprep.mubr.msk.bf16.mxu0 %vm9712_vm10, %v9711_v17  ;;  %8852 = vmatprep.subr.bf16.mxu0 %v9711_v17 }
 0x339   : >> { %v2778_v12 = vpop.f32.mrb[24].mxu1  ;;  %v2939_v16 = vpop.f32.mrb[24].mxu0  ;;  %8819 = vmatpush3.bf16.msra.mxu1 %v9613_v4 }
 0x33a   : >> { %v2779_v31 = vadd.f32 %v2778_v12, %v11208_v30  ;;  %v11294_v46 = vadd.f32 %v2939_v16, %v2771_v55  ;;  %v8508_v33 = vpop.f32.mrb[25].mxu0  ;;  %v8476_v52 = vpop.f32.mrb[25].mxu1  ;;  %8820 = vmatprep.subr.bf16.mxu1 %v9711_v17  ;;  %v11304_v30 = vld [vmem:[%s11192_s9 + $0x28] sm:$0xff] }
 0x33b   : >> { %v2942_v49 = vpop.f32.mrb[26].mxu0  ;;  %v2781_v13 = vpop.f32.mrb[26].mxu1  ;;  %8853 = vmatpush3.bf16.msra.mxu0 %v9612_v54  ;;  %v3908_v62 = vshrl.u32 %v11304_v30, 16  ;;  %v3911_v28 = vshll.u32 %v11304_v30, 16 }
 0x33c   : >> { %v8509_v15 = vpop.f32.mrb[27].mxu0  ;;  %v8477_v35 = vpop.f32.mrb[27].mxu1  ;;  %8854 = vmatprep.subr.bf16.mxu0 %v9711_v17  ;;  %v3918_v49 = vrot.slane %v3916_v25, 7  ;;  %v3919_v13 = vshll.u32 %v11336_v61, 16 }
 0x33d   : >> { %8821 = vmatpush3.bf16.msra.mxu1 %v9615_v27  ;;  %v3910_v32 = vrot.slane %v3908_v62, 7 }
 0x33e   : >> { %8759 = vmatmul.mubr.msk.bf16.gmra.mrb[132].mxu1 %vm222_vm0, %v11298_v38  ;;  %8791 = vmatmul.mubr.msk.bf16.gmra.mrb[132].mxu0 %vm222_vm0, %v11214_v50 }
 0x33f   : >> { %8762 = vmatprep.mubr.msk.bf16.mxu1 %vm9712_vm10, %v9711_v17  ;;  %8794 = vmatprep.mubr.msk.bf16.mxu0 %vm9712_vm10, %v9711_v17 }
 0x340   : >> { %8855 = vmatpush3.bf16.msra.mxu0 %v9614_v11  ;;  %8886 = vmatprep.subr.bf16.mxu1 %v9711_v17  ;;  %v11360_v11 = vld [vmem:[%s11192_s9 + $0x38] sm:$0xff] }
 0x341   : >> { %v2786_v37 = vpop.f32.mrb[28].mxu1  ;;  %v2947_v45 = vpop.f32.mrb[28].mxu0  ;;  %8856 = vmatprep.subr.bf16.mxu0 %v9711_v17 }
 0x342   : >> { %v2787_v8 = vadd.f32 %v2786_v37, %v11165_v43  ;;  %v11327_v59 = vadd.f32 %v2947_v45, %v2779_v31  ;;  %v8512_v10 = vpop.f32.mrb[29].mxu0  ;;  %v8480_v36 = vpop.f32.mrb[29].mxu1  ;;  %v3913_v43 = vor.u32 %v3911_v28, %v3910_v32 }
 0x343   : >> { %v2950_v55 = vpop.f32.mrb[30].mxu0  ;;  %v2789_v58 = vpop.f32.mrb[30].mxu1 }
 0x344   : >> { %v8513_v29 = vpop.f32.mrb[31].mxu0  ;;  %v8481_v2 = vpop.f32.mrb[31].mxu1  ;;  %8857 = vmatpush3.bf16.msra.mxu0 %v9616_v44  ;;  %v11354_v33 = vsel %vm2621_vm11, %v3902_v39, %v3913_v43  ;;  %v3924_v39 = vshrl.u32 %v11360_v11, 16 }
 0x345   : >> { %8922 = vmatprep.subr.bf16.mxu0 %v9711_v17  ;;  %v3927_v2 = vshll.u32 %v11360_v11, 16 }
 0x346   : >> { %8763 = vmatmul.mubr.msk.bf16.gmra.mrb[136].mxu1 %vm222_vm0, %v11330_v57  ;;  %8795 = vmatmul.mubr.msk.bf16.gmra.mrb[136].mxu0 %vm222_vm0, %v11241_v53  ;;  %v11381_v29 = vrot.slane %v3924_v39, 7 }
 0x347   : >> { %8766 = vmatprep.mubr.msk.bf16.mxu1 %vm9712_vm10, %v9711_v17  ;;  %8798 = vmatprep.mubr.msk.bf16.mxu0 %vm9712_vm10, %v9711_v17 }
 0x349   : >> { %v2794_v4 = vpop.f32.mrb[32].mxu1  ;;  %v2955_v26 = vpop.f32.mrb[32].mxu0 }
 0x34a   : >> { %v2795_v54 = vadd.f32 %v2794_v4, %v11178_v7  ;;  %v11351_v12 = vadd.f32 %v2955_v26, %v2787_v8  ;;  %v8516_v16 = vpop.f32.mrb[33].mxu0  ;;  %v8484_v27 = vpop.f32.mrb[33].mxu1  ;;  %v3921_v7 = vor.u32 %v3919_v13, %v3918_v49 }
 0x34b   : >> { %v2958_v31 = vpop.f32.mrb[34].mxu0  ;;  %v2797_v52 = vpop.f32.mrb[34].mxu1 }
 0x34c   : >> { %v8517_v15 = vpop.f32.mrb[35].mxu0  ;;  %v8485_v35 = vpop.f32.mrb[35].mxu1  ;;  %v11377_v55 = vsel %vm2621_vm11, %v3910_v32, %v3921_v7  ;;  %v4238_v7 = vrot.slane %v3879_v40, 1  ;;  %v4240_v40 = vrot.slane %v3887_v56, 1  ;;  %v4243_v56 = vrot.slane %v3895_v0, 1 }
 0x34e   : >> { %8767 = vmatmul.mubr.msk.bf16.gmra.mrb[140].mxu1 %vm222_vm0, %v11354_v33  ;;  %8799 = vmatmul.mubr.msk.bf16.gmra.mrb[140].mxu0 %vm222_vm0, %v11269_v42 }
 0x34f   : >> { %8770 = vmatprep.mubr.msk.bf16.mxu1 %vm9712_vm10, %v9711_v17  ;;  %8802 = vmatprep.mubr.msk.bf16.mxu0 %vm9712_vm10, %v9711_v17 }
 0x351   : >> { %v2802_v51 = vpop.f32.mrb[36].mxu1  ;;  %v2963_v44 = vpop.f32.mrb[36].mxu0 }
 0x352   : >> { %v2803_v37 = vadd.f32 %v2802_v51, %v11190_v47  ;;  %v11374_v45 = vadd.f32 %v2963_v44, %v2795_v54  ;;  %v8520_v8 = vpop.f32.mrb[37].mxu0  ;;  %v8488_v10 = vpop.f32.mrb[37].mxu1  ;;  %v3929_v47 = vor.u32 %v3927_v2, %v11381_v29 }
 0x353   : >> { %v2966_v36 = vpop.f32.mrb[38].mxu0  ;;  %v2805_v58 = vpop.f32.mrb[38].mxu1 }
 0x354   : >> { %v8521_v43 = vpop.f32.mrb[39].mxu0  ;;  %v8489_v4 = vpop.f32.mrb[39].mxu1  ;;  %v11399_v15 = vsel %vm2621_vm11, %v3918_v49, %v3929_v47 }
 0x356   : >> { %8771 = vmatmul.mubr.msk.bf16.gmra.mrb[144].mxu1 %vm222_vm0, %v11377_v55  ;;  %8803 = vmatmul.mubr.msk.bf16.gmra.mrb[144].mxu0 %vm222_vm0, %v11304_v30 }
 0x357   : >> { %8774 = vmatprep.mubr.msk.bf16.mxu1 %vm9712_vm10, %v9711_v17  ;;  %8806 = vmatprep.mubr.msk.bf16.mxu0 %vm9712_vm10, %v9711_v17 }
 0x359   : >> { %v2971_v32 = vpop.f32.mrb[40].mxu0  ;;  %v3067_v26 = vpop.f32.mrb[40].mxu1 }
 0x35a   : >> { %v11395_v54 = vadd.f32 %v2971_v32, %v2803_v37  ;;  %v3122_v16 = vadd.f32 %v3067_v26, %v11230_v34  ;;  %v8524_v27 = vpop.f32.mrb[41].mxu0  ;;  %v8536_v31 = vpop.f32.mrb[41].mxu1  ;;  %v4239_v34 = vor.u32 %v4238_v7, %v3876_v1  ;;  %v4242_v1 = vor.u32 %v4240_v40, %v3884_v60 }
 0x35b   : >> { %v2974_v52 = vpop.f32.mrb[42].mxu0  ;;  %v3070_v35 = vpop.f32.mrb[42].mxu1 }
 0x35c   : >> { %v8525_v51 = vpop.f32.mrb[43].mxu0  ;;  %v8537_v44 = vpop.f32.mrb[43].mxu1  ;;  %v4241_v4 = vsel %vm2818_vm12, %v4239_v34, %v4240_v40  ;;  %v11441_v60 = vsel %vm2818_vm12, %v4242_v1, %v4243_v56 }
 0x35d   : >> { %v9618_v44 = vld [vmem:[%s12567_s3 + $0x1c0] sm:$0xff]  }
 0x35e   : >> { %8775 = vmatmul.mubr.msk.bf16.gmra.mrb[148].mxu1 %vm222_vm0, %v11399_v15  ;;  %8807 = vmatmul.mubr.msk.bf16.gmra.mrb[148].mxu0 %vm222_vm0, %v11336_v61 }
 0x35f   : >> { %8810 = vmatprep.mubr.msk.bf16.mxu0 %vm9712_vm10, %v9711_v17  ;;  %8822 = vmatprep.mubr.msk.bf16.mxu1 %vm9712_vm10, %v9711_v17 }
 0x361   : >> { %v3075_v49 = vpop.f32.mrb[44].mxu1  ;;  %v3205_v37 = vpop.f32.mrb[44].mxu0 }
 0x362   : >> { %v3124_v8 = vadd.f32 %v3075_v49, %v11257_v41  ;;  %v11416_v10 = vadd.f32 %v3205_v37, %v3122_v16  ;;  %v8572_v36 = vpop.f32.mrb[45].mxu0  ;;  %v8540_v58 = vpop.f32.mrb[45].mxu1  ;;  %v9619_v41 = vld [vmem:[%s12567_s3 + $0x1a8] sm:$0xff]   ;;  %v4245_v49 = vor.u32 %v4243_v56, %v3892_v9  ;;  %v4246_v37 = vrot.slane %v3903_v14, 1 }
 0x363   : >> { %v3208_v43 = vpop.f32.mrb[46].mxu0  ;;  %v3078_v47 = vpop.f32.mrb[46].mxu1  ;;  %v9623_v58 = vld [vmem:[%s12567_s3 + $0x1b8] sm:$0xff]  }
 0x364   : >> { %v8573_v32 = vpop.f32.mrb[47].mxu0  ;;  %v8541_v26 = vpop.f32.mrb[47].mxu1  ;;  %v4248_v56 = vor.u32 %v4246_v37, %v3900_v5 }
 0x365   : >> { %v11474_v32 = vsel %vm2818_vm12, %v4245_v49, %v4246_v37 }
 0x366   : >> { %8811 = vmatmul.mubr.msk.bf16.gmra.mrb[152].mxu0 %vm222_vm0, %v11360_v11  ;;  %8823 = vmatmul.mubr.msk.bf16.vlgmr.msra.gmra.mrb[152].mxu1 %vm222_vm0, %v4241_v4 }
 0x367   : >> { %8826 = vmatprep.mubr.msk.bf16.mxu1 %vm9712_vm10, %v9711_v17  ;;  %8858 = vmatprep.mubr.msk.bf16.mxu0 %vm9712_vm10, %v9711_v17 }
 0x368   : >> { %8887 = vmatpush3.bf16.msra.mxu1 %v9617_v48 }
 0x369   : >> { %v3083_v16 = vpop.f32.mrb[48].mxu1  ;;  %v3213_v27 = vpop.f32.mrb[48].mxu0  ;;  %8888 = vmatprep.subr.bf16.mxu1 %v9711_v17 }
 0x36a   : >> { %v3126_v31 = vadd.f32 %v3083_v16, %v11294_v46  ;;  %v11438_v52 = vadd.f32 %v3213_v27, %v3124_v8  ;;  %v8576_v35 = vpop.f32.mrb[49].mxu0  ;;  %v8544_v7 = vpop.f32.mrb[49].mxu1  ;;  %v9621_v46 = vld [vmem:[%s12567_s3 + $0x1b0] sm:$0xff]   ;;  %v9620_v8 = vld [vmem:[%s12567_s3 + $0x1c8] sm:$0xff]   ;;  %v9624_v16 = vld [vmem:[%s12567_s3 + $0x1d8] sm:$0xff]  }
 0x36b   : >> { %v3216_v51 = vpop.f32.mrb[50].mxu0  ;;  %v3086_v0 = vpop.f32.mrb[50].mxu1 }
 0x36c   : >> { %v8577_v34 = vpop.f32.mrb[51].mxu0  ;;  %v8545_v40 = vpop.f32.mrb[51].mxu1  ;;  %8889 = vmatpush3.bf16.msra.mxu1 %v9619_v41  ;;  %v4249_v41 = vrot.slane %v3911_v28, 1 }
 0x36d   : >> { %8890 = vmatprep.subr.bf16.mxu1 %v9711_v17 }
 0x36e   : >> { %8827 = vmatmul.mubr.msk.bf16.gmra.mrb[156].mxu1 %vm222_vm0, %v11441_v60  ;;  %8859 = vmatmul.mubr.msk.bf16.vlgmr.msra.gmra.mrb[156].mxu0 %vm222_vm0, %v11260_v63  ;;  %v11501_v28 = vsel %vm2818_vm12, %v4248_v56, %v4249_v41 }
 0x36f   : >> { %8923 = vmatpush3.bf16.msra.mxu0 %v9618_v44  ;;  %8830 = vmatprep.mubr.msk.bf16.mxu1 %vm9712_vm10, %v9711_v17 }
 0x370   : >> { %8862 = vmatprep.mubr.msk.bf16.mxu0 %vm9712_vm10, %v9711_v17  ;;  %8924 = vmatprep.subr.bf16.mxu0 %v9711_v17 }
 0x371   : >> { %v3091_v63 = vpop.f32.mrb[52].mxu1  ;;  %v3221_v36 = vpop.f32.mrb[52].mxu0  ;;  %8891 = vmatpush3.bf16.msra.mxu1 %v9621_v46  ;;  %v4252_v46 = vrot.slane %v3919_v13, 1  ;;  %v4255_v13 = vrot.slane %v3927_v2, 1 }
 0x372   : >> { %v3128_v9 = vadd.f32 %v3091_v63, %v11327_v59  ;;  %v11470_v43 = vadd.f32 %v3221_v36, %v3126_v31  ;;  %v8580_v14 = vpop.f32.mrb[53].mxu0  ;;  %v8548_v4 = vpop.f32.mrb[53].mxu1  ;;  %8892 = vmatprep.subr.bf16.mxu1 %v9711_v17  ;;  %v9622_v59 = vld [vmem:[%s12567_s3 + $0x1d0] sm:$0xff]  }
 0x373   : >> { %v3224_v47 = vpop.f32.mrb[54].mxu0  ;;  %v3094_v26 = vpop.f32.mrb[54].mxu1  ;;  %8925 = vmatpush3.bf16.msra.mxu0 %v9620_v8  ;;  %v4257_v2 = vor.u32 %v4255_v13, %v3924_v39 }
 0x374   : >> { %v8581_v48 = vpop.f32.mrb[55].mxu0  ;;  %v8549_v1 = vpop.f32.mrb[55].mxu1  ;;  %8926 = vmatprep.subr.bf16.mxu0 %v9711_v17 }
 0x375   : >> { %8893 = vmatpush3.bf16.msra.mxu1 %v9623_v58 }
 0x376   : >> { %8831 = vmatmul.mubr.msk.bf16.gmra.mrb[160].mxu1 %vm222_vm0, %v11474_v32  ;;  %8863 = vmatmul.mubr.msk.bf16.gmra.mrb[160].mxu0 %vm222_vm0, %v11298_v38 }
 0x377   : >> { %8834 = vmatprep.mubr.msk.bf16.mxu1 %vm9712_vm10, %v9711_v17  ;;  %8866 = vmatprep.mubr.msk.bf16.mxu0 %vm9712_vm10, %v9711_v17 }
 0x378   : >> { %8927 = vmatpush3.bf16.msra.mxu0 %v9622_v59  ;;  %8958 = vmatprep.subr.bf16.mxu1 %v9711_v17 }
 0x379   : >> { %v3099_v27 = vpop.f32.mrb[56].mxu1  ;;  %v3229_v31 = vpop.f32.mrb[56].mxu0  ;;  %8928 = vmatprep.subr.bf16.mxu0 %v9711_v17 }
 0x37a   : >> { %v3130_v35 = vadd.f32 %v3099_v27, %v11351_v12  ;;  %v11498_v7 = vadd.f32 %v3229_v31, %v3128_v9  ;;  %v8584_v51 = vpop.f32.mrb[57].mxu0  ;;  %v8552_v5 = vpop.f32.mrb[57].mxu1  ;;  %v4251_v12 = vor.u32 %v4249_v41, %v3908_v62  ;;  %v4254_v62 = vor.u32 %v4252_v46, %v3916_v25 }
 0x37b   : >> { %v3232_v0 = vpop.f32.mrb[58].mxu0  ;;  %v3102_v44 = vpop.f32.mrb[58].mxu1 }
 0x37c   : >> { %v8585_v34 = vpop.f32.mrb[59].mxu0  ;;  %v8553_v40 = vpop.f32.mrb[59].mxu1  ;;  %8929 = vmatpush3.bf16.msra.mxu0 %v9624_v16  ;;  %v11520_v14 = vsel %vm2818_vm12, %v4251_v12, %v4252_v46  ;;  %v11541_v31 = vsel %vm2818_vm12, %v4254_v62, %v4255_v13 }
 0x37d   : >> { %8994 = vmatprep.subr.bf16.mxu0 %v9711_v17 }
 0x37e   : >> { %8835 = vmatmul.mubr.msk.bf16.gmra.mrb[164].mxu1 %vm222_vm0, %v11501_v28  ;;  %8867 = vmatmul.mubr.msk.bf16.gmra.mrb[164].mxu0 %vm222_vm0, %v11330_v57 }
 0x37f   : >> { %8838 = vmatprep.mubr.msk.bf16.mxu1 %vm9712_vm10, %v9711_v17  ;;  %8870 = vmatprep.mubr.msk.bf16.mxu0 %vm9712_vm10, %v9711_v17 }
 0x381   : >> { %v3107_v49 = vpop.f32.mrb[60].mxu1  ;;  %v3237_v37 = vpop.f32.mrb[60].mxu0 }
 0x382   : >> { %v3132_v8 = vadd.f32 %v3107_v49, %v11374_v45  ;;  %v11517_v63 = vadd.f32 %v3237_v37, %v3130_v35  ;;  %v8588_v36 = vpop.f32.mrb[61].mxu0  ;;  %v8556_v58 = vpop.f32.mrb[61].mxu1  ;;  %v11535_v45 = vld [vmem:[%s11192_s9 + $0x40] sm:$0xff] }
 0x383   : >> { %v3240_v9 = vpop.f32.mrb[62].mxu0  ;;  %v3110_v4 = vpop.f32.mrb[62].mxu1  ;;  %v4259_v25 = vshll.u32 %v11535_v45, 16  ;;  %v4420_v0 = vshrl.u32 %v11535_v45, 16 }
 0x384   : >> { %v8589_v47 = vpop.f32.mrb[63].mxu0  ;;  %v8557_v26 = vpop.f32.mrb[63].mxu1 }
 0x385   : >> { %v11566_v39 = vrot.slane %v4420_v0, 7 }
 0x386   : >> { %8839 = vmatmul.mubr.msk.bf16.gmra.mrb[168].mxu1 %vm222_vm0, %v11520_v14  ;;  %8871 = vmatmul.mubr.msk.bf16.gmra.mrb[168].mxu0 %vm222_vm0, %v11354_v33 }
 0x387   : >> { %8842 = vmatprep.mubr.msk.bf16.mxu1 %vm9712_vm10, %v9711_v17  ;;  %8874 = vmatprep.mubr.msk.bf16.mxu0 %vm9712_vm10, %v9711_v17 }
 0x389   : >> { %v3115_v48 = vpop.f32.mrb[64].mxu1  ;;  %v3245_v1 = vpop.f32.mrb[64].mxu0 }
 0x38a   : >> { %v3134_v59 = vadd.f32 %v3115_v48, %v11395_v54  ;;  %v11538_v56 = vadd.f32 %v3245_v1, %v3132_v8  ;;  %v8592_v41 = vpop.f32.mrb[65].mxu0  ;;  %v8560_v16 = vpop.f32.mrb[65].mxu1  ;;  %v11554_v54 = vrot.slane %v4259_v25, 1 }
 0x38b   : >> { %v3248_v27 = vpop.f32.mrb[66].mxu0  ;;  %v3118_v35 = vpop.f32.mrb[66].mxu1 }
 0x38c   : >> { %v8593_v51 = vpop.f32.mrb[67].mxu0  ;;  %v8561_v5 = vpop.f32.mrb[67].mxu1  ;;  %v11562_v8 = vsel %vm2818_vm12, %v4257_v2, %v11554_v54  ;;  %v9625_v35 = vld [vmem:[%s12567_s3 + $0x1e0] sm:$0xff]  }
 0x38e   : >> { %8843 = vmatmul.mubr.msk.bf16.gmra.mrb[172].mxu1 %vm222_vm0, %v11541_v31  ;;  %8875 = vmatmul.mubr.msk.bf16.gmra.mrb[172].mxu0 %vm222_vm0, %v11377_v55 }
 0x38f   : >> { %8846 = vmatprep.mubr.msk.bf16.mxu1 %vm9712_vm10, %v9711_v17  ;;  %8878 = vmatprep.mubr.msk.bf16.mxu0 %vm9712_vm10, %v9711_v17 }
 0x391   : >> { %v3253_v44 = vpop.f32.mrb[68].mxu0  ;;  %v3350_v34 = vpop.f32.mrb[68].mxu1 }
 0x392   : >> { %v11557_v40 = vadd.f32 %v3253_v44, %v3134_v59  ;;  %v3405_v12 = vadd.f32 %v3350_v34, %v11416_v10  ;;  %v8596_v46 = vpop.f32.mrb[69].mxu0  ;;  %v8608_v49 = vpop.f32.mrb[69].mxu1  ;;  %v4423_v10 = vor.u32 %v11566_v39, %v4259_v25 }
 0x393   : >> { %v3256_v37 = vpop.f32.mrb[70].mxu0  ;;  %v3353_v36 = vpop.f32.mrb[70].mxu1 }
 0x394   : >> { %v8597_v58 = vpop.f32.mrb[71].mxu0  ;;  %v8609_v9 = vpop.f32.mrb[71].mxu1  ;;  %v11582_v59 = vsel %vm2621_vm11, %v11381_v29, %v4423_v10  ;;  %v9627_v29 = vld [vmem:[%s12567_s3 + $0x1e8] sm:$0xff]   ;;  %v9629_v37 = vld [vmem:[%s12567_s3 + $0x1f0] sm:$0xff]  }
 0x396   : >> { %8847 = vmatmul.mubr.msk.bf16.gmra.mrb[176].mxu1 %vm222_vm0, %v11562_v8  ;;  %8879 = vmatmul.mubr.msk.bf16.gmra.mrb[176].mxu0 %vm222_vm0, %v11399_v15 }
 0x397   : >> { %8882 = vmatprep.mubr.msk.bf16.mxu0 %vm9712_vm10, %v9711_v17  ;;  %8894 = vmatprep.mubr.msk.bf16.mxu1 %vm9712_vm10, %v9711_v17 }
 0x399   : >> { %v3358_v4 = vpop.f32.mrb[72].mxu1  ;;  %v3494_v47 = vpop.f32.mrb[72].mxu0 }
 0x39a   : >> { %v3407_v26 = vadd.f32 %v3358_v4, %v11438_v52  ;;  %v11578_v62 = vadd.f32 %v3494_v47, %v3405_v12  ;;  %v8644_v13 = vpop.f32.mrb[73].mxu0  ;;  %v8612_v48 = vpop.f32.mrb[73].mxu1  ;;  %v9626_v12 = vld [vmem:[%s12567_s3 + $0x200] sm:$0xff]  }
 0x39b   : >> { %v3497_v1 = vpop.f32.mrb[74].mxu0  ;;  %v3361_v41 = vpop.f32.mrb[74].mxu1 }
 0x39c   : >> { %v8645_v16 = vpop.f32.mrb[75].mxu0  ;;  %v8613_v27 = vpop.f32.mrb[75].mxu1  ;;  %v9630_v41 = vld [vmem:[%s12567_s3 + $0x210] sm:$0xff]  }
 0x39e   : >> { %8883 = vmatmul.mubr.msk.bf16.gmra.mrb[180].mxu0 %vm222_vm0, %v11582_v59  ;;  %8895 = vmatmul.mubr.msk.bf16.vlgmr.msra.gmra.mrb[180].mxu1 %vm222_vm0, %v11214_v50 }
 0x39f   : >> { %8898 = vmatprep.mubr.msk.bf16.mxu1 %vm9712_vm10, %v9711_v17  ;;  %8930 = vmatprep.mubr.msk.bf16.mxu0 %vm9712_vm10, %v9711_v17 }
 0x3a0   : >> { %8959 = vmatpush3.bf16.msra.mxu1 %v9625_v35 }
 0x3a1   : >> { %v3366_v52 = vpop.f32.mrb[76].mxu1  ;;  %v3502_v25 = vpop.f32.mrb[76].mxu0  ;;  %8960 = vmatprep.subr.bf16.mxu1 %v9711_v17 }
 0x3a2   : >> { %v3409_v51 = vadd.f32 %v3366_v52, %v11470_v43  ;;  %v11600_v5 = vadd.f32 %v3502_v25, %v3407_v26  ;;  %v8648_v50 = vpop.f32.mrb[77].mxu0  ;;  %v8616_v2 = vpop.f32.mrb[77].mxu1  ;;  %v9628_v43 = vld [vmem:[%s12567_s3 + $0x208] sm:$0xff]  }
 0x3a3   : >> { %v3505_v44 = vpop.f32.mrb[78].mxu0  ;;  %v3369_v34 = vpop.f32.mrb[78].mxu1 }
 0x3a4   : >> { %v8649_v46 = vpop.f32.mrb[79].mxu0  ;;  %v8617_v49 = vpop.f32.mrb[79].mxu1  ;;  %8961 = vmatpush3.bf16.msra.mxu1 %v9627_v29 }
 0x3a5   : >> { %8962 = vmatprep.subr.bf16.mxu1 %v9711_v17 }
 0x3a6   : >> { %8899 = vmatmul.mubr.msk.bf16.gmra.mrb[184].mxu1 %vm222_vm0, %v11241_v53  ;;  %8931 = vmatmul.mubr.msk.bf16.vlgmr.msra.gmra.mrb[184].mxu0 %vm222_vm0, %v11441_v60  ;;  %v9631_v60 = vld [vmem:[%s12567_s3 + $0x1f8] sm:$0xff]  }
 0x3a7   : >> { %8995 = vmatpush3.bf16.msra.mxu0 %v9626_v12  ;;  %8902 = vmatprep.mubr.msk.bf16.mxu1 %vm9712_vm10, %v9711_v17 }
 0x3a8   : >> { %8934 = vmatprep.mubr.msk.bf16.mxu0 %vm9712_vm10, %v9711_v17  ;;  %8996 = vmatprep.subr.bf16.mxu0 %v9711_v17 }
 0x3a9   : >> { %v3374_v36 = vpop.f32.mrb[80].mxu1  ;;  %v3510_v58 = vpop.f32.mrb[80].mxu0  ;;  %8963 = vmatpush3.bf16.msra.mxu1 %v9629_v37 }
 0x3aa   : >> { %v3411_v9 = vadd.f32 %v3374_v36, %v11498_v7  ;;  %v11625_v10 = vadd.f32 %v3510_v58, %v3409_v51  ;;  %v8652_v4 = vpop.f32.mrb[81].mxu0  ;;  %v8620_v47 = vpop.f32.mrb[81].mxu1  ;;  %8964 = vmatprep.subr.bf16.mxu1 %v9711_v17  ;;  %v9632_v7 = vld [vmem:[%s12567_s3 + $0x218] sm:$0xff]  }
 0x3ab   : >> { %v3513_v26 = vpop.f32.mrb[82].mxu0  ;;  %v3377_v13 = vpop.f32.mrb[82].mxu1  ;;  %8997 = vmatpush3.bf16.msra.mxu0 %v9628_v43 }
 0x3ac   : >> { %v8653_v48 = vpop.f32.mrb[83].mxu0  ;;  %v8621_v1 = vpop.f32.mrb[83].mxu1  ;;  %8998 = vmatprep.subr.bf16.mxu0 %v9711_v17 }
 0x3ad   : >> { %8965 = vmatpush3.bf16.msra.mxu1 %v9631_v60 }
 0x3ae   : >> { %8903 = vmatmul.mubr.msk.bf16.gmra.mrb[188].mxu1 %vm222_vm0, %v11269_v42  ;;  %8935 = vmatmul.mubr.msk.bf16.gmra.mrb[188].mxu0 %vm222_vm0, %v11474_v32 }
 0x3af   : >> { %8906 = vmatprep.mubr.msk.bf16.mxu1 %vm9712_vm10, %v9711_v17  ;;  %8938 = vmatprep.mubr.msk.bf16.mxu0 %vm9712_vm10, %v9711_v17 }
 0x3b0   : >> { %8999 = vmatpush3.bf16.msra.mxu0 %v9630_v41  ;;  %9030 = vmatprep.subr.bf16.mxu1 %v9711_v17 }
 0x3b1   : >> { %v3382_v16 = vpop.f32.mrb[84].mxu1  ;;  %v3518_v27 = vpop.f32.mrb[84].mxu0  ;;  %9000 = vmatprep.subr.bf16.mxu0 %v9711_v17 }
 0x3b2   : >> { %v3413_v35 = vadd.f32 %v3382_v16, %v11517_v63  ;;  %v11646_v29 = vadd.f32 %v3518_v27, %v3411_v9  ;;  %v8656_v52 = vpop.f32.mrb[85].mxu0  ;;  %v8624_v25 = vpop.f32.mrb[85].mxu1 }
 0x3b3   : >> { %v3521_v51 = vpop.f32.mrb[86].mxu0  ;;  %v3385_v50 = vpop.f32.mrb[86].mxu1 }
 0x3b4   : >> { %v8657_v2 = vpop.f32.mrb[87].mxu0  ;;  %v8625_v44 = vpop.f32.mrb[87].mxu1  ;;  %9001 = vmatpush3.bf16.msra.mxu0 %v9632_v7 }
 0x3b5   : >> { %9066 = vmatprep.subr.bf16.mxu0 %v9711_v17 }
 0x3b6   : >> { %8907 = vmatmul.mubr.msk.bf16.gmra.mrb[192].mxu1 %vm222_vm0, %v11304_v30  ;;  %8939 = vmatmul.mubr.msk.bf16.gmra.mrb[192].mxu0 %vm222_vm0, %v11501_v28 }
 0x3b7   : >> { %8910 = vmatprep.mubr.msk.bf16.mxu1 %vm9712_vm10, %v9711_v17  ;;  %8942 = vmatprep.mubr.msk.bf16.mxu0 %vm9712_vm10, %v9711_v17 }
 0x3b9   : >> { %v3390_v63 = vpop.f32.mrb[88].mxu1  ;;  %v3526_v34 = vpop.f32.mrb[88].mxu0 }
 0x3ba   : >> { %v3415_v12 = vadd.f32 %v3390_v63, %v11538_v56  ;;  %v11658_v46 = vadd.f32 %v3526_v34, %v3413_v35  ;;  %v8660_v49 = vpop.f32.mrb[89].mxu0  ;;  %v8628_v37 = vpop.f32.mrb[89].mxu1 }
 0x3bb   : >> { %v3529_v43 = vpop.f32.mrb[90].mxu0  ;;  %v3393_v36 = vpop.f32.mrb[90].mxu1 }
 0x3bc   : >> { %v8661_v58 = vpop.f32.mrb[91].mxu0  ;;  %v8629_v60 = vpop.f32.mrb[91].mxu1 }
 0x3be   : >> { %8911 = vmatmul.mubr.msk.bf16.gmra.mrb[196].mxu1 %vm222_vm0, %v11336_v61  ;;  %8943 = vmatmul.mubr.msk.bf16.gmra.mrb[196].mxu0 %vm222_vm0, %v11520_v14 }
 0x3bf   : >> { %8914 = vmatprep.mubr.msk.bf16.mxu1 %vm9712_vm10, %v9711_v17  ;;  %8946 = vmatprep.mubr.msk.bf16.mxu0 %vm9712_vm10, %v9711_v17 }
 0x3c1   : >> { %v3398_v56 = vpop.f32.mrb[92].mxu1  ;;  %v3534_v9 = vpop.f32.mrb[92].mxu0 }
 0x3c2   : >> { %v3417_v4 = vadd.f32 %v3398_v56, %v11557_v40  ;;  %v11669_v47 = vadd.f32 %v3534_v9, %v3415_v12  ;;  %v8664_v26 = vpop.f32.mrb[93].mxu0  ;;  %v8632_v13 = vpop.f32.mrb[93].mxu1  ;;  %v11680_v40 = vld [vmem:[%s11192_s9 + $0x48] sm:$0xff] }
 0x3c3   : >> { %v3537_v48 = vpop.f32.mrb[94].mxu0  ;;  %v3401_v1 = vpop.f32.mrb[94].mxu1  ;;  %v4704_v44 = vshll.u32 %v11680_v40, 16 }
 0x3c4   : >> { %v8665_v41 = vpop.f32.mrb[95].mxu0  ;;  %v8633_v7 = vpop.f32.mrb[95].mxu1 }
 0x3c5   : >> { %v11699_v12 = vrot.slane %v4704_v44, 1 }
 0x3c6   : >> { %8915 = vmatmul.mubr.msk.bf16.gmra.mrb[200].mxu1 %vm222_vm0, %v11360_v11  ;;  %8947 = vmatmul.mubr.msk.bf16.gmra.mrb[200].mxu0 %vm222_vm0, %v11541_v31 }
 0x3c7   : >> { %8918 = vmatprep.mubr.msk.bf16.mxu1 %vm9712_vm10, %v9711_v17  ;;  %8950 = vmatprep.mubr.msk.bf16.mxu0 %vm9712_vm10, %v9711_v17 }
 0x3c9   : >> { %v3542_v16 = vpop.f32.mrb[96].mxu0  ;;  %v3632_v27 = vpop.f32.mrb[96].mxu1 }
 0x3ca   : >> { %v3687_v35 = vadd.f32 %v3632_v27, %v11578_v62  ;;  %v8668_v52 = vpop.f32.mrb[97].mxu0  ;;  %v8680_v25 = vpop.f32.mrb[97].mxu1  ;;  %v11683_v51 = vadd.f32 %v3542_v16, %v3417_v4  ;;  %v4702_v62 = vor.u32 %v4420_v0, %v11554_v54  ;;  %v9633_v0 = vld [vmem:[%s12567_s3 + $0x220] sm:$0xff]  }
 0x3cb   : >> { %v3545_v50 = vpop.f32.mrb[98].mxu0  ;;  %v3635_v2 = vpop.f32.mrb[98].mxu1 }
 0x3cc   : >> { %v8669_v63 = vpop.f32.mrb[99].mxu0  ;;  %v8681_v34 = vpop.f32.mrb[99].mxu1  ;;  %v11706_v9 = vsel %vm2818_vm12, %v4702_v62, %v11699_v12  ;;  %v9637_v50 = vld [vmem:[%s12567_s3 + $0x230] sm:$0xff]  }
 0x3ce   : >> { %8919 = vmatmul.mubr.msk.bf16.gmra.mrb[204].mxu1 %vm222_vm0, %v11535_v45  ;;  %8951 = vmatmul.mubr.msk.bf16.gmra.mrb[204].mxu0 %vm222_vm0, %v11562_v8 }
 0x3cf   : >> { %8954 = vmatprep.mubr.msk.bf16.mxu0 %vm9712_vm10, %v9711_v17  ;;  %8966 = vmatprep.mubr.msk.bf16.mxu1 %vm9712_vm10, %v9711_v17 }
 0x3d1   : >> { %v3640_v49 = vpop.f32.mrb[100].mxu1  ;;  %v3777_v37 = vpop.f32.mrb[100].mxu0 }
 0x3d2   : >> { %v3689_v43 = vadd.f32 %v3640_v49, %v11600_v5  ;;  %v8716_v36 = vpop.f32.mrb[101].mxu0  ;;  %v8684_v58 = vpop.f32.mrb[101].mxu1  ;;  %v11702_v60 = vadd.f32 %v3777_v37, %v3687_v35  ;;  %v9635_v5 = vld [vmem:[%s12567_s3 + $0x228] sm:$0xff]   ;;  %v9634_v35 = vld [vmem:[%s12567_s3 + $0x240] sm:$0xff]  }
 0x3d3   : >> { %v3780_v56 = vpop.f32.mrb[102].mxu0  ;;  %v3643_v4 = vpop.f32.mrb[102].mxu1 }
 0x3d4   : >> { %v8717_v26 = vpop.f32.mrb[103].mxu0  ;;  %v8685_v54 = vpop.f32.mrb[103].mxu1  ;;  %v9638_v56 = vld [vmem:[%s12567_s3 + $0x250] sm:$0xff]  }
 0x3d6   : >> { %8955 = vmatmul.mubr.msk.bf16.gmra.mrb[208].mxu0 %vm222_vm0, %v11706_v9  ;;  %8967 = vmatmul.mubr.msk.bf16.vlgmr.msra.gmra.mrb[208].mxu1 %vm222_vm0, %v11298_v38 }
 0x3d7   : >> { %8970 = vmatprep.mubr.msk.bf16.mxu1 %vm9712_vm10, %v9711_v17  ;;  %9002 = vmatprep.mubr.msk.bf16.mxu0 %vm9712_vm10, %v9711_v17 }
 0x3d8   : >> { %9031 = vmatpush3.bf16.msra.mxu1 %v9633_v0 }
 0x3d9   : >> { %v3648_v13 = vpop.f32.mrb[104].mxu1  ;;  %v3785_v48 = vpop.f32.mrb[104].mxu0  ;;  %9032 = vmatprep.subr.bf16.mxu1 %v9711_v17 }
 0x3da   : >> { %v3691_v1 = vadd.f32 %v3648_v13, %v11625_v10  ;;  %v8720_v41 = vpop.f32.mrb[105].mxu0  ;;  %v8688_v7 = vpop.f32.mrb[105].mxu1  ;;  %v11724_v38 = vadd.f32 %v3785_v48, %v3689_v43  ;;  %v9636_v10 = vld [vmem:[%s12567_s3 + $0x248] sm:$0xff]  }
 0x3db   : >> { %v3788_v16 = vpop.f32.mrb[106].mxu0  ;;  %v3651_v27 = vpop.f32.mrb[106].mxu1 }
 0x3dc   : >> { %v8721_v52 = vpop.f32.mrb[107].mxu0  ;;  %v8689_v25 = vpop.f32.mrb[107].mxu1  ;;  %9033 = vmatpush3.bf16.msra.mxu1 %v9635_v5 }
 0x3dd   : >> { %9034 = vmatprep.subr.bf16.mxu1 %v9711_v17 }
 0x3de   : >> { %8971 = vmatmul.mubr.msk.bf16.gmra.mrb[212].mxu1 %vm222_vm0, %v11330_v57  ;;  %9003 = vmatmul.mubr.msk.bf16.vlgmr.msra.gmra.mrb[212].mxu0 %vm222_vm0, %v11241_v53  ;;  %v9639_v53 = vld [vmem:[%s12567_s3 + $0x238] sm:$0xff]  }
 0x3df   : >> { %9067 = vmatpush3.bf16.msra.mxu0 %v9634_v35  ;;  %8974 = vmatprep.mubr.msk.bf16.mxu1 %vm9712_vm10, %v9711_v17 }
 0x3e0   : >> { %9006 = vmatprep.mubr.msk.bf16.mxu0 %vm9712_vm10, %v9711_v17  ;;  %9068 = vmatprep.subr.bf16.mxu0 %v9711_v17 }
 0x3e1   : >> { %v3656_v2 = vpop.f32.mrb[108].mxu1  ;;  %v3793_v63 = vpop.f32.mrb[108].mxu0  ;;  %9035 = vmatpush3.bf16.msra.mxu1 %v9637_v50 }
 0x3e2   : >> { %v3693_v57 = vadd.f32 %v3656_v2, %v11646_v29  ;;  %v8724_v34 = vpop.f32.mrb[109].mxu0  ;;  %v8692_v62 = vpop.f32.mrb[109].mxu1  ;;  %9036 = vmatprep.subr.bf16.mxu1 %v9711_v17  ;;  %v11750_v49 = vadd.f32 %v3793_v63, %v3691_v1  ;;  %v9640_v29 = vld [vmem:[%s12567_s3 + $0x258] sm:$0xff]  }
 0x3e3   : >> { %v3796_v37 = vpop.f32.mrb[110].mxu0  ;;  %v3659_v43 = vpop.f32.mrb[110].mxu1  ;;  %9069 = vmatpush3.bf16.msra.mxu0 %v9636_v10 }
 0x3e4   : >> { %v8725_v36 = vpop.f32.mrb[111].mxu0  ;;  %v8693_v58 = vpop.f32.mrb[111].mxu1  ;;  %9070 = vmatprep.subr.bf16.mxu0 %v9711_v17 }
 0x3e5   : >> { %9037 = vmatpush3.bf16.msra.mxu1 %v9639_v53 }
 0x3e6   : >> { %8975 = vmatmul.mubr.msk.bf16.gmra.mrb[216].mxu1 %vm222_vm0, %v11354_v33  ;;  %9007 = vmatmul.mubr.msk.bf16.gmra.mrb[216].mxu0 %vm222_vm0, %v11269_v42 }
 0x3e7   : >> { %8978 = vmatprep.mubr.msk.bf16.mxu1 %vm9712_vm10, %v9711_v17  ;;  %9010 = vmatprep.mubr.msk.bf16.mxu0 %vm9712_vm10, %v9711_v17 }
 0x3e8   : >> { %9071 = vmatpush3.bf16.msra.mxu0 %v9638_v56  ;;  %9102 = vmatprep.subr.bf16.mxu1 %v9711_v17 }
 0x3e9   : >> { %v3664_v4 = vpop.f32.mrb[112].mxu1  ;;  %v3801_v26 = vpop.f32.mrb[112].mxu0  ;;  %9072 = vmatprep.subr.bf16.mxu0 %v9711_v17 }
 0x3ea   : >> { %v3695_v33 = vadd.f32 %v3664_v4, %v11658_v46  ;;  %v8728_v42 = vpop.f32.mrb[113].mxu0  ;;  %v8696_v54 = vpop.f32.mrb[113].mxu1  ;;  %v11770_v0 = vadd.f32 %v3801_v26, %v3693_v57 }
 0x3eb   : >> { %v3804_v5 = vpop.f32.mrb[114].mxu0  ;;  %v3667_v13 = vpop.f32.mrb[114].mxu1 }
 0x3ec   : >> { %v8729_v48 = vpop.f32.mrb[115].mxu0  ;;  %v8697_v1 = vpop.f32.mrb[115].mxu1  ;;  %9073 = vmatpush3.bf16.msra.mxu0 %v9640_v29 }
 0x3ed   : >> { %9138 = vmatprep.subr.bf16.mxu0 %v9711_v17 }
 0x3ee   : >> { %8979 = vmatmul.mubr.msk.bf16.gmra.mrb[220].mxu1 %vm222_vm0, %v11377_v55  ;;  %9011 = vmatmul.mubr.msk.bf16.gmra.mrb[220].mxu0 %vm222_vm0, %v11304_v30  ;;  %v4847_v30 = vshrl.u32 %v11680_v40, 16 }
 0x3ef   : >> { %8982 = vmatprep.mubr.msk.bf16.mxu1 %vm9712_vm10, %v9711_v17  ;;  %9014 = vmatprep.mubr.msk.bf16.mxu0 %vm9712_vm10, %v9711_v17 }
 0x3f1   : >> { %v3672_v46 = vpop.f32.mrb[116].mxu1  ;;  %v3809_v41 = vpop.f32.mrb[116].mxu0 }
 0x3f2   : >> { %v3697_v7 = vadd.f32 %v3672_v46, %v11669_v47  ;;  %v8732_v16 = vpop.f32.mrb[117].mxu0  ;;  %v8700_v27 = vpop.f32.mrb[117].mxu1  ;;  %v11782_v35 = vadd.f32 %v3809_v41, %v3695_v33 }
 0x3f3   : >> { %v3812_v52 = vpop.f32.mrb[118].mxu0  ;;  %v3675_v55 = vpop.f32.mrb[118].mxu1 }
 0x3f4   : >> { %v8733_v25 = vpop.f32.mrb[119].mxu0  ;;  %v8701_v50 = vpop.f32.mrb[119].mxu1 }
 0x3f5   : >> { %v9641_v25 = vld [vmem:[%s12567_s3 + $0x260] sm:$0xff]   ;;  %v11838_v50 = vld [vmem:[%s11814_s25 + $0x10] sm:$0xff] }
 0x3f6   : >> { %8983 = vmatmul.mubr.msk.bf16.gmra.mrb[224].mxu1 %vm222_vm0, %v11399_v15  ;;  %9015 = vmatmul.mubr.msk.bf16.gmra.mrb[224].mxu0 %vm222_vm0, %v11336_v61  ;;  %v4849_v61 = vrot.slane %v4847_v30, 7 }
 0x3f7   : >> { %8986 = vmatprep.mubr.msk.bf16.mxu1 %vm9712_vm10, %v9711_v17  ;;  %9018 = vmatprep.mubr.msk.bf16.mxu0 %vm9712_vm10, %v9711_v17 }
 0x3f9   : >> { %v3680_v47 = vpop.f32.mrb[120].mxu1  ;;  %v3817_v10 = vpop.f32.mrb[120].mxu0 }
 0x3fa   : >> { %v3699_v2 = vadd.f32 %v3680_v47, %v11683_v51  ;;  %v8736_v63 = vpop.f32.mrb[121].mxu0  ;;  %v8704_v53 = vpop.f32.mrb[121].mxu1  ;;  %v11795_v57 = vadd.f32 %v3817_v10, %v3697_v7  ;;  %v4850_v51 = vor.u32 %v4849_v61, %v4704_v44  ;;  %v11817_v44 = vld [vmem:[%s11814_s25 + $0x8] sm:$0xff]  ;;  %v5303_v10 = vshrl.u32 %v11838_v50, 16 }
 0x3fb   : >> { %v3820_v15 = vpop.f32.mrb[122].mxu0  ;;  %v3683_v34 = vpop.f32.mrb[122].mxu1  ;;  %v5298_v27 = vshll.u32 %v11817_v44, 16 }
 0x3fc   : >> { %v8737_v62 = vpop.f32.mrb[123].mxu0  ;;  %v8705_v37 = vpop.f32.mrb[123].mxu1 }
 0x3fe   : >> { %8987 = vmatmul.mubr.msk.bf16.gmra.mrb[228].mxu1 %vm222_vm0, %v11582_v59  ;;  %9019 = vmatmul.mubr.msk.bf16.gmra.mrb[228].mxu0 %vm222_vm0, %v11360_v11  ;;  %v4851_v11 = vsel %vm2621_vm11, %v11566_v39, %v4850_v51  ;;  %v5295_v39 = vshrl.u32 %v11817_v44, 16 }
 0x3ff   : >> { %8990 = vmatprep.mubr.msk.bf16.mxu1 %vm9712_vm10, %v9711_v17  ;;  %9022 = vmatprep.mubr.msk.bf16.mxu0 %vm9712_vm10, %v9711_v17 }
 0x400   : >> { %v5297_v16 = vrot.slane %v5295_v39, 7 }
 0x401   : >> { %v3825_v43 = vpop.f32.mrb[124].mxu0  ;;  %v4010_v36 = vpop.f32.mrb[124].mxu1 }
 0x402   : >> { %v11809_v58 = vadd.f32 %v3825_v43, %v3699_v2  ;;  %v4065_v56 = vadd.f32 %v4010_v36, %v11702_v60  ;;  %v8740_v59 = vpop.f32.mrb[125].mxu0  ;;  %v8752_v29 = vpop.f32.mrb[125].mxu1  ;;  %v5270_v60 = vld [vmem:[%s11814_s25] sm:$0xff]  ;;  %v5300_v47 = vor.u32 %v5298_v27, %v5297_v16  ;;  %v9643_v2 = vld [vmem:[%s12567_s3 + $0x268] sm:$0xff]   ;;  %v5305_v36 = vrot.slane %v5303_v10, 7 }
 0x403   : >> { %v3828_v4 = vpop.f32.mrb[126].mxu0  ;;  %v4013_v26 = vpop.f32.mrb[126].mxu1  ;;  %v5291_v7 = vshrl.u32 %v5270_v60, 16  ;;  %v9642_v43 = vld [vmem:[%s12567_s3 + $0x280] sm:$0xff]   ;;  %v9647_v60 = vld [vmem:[%s12567_s3 + $0x278] sm:$0xff]  }
 0x404   : >> { %v8741_v33 = vpop.f32.mrb[127].mxu0  ;;  %v8753_v42 = vpop.f32.mrb[127].mxu1  ;;  %v9645_v4 = vld [vmem:[%s12567_s3 + $0x270] sm:$0xff]   ;;  %v9644_v26 = vld [vmem:[%s12567_s3 + $0x288] sm:$0xff]  }
 0x406   : >> { %8991 = vmatmul.mubr.msk.bf16.gmra.mrb[232].mxu1 %vm222_vm0, %v4851_v11  ;;  %9023 = vmatmul.mubr.msk.bf16.gmra.mrb[232].mxu0 %vm222_vm0, %v11535_v45 }
 0x407   : >> { %9026 = vmatprep.mubr.msk.bf16.mxu0 %vm9712_vm10, %v9711_v17  ;;  %9038 = vmatprep.mubr.msk.bf16.mxu1 %vm9712_vm10, %v9711_v17 }
 0x409   : >> { %v4018_v54 = vpop.f32.mrb[128].mxu1  ;;  %v4160_v5 = vpop.f32.mrb[128].mxu0 }
 0x40a   : >> { %v4067_v13 = vadd.f32 %v4018_v54, %v11724_v38  ;;  %v11829_v48 = vadd.f32 %v4160_v5, %v4065_v56  ;;  %v8788_v1 = vpop.f32.mrb[129].mxu0  ;;  %v8756_v46 = vpop.f32.mrb[129].mxu1  ;;  %v5293_v38 = vrot.slane %v5291_v7, 7  ;;  %v5306_v56 = vshll.u32 %v11838_v50, 16 }
 0x40b   : >> { %v4163_v41 = vpop.f32.mrb[130].mxu0  ;;  %v4021_v45 = vpop.f32.mrb[130].mxu1 }
 0x40c   : >> { %v8789_v52 = vpop.f32.mrb[131].mxu0  ;;  %v8757_v55 = vpop.f32.mrb[131].mxu1  ;;  %v5301_v37 = vsel %vm2621_vm11, %v5293_v38, %v5300_v47  ;;  %v5308_v11 = vor.u32 %v5306_v56, %v5305_v36  ;;  %v9646_v38 = vld [vmem:[%s12567_s3 + $0x290] sm:$0xff]  }
 0x40e   : >> { %9027 = vmatmul.mubr.msk.bf16.gmra.mrb[236].mxu0 %vm222_vm0, %v11680_v40  ;;  %9039 = vmatmul.mubr.msk.bf16.vlgmr.msra.gmra.mrb[236].mxu1 %vm222_vm0, %v11474_v32  ;;  %v11894_v41 = vsel %vm2621_vm11, %v5297_v16, %v5308_v11  ;;  %v11932_v11 = vld [vmem:[%s11814_s25 + $0x28] sm:$0xff] }
 0x40f   : >> { %9042 = vmatprep.mubr.msk.bf16.mxu1 %vm9712_vm10, %v9711_v17  ;;  %9074 = vmatprep.mubr.msk.bf16.mxu0 %vm9712_vm10, %v9711_v17 }
 0x410   : >> { %9103 = vmatpush3.bf16.msra.mxu1 %v9641_v25 }
 0x411   : >> { %v4026_v63 = vpop.f32.mrb[132].mxu1  ;;  %v4168_v32 = vpop.f32.mrb[132].mxu0  ;;  %9104 = vmatprep.subr.bf16.mxu1 %v9711_v17 }
 0x412   : >> { %v4069_v53 = vadd.f32 %v4026_v63, %v11750_v49  ;;  %v11856_v15 = vadd.f32 %v4168_v32, %v4067_v13  ;;  %v8792_v34 = vpop.f32.mrb[133].mxu0  ;;  %v8760_v61 = vpop.f32.mrb[133].mxu1  ;;  %v11866_v49 = vld [vmem:[%s11814_s25 + $0x18] sm:$0xff] }
 0x413   : >> { %v4171_v62 = vpop.f32.mrb[134].mxu0  ;;  %v4029_v51 = vpop.f32.mrb[134].mxu1  ;;  %v5311_v33 = vshrl.u32 %v11866_v49, 16  ;;  %v5314_v52 = vshll.u32 %v11866_v49, 16 }
 0x414   : >> { %v8793_v59 = vpop.f32.mrb[135].mxu0  ;;  %v8761_v29 = vpop.f32.mrb[135].mxu1  ;;  %9105 = vmatpush3.bf16.msra.mxu1 %v9643_v2  ;;  %v9648_v2 = vld [vmem:[%s12567_s3 + $0x298] sm:$0xff]  }
 0x415   : >> { %9106 = vmatprep.subr.bf16.mxu1 %v9711_v17  ;;  %v5313_v7 = vrot.slane %v5311_v33, 7 }
 0x416   : >> { %9043 = vmatmul.mubr.msk.bf16.gmra.mrb[240].mxu1 %vm222_vm0, %v11501_v28  ;;  %9075 = vmatmul.mubr.msk.bf16.vlgmr.msra.gmra.mrb[240].mxu0 %vm222_vm0, %v5301_v37 }
 0x417   : >> { %9139 = vmatpush3.bf16.msra.mxu0 %v9642_v43  ;;  %9046 = vmatprep.mubr.msk.bf16.mxu1 %vm9712_vm10, %v9711_v17  ;;  %v5316_v16 = vor.u32 %v5314_v52, %v5313_v7 }
 0x418   : >> { %9078 = vmatprep.mubr.msk.bf16.mxu0 %vm9712_vm10, %v9711_v17  ;;  %9140 = vmatprep.subr.bf16.mxu0 %v9711_v17 }
 0x419   : >> { %v4034_v28 = vpop.f32.mrb[136].mxu1  ;;  %v4176_v42 = vpop.f32.mrb[136].mxu0  ;;  %9107 = vmatpush3.bf16.msra.mxu1 %v9645_v4  ;;  %v11926_v37 = vsel %vm2621_vm11, %v5305_v36, %v5316_v16  ;;  %v5327_v36 = vshrl.u32 %v11932_v11, 16  ;;  %v11956_v16 = vld [vmem:[%s11814_s25 + $0x30] sm:$0xff] }
 0x41a   : >> { %v4071_v54 = vadd.f32 %v4034_v28, %v11770_v0  ;;  %v11890_v5 = vadd.f32 %v4176_v42, %v4069_v53  ;;  %v8796_v13 = vpop.f32.mrb[137].mxu0  ;;  %v8764_v1 = vpop.f32.mrb[137].mxu1  ;;  %9108 = vmatprep.subr.bf16.mxu1 %v9711_v17  ;;  %v11900_v0 = vld [vmem:[%s11814_s25 + $0x20] sm:$0xff] }
 0x41b   : >> { %v4179_v46 = vpop.f32.mrb[138].mxu0  ;;  %v4037_v45 = vpop.f32.mrb[138].mxu1  ;;  %9141 = vmatpush3.bf16.msra.mxu0 %v9644_v26  ;;  %v5319_v47 = vshrl.u32 %v11900_v0, 16  ;;  %v5322_v59 = vshll.u32 %v11900_v0, 16 }
 0x41c   : >> { %v8797_v55 = vpop.f32.mrb[139].mxu0  ;;  %v8765_v25 = vpop.f32.mrb[139].mxu1  ;;  %9142 = vmatprep.subr.bf16.mxu0 %v9711_v17  ;;  %v5329_v45 = vrot.slane %v5327_v36, 7 }
 0x41d   : >> { %9109 = vmatpush3.bf16.msra.mxu1 %v9647_v60  ;;  %v5321_v43 = vrot.slane %v5319_v47, 7  ;;  %v5330_v55 = vshll.u32 %v11932_v11, 16 }
 0x41e   : >> { %9047 = vmatmul.mubr.msk.bf16.gmra.mrb[244].mxu1 %vm222_vm0, %v11520_v14  ;;  %9079 = vmatmul.mubr.msk.bf16.gmra.mrb[244].mxu0 %vm222_vm0, %v11894_v41 }
 0x41f   : >> { %9050 = vmatprep.mubr.msk.bf16.mxu1 %vm9712_vm10, %v9711_v17  ;;  %9082 = vmatprep.mubr.msk.bf16.mxu0 %vm9712_vm10, %v9711_v17 }
 0x420   : >> { %9143 = vmatpush3.bf16.msra.mxu0 %v9646_v38  ;;  %9174 = vmatprep.subr.bf16.mxu1 %v9711_v17 }
 0x421   : >> { %v4042_v14 = vpop.f32.mrb[140].mxu1  ;;  %v4184_v63 = vpop.f32.mrb[140].mxu0  ;;  %9144 = vmatprep.subr.bf16.mxu0 %v9711_v17 }
 0x422   : >> { %v4073_v32 = vadd.f32 %v4042_v14, %v11782_v35  ;;  %v11923_v53 = vadd.f32 %v4184_v63, %v4071_v54  ;;  %v8800_v34 = vpop.f32.mrb[141].mxu0  ;;  %v8768_v61 = vpop.f32.mrb[141].mxu1  ;;  %v5324_v35 = vor.u32 %v5322_v59, %v5321_v43 }
 0x423   : >> { %v4187_v62 = vpop.f32.mrb[142].mxu0  ;;  %v4045_v51 = vpop.f32.mrb[142].mxu1 }
 0x424   : >> { %v8801_v29 = vpop.f32.mrb[143].mxu0  ;;  %v8769_v4 = vpop.f32.mrb[143].mxu1  ;;  %9145 = vmatpush3.bf16.msra.mxu0 %v9648_v2  ;;  %v11950_v1 = vsel %vm2621_vm11, %v5313_v7, %v5324_v35  ;;  %v5335_v7 = vshrl.u32 %v11956_v16, 16  ;;  %v3861_v2 = vld [vmem:[%s11192_s9 + $0x50] sm:$0xff] }
 0x425   : >> { %9210 = vmatprep.subr.bf16.mxu0 %v9711_v17  ;;  %v5131_v4 = vshll.u32 %v3861_v2, 16 }
 0x426   : >> { %9051 = vmatmul.mubr.msk.bf16.gmra.mrb[248].mxu1 %vm222_vm0, %v11541_v31  ;;  %9083 = vmatmul.mubr.msk.bf16.gmra.mrb[248].mxu0 %vm222_vm0, %v11926_v37  ;;  %v5337_v35 = vrot.slane %v5335_v7, 7 }
 0x427   : >> { %9054 = vmatprep.mubr.msk.bf16.mxu1 %vm9712_vm10, %v9711_v17  ;;  %9086 = vmatprep.mubr.msk.bf16.mxu0 %vm9712_vm10, %v9711_v17 }
 0x429   : >> { %v4050_v26 = vpop.f32.mrb[144].mxu1  ;;  %v4192_v28 = vpop.f32.mrb[144].mxu0 }
 0x42a   : >> { %v4075_v42 = vadd.f32 %v4050_v26, %v11795_v57  ;;  %v11947_v31 = vadd.f32 %v4192_v28, %v4073_v32  ;;  %v8804_v60 = vpop.f32.mrb[145].mxu0  ;;  %v8772_v54 = vpop.f32.mrb[145].mxu1  ;;  %v5332_v57 = vor.u32 %v5330_v55, %v5329_v45  ;;  %v5338_v26 = vshll.u32 %v11956_v16, 16 }
 0x42b   : >> { %v4195_v13 = vpop.f32.mrb[146].mxu0  ;;  %v4053_v46 = vpop.f32.mrb[146].mxu1  ;;  %v11980_v54 = vld [vmem:[%s11814_s25 + $0x38] sm:$0xff] }
 0x42c   : >> { %v8805_v25 = vpop.f32.mrb[147].mxu0  ;;  %v8773_v38 = vpop.f32.mrb[147].mxu1  ;;  %v11974_v51 = vsel %vm2621_vm11, %v5321_v43, %v5332_v57  ;;  %v5133_v43 = vrot.slane %v5131_v4, 1  ;;  %v5343_v13 = vshrl.u32 %v11980_v54, 16 }
 0x42e   : >> { %9055 = vmatmul.mubr.msk.bf16.gmra.mrb[252].mxu1 %vm222_vm0, %v11562_v8  ;;  %9087 = vmatmul.mubr.msk.bf16.gmra.mrb[252].mxu0 %vm222_vm0, %v11950_v1 }
 0x42f   : >> { %9058 = vmatprep.mubr.msk.bf16.mxu1 %vm9712_vm10, %v9711_v17  ;;  %9090 = vmatprep.mubr.msk.bf16.mxu0 %vm9712_vm10, %v9711_v17 }
 0x431   : >> { %v4058_v14 = vpop.f32.mrb[148].mxu1  ;;  %v4200_v63 = vpop.f32.mrb[148].mxu0 }
 0x432   : >> { %v4077_v8 = vadd.f32 %v4058_v14, %v11809_v58  ;;  %v11971_v32 = vadd.f32 %v4200_v63, %v4075_v42  ;;  %v8808_v34 = vpop.f32.mrb[149].mxu0  ;;  %v8776_v61 = vpop.f32.mrb[149].mxu1  ;;  %v5129_v58 = vor.u32 %v4847_v30, %v11699_v12  ;;  %v5340_v42 = vor.u32 %v5338_v26, %v5337_v35 }
 0x433   : >> { %v4203_v62 = vpop.f32.mrb[150].mxu0  ;;  %v4061_v29 = vpop.f32.mrb[150].mxu1  ;;  %v12005_v63 = vrot.slane %v5343_v13, 7  ;;  %v5346_v34 = vshll.u32 %v11980_v54, 16 }
 0x434   : >> { %v8809_v28 = vpop.f32.mrb[151].mxu0  ;;  %v8777_v60 = vpop.f32.mrb[151].mxu1  ;;  %v5134_v57 = vsel %vm2818_vm12, %v5129_v58, %v5133_v43  ;;  %v12001_v2 = vsel %vm2621_vm11, %v5329_v45, %v5340_v42  ;;  %v5657_v58 = vrot.slane %v5298_v27, 1 }
 0x436   : >> { %9059 = vmatmul.mubr.msk.bf16.gmra.mrb[0].mxu1 %vm222_vm0, %v11706_v9  ;;  %9091 = vmatmul.mubr.msk.bf16.gmra.mrb[0].mxu0 %vm222_vm0, %v11974_v51  ;;  %v5658_v27 = vor.u32 %v5657_v58, %v5295_v39 }
 0x437   : >> { %9062 = vmatprep.mubr.msk.bf16.mxu1 %vm9712_vm10, %v9711_v17  ;;  %9094 = vmatprep.mubr.msk.bf16.mxu0 %vm9712_vm10, %v9711_v17 }
 0x439   : >> { %v4208_v9 = vpop.f32.mrb[152].mxu0  ;;  %v4342_v46 = vpop.f32.mrb[152].mxu1 }
 0x43a   : >> { %v11996_v25 = vadd.f32 %v4208_v9, %v4077_v8  ;;  %v4397_v38 = vadd.f32 %v4342_v46, %v11829_v48  ;;  %v8812_v40 = vpop.f32.mrb[153].mxu0  ;;  %v8824_v12 = vpop.f32.mrb[153].mxu1  ;;  %v5348_v48 = vor.u32 %v5346_v34, %v12005_v63 }
 0x43b   : >> { %v4211_v30 = vpop.f32.mrb[154].mxu0  ;;  %v4345_v14 = vpop.f32.mrb[154].mxu1  ;;  %v9649_v12 = vld [vmem:[%s12567_s3 + $0x2a0] sm:$0xff]  }
 0x43c   : >> { %v8813_v61 = vpop.f32.mrb[155].mxu0  ;;  %v8825_v8 = vpop.f32.mrb[155].mxu1  ;;  %v12024_v42 = vsel %vm2621_vm11, %v5337_v35, %v5348_v48  ;;  %v9651_v35 = vld [vmem:[%s12567_s3 + $0x2a8] sm:$0xff]   ;;  %v9650_v48 = vld [vmem:[%s12567_s3 + $0x2c0] sm:$0xff]  }
 0x43e   : >> { %9063 = vmatmul.mubr.msk.bf16.gmra.mrb[4].mxu1 %vm222_vm0, %v5134_v57  ;;  %9095 = vmatmul.mubr.msk.bf16.gmra.mrb[4].mxu0 %vm222_vm0, %v12001_v2 }
 0x43f   : >> { %9098 = vmatprep.mubr.msk.bf16.mxu0 %vm9712_vm10, %v9711_v17  ;;  %9110 = vmatprep.mubr.msk.bf16.mxu1 %vm9712_vm10, %v9711_v17 }
 0x441   : >> { %v4350_v45 = vpop.f32.mrb[156].mxu1  ;;  %v4486_v62 = vpop.f32.mrb[156].mxu0 }
 0x442   : >> { %v4399_v29 = vadd.f32 %v4350_v45, %v11856_v15  ;;  %v12019_v4 = vadd.f32 %v4486_v62, %v4397_v38  ;;  %v8860_v28 = vpop.f32.mrb[157].mxu0  ;;  %v8828_v60 = vpop.f32.mrb[157].mxu1  ;;  %v5659_v15 = vrot.slane %v5306_v56, 1 }
 0x443   : >> { %v4489_v43 = vpop.f32.mrb[158].mxu0  ;;  %v4353_v9 = vpop.f32.mrb[158].mxu1  ;;  %v5662_v28 = vrot.slane %v5314_v52, 1  ;;  %v9652_v60 = vld [vmem:[%s12567_s3 + $0x2c8] sm:$0xff]  }
 0x444   : >> { %v8861_v46 = vpop.f32.mrb[159].mxu0  ;;  %v8829_v40 = vpop.f32.mrb[159].mxu1  ;;  %v5660_v14 = vsel %vm2818_vm12, %v5658_v27, %v5659_v15 }
 0x446   : >> { %9099 = vmatmul.mubr.msk.bf16.gmra.mrb[8].mxu0 %vm222_vm0, %v12024_v42  ;;  %9111 = vmatmul.mubr.msk.bf16.vlgmr.msra.gmra.mrb[8].mxu1 %vm222_vm0, %v11817_v44 }
 0x447   : >> { %9114 = vmatprep.mubr.msk.bf16.mxu1 %vm9712_vm10, %v9711_v17  ;;  %9146 = vmatprep.mubr.msk.bf16.mxu0 %vm9712_vm10, %v9711_v17 }
 0x448   : >> { %9175 = vmatpush3.bf16.msra.mxu1 %v9649_v12 }
 0x449   : >> { %v4358_v38 = vpop.f32.mrb[160].mxu1  ;;  %v4494_v30 = vpop.f32.mrb[160].mxu0  ;;  %9176 = vmatprep.subr.bf16.mxu1 %v9711_v17 }
 0x44a   : >> { %v4401_v44 = vadd.f32 %v4358_v38, %v11890_v5  ;;  %v12046_v39 = vadd.f32 %v4494_v30, %v4399_v29  ;;  %v8864_v56 = vpop.f32.mrb[161].mxu0  ;;  %v8832_v57 = vpop.f32.mrb[161].mxu1  ;;  %v9653_v5 = vld [vmem:[%s12567_s3 + $0x2b0] sm:$0xff]   ;;  %v5661_v29 = vor.u32 %v5659_v15, %v5303_v10  ;;  %v9655_v10 = vld [vmem:[%s12567_s3 + $0x2b8] sm:$0xff]   ;;  %v5664_v30 = vor.u32 %v5662_v28, %v5311_v33 }
 0x44b   : >> { %v4497_v61 = vpop.f32.mrb[162].mxu0  ;;  %v4361_v8 = vpop.f32.mrb[162].mxu1  ;;  %v9656_v56 = vld [vmem:[%s12567_s3 + $0x2d8] sm:$0xff]  }
 0x44c   : >> { %v8865_v45 = vpop.f32.mrb[163].mxu0  ;;  %v8833_v62 = vpop.f32.mrb[163].mxu1  ;;  %9177 = vmatpush3.bf16.msra.mxu1 %v9651_v35  ;;  %v12079_v27 = vsel %vm2818_vm12, %v5661_v29, %v5662_v28  ;;  %v5668_v28 = vrot.slane %v5330_v55, 1 }
 0x44d   : >> { %9178 = vmatprep.subr.bf16.mxu1 %v9711_v17 }
 0x44e   : >> { %9115 = vmatmul.mubr.msk.bf16.gmra.mrb[12].mxu1 %vm222_vm0, %v11838_v50  ;;  %9147 = vmatmul.mubr.msk.bf16.vlgmr.msra.gmra.mrb[12].mxu0 %vm222_vm0, %v5660_v14  ;;  %v5670_v55 = vor.u32 %v5668_v28, %v5327_v36 }
 0x44f   : >> { %9211 = vmatpush3.bf16.msra.mxu0 %v9650_v48  ;;  %9118 = vmatprep.mubr.msk.bf16.mxu1 %vm9712_vm10, %v9711_v17 }
 0x450   : >> { %9150 = vmatprep.mubr.msk.bf16.mxu0 %vm9712_vm10, %v9711_v17  ;;  %9212 = vmatprep.subr.bf16.mxu0 %v9711_v17 }
 0x451   : >> { %v4366_v58 = vpop.f32.mrb[164].mxu1  ;;  %v4502_v43 = vpop.f32.mrb[164].mxu0  ;;  %9179 = vmatpush3.bf16.msra.mxu1 %v9653_v5 }
 0x452   : >> { %v4403_v52 = vadd.f32 %v4366_v58, %v11923_v53  ;;  %v12075_v9 = vadd.f32 %v4502_v43, %v4401_v44  ;;  %v8868_v46 = vpop.f32.mrb[165].mxu0  ;;  %v8836_v40 = vpop.f32.mrb[165].mxu1  ;;  %9180 = vmatprep.subr.bf16.mxu1 %v9711_v17  ;;  %v9654_v53 = vld [vmem:[%s12567_s3 + $0x2d0] sm:$0xff]   ;;  %v5665_v44 = vrot.slane %v5322_v59, 1 }
 0x453   : >> { %v4505_v12 = vpop.f32.mrb[166].mxu0  ;;  %v4369_v15 = vpop.f32.mrb[166].mxu1  ;;  %9213 = vmatpush3.bf16.msra.mxu0 %v9652_v60 }
 0x454   : >> { %v8869_v35 = vpop.f32.mrb[167].mxu0  ;;  %v8837_v38 = vpop.f32.mrb[167].mxu1  ;;  %9214 = vmatprep.subr.bf16.mxu0 %v9711_v17  ;;  %v12106_v45 = vsel %vm2818_vm12, %v5664_v30, %v5665_v44 }
 0x455   : >> { %9181 = vmatpush3.bf16.msra.mxu1 %v9655_v10 }
 0x456   : >> { %9119 = vmatmul.mubr.msk.bf16.gmra.mrb[16].mxu1 %vm222_vm0, %v11866_v49  ;;  %9151 = vmatmul.mubr.msk.bf16.gmra.mrb[16].mxu0 %vm222_vm0, %v12079_v27 }
 0x457   : >> { %9122 = vmatprep.mubr.msk.bf16.mxu1 %vm9712_vm10, %v9711_v17  ;;  %9154 = vmatprep.mubr.msk.bf16.mxu0 %vm9712_vm10, %v9711_v17 }
 0x458   : >> { %9215 = vmatpush3.bf16.msra.mxu0 %v9654_v53  ;;  %9246 = vmatprep.subr.bf16.mxu1 %v9711_v17 }
 0x459   : >> { %v4374_v57 = vpop.f32.mrb[168].mxu1  ;;  %v4510_v14 = vpop.f32.mrb[168].mxu0  ;;  %9216 = vmatprep.subr.bf16.mxu0 %v9711_v17 }
 0x45a   : >> { %v4405_v33 = vadd.f32 %v4374_v57, %v11947_v31  ;;  %v12103_v59 = vadd.f32 %v4510_v14, %v4403_v52  ;;  %v8872_v61 = vpop.f32.mrb[169].mxu0  ;;  %v8840_v8 = vpop.f32.mrb[169].mxu1  ;;  %v5667_v31 = vor.u32 %v5665_v44, %v5319_v47 }
 0x45b   : >> { %v4513_v48 = vpop.f32.mrb[170].mxu0  ;;  %v4377_v62 = vpop.f32.mrb[170].mxu1 }
 0x45c   : >> { %v8873_v5 = vpop.f32.mrb[171].mxu0  ;;  %v8841_v29 = vpop.f32.mrb[171].mxu1  ;;  %9217 = vmatpush3.bf16.msra.mxu0 %v9656_v56  ;;  %v12125_v47 = vsel %vm2818_vm12, %v5667_v31, %v5668_v28 }
 0x45d   : >> { %9282 = vmatprep.subr.bf16.mxu0 %v9711_v17 }
 0x45e   : >> { %9123 = vmatmul.mubr.msk.bf16.gmra.mrb[20].mxu1 %vm222_vm0, %v11900_v0  ;;  %9155 = vmatmul.mubr.msk.bf16.gmra.mrb[20].mxu0 %vm222_vm0, %v12106_v45 }
 0x45f   : >> { %9126 = vmatprep.mubr.msk.bf16.mxu1 %vm9712_vm10, %v9711_v17  ;;  %9158 = vmatprep.mubr.msk.bf16.mxu0 %vm9712_vm10, %v9711_v17 }
 0x461   : >> { %v4382_v60 = vpop.f32.mrb[172].mxu1  ;;  %v4518_v58 = vpop.f32.mrb[172].mxu0 }
 0x462   : >> { %v4407_v43 = vadd.f32 %v4382_v60, %v11971_v32  ;;  %v12122_v10 = vadd.f32 %v4518_v58, %v4405_v33  ;;  %v8876_v52 = vpop.f32.mrb[173].mxu0  ;;  %v8844_v46 = vpop.f32.mrb[173].mxu1  ;;  %v5671_v32 = vrot.slane %v5338_v26, 1  ;;  %v5674_v26 = vrot.slane %v5346_v34, 1 }
 0x463   : >> { %v4521_v40 = vpop.f32.mrb[174].mxu0  ;;  %v4385_v12 = vpop.f32.mrb[174].mxu1 }
 0x464   : >> { %v8877_v15 = vpop.f32.mrb[175].mxu0  ;;  %v8845_v35 = vpop.f32.mrb[175].mxu1  ;;  %v12143_v33 = vsel %vm2818_vm12, %v5670_v55, %v5671_v32  ;;  %v5673_v36 = vor.u32 %v5671_v32, %v5335_v7  ;;  %v5676_v34 = vor.u32 %v5674_v26, %v5343_v13 }
 0x466   : >> { %9127 = vmatmul.mubr.msk.bf16.gmra.mrb[24].mxu1 %vm222_vm0, %v11932_v11  ;;  %9159 = vmatmul.mubr.msk.bf16.gmra.mrb[24].mxu0 %vm222_vm0, %v12125_v47 }
 0x467   : >> { %9130 = vmatprep.mubr.msk.bf16.mxu1 %vm9712_vm10, %v9711_v17  ;;  %9162 = vmatprep.mubr.msk.bf16.mxu0 %vm9712_vm10, %v9711_v17 }
 0x469   : >> { %v4390_v38 = vpop.f32.mrb[176].mxu1  ;;  %v4526_v53 = vpop.f32.mrb[176].mxu0 }
 0x46a   : >> { %v4409_v30 = vadd.f32 %v4390_v38, %v11996_v25  ;;  %v12140_v44 = vadd.f32 %v4526_v53, %v4407_v43  ;;  %v8880_v56 = vpop.f32.mrb[177].mxu0  ;;  %v8848_v57 = vpop.f32.mrb[177].mxu1  ;;  %v12158_v25 = vld [vmem:[%s11814_s25 + $0x40] sm:$0xff]  ;;  %v12164_v43 = vsel %vm2818_vm12, %v5673_v36, %v5674_v26 }
 0x46b   : >> { %v4529_v14 = vpop.f32.mrb[178].mxu0  ;;  %v4393_v61 = vpop.f32.mrb[178].mxu1  ;;  %v5678_v7 = vshll.u32 %v12158_v25, 16 }
 0x46c   : >> { %v8881_v8 = vpop.f32.mrb[179].mxu0  ;;  %v8849_v48 = vpop.f32.mrb[179].mxu1  ;;  %v9657_v14 = vld [vmem:[%s12567_s3 + $0x2e0] sm:$0xff]  }
 0x46e   : >> { %9131 = vmatmul.mubr.msk.bf16.gmra.mrb[28].mxu1 %vm222_vm0, %v11956_v16  ;;  %9163 = vmatmul.mubr.msk.bf16.gmra.mrb[28].mxu0 %vm222_vm0, %v12143_v33 }
 0x46f   : >> { %9134 = vmatprep.mubr.msk.bf16.mxu1 %vm9712_vm10, %v9711_v17  ;;  %9166 = vmatprep.mubr.msk.bf16.mxu0 %vm9712_vm10, %v9711_v17 }
 0x471   : >> { %v4534_v62 = vpop.f32.mrb[180].mxu0  ;;  %v4624_v5 = vpop.f32.mrb[180].mxu1 }
 0x472   : >> { %v12160_v29 = vadd.f32 %v4534_v62, %v4409_v30  ;;  %v4679_v31 = vadd.f32 %v4624_v5, %v12019_v4  ;;  %v8884_v28 = vpop.f32.mrb[181].mxu0  ;;  %v8896_v60 = vpop.f32.mrb[181].mxu1  ;;  %v12179_v4 = vrot.slane %v5678_v7, 1 }
 0x473   : >> { %v4537_v58 = vpop.f32.mrb[182].mxu0  ;;  %v4627_v52 = vpop.f32.mrb[182].mxu1 }
 0x474   : >> { %v8885_v46 = vpop.f32.mrb[183].mxu0  ;;  %v8897_v40 = vpop.f32.mrb[183].mxu1  ;;  %v12186_v30 = vsel %vm2818_vm12, %v5676_v34, %v12179_v4  ;;  %v9661_v58 = vld [vmem:[%s12567_s3 + $0x2f0] sm:$0xff]  }
 0x476   : >> { %9135 = vmatmul.mubr.msk.bf16.gmra.mrb[32].mxu1 %vm222_vm0, %v11980_v54  ;;  %9167 = vmatmul.mubr.msk.bf16.gmra.mrb[32].mxu0 %vm222_vm0, %v12164_v43 }
 0x477   : >> { %9170 = vmatprep.mubr.msk.bf16.mxu0 %vm9712_vm10, %v9711_v17  ;;  %9182 = vmatprep.mubr.msk.bf16.mxu1 %vm9712_vm10, %v9711_v17 }
 0x479   : >> { %v4632_v12 = vpop.f32.mrb[184].mxu1  ;;  %v4769_v15 = vpop.f32.mrb[184].mxu0 }
 0x47a   : >> { %v4681_v35 = vadd.f32 %v4632_v12, %v12046_v39  ;;  %v12182_v55 = vadd.f32 %v4769_v15, %v4679_v31  ;;  %v8932_v32 = vpop.f32.mrb[185].mxu0  ;;  %v8900_v38 = vpop.f32.mrb[185].mxu1  ;;  %v9659_v39 = vld [vmem:[%s12567_s3 + $0x2e8] sm:$0xff]   ;;  %v9658_v31 = vld [vmem:[%s12567_s3 + $0x300] sm:$0xff]  }
 0x47b   : >> { %v4772_v53 = vpop.f32.mrb[186].mxu0  ;;  %v4635_v56 = vpop.f32.mrb[186].mxu1 }
 0x47c   : >> { %v8933_v57 = vpop.f32.mrb[187].mxu0  ;;  %v8901_v13 = vpop.f32.mrb[187].mxu1  ;;  %v9662_v56 = vld [vmem:[%s12567_s3 + $0x310] sm:$0xff]  }
 0x47e   : >> { %9171 = vmatmul.mubr.msk.bf16.gmra.mrb[36].mxu0 %vm222_vm0, %v12186_v30  ;;  %9183 = vmatmul.mubr.msk.bf16.vlgmr.msra.gmra.mrb[36].mxu1 %vm222_vm0, %v11894_v41 }
 0x47f   : >> { %9186 = vmatprep.mubr.msk.bf16.mxu1 %vm9712_vm10, %v9711_v17  ;;  %9218 = vmatprep.mubr.msk.bf16.mxu0 %vm9712_vm10, %v9711_v17 }
 0x480   : >> { %9247 = vmatpush3.bf16.msra.mxu1 %v9657_v14 }
 0x481   : >> { %v4640_v61 = vpop.f32.mrb[188].mxu1  ;;  %v4777_v8 = vpop.f32.mrb[188].mxu0  ;;  %9248 = vmatprep.subr.bf16.mxu1 %v9711_v17 }
 0x482   : >> { %v4683_v48 = vadd.f32 %v4640_v61, %v12075_v9  ;;  %v12204_v36 = vadd.f32 %v4777_v8, %v4681_v35  ;;  %v8936_v41 = vpop.f32.mrb[189].mxu0  ;;  %v8904_v26 = vpop.f32.mrb[189].mxu1  ;;  %v9660_v9 = vld [vmem:[%s12567_s3 + $0x308] sm:$0xff]  }
 0x483   : >> { %v4780_v62 = vpop.f32.mrb[190].mxu0  ;;  %v4643_v5 = vpop.f32.mrb[190].mxu1 }
 0x484   : >> { %v8937_v28 = vpop.f32.mrb[191].mxu0  ;;  %v8905_v60 = vpop.f32.mrb[191].mxu1  ;;  %9249 = vmatpush3.bf16.msra.mxu1 %v9659_v39 }
 0x485   : >> { %9250 = vmatprep.subr.bf16.mxu1 %v9711_v17 }
 0x486   : >> { %9187 = vmatmul.mubr.msk.bf16.gmra.mrb[40].mxu1 %vm222_vm0, %v11926_v37  ;;  %9219 = vmatmul.mubr.msk.bf16.vlgmr.msra.gmra.mrb[40].mxu0 %vm222_vm0, %v11838_v50  ;;  %v9663_v50 = vld [vmem:[%s12567_s3 + $0x2f8] sm:$0xff]  }
 0x487   : >> { %9283 = vmatpush3.bf16.msra.mxu0 %v9658_v31  ;;  %9190 = vmatprep.mubr.msk.bf16.mxu1 %vm9712_vm10, %v9711_v17 }
 0x488   : >> { %9222 = vmatprep.mubr.msk.bf16.mxu0 %vm9712_vm10, %v9711_v17  ;;  %9284 = vmatprep.subr.bf16.mxu0 %v9711_v17 }
 0x489   : >> { %v4648_v52 = vpop.f32.mrb[192].mxu1  ;;  %v4785_v46 = vpop.f32.mrb[192].mxu0  ;;  %9251 = vmatpush3.bf16.msra.mxu1 %v9661_v58 }
 0x48a   : >> { %v4685_v40 = vadd.f32 %v4648_v52, %v12103_v59  ;;  %v12229_v34 = vadd.f32 %v4785_v46, %v4683_v48  ;;  %v8940_v12 = vpop.f32.mrb[193].mxu0  ;;  %v8908_v15 = vpop.f32.mrb[193].mxu1  ;;  %9252 = vmatprep.subr.bf16.mxu1 %v9711_v17  ;;  %v9664_v59 = vld [vmem:[%s12567_s3 + $0x318] sm:$0xff]  }
 0x48b   : >> { %v4788_v35 = vpop.f32.mrb[194].mxu0  ;;  %v4651_v32 = vpop.f32.mrb[194].mxu1  ;;  %9285 = vmatpush3.bf16.msra.mxu0 %v9660_v9 }
 0x48c   : >> { %v8941_v38 = vpop.f32.mrb[195].mxu0  ;;  %v8909_v53 = vpop.f32.mrb[195].mxu1  ;;  %9286 = vmatprep.subr.bf16.mxu0 %v9711_v17 }
 0x48d   : >> { %9253 = vmatpush3.bf16.msra.mxu1 %v9663_v50 }
 0x48e   : >> { %9191 = vmatmul.mubr.msk.bf16.gmra.mrb[44].mxu1 %vm222_vm0, %v11950_v1  ;;  %9223 = vmatmul.mubr.msk.bf16.gmra.mrb[44].mxu0 %vm222_vm0, %v11866_v49 }
 0x48f   : >> { %9194 = vmatprep.mubr.msk.bf16.mxu1 %vm9712_vm10, %v9711_v17  ;;  %9226 = vmatprep.mubr.msk.bf16.mxu0 %vm9712_vm10, %v9711_v17 }
 0x490   : >> { %9287 = vmatpush3.bf16.msra.mxu0 %v9662_v56  ;;  %9318 = vmatprep.subr.bf16.mxu1 %v9711_v17 }
 0x491   : >> { %v4656_v57 = vpop.f32.mrb[196].mxu1  ;;  %v4793_v13 = vpop.f32.mrb[196].mxu0  ;;  %9288 = vmatprep.subr.bf16.mxu0 %v9711_v17 }
 0x492   : >> { %v4687_v14 = vadd.f32 %v4656_v57, %v12122_v10  ;;  %v12250_v49 = vadd.f32 %v4793_v13, %v4685_v40  ;;  %v8944_v39 = vpop.f32.mrb[197].mxu0  ;;  %v8912_v61 = vpop.f32.mrb[197].mxu1 }
 0x493   : >> { %v4796_v8 = vpop.f32.mrb[198].mxu0  ;;  %v4659_v48 = vpop.f32.mrb[198].mxu1 }
 0x494   : >> { %v8945_v41 = vpop.f32.mrb[199].mxu0  ;;  %v8913_v26 = vpop.f32.mrb[199].mxu1  ;;  %9289 = vmatpush3.bf16.msra.mxu0 %v9664_v59 }
 0x495   : >> { %9354 = vmatprep.subr.bf16.mxu0 %v9711_v17 }
 0x496   : >> { %9195 = vmatmul.mubr.msk.bf16.gmra.mrb[48].mxu1 %vm222_vm0, %v11974_v51  ;;  %9227 = vmatmul.mubr.msk.bf16.gmra.mrb[48].mxu0 %vm222_vm0, %v11900_v0  ;;  %v5839_v0 = vshrl.u32 %v12158_v25, 16 }
 0x497   : >> { %9198 = vmatprep.mubr.msk.bf16.mxu1 %vm9712_vm10, %v9711_v17  ;;  %9230 = vmatprep.mubr.msk.bf16.mxu0 %vm9712_vm10, %v9711_v17 }
 0x499   : >> { %v4664_v10 = vpop.f32.mrb[200].mxu1  ;;  %v4801_v62 = vpop.f32.mrb[200].mxu0 }
 0x49a   : >> { %v4689_v5 = vadd.f32 %v4664_v10, %v12140_v44  ;;  %v12262_v31 = vadd.f32 %v4801_v62, %v4687_v14  ;;  %v8948_v28 = vpop.f32.mrb[201].mxu0  ;;  %v8916_v60 = vpop.f32.mrb[201].mxu1 }
 0x49b   : >> { %v4804_v58 = vpop.f32.mrb[202].mxu0  ;;  %v4667_v9 = vpop.f32.mrb[202].mxu1 }
 0x49c   : >> { %v8949_v52 = vpop.f32.mrb[203].mxu0  ;;  %v8917_v46 = vpop.f32.mrb[203].mxu1 }
 0x49d   : >> { %v9665_v46 = vld [vmem:[%s12567_s3 + $0x320] sm:$0xff]  }
 0x49e   : >> { %9199 = vmatmul.mubr.msk.bf16.gmra.mrb[52].mxu1 %vm222_vm0, %v12001_v2  ;;  %9231 = vmatmul.mubr.msk.bf16.gmra.mrb[52].mxu0 %vm222_vm0, %v11932_v11  ;;  %v12278_v11 = vrot.slane %v5839_v0, 7 }
 0x49f   : >> { %9202 = vmatprep.mubr.msk.bf16.mxu1 %vm9712_vm10, %v9711_v17  ;;  %9234 = vmatprep.mubr.msk.bf16.mxu0 %vm9712_vm10, %v9711_v17 }
 0x4a1   : >> { %v4672_v44 = vpop.f32.mrb[204].mxu1  ;;  %v4809_v50 = vpop.f32.mrb[204].mxu0 }
 0x4a2   : >> { %v4691_v40 = vadd.f32 %v4672_v44, %v12160_v29  ;;  %v12274_v12 = vadd.f32 %v4809_v50, %v4689_v5  ;;  %v8952_v15 = vpop.f32.mrb[205].mxu0  ;;  %v8920_v35 = vpop.f32.mrb[205].mxu1  ;;  %v5842_v29 = vor.u32 %v12278_v11, %v5678_v7 }
 0x4a3   : >> { %v4812_v32 = vpop.f32.mrb[206].mxu0  ;;  %v4675_v38 = vpop.f32.mrb[206].mxu1 }
 0x4a4   : >> { %v8953_v53 = vpop.f32.mrb[207].mxu0  ;;  %v8921_v56 = vpop.f32.mrb[207].mxu1  ;;  %v12296_v48 = vsel %vm2621_vm11, %v12005_v63, %v5842_v29 }
 0x4a5   : >> { %v9666_v53 = vld [vmem:[%s12567_s3 + $0x340] sm:$0xff]  }
 0x4a6   : >> { %9203 = vmatmul.mubr.msk.bf16.gmra.mrb[56].mxu1 %vm222_vm0, %v12024_v42  ;;  %9235 = vmatmul.mubr.msk.bf16.gmra.mrb[56].mxu0 %vm222_vm0, %v11956_v16 }
 0x4a7   : >> { %9206 = vmatprep.mubr.msk.bf16.mxu1 %vm9712_vm10, %v9711_v17  ;;  %9238 = vmatprep.mubr.msk.bf16.mxu0 %vm9712_vm10, %v9711_v17 }
 0x4a9   : >> { %v4817_v59 = vpop.f32.mrb[208].mxu0  ;;  %v4913_v57 = vpop.f32.mrb[208].mxu1 }
 0x4aa   : >> { %v12291_v13 = vadd.f32 %v4817_v59, %v4691_v40  ;;  %v4968_v14 = vadd.f32 %v4913_v57, %v12182_v55  ;;  %v8956_v39 = vpop.f32.mrb[209].mxu0  ;;  %v8968_v61 = vpop.f32.mrb[209].mxu1  ;;  %v9669_v59 = vld [vmem:[%s12567_s3 + $0x330] sm:$0xff]  }
 0x4ab   : >> { %v4820_v8 = vpop.f32.mrb[210].mxu0  ;;  %v4916_v41 = vpop.f32.mrb[210].mxu1 }
 0x4ac   : >> { %v8957_v26 = vpop.f32.mrb[211].mxu0  ;;  %v8969_v10 = vpop.f32.mrb[211].mxu1 }
 0x4ae   : >> { %9207 = vmatmul.mubr.msk.bf16.gmra.mrb[60].mxu1 %vm222_vm0, %v12296_v48  ;;  %9239 = vmatmul.mubr.msk.bf16.gmra.mrb[60].mxu0 %vm222_vm0, %v11980_v54 }
 0x4af   : >> { %9242 = vmatprep.mubr.msk.bf16.mxu0 %vm9712_vm10, %v9711_v17  ;;  %9254 = vmatprep.mubr.msk.bf16.mxu1 %vm9712_vm10, %v9711_v17 }
 0x4b1   : >> { %v4921_v7 = vpop.f32.mrb[212].mxu1  ;;  %v5051_v55 = vpop.f32.mrb[212].mxu0 }
 0x4b2   : >> { %v4970_v63 = vadd.f32 %v4921_v7, %v12204_v36  ;;  %v12307_v62 = vadd.f32 %v5051_v55, %v4968_v14  ;;  %v9004_v5 = vpop.f32.mrb[213].mxu0  ;;  %v8972_v28 = vpop.f32.mrb[213].mxu1  ;;  %v9667_v36 = vld [vmem:[%s12567_s3 + $0x328] sm:$0xff]  }
 0x4b3   : >> { %v5054_v60 = vpop.f32.mrb[214].mxu0  ;;  %v4924_v58 = vpop.f32.mrb[214].mxu1 }
 0x4b4   : >> { %v9005_v9 = vpop.f32.mrb[215].mxu0  ;;  %v8973_v52 = vpop.f32.mrb[215].mxu1 }
 0x4b6   : >> { %9243 = vmatmul.mubr.msk.bf16.gmra.mrb[64].mxu0 %vm222_vm0, %v12158_v25  ;;  %9255 = vmatmul.mubr.msk.bf16.vlgmr.msra.gmra.mrb[64].mxu1 %vm222_vm0, %v12079_v27 }
 0x4b7   : >> { %9258 = vmatprep.mubr.msk.bf16.mxu1 %vm9712_vm10, %v9711_v17  ;;  %9290 = vmatprep.mubr.msk.bf16.mxu0 %vm9712_vm10, %v9711_v17 }
 0x4b8   : >> { %9319 = vmatpush3.bf16.msra.mxu1 %v9665_v46 }
 0x4b9   : >> { %v4929_v44 = vpop.f32.mrb[216].mxu1  ;;  %v5059_v50 = vpop.f32.mrb[216].mxu0  ;;  %9320 = vmatprep.subr.bf16.mxu1 %v9711_v17 }
 0x4ba   : >> { %v4972_v40 = vadd.f32 %v4929_v44, %v12229_v34  ;;  %v12325_v15 = vadd.f32 %v5059_v50, %v4970_v63  ;;  %v9008_v27 = vpop.f32.mrb[217].mxu0  ;;  %v8976_v35 = vpop.f32.mrb[217].mxu1  ;;  %v9668_v34 = vld [vmem:[%s12567_s3 + $0x348] sm:$0xff]   ;;  %v9670_v63 = vld [vmem:[%s12567_s3 + $0x350] sm:$0xff]  }
 0x4bb   : >> { %v5062_v32 = vpop.f32.mrb[218].mxu0  ;;  %v4932_v38 = vpop.f32.mrb[218].mxu1 }
 0x4bc   : >> { %v9009_v56 = vpop.f32.mrb[219].mxu0  ;;  %v8977_v29 = vpop.f32.mrb[219].mxu1  ;;  %9321 = vmatpush3.bf16.msra.mxu1 %v9667_v36 }
 0x4bd   : >> { %9322 = vmatprep.subr.bf16.mxu1 %v9711_v17 }
 0x4be   : >> { %9259 = vmatmul.mubr.msk.bf16.gmra.mrb[68].mxu1 %vm222_vm0, %v12106_v45  ;;  %9291 = vmatmul.mubr.msk.bf16.vlgmr.msra.gmra.mrb[68].mxu0 %vm222_vm0, %v11926_v37  ;;  %v9671_v37 = vld [vmem:[%s12567_s3 + $0x338] sm:$0xff]  }
 0x4bf   : >> { %9355 = vmatpush3.bf16.msra.mxu0 %v9666_v53  ;;  %9262 = vmatprep.mubr.msk.bf16.mxu1 %vm9712_vm10, %v9711_v17 }
 0x4c0   : >> { %9294 = vmatprep.mubr.msk.bf16.mxu0 %vm9712_vm10, %v9711_v17  ;;  %9356 = vmatprep.subr.bf16.mxu0 %v9711_v17 }
 0x4c1   : >> { %v4937_v57 = vpop.f32.mrb[220].mxu1  ;;  %v5067_v14 = vpop.f32.mrb[220].mxu0  ;;  %9323 = vmatpush3.bf16.msra.mxu1 %v9669_v59 }
 0x4c2   : >> { %v4974_v39 = vadd.f32 %v4937_v57, %v12250_v49  ;;  %v12350_v61 = vadd.f32 %v5067_v14, %v4972_v40  ;;  %v9012_v8 = vpop.f32.mrb[221].mxu0  ;;  %v8980_v41 = vpop.f32.mrb[221].mxu1  ;;  %9324 = vmatprep.subr.bf16.mxu1 %v9711_v17  ;;  %v9672_v49 = vld [vmem:[%s12567_s3 + $0x358] sm:$0xff]  }
 0x4c3   : >> { %v5070_v26 = vpop.f32.mrb[222].mxu0  ;;  %v4940_v10 = vpop.f32.mrb[222].mxu1  ;;  %9357 = vmatpush3.bf16.msra.mxu0 %v9668_v34 }
 0x4c4   : >> { %v9013_v7 = vpop.f32.mrb[223].mxu0  ;;  %v8981_v55 = vpop.f32.mrb[223].mxu1  ;;  %9358 = vmatprep.subr.bf16.mxu0 %v9711_v17 }
 0x4c5   : >> { %9325 = vmatpush3.bf16.msra.mxu1 %v9671_v37 }
 0x4c6   : >> { %9263 = vmatmul.mubr.msk.bf16.gmra.mrb[72].mxu1 %vm222_vm0, %v12125_v47  ;;  %9295 = vmatmul.mubr.msk.bf16.gmra.mrb[72].mxu0 %vm222_vm0, %v11950_v1 }
 0x4c7   : >> { %9266 = vmatprep.mubr.msk.bf16.mxu1 %vm9712_vm10, %v9711_v17  ;;  %9298 = vmatprep.mubr.msk.bf16.mxu0 %vm9712_vm10, %v9711_v17 }
 0x4c8   : >> { %9359 = vmatpush3.bf16.msra.mxu0 %v9670_v63 }
 0x4c9   : >> { %v4945_v5 = vpop.f32.mrb[224].mxu1  ;;  %v5075_v28 = vpop.f32.mrb[224].mxu0  ;;  %9360 = vmatprep.subr.bf16.mxu0 %v9711_v17 }
 0x4ca   : >> { %v4976_v60 = vadd.f32 %v4945_v5, %v12262_v31  ;;  %v12370_v58 = vadd.f32 %v5075_v28, %v4974_v39  ;;  %v9016_v1 = vpop.f32.mrb[225].mxu0  ;;  %v8984_v9 = vpop.f32.mrb[225].mxu1 }
 0x4cb   : >> { %v5078_v52 = vpop.f32.mrb[226].mxu0  ;;  %v4948_v46 = vpop.f32.mrb[226].mxu1 }
 0x4cc   : >> { %v9017_v36 = vpop.f32.mrb[227].mxu0  ;;  %v8985_v44 = vpop.f32.mrb[227].mxu1  ;;  %9361 = vmatpush3.bf16.msra.mxu0 %v9672_v49 }
 0x4ce   : >> { %9267 = vmatmul.mubr.msk.bf16.gmra.mrb[76].mxu1 %vm222_vm0, %v12143_v33  ;;  %9299 = vmatmul.mubr.msk.bf16.gmra.mrb[76].mxu0 %vm222_vm0, %v11974_v51  ;;  %v12392_v51 = vld [vmem:[%s11814_s25 + $0x48] sm:$0xff] }
 0x4cf   : >> { %9270 = vmatprep.mubr.msk.bf16.mxu1 %vm9712_vm10, %v9711_v17  ;;  %9302 = vmatprep.mubr.msk.bf16.mxu0 %vm9712_vm10, %v9711_v17  ;;  %v6266_v7 = vshrl.u32 %v12392_v51, 16 }
 0x4d1   : >> { %v4953_v31 = vpop.f32.mrb[228].mxu1  ;;  %v5083_v50 = vpop.f32.mrb[228].mxu0 }
 0x4d2   : >> { %v4978_v40 = vadd.f32 %v4953_v31, %v12274_v12  ;;  %v12381_v27 = vadd.f32 %v5083_v50, %v4976_v60  ;;  %v9020_v35 = vpop.f32.mrb[229].mxu0  ;;  %v8988_v32 = vpop.f32.mrb[229].mxu1 }
 0x4d3   : >> { %v5086_v38 = vpop.f32.mrb[230].mxu0  ;;  %v4956_v53 = vpop.f32.mrb[230].mxu1 }
 0x4d4   : >> { %v9021_v56 = vpop.f32.mrb[231].mxu0  ;;  %v8989_v29 = vpop.f32.mrb[231].mxu1 }
 0x4d5   : >> { %v9673_v56 = vld [vmem:[%s11814_s25 + $0x18] sm:$0xff] }
 0x4d6   : >> { %9271 = vmatmul.mubr.msk.bf16.gmra.mrb[80].mxu1 %vm222_vm0, %v12164_v43  ;;  %9303 = vmatmul.mubr.msk.bf16.gmra.mrb[80].mxu0 %vm222_vm0, %v12001_v2  ;;  %v6123_v2 = vshll.u32 %v12392_v51, 16 }
 0x4d7   : >> { %9274 = vmatprep.mubr.msk.bf16.mxu1 %vm9712_vm10, %v9711_v17  ;;  %9306 = vmatprep.mubr.msk.bf16.mxu0 %vm9712_vm10, %v9711_v17 }
 0x4d8   : >> { %v12409_v10 = vrot.slane %v6123_v2, 1 }
 0x4d9   : >> { %v4961_v12 = vpop.f32.mrb[232].mxu1  ;;  %v5091_v59 = vpop.f32.mrb[232].mxu0 }
 0x4da   : >> { %v4980_v34 = vadd.f32 %v4961_v12, %v12291_v13  ;;  %v12395_v57 = vadd.f32 %v5091_v59, %v4978_v40  ;;  %v9024_v14 = vpop.f32.mrb[233].mxu0  ;;  %v8992_v37 = vpop.f32.mrb[233].mxu1  ;;  %v6121_v13 = vor.u32 %v5839_v0, %v12179_v4  ;;  %v6268_v4 = vrot.slane %v6266_v7, 7 }
 0x4db   : >> { %v5094_v39 = vpop.f32.mrb[234].mxu0  ;;  %v4964_v8 = vpop.f32.mrb[234].mxu1 }
 0x4dc   : >> { %v9025_v41 = vpop.f32.mrb[235].mxu0  ;;  %v8993_v26 = vpop.f32.mrb[235].mxu1  ;;  %v12417_v1 = vsel %vm2818_vm12, %v6121_v13, %v12409_v10 }
 0x4de   : >> { %9275 = vmatmul.mubr.msk.bf16.gmra.mrb[84].mxu1 %vm222_vm0, %v12186_v30  ;;  %9307 = vmatmul.mubr.msk.bf16.gmra.mrb[84].mxu0 %vm222_vm0, %v12024_v42 }
 0x4df   : >> { %9278 = vmatprep.mubr.msk.bf16.mxu1 %vm9712_vm10, %v9711_v17  ;;  %9310 = vmatprep.mubr.msk.bf16.mxu0 %vm9712_vm10, %v9711_v17 }
 0x4e1   : >> { %v5099_v55 = vpop.f32.mrb[236].mxu0  ;;  %v5196_v63 = vpop.f32.mrb[236].mxu1 }
 0x4e2   : >> { %v12412_v49 = vadd.f32 %v5099_v55, %v4980_v34  ;;  %v5251_v42 = vadd.f32 %v5196_v63, %v12307_v62  ;;  %v9028_v5 = vpop.f32.mrb[237].mxu0  ;;  %v9040_v28 = vpop.f32.mrb[237].mxu1  ;;  %v6269_v62 = vor.u32 %v6268_v4, %v6123_v2  ;;  %v9674_v2 = vld [vmem:[%s11814_s25 + $0x20] sm:$0xff] }
 0x4e3   : >> { %v5102_v60 = vpop.f32.mrb[238].mxu0  ;;  %v5199_v9 = vpop.f32.mrb[238].mxu1 }
 0x4e4   : >> { %v9029_v0 = vpop.f32.mrb[239].mxu0  ;;  %v9041_v52 = vpop.f32.mrb[239].mxu1  ;;  %v9675_v9 = vld [vmem:[%s11814_s25 + $0x28] sm:$0xff] }
 0x4e6   : >> { %9279 = vmatmul.mubr.msk.bf16.gmra.mrb[88].mxu1 %vm222_vm0, %v12417_v1  ;;  %9311 = vmatmul.mubr.msk.bf16.gmra.mrb[88].mxu0 %vm222_vm0, %v12296_v48  ;;  %v6270_v48 = vsel %vm2621_vm11, %v12278_v11, %v6269_v62 }
 0x4e7   : >> { %9314 = vmatprep.mubr.msk.bf16.mxu0 %vm9712_vm10, %v9711_v17  ;;  %9326 = vmatprep.mubr.msk.bf16.mxu1 %vm9712_vm10, %v9711_v17 }
 0x4e9   : >> { %v5204_v46 = vpop.f32.mrb[240].mxu1  ;;  %v5429_v36 = vpop.f32.mrb[240].mxu0 }
 0x4ea   : >> { %v5253_v44 = vadd.f32 %v5204_v46, %v12325_v15  ;;  %v12430_v31 = vadd.f32 %v5429_v36, %v5251_v42  ;;  %v9076_v50 = vpop.f32.mrb[241].mxu0  ;;  %v9044_v40 = vpop.f32.mrb[241].mxu1 }
 0x4eb   : >> { %v5432_v35 = vpop.f32.mrb[242].mxu0  ;;  %v5207_v32 = vpop.f32.mrb[242].mxu1 }
 0x4ec   : >> { %v9077_v38 = vpop.f32.mrb[243].mxu0  ;;  %v9045_v53 = vpop.f32.mrb[243].mxu1 }
 0x4ee   : >> { %9315 = vmatmul.mubr.msk.bf16.gmra.mrb[92].mxu0 %vm222_vm0, %v6270_v48  ;;  %9327 = vmatmul.mubr.msk.bf16.vlgmr.msra.gmra.mrb[92].mxu1 %vm222_vm0, %v9673_v56 }
 0x4ef   : >> { %9330 = vmatprep.mubr.msk.bf16.mxu1 %vm9712_vm10, %v9711_v17  ;;  %9362 = vmatprep.mubr.msk.bf16.mxu0 %vm9712_vm10, %v9711_v17 }
 0x4f1   : >> { %v5212_v15 = vpop.f32.mrb[244].mxu1  ;;  %v5437_v29 = vpop.f32.mrb[244].mxu0 }
 0x4f2   : >> { %v5255_v12 = vadd.f32 %v5212_v15, %v12350_v61  ;;  %v12442_v11 = vadd.f32 %v5437_v29, %v5253_v44  ;;  %v9080_v59 = vpop.f32.mrb[245].mxu0  ;;  %v9048_v34 = vpop.f32.mrb[245].mxu1 }
 0x4f3   : >> { %v5440_v14 = vpop.f32.mrb[246].mxu0  ;;  %v5215_v37 = vpop.f32.mrb[246].mxu1 }
 0x4f4   : >> { %v9081_v39 = vpop.f32.mrb[247].mxu0  ;;  %v9049_v8 = vpop.f32.mrb[247].mxu1 }
 0x4f6   : >> { %9331 = vmatmul.mubr.msk.bf16.gmra.mrb[96].mxu1 %vm222_vm0, %v9674_v2  ;;  %9363 = vmatmul.mubr.msk.bf16.vlgmr.msra.gmra.mrb[96].mxu0 %vm222_vm0, %v12106_v45 }
 0x4f7   : >> { %9334 = vmatprep.mubr.msk.bf16.mxu1 %vm9712_vm10, %v9711_v17  ;;  %9366 = vmatprep.mubr.msk.bf16.mxu0 %vm9712_vm10, %v9711_v17 }
 0x4f9   : >> { %v5220_v61 = vpop.f32.mrb[248].mxu1  ;;  %v5445_v41 = vpop.f32.mrb[248].mxu0 }
 0x4fa   : >> { %v5257_v26 = vadd.f32 %v5220_v61, %v12370_v58  ;;  %v12453_v13 = vadd.f32 %v5445_v41, %v5255_v12  ;;  %v9084_v55 = vpop.f32.mrb[249].mxu0  ;;  %v9052_v63 = vpop.f32.mrb[249].mxu1 }
 0x4fb   : >> { %v5448_v42 = vpop.f32.mrb[250].mxu0  ;;  %v5223_v5 = vpop.f32.mrb[250].mxu1 }
 0x4fc   : >> { %v9085_v28 = vpop.f32.mrb[251].mxu0  ;;  %v9053_v60 = vpop.f32.mrb[251].mxu1 }
 0x4fe   : >> { %9335 = vmatmul.mubr.msk.bf16.gmra.mrb[100].mxu1 %vm222_vm0, %v9675_v9  ;;  %9367 = vmatmul.mubr.msk.bf16.gmra.mrb[100].mxu0 %vm222_vm0, %v12125_v47 }
 0x4ff   : >> { %9338 = vmatprep.mubr.msk.bf16.mxu1 %vm9712_vm10, %v9711_v17  ;;  %9370 = vmatprep.mubr.msk.bf16.mxu0 %vm9712_vm10, %v9711_v17 }
 0x501   : >> { %v5228_v45 = vpop.f32.mrb[252].mxu1  ;;  %v5453_v58 = vpop.f32.mrb[252].mxu0 }
 0x502   : >> { %v5259_v4 = vadd.f32 %v5228_v45, %v12381_v27  ;;  %v12464_v0 = vadd.f32 %v5453_v58, %v5257_v26  ;;  %v9088_v52 = vpop.f32.mrb[253].mxu0  ;;  %v9056_v62 = vpop.f32.mrb[253].mxu1 }
 0x503   : >> { %v5456_v46 = vpop.f32.mrb[254].mxu0  ;;  %v5231_v36 = vpop.f32.mrb[254].mxu1 }
 0x504   : >> { %v9089_v44 = vpop.f32.mrb[255].mxu0  ;;  %v9057_v50 = vpop.f32.mrb[255].mxu1 }
 0x506   : >> { %9339 = vmatmul.mubr.msk.bf16.gmra.mrb[104].mxu1 %vm222_vm0, %v11956_v16  ;;  %9371 = vmatmul.mubr.msk.bf16.gmra.mrb[104].mxu0 %vm222_vm0, %v12143_v33 }
 0x507   : >> { %9342 = vmatprep.mubr.msk.bf16.mxu1 %vm9712_vm10, %v9711_v17  ;;  %9374 = vmatprep.mubr.msk.bf16.mxu0 %vm9712_vm10, %v9711_v17 }
 0x509   : >> { %v5236_v47 = vpop.f32.mrb[0].mxu1  ;;  %v5461_v27 = vpop.f32.mrb[0].mxu0 }
 0x50a   : >> { %v5261_v40 = vadd.f32 %v5236_v47, %v12395_v57  ;;  %v12475_v35 = vadd.f32 %v5461_v27, %v5259_v4  ;;  %v9092_v48 = vpop.f32.mrb[1].mxu0  ;;  %v9060_v32 = vpop.f32.mrb[1].mxu1 }
 0x50b   : >> { %v5464_v38 = vpop.f32.mrb[2].mxu0  ;;  %v5239_v53 = vpop.f32.mrb[2].mxu1 }
 0x50c   : >> { %v9093_v16 = vpop.f32.mrb[3].mxu0  ;;  %v9061_v56 = vpop.f32.mrb[3].mxu1 }
 0x50e   : >> { %9343 = vmatmul.mubr.msk.bf16.gmra.mrb[108].mxu1 %vm222_vm0, %v11980_v54  ;;  %9375 = vmatmul.mubr.msk.bf16.gmra.mrb[108].mxu0 %vm222_vm0, %v12164_v43  ;;  %v5280_v43 = vld [vmem:[%s11814_s25 + $0x50] sm:$0xff] }
 0x50f   : >> { %9346 = vmatprep.mubr.msk.bf16.mxu1 %vm9712_vm10, %v9711_v17  ;;  %9378 = vmatprep.mubr.msk.bf16.mxu0 %vm9712_vm10, %v9711_v17  ;;  %v6550_v55 = vshll.u32 %v5280_v43, 16 }
 0x511   : >> { %v5244_v33 = vpop.f32.mrb[4].mxu1  ;;  %v5469_v57 = vpop.f32.mrb[4].mxu0  ;;  %v6552_v42 = vrot.slane %v6550_v55, 1 }
 0x512   : >> { %v5263_v15 = vadd.f32 %v5244_v33, %v12412_v49  ;;  %v12486_v29 = vadd.f32 %v5469_v57, %v5261_v40  ;;  %v9096_v12 = vpop.f32.mrb[5].mxu0  ;;  %v9064_v59 = vpop.f32.mrb[5].mxu1 }
 0x513   : >> { %v5472_v34 = vpop.f32.mrb[6].mxu0  ;;  %v5247_v54 = vpop.f32.mrb[6].mxu1 }
 0x514   : >> { %v9097_v14 = vpop.f32.mrb[7].mxu0  ;;  %v9065_v37 = vpop.f32.mrb[7].mxu1 }
 0x516   : >> { %9347 = vmatmul.mubr.msk.bf16.gmra.mrb[112].mxu1 %vm222_vm0, %v12158_v25  ;;  %9379 = vmatmul.mubr.msk.bf16.gmra.mrb[112].mxu0 %vm222_vm0, %v12186_v30 }
 0x517   : >> { %9350 = vmatprep.mubr.msk.bf16.mxu1 %vm9712_vm10, %v9711_v17  ;;  %9382 = vmatprep.mubr.msk.bf16.mxu0 %vm9712_vm10, %v9711_v17 }
 0x519   : >> { %v5477_v49 = vpop.f32.mrb[8].mxu0  ;;  %v5579_v39 = vpop.f32.mrb[8].mxu1 }
 0x51a   : >> { %v12497_v8 = vadd.f32 %v5477_v49, %v5263_v15  ;;  %v5634_v2 = vadd.f32 %v5579_v39, %v12430_v31  ;;  %v9100_v61 = vpop.f32.mrb[9].mxu0  ;;  %v9112_v41 = vpop.f32.mrb[9].mxu1  ;;  %v6548_v31 = vor.u32 %v6266_v7, %v12409_v10 }
 0x51b   : >> { %v5480_v26 = vpop.f32.mrb[10].mxu0  ;;  %v5582_v25 = vpop.f32.mrb[10].mxu1 }
 0x51c   : >> { %v9101_v63 = vpop.f32.mrb[11].mxu0  ;;  %v9113_v30 = vpop.f32.mrb[11].mxu1  ;;  %v6553_v52 = vsel %vm2818_vm12, %v6548_v31, %v6552_v42 }
 0x51e   : >> { %9351 = vmatmul.mubr.msk.bf16.gmra.mrb[116].mxu1 %vm222_vm0, %v12392_v51  ;;  %9383 = vmatmul.mubr.msk.bf16.gmra.mrb[116].mxu0 %vm222_vm0, %v12417_v1 }
 0x51f   : >> { %9386 = vmatprep.mubr.msk.bf16.mxu0 %vm9712_vm10, %v9711_v17 }
 0x521   : >> { %v5587_v5 = vpop.f32.mrb[12].mxu1  ;;  %v5761_v28 = vpop.f32.mrb[12].mxu0 }
 0x522   : >> { %v5636_v60 = vadd.f32 %v5587_v5, %v12442_v11  ;;  %v5816_v9 = vadd.f32 %v5761_v28, %v5634_v2  ;;  %v9148_v45 = vpop.f32.mrb[13].mxu0  ;;  %v9116_v58 = vpop.f32.mrb[13].mxu1 }
 0x523   : >> { %v5764_v4 = vpop.f32.mrb[14].mxu0  ;;  %v5590_v62 = vpop.f32.mrb[14].mxu1 }
 0x524   : >> { %v9149_v1 = vpop.f32.mrb[15].mxu0  ;;  %v9117_v46 = vpop.f32.mrb[15].mxu1 }
 0x526   : >> { %9387 = vmatmul.mubr.msk.bf16.gmra.mrb[120].mxu0 %vm222_vm0, %v6553_v52 }
 0x529   : >> { %v5595_v17 = vpop.f32.mrb[16].mxu1  ;;  %v5769_v36 = vpop.f32.mrb[16].mxu0 }
 0x52a   : >> { %v5638_v51 = vadd.f32 %v5595_v17, %v12453_v13  ;;  %v5818_v10 = vadd.f32 %v5769_v36, %v5636_v60  ;;  %v9152_v7 = vpop.f32.mrb[17].mxu0  ;;  %v9120_v44 = vpop.f32.mrb[17].mxu1 }
 0x52b   : >> { %v5772_v50 = vpop.f32.mrb[18].mxu0  ;;  %v5598_v11 = vpop.f32.mrb[18].mxu1 }
 0x52c   : >> { %v9153_v47 = vpop.f32.mrb[19].mxu0  ;;  %v9121_v27 = vpop.f32.mrb[19].mxu1 }
 0x531   : >> { %v5603_v40 = vpop.f32.mrb[20].mxu1  ;;  %v5777_v48 = vpop.f32.mrb[20].mxu0 }
 0x532   : >> { %v5640_v32 = vadd.f32 %v5603_v40, %v12464_v0  ;;  %v5820_v38 = vadd.f32 %v5777_v48, %v5638_v51  ;;  %v9156_v53 = vpop.f32.mrb[21].mxu0  ;;  %v9124_v16 = vpop.f32.mrb[21].mxu1 }
 0x533   : >> { %v5780_v56 = vpop.f32.mrb[22].mxu0  ;;  %v5606_v33 = vpop.f32.mrb[22].mxu1 }
 0x534   : >> { %v9157_v57 = vpop.f32.mrb[23].mxu0  ;;  %v9125_v15 = vpop.f32.mrb[23].mxu1 }
 0x539   : >> { %v5611_v12 = vpop.f32.mrb[24].mxu1  ;;  %v5785_v13 = vpop.f32.mrb[24].mxu0 }
 0x53a   : >> { %v5642_v59 = vadd.f32 %v5611_v12, %v12475_v35  ;;  %v5822_v34 = vadd.f32 %v5785_v13, %v5640_v32  ;;  %v9160_v54 = vpop.f32.mrb[25].mxu0  ;;  %v9128_v14 = vpop.f32.mrb[25].mxu1 }
 0x53b   : >> { %v5788_v37 = vpop.f32.mrb[26].mxu0  ;;  %v5614_v43 = vpop.f32.mrb[26].mxu1 }
 0x53c   : >> { %v9161_v49 = vpop.f32.mrb[27].mxu0  ;;  %v9129_v39 = vpop.f32.mrb[27].mxu1 }
 0x541   : >> { %v5619_v2 = vpop.f32.mrb[28].mxu1  ;;  %v5793_v0 = vpop.f32.mrb[28].mxu0 }
 0x542   : >> { %v5644_v61 = vadd.f32 %v5619_v2, %v12486_v29  ;;  %v5824_v41 = vadd.f32 %v5793_v0, %v5642_v59  ;;  %v9164_v26 = vpop.f32.mrb[29].mxu0  ;;  %v9132_v25 = vpop.f32.mrb[29].mxu1 }
 0x543   : >> { %v5796_v55 = vpop.f32.mrb[30].mxu0  ;;  %v5622_v63 = vpop.f32.mrb[30].mxu1 }
 0x544   : >> { %v9165_v30 = vpop.f32.mrb[31].mxu0  ;;  %v9133_v31 = vpop.f32.mrb[31].mxu1 }
 0x549   : >> { %v5627_v42 = vpop.f32.mrb[32].mxu1  ;;  %v5801_v35 = vpop.f32.mrb[32].mxu0 }
 0x54a   : >> { %v5646_v5 = vadd.f32 %v5627_v42, %v12497_v8  ;;  %v5826_v28 = vadd.f32 %v5801_v35, %v5644_v61  ;;  %v9168_v60 = vpop.f32.mrb[33].mxu0  ;;  %v9136_v45 = vpop.f32.mrb[33].mxu1 }
 0x54b   : >> { %v5804_v58 = vpop.f32.mrb[34].mxu0  ;;  %v5630_v4 = vpop.f32.mrb[34].mxu1 }
 0x54c   : >> { %v9169_v52 = vpop.f32.mrb[35].mxu0  ;;  %v9137_v62 = vpop.f32.mrb[35].mxu1 }
 0x551   : >> { %v5809_v1 = vpop.f32.mrb[36].mxu0  ;;  %v5905_v29 = vpop.f32.mrb[36].mxu1 }
 0x552   : >> { %v5828_v46 = vadd.f32 %v5809_v1, %v5646_v5  ;;  %v5960_v17 = vadd.f32 %v5905_v29, %v5816_v9  ;;  %v9172_v36 = vpop.f32.mrb[37].mxu0  ;;  %v9184_v51 = vpop.f32.mrb[37].mxu1 }
 0x553   : >> { %v5812_v7 = vpop.f32.mrb[38].mxu0  ;;  %v5908_v44 = vpop.f32.mrb[38].mxu1 }
 0x554   : >> { %v9173_v50 = vpop.f32.mrb[39].mxu0  ;;  %v9185_v11 = vpop.f32.mrb[39].mxu1 }
 0x559   : >> { %v5913_v47 = vpop.f32.mrb[40].mxu1  ;;  %v6043_v27 = vpop.f32.mrb[40].mxu0 }
 0x55a   : >> { %v5962_v8 = vadd.f32 %v5913_v47, %v5818_v10  ;;  %v6098_v40 = vadd.f32 %v6043_v27, %v5960_v17  ;;  %v9220_v48 = vpop.f32.mrb[41].mxu0  ;;  %v9188_v32 = vpop.f32.mrb[41].mxu1 }
 0x55b   : >> { %v6046_v53 = vpop.f32.mrb[42].mxu0  ;;  %v5916_v16 = vpop.f32.mrb[42].mxu1 }
 0x55c   : >> { %v9221_v56 = vpop.f32.mrb[43].mxu0  ;;  %v9189_v33 = vpop.f32.mrb[43].mxu1 }
 0x561   : >> { %v5921_v57 = vpop.f32.mrb[44].mxu1  ;;  %v6051_v15 = vpop.f32.mrb[44].mxu0 }
 0x562   : >> { %v5964_v12 = vadd.f32 %v5921_v57, %v5820_v38  ;;  %v6100_v9 = vadd.f32 %v6051_v15, %v5962_v8  ;;  %v9224_v13 = vpop.f32.mrb[45].mxu0  ;;  %v9192_v59 = vpop.f32.mrb[45].mxu1 }
 0x563   : >> { %v6054_v54 = vpop.f32.mrb[46].mxu0  ;;  %v5924_v14 = vpop.f32.mrb[46].mxu1 }
 0x564   : >> { %v9225_v37 = vpop.f32.mrb[47].mxu0  ;;  %v9193_v43 = vpop.f32.mrb[47].mxu1 }
 0x569   : >> { %v5929_v49 = vpop.f32.mrb[48].mxu1  ;;  %v6059_v39 = vpop.f32.mrb[48].mxu0 }
 0x56a   : >> { %v5966_v10 = vadd.f32 %v5929_v49, %v5822_v34  ;;  %v6102_v2 = vadd.f32 %v6059_v39, %v5964_v12  ;;  %v9228_v0 = vpop.f32.mrb[49].mxu0  ;;  %v9196_v61 = vpop.f32.mrb[49].mxu1 }
 0x56b   : >> { %v6062_v26 = vpop.f32.mrb[50].mxu0  ;;  %v5932_v25 = vpop.f32.mrb[50].mxu1 }
 0x56c   : >> { %v9229_v55 = vpop.f32.mrb[51].mxu0  ;;  %v9197_v63 = vpop.f32.mrb[51].mxu1 }
 0x571   : >> { %v5937_v30 = vpop.f32.mrb[52].mxu1  ;;  %v6067_v31 = vpop.f32.mrb[52].mxu0 }
 0x572   : >> { %v5968_v38 = vadd.f32 %v5937_v30, %v5824_v41  ;;  %v6104_v42 = vadd.f32 %v6067_v31, %v5966_v10  ;;  %v9232_v35 = vpop.f32.mrb[53].mxu0  ;;  %v9200_v5 = vpop.f32.mrb[53].mxu1 }
 0x573   : >> { %v6070_v60 = vpop.f32.mrb[54].mxu0  ;;  %v5940_v45 = vpop.f32.mrb[54].mxu1 }
 0x574   : >> { %v9233_v58 = vpop.f32.mrb[55].mxu0  ;;  %v9201_v4 = vpop.f32.mrb[55].mxu1 }
 0x579   : >> { %v5945_v52 = vpop.f32.mrb[56].mxu1  ;;  %v6075_v62 = vpop.f32.mrb[56].mxu0 }
 0x57a   : >> { %v5970_v34 = vadd.f32 %v5945_v52, %v5826_v28  ;;  %v6106_v1 = vadd.f32 %v6075_v62, %v5968_v38  ;;  %v9236_v29 = vpop.f32.mrb[57].mxu0  ;;  %v9204_v17 = vpop.f32.mrb[57].mxu1 }
 0x57b   : >> { %v6078_v36 = vpop.f32.mrb[58].mxu0  ;;  %v5948_v51 = vpop.f32.mrb[58].mxu1 }
 0x57c   : >> { %v9237_v7 = vpop.f32.mrb[59].mxu0  ;;  %v9205_v44 = vpop.f32.mrb[59].mxu1 }
 0x581   : >> { %v5953_v50 = vpop.f32.mrb[60].mxu1  ;;  %v6083_v11 = vpop.f32.mrb[60].mxu0 }
 0x582   : >> { %v5972_v41 = vadd.f32 %v5953_v50, %v5828_v46  ;;  %v6108_v47 = vadd.f32 %v6083_v11, %v5970_v34  ;;  %v9240_v27 = vpop.f32.mrb[61].mxu0  ;;  %v9208_v8 = vpop.f32.mrb[61].mxu1 }
 0x583   : >> { %v6086_v48 = vpop.f32.mrb[62].mxu0  ;;  %v5956_v32 = vpop.f32.mrb[62].mxu1 }
 0x584   : >> { %v9241_v53 = vpop.f32.mrb[63].mxu0  ;;  %v9209_v16 = vpop.f32.mrb[63].mxu1 }
 0x589   : >> { %v6091_v56 = vpop.f32.mrb[64].mxu0  ;;  %v6188_v33 = vpop.f32.mrb[64].mxu1 }
 0x58a   : >> { %v6110_v28 = vadd.f32 %v6091_v56, %v5972_v41  ;;  %v6243_v57 = vadd.f32 %v6188_v33, %v6098_v40  ;;  %v9244_v15 = vpop.f32.mrb[65].mxu0  ;;  %v9256_v12 = vpop.f32.mrb[65].mxu1 }
 0x58b   : >> { %v6094_v13 = vpop.f32.mrb[66].mxu0  ;;  %v6191_v59 = vpop.f32.mrb[66].mxu1 }
 0x58c   : >> { %v9245_v54 = vpop.f32.mrb[67].mxu0  ;;  %v9257_v14 = vpop.f32.mrb[67].mxu1 }
 0x591   : >> { %v6196_v37 = vpop.f32.mrb[68].mxu1  ;;  %v6332_v43 = vpop.f32.mrb[68].mxu0 }
 0x592   : >> { %v6245_v46 = vadd.f32 %v6196_v37, %v6100_v9  ;;  %v6387_v49 = vadd.f32 %v6332_v43, %v6243_v57  ;;  %v9292_v39 = vpop.f32.mrb[69].mxu0  ;;  %v9260_v10 = vpop.f32.mrb[69].mxu1 }
 0x593   : >> { %v6335_v0 = vpop.f32.mrb[70].mxu0  ;;  %v6199_v61 = vpop.f32.mrb[70].mxu1 }
 0x594   : >> { %v9293_v26 = vpop.f32.mrb[71].mxu0  ;;  %v9261_v25 = vpop.f32.mrb[71].mxu1 }
 0x599   : >> { %v6204_v55 = vpop.f32.mrb[72].mxu1  ;;  %v6340_v63 = vpop.f32.mrb[72].mxu0 }
 0x59a   : >> { %v6247_v30 = vadd.f32 %v6204_v55, %v6102_v2  ;;  %v6389_v40 = vadd.f32 %v6340_v63, %v6245_v46  ;;  %v9296_v31 = vpop.f32.mrb[73].mxu0  ;;  %v9264_v38 = vpop.f32.mrb[73].mxu1 }
 0x59b   : >> { %v6343_v35 = vpop.f32.mrb[74].mxu0  ;;  %v6207_v5 = vpop.f32.mrb[74].mxu1 }
 0x59c   : >> { %v9297_v60 = vpop.f32.mrb[75].mxu0  ;;  %v9265_v45 = vpop.f32.mrb[75].mxu1 }
 0x5a1   : >> { %v6212_v58 = vpop.f32.mrb[76].mxu1  ;;  %v6348_v4 = vpop.f32.mrb[76].mxu0 }
 0x5a2   : >> { %v6249_v9 = vadd.f32 %v6212_v58, %v6104_v42  ;;  %v6391_v52 = vadd.f32 %v6348_v4, %v6247_v30  ;;  %v9300_v62 = vpop.f32.mrb[77].mxu0  ;;  %v9268_v34 = vpop.f32.mrb[77].mxu1 }
 0x5a3   : >> { %v6351_v29 = vpop.f32.mrb[78].mxu0  ;;  %v6215_v17 = vpop.f32.mrb[78].mxu1 }
 0x5a4   : >> { %v9301_v36 = vpop.f32.mrb[79].mxu0  ;;  %v9269_v51 = vpop.f32.mrb[79].mxu1 }
 0x5a9   : >> { %v6220_v7 = vpop.f32.mrb[80].mxu1  ;;  %v6356_v44 = vpop.f32.mrb[80].mxu0 }
 0x5aa   : >> { %v6251_v2 = vadd.f32 %v6220_v7, %v6106_v1  ;;  %v12517_v50 = vadd.f32 %v6356_v44, %v6249_v9  ;;  %v9304_v11 = vpop.f32.mrb[81].mxu0  ;;  %v9272_v41 = vpop.f32.mrb[81].mxu1 }
 0x5ab   : >> { %v6359_v27 = vpop.f32.mrb[82].mxu0  ;;  %v6223_v8 = vpop.f32.mrb[82].mxu1 }
 0x5ac   : >> { %v9305_v48 = vpop.f32.mrb[83].mxu0  ;;  %v9273_v32 = vpop.f32.mrb[83].mxu1 }
 0x5b1   : >> { %v6228_v53 = vpop.f32.mrb[84].mxu1  ;;  %v6364_v42 = vpop.f32.mrb[84].mxu0 }
 0x5b2   : >> { %v6253_v16 = vadd.f32 %v6228_v53, %v6108_v47  ;;  %v12519_v56 = vadd.f32 %v6364_v42, %v6251_v2  ;;  %v9308_v33 = vpop.f32.mrb[85].mxu0  ;;  %v9276_v57 = vpop.f32.mrb[85].mxu1 }
 0x5b3   : >> { %v6367_v15 = vpop.f32.mrb[86].mxu0  ;;  %v6231_v12 = vpop.f32.mrb[86].mxu1 }
 0x5b4   : >> { %v9309_v13 = vpop.f32.mrb[87].mxu0  ;;  %v9277_v59 = vpop.f32.mrb[87].mxu1 }
 0x5b9   : >> { %v6236_v1 = vpop.f32.mrb[88].mxu1  ;;  %v6372_v54 = vpop.f32.mrb[88].mxu0 }
 0x5ba   : >> { %v6255_v14 = vadd.f32 %v6236_v1, %v6110_v28  ;;  %v12521_v37 = vadd.f32 %v6372_v54, %v6253_v16  ;;  %v9312_v43 = vpop.f32.mrb[89].mxu0  ;;  %v9280_v46 = vpop.f32.mrb[89].mxu1 }
 0x5bb   : >> { %v6375_v39 = vpop.f32.mrb[90].mxu0  ;;  %v6239_v10 = vpop.f32.mrb[90].mxu1 }
 0x5bc   : >> { %v9313_v0 = vpop.f32.mrb[91].mxu0  ;;  %v9281_v61 = vpop.f32.mrb[91].mxu1 }
 0x5c1   : >> { %v6380_v47 = vpop.f32.mrb[92].mxu0  ;;  %v6470_v26 = vpop.f32.mrb[92].mxu1 }
 0x5c2   : >> { %v12523_v25 = vadd.f32 %v6380_v47, %v6255_v14  ;;  %v6525_v55 = vadd.f32 %v6470_v26, %v6387_v49  ;;  %v9316_v63 = vpop.f32.mrb[93].mxu0  ;;  %v9328_v30 = vpop.f32.mrb[93].mxu1 }
 0x5c3   : >> { %v6383_v31 = vpop.f32.mrb[94].mxu0  ;;  %v6473_v38 = vpop.f32.mrb[94].mxu1 }
 0x5c4   : >> { %v9317_v35 = vpop.f32.mrb[95].mxu0  ;;  %v9329_v5 = vpop.f32.mrb[95].mxu1 }
 0x5c9   : >> { %v6478_v28 = vpop.f32.mrb[96].mxu1  ;;  %v6615_v60 = vpop.f32.mrb[96].mxu0 }
 0x5ca   : >> { %v6527_v45 = vadd.f32 %v6478_v28, %v6389_v40  ;;  %v6670_v58 = vadd.f32 %v6615_v60, %v6525_v55  ;;  %v9364_v4 = vpop.f32.mrb[97].mxu0  ;;  %v9332_v9 = vpop.f32.mrb[97].mxu1 }
 0x5cb   : >> { %v6618_v62 = vpop.f32.mrb[98].mxu0  ;;  %v6481_v34 = vpop.f32.mrb[98].mxu1 }
 0x5cc   : >> { %v9365_v29 = vpop.f32.mrb[99].mxu0  ;;  %v9333_v17 = vpop.f32.mrb[99].mxu1  ;;  %v6690_v36 = vadd.f32 %v9949_v3, %v6670_v58 }
 0x5ce   : >> { %v6704_v8 = vmax.f32 %v6690_v36, 0.0 }
 0x5d0   : >> { %v6718_v42 = vsel %vm9968_vm1, %v6704_v8, 0.0 }
 0x5d1   : >> { %v6486_v51 = vpop.f32.mrb[100].mxu1  ;;  %v6623_v49 = vpop.f32.mrb[100].mxu0 }
 0x5d2   : >> { %v6529_v7 = vadd.f32 %v6486_v51, %v6391_v52  ;;  %v6672_v44 = vadd.f32 %v6623_v49, %v6527_v45  ;;  %v9368_v2 = vpop.f32.mrb[101].mxu0  ;;  %v9336_v11 = vpop.f32.mrb[101].mxu1 }
 0x5d3   : >> { %v6626_v41 = vpop.f32.mrb[102].mxu0  ;;  %v6489_v27 = vpop.f32.mrb[102].mxu1 }
 0x5d4   : >> { %v6692_v40 = vadd.f32 %v9949_v3, %v6672_v44  ;;  %v9369_v48 = vpop.f32.mrb[103].mxu0  ;;  %v9337_v32 = vpop.f32.mrb[103].mxu1 }
 0x5d6   : >> { %v6706_v53 = vmax.f32 %v6692_v40, 0.0 }
 0x5d8   : >> { %v6720_v16 = vsel %vm9972_vm2, %v6706_v53, 0.0 }
 0x5d9   : >> { %v6733_v33 = vadd.f32 %v6720_v16, %v6718_v42  ;;  %v6494_v57 = vpop.f32.mrb[104].mxu1  ;;  %v6631_v52 = vpop.f32.mrb[104].mxu0 }
 0x5da   : >> { %v6531_v15 = vadd.f32 %v6494_v57, %v12517_v50  ;;  %v6674_v12 = vadd.f32 %v6631_v52, %v6529_v7  ;;  %v9372_v13 = vpop.f32.mrb[105].mxu0  ;;  %v9340_v59 = vpop.f32.mrb[105].mxu1 }
 0x5db   : >> { %v6634_v1 = vpop.f32.mrb[106].mxu0  ;;  %v6497_v54 = vpop.f32.mrb[106].mxu1 }
 0x5dc   : >> { %v6694_v14 = vadd.f32 %v9949_v3, %v6674_v12  ;;  %v9373_v43 = vpop.f32.mrb[107].mxu0  ;;  %v9341_v46 = vpop.f32.mrb[107].mxu1 }
 0x5de   : >> { %v6708_v39 = vmax.f32 %v6694_v14, 0.0 }
 0x5e0   : >> { %v6722_v10 = vsel %vm9976_vm3, %v6708_v39, 0.0 }
 0x5e1   : >> { %v6735_v0 = vadd.f32 %v6733_v33, %v6722_v10  ;;  %v6502_v61 = vpop.f32.mrb[108].mxu1  ;;  %v6639_v47 = vpop.f32.mrb[108].mxu0 }
 0x5e2   : >> { %v6533_v26 = vadd.f32 %v6502_v61, %v12519_v56  ;;  %v6676_v55 = vadd.f32 %v6639_v47, %v6531_v15  ;;  %v9376_v50 = vpop.f32.mrb[109].mxu0  ;;  %v9344_v63 = vpop.f32.mrb[109].mxu1 }
 0x5e3   : >> { %v6642_v30 = vpop.f32.mrb[110].mxu0  ;;  %v6505_v31 = vpop.f32.mrb[110].mxu1 }
 0x5e4   : >> { %v6696_v38 = vadd.f32 %v9949_v3, %v6676_v55  ;;  %v9377_v35 = vpop.f32.mrb[111].mxu0  ;;  %v9345_v5 = vpop.f32.mrb[111].mxu1 }
 0x5e6   : >> { %v6710_v28 = vmax.f32 %v6696_v38, 0.0 }
 0x5e8   : >> { %v6724_v60 = vsel %vm9980_vm4, %v6710_v28, 0.0 }
 0x5e9   : >> { %v6737_v45 = vadd.f32 %v6735_v0, %v6724_v60  ;;  %v6510_v58 = vpop.f32.mrb[112].mxu1  ;;  %v6647_v4 = vpop.f32.mrb[112].mxu0 }
 0x5ea   : >> { %v6535_v9 = vadd.f32 %v6510_v58, %v12521_v37  ;;  %v6678_v62 = vadd.f32 %v6647_v4, %v6533_v26  ;;  %v9380_v56 = vpop.f32.mrb[113].mxu0  ;;  %v9348_v34 = vpop.f32.mrb[113].mxu1 }
 0x5eb   : >> { %v6650_v29 = vpop.f32.mrb[114].mxu0  ;;  %v6513_v17 = vpop.f32.mrb[114].mxu1 }
 0x5ec   : >> { %v6698_v36 = vadd.f32 %v9949_v3, %v6678_v62  ;;  %v9381_v51 = vpop.f32.mrb[115].mxu0  ;;  %v9349_v49 = vpop.f32.mrb[115].mxu1 }
 0x5ee   : >> { %v6712_v7 = vmax.f32 %v6698_v36, 0.0 }
 0x5f0   : >> { %v6726_v44 = vsel %vm9984_vm5, %v6712_v7, 0.0 }
 0x5f1   : >> { %v6739_v2 = vadd.f32 %v6737_v45, %v6726_v44  ;;  %v6518_v11 = vpop.f32.mrb[116].mxu1  ;;  %v6655_v41 = vpop.f32.mrb[116].mxu0 }
 0x5f2   : >> { %v6537_v27 = vadd.f32 %v6518_v11, %v12523_v25  ;;  %v6680_v8 = vadd.f32 %v6655_v41, %v6535_v9  ;;  %v9384_v37 = vpop.f32.mrb[117].mxu0  ;;  %v9352_v40 = vpop.f32.mrb[117].mxu1 }
 0x5f3   : >> { %v6658_v48 = vpop.f32.mrb[118].mxu0  ;;  %v6521_v32 = vpop.f32.mrb[118].mxu1 }
 0x5f4   : >> { %v6700_v53 = vadd.f32 %v9949_v3, %v6680_v8  ;;  %v9385_v42 = vpop.f32.mrb[119].mxu0  ;;  %v9353_v16 = vpop.f32.mrb[119].mxu1 }
 0x5f6   : >> { %v6714_v33 = vmax.f32 %v6700_v53, 0.0 }
 0x5f8   : >> { %v6728_v57 = vsel %vm9988_vm6, %v6714_v33, 0.0 }
 0x5f9   : >> { %v6741_v52 = vadd.f32 %v6739_v2, %v6728_v57  ;;  %v6663_v15 = vpop.f32.mrb[120].mxu0 }
 0x5fa   : >> { %v6682_v12 = vadd.f32 %v6663_v15, %v6537_v27  ;;  %v9388_v13 = vpop.f32.mrb[121].mxu0 }
 0x5fb   : >> { %v6666_v59 = vpop.f32.mrb[122].mxu0 }
 0x5fc   : >> { %v6702_v25 = vadd.f32 %v9949_v3, %v6682_v12  ;;  %v9389_v1 = vpop.f32.mrb[123].mxu0 }
 0x5fe   : >> { %v6716_v54 = vmax.f32 %v6702_v25, 0.0 }
 0x600   : >> { %v6730_v14 = vsel %vm9992_vm7, %v6716_v54, 0.0 }
 0x601   : >> { %v6743_v43 = vadd.f32 %v6741_v52, %v6730_v14 }
 0x603   : >> { %v6745_v46 = vrot.slane %v6743_v43, 4 }
 0x605   : >> { %v6746_v39 = vadd.f32 %v6745_v46, %v6743_v43 }
 0x607   : >> { %v6747_v10 = vrot.slane %v6746_v39, 2 }
 0x609   : >> { %v6748_v0 = vadd.f32 %v6747_v10, %v6746_v39 }
 0x60b   : >> { %v6749_v61 = vrot.slane %v6748_v0, 1  ;;  %2451 = sbr.rel (!%p2449_p5) target bundleno = 549 (0x225), region = 142 }
 0x60d   : >> { %v6750_v47 = vadd.f32 %v6749_v61, %v6748_v0 }
 0x60f   : >> { %v6751_v26 = vadd.f32 %v9702_v6, %v6750_v47  }
 0x611   : >> { %v12585_v6 = vmov %v6751_v26  ;;  %v6752_v55 = vmul.f32 (%p2449_p5), 0.0025510204, %v6751_v26 }
 0x613   : > { %6753 = vst [vmem:[%s220_s28] sm:$0x1] %v6752_v55 }
 0x614 PF: > { %s15_s18 = sadd.s32 1, %s9694_s18  }
 0x615   : > { %p12_p6 = scmp.ge.s32.totalorder %s15_s18, 4  }
 0x617   :  { %14 = sbr.rel (!%p12_p6) target bundleno = 1 (0x1), region = 153 }

</bundles_post_ra>
